<compile_context>
chip_gen: v6e
topology: v6e:2x2x1
jax: 0.10.0
libtpu: 0.0.40
codegen_flags: <defaults>
</compile_context>

<pallas_src>
import numpy as np

import jax
import jax.numpy as jnp
from jax import lax
from jax.experimental import pallas as pl
from jax.experimental.pallas import tpu as pltpu


C1P = 32                   # conv1 out channels padded 10 -> 32
C2P = 32                   # conv2 out channels padded 20 -> 32
K1 = 256                   # conv1 contraction: 5 kernel rows * 28 cols = 140 -> 256

# Lane-group orders so that 2x2 pooling == max(first half, second half).
_W1_ORDER = list(range(0, 24, 2)) + list(range(1, 24, 2))   # conv1 W_out order
_W2_ORDER = [0, 2, 4, 6, 1, 3, 5, 7]                        # conv2 W_out order
# conv1 output-row order: even rows (0,4,..20, 2,..22) then odd rows, so the
# H-pool is max(rows 0..11, rows 12..23) and pooled rows come out in the order
# [0,2,4,6,8,10, 1,3,5,7,9,11] that the conv2 slicing below assumes.
_H_OUT_ORDER = np.array([0, 4, 8, 12, 16, 20, 2, 6, 10, 14, 18, 22,
                         1, 5, 9, 13, 17, 21, 3, 7, 11, 15, 19, 23], np.int32)
_ROW_GATHER = np.stack([_H_OUT_ORDER + kh for kh in range(5)], axis=1)  # (24, 5)


# ----------------------------- fused kernel ---------------------------------

def _fused_kernel(x_ref, w1_ref, b1_ref, w2_ref, b2_ref,
                  wf1_ref, bf1_ref, wf2_ref, bf2_ref, out_ref,
                  a1_ref, acc2_ref):
    bt = out_ref.shape[0]

    # ---- conv1 + 2x2 pool + bias + relu -------------------------------------
    # Two K=256 Toeplitz matmuls: input rows 0..11 hold the 12 even conv1
    # output rows, rows 12..23 the 12 odd ones -> H-pool = max(even, odd);
    # W-pool = max of 384-lane halves (even/odd output columns).
    de = jnp.dot(x_ref[0:12, :, :].reshape(12 * bt, K1), w1_ref[...],
                 preferred_element_type=jnp.float32)            # (12*bt, 768)
    do = jnp.dot(x_ref[12:24, :, :].reshape(12 * bt, K1), w1_ref[...],
                 preferred_element_type=jnp.float32)
    v1 = jnp.maximum(de, do)                                    # pool over H
    v1 = jnp.maximum(v1[:, :12 * C1P], v1[:, 12 * C1P:])        # pool over W
    a1 = jnp.maximum(v1 + b1_ref[...], 0.0).astype(jnp.bfloat16)
    # rows = pooled H in order [0,2,4,6,8,10, 1,3,5,7,9,11]; lanes = (w, c)
    a1_ref[...] = a1.reshape(12, bt, 12 * C1P)

    # ---- conv2: 10 accumulating K=384 matmuls into a VMEM accumulator -------
    # M is split into two disjoint halves (even / odd conv2 output rows) so
    # the 2x2 H-pool is again max(first half, second half).
    for half in range(2):
        m0 = half * 4 * bt
        for kh in range(5):
            if (kh + half) % 2 == 0:
                s = (kh + half) // 2          # even pooled-row block of a1
            else:
                s = 6 + kh // 2               # odd pooled-row block of a1
            chunk = a1_ref[s:s + 4, :, :].reshape(4 * bt, 12 * C1P)
            d = jnp.dot(chunk, w2_ref[kh], preferred_element_type=jnp.float32)
            if kh == 0:
                acc2_ref[m0:m0 + 4 * bt, :] = d
            else:
                acc2_ref[m0:m0 + 4 * bt, :] += d

    # ---- pool2 (2x2) + bias + relu ------------------------------------------
    acc2 = acc2_ref[...]                                        # (8*bt, 256)
    v2 = jnp.maximum(acc2[:4 * bt], acc2[4 * bt:])              # pool over H
    v2 = jnp.maximum(v2[:, :4 * C2P], v2[:, 4 * C2P:])          # pool over W
    a2 = jnp.maximum(v2 + b2_ref[...], 0.0).astype(jnp.bfloat16)  # (4*bt, 128)

    # ---- fc1 (+relu); torch view(-1,320) permutation is folded into wf1 -----
    acc3 = jnp.dot(a2[0:bt], wf1_ref[0], preferred_element_type=jnp.float32)
    for i2 in range(1, 4):
        acc3 = acc3 + jnp.dot(a2[i2 * bt:(i2 + 1) * bt], wf1_ref[i2],
                              preferred_element_type=jnp.float32)
    h = jnp.maximum(acc3 + bf1_ref[...], 0.0).astype(jnp.bfloat16)   # (bt, 128)

    # ---- fc2 + log_softmax (padded lanes carry a -1e30 f32 bias -> exp()=0) --
    # NOTE: bf2_ref and logits must stay f32 so the -1e30 pad does not overflow.
    logits = jnp.dot(h, wf2_ref[...], preferred_element_type=jnp.float32)
    logits = logits + bf2_ref[...]                                   # (bt, 128)
    m = jnp.max(logits, axis=-1, keepdims=True)
    z = logits - m
    lse = jnp.log(jnp.sum(jnp.exp(z), axis=-1, keepdims=True))
    out_ref[...] = (z - lse).astype(out_ref.dtype)


# --------------------------- parameter preparation --------------------------

def prepare_params(params):
    """One-time prep: Toeplitz-expand conv weights, pad channels to lane-dense
    widths, fold the NCHW flatten permutation into fc1, cast to bf16."""
    w1 = params["w1"].astype(jnp.float32)      # (10, 1, 5, 5)
    w2 = params["w2"].astype(jnp.float32)      # (20, 10, 5, 5)
    wf1 = params["wf1"].astype(jnp.float32)    # (50, 320)
    wf2 = params["wf2"].astype(jnp.float32)    # (10, 50)

    # conv1 Toeplitz with the 5 kernel rows folded into one K=256 contraction:
    # contraction index = kh*28 + input_col (padded 140 -> 256).
    p1 = np.zeros((28, 24, 5), np.float32)
    for s, ow in enumerate(_W1_ORDER):
        for kw in range(5):
            p1[ow + kw, s, kw] = 1.0
    w1t = jnp.einsum("isv,ckv->kisc", jnp.asarray(p1), w1[:, 0])    # (5,28,24,10)
    w1t = jnp.pad(w1t, ((0, 0), (0, 0), (0, 0), (0, C1P - 10)))
    w1t = w1t.reshape(5 * 28, 24 * C1P)
    w1t = jnp.pad(w1t, ((0, K1 - 5 * 28), (0, 0))).astype(jnp.bfloat16)  # (256,768)

    # conv2 Toeplitz: (5, 12*C1P, 8 W_out groups * C2P)
    p2 = np.zeros((12, 8, 5), np.float32)
    for q, ow in enumerate(_W2_ORDER):
        for kw in range(5):
            p2[ow + kw, q, kw] = 1.0
    w2t = jnp.einsum("wqv,dckv->kwcqd", jnp.asarray(p2), w2)        # (5,12,10,8,20)
    w2t = jnp.pad(w2t, ((0, 0), (0, 0), (0, C1P - 10), (0, 0), (0, C2P - 20)))
    w2t = w2t.reshape(5, 12 * C1P, 8 * C2P).astype(jnp.bfloat16)

    # fc1 with the torch NCHW flatten (c*16 + h*4 + w) folded in: (4,128,128)
    idx = np.zeros((4, 4, 20), np.int32)
    for i2 in range(4):
        for j2 in range(4):
            for c2 in range(20):
                idx[i2, j2, c2] = c2 * 16 + i2 * 4 + j2
    wf1r = jnp.transpose(wf1[:, jnp.asarray(idx)], (1, 2, 3, 0))    # (4,4,20,50)
    wf1r = jnp.pad(wf1r, ((0, 0), (0, 0), (0, C2P - 20), (0, 78)))  # (4,4,32,128)
    wf1r = wf1r.reshape(4, 4 * C2P, 128).astype(jnp.bfloat16)

    wf2r = jnp.zeros((128, 128), jnp.float32).at[:50, :10].set(wf2.T)
    wf2r = wf2r.astype(jnp.bfloat16)

    b1r = jnp.tile(jnp.pad(params["b1"].astype(jnp.float32), (0, C1P - 10)), 12)[None]
    b2r = jnp.tile(jnp.pad(params["b2"].astype(jnp.float32), (0, C2P - 20)), 4)[None]
    bf1r = jnp.pad(params["bf1"].astype(jnp.float32), (0, 78))[None]
    bf2r = jnp.concatenate([params["bf2"].astype(jnp.float32),
                            jnp.full((118,), -1e30, jnp.float32)])[None]   # keep f32!

    return dict(w1t=w1t, b1r=b1r, w2t=w2t, b2r=b2r,
                wf1r=wf1r, bf1r=bf1r, wf2r=wf2r, bf2r=bf2r)


# ------------------------------ forward wrapper ------------------------------

def _batch_tile(n):
    # >= 16 keeps every bf16 intermediate (16,128)-tile aligned; 32 is the
    # default so realistic batches still yield >= 2 grid tiles (v7x megacore).
    return 16 if n <= 16 else 32


def net_forward(prep, x):
    """x: (N, 1, 28, 28) float32 -> (N, 10) float32 log-probabilities."""
    n = x.shape[0]
    bt = _batch_tile(n)
    n_pad = ((n + bt - 1) // bt) * bt
    n_tiles = n_pad // bt

    # Layout plumbing on the tiny input (wrapper-side XLA): gather the 5 input
    # rows each conv1 output row needs, pack them along the lane axis
    # (lane = kh*28 + col, padded to 256), order output rows even-then-odd so
    # the kernel's H-pool is a plain max, pad batch, cast to bf16.
    xs = x[:, 0]                                               # (N, 28, 28)
    xs = jnp.pad(xs, ((0, n_pad - n), (0, 0), (0, 0)))         # (n_pad, 28, 28)
    xe = xs[:, jnp.asarray(_ROW_GATHER), :]                    # (n_pad, 24, 5, 28)
    xe = xe.reshape(n_pad, 24, 5 * 28)
    xe = jnp.pad(xe, ((0, 0), (0, 0), (0, K1 - 5 * 28)))       # (n_pad, 24, 256)
    xt = jnp.transpose(xe, (1, 0, 2)).astype(jnp.bfloat16)     # (24, n_pad, 256)

    flops_tile = 2 * (2 * (12 * bt) * K1 * (24 * C1P)              # conv1
                      + 10 * (4 * bt) * (12 * C1P) * (8 * C2P)     # conv2
                      + 4 * bt * (4 * C2P) * 128                   # fc1
                      + bt * 128 * 128)                            # fc2
    weight_bytes = sum(int(np.prod(v.shape)) * v.dtype.itemsize for v in prep.values())
    cost = pl.CostEstimate(
        flops=flops_tile * n_tiles,
        transcendentals=(bt * 128 + bt) * n_tiles,
        bytes_accessed=int(xt.size) * 2 + weight_bytes + n_pad * 128 * 4)

    out = pl.pallas_call(
        _fused_kernel,
        out_shape=jax.ShapeDtypeStruct((n_pad, 128), jnp.float32),
        grid_spec=pltpu.PrefetchScalarGridSpec(
            num_scalar_prefetch=0,
            grid=(n_tiles,),
            in_specs=[
                pl.BlockSpec((24, bt, K1), lambda i: (0, i, 0)),          # packed image
                pl.BlockSpec((K1, 24 * C1P), lambda i: (0, 0)),           # conv1 weights
                pl.BlockSpec((1, 12 * C1P), lambda i: (0, 0)),            # conv1 bias
                pl.BlockSpec((5, 12 * C1P, 8 * C2P), lambda i: (0, 0, 0)),  # conv2 weights
                pl.BlockSpec((1, 4 * C2P), lambda i: (0, 0)),             # conv2 bias
                pl.BlockSpec((4, 4 * C2P, 128), lambda i: (0, 0, 0)),     # fc1 weights
                pl.BlockSpec((1, 128), lambda i: (0, 0)),                 # fc1 bias
                pl.BlockSpec((128, 128), lambda i: (0, 0)),               # fc2 weights
                pl.BlockSpec((1, 128), lambda i: (0, 0)),                 # fc2 bias
            ],
            out_specs=pl.BlockSpec((bt, 128), lambda i: (i, 0)),
            scratch_shapes=[
                pltpu.VMEM((12, bt, 12 * C1P), jnp.bfloat16),   # pooled conv1 act
                pltpu.VMEM((8 * bt, 8 * C2P), jnp.float32),     # conv2 accumulator
            ],
        ),
        compiler_params=pltpu.CompilerParams(
            dimension_semantics=("parallel",),
            vmem_limit_bytes=32 * 1024 * 1024),
        cost_estimate=cost,
    )(xt, prep["w1t"], prep["b1r"], prep["w2t"], prep["b2r"],
      prep["wf1r"], prep["bf1r"], prep["wf2r"], prep["bf2r"])

    return out[:n, :10]


# ---------------------- reference (pure JAX, f32) ----------------------------

def ref_forward(params, x):
    dn = ("NCHW", "OIHW", "NCHW")
    y = lax.conv_general_dilated(x, params["w1"], (1, 1), "VALID",
                                 dimension_numbers=dn) + params["b1"][None, :, None, None]
    y = lax.reduce_window(y, -jnp.inf, lax.max, (1, 1, 2, 2), (1, 1, 2, 2), "VALID")
    y = jnp.maximum(y, 0.0)
    y = lax.conv_general_dilated(y, params["w2"], (1, 1), "VALID",
                                 dimension_numbers=dn) + params["b2"][None, :, None, None]
    y = lax.reduce_window(y, -jnp.inf, lax.max, (1, 1, 2, 2), (1, 1, 2, 2), "VALID")
    y = jnp.maximum(y, 0.0)
    y = y.reshape(y.shape[0], 320)
    y = jnp.maximum(y @ params["wf1"].T + params["bf1"], 0.0)
    y = y @ params["wf2"].T + params["bf2"]
    return jax.nn.log_softmax(y, axis=1)


# ------------------------------ param init -----------------------------------

def init_params(key):
    ks = jax.random.split(key, 8)

    def unif(k, shape, fan_in):
        bound = 1.0 / jnp.sqrt(float(fan_in))
        return jax.random.uniform(k, shape, jnp.float32, -bound, bound)

    return {
        "w1": unif(ks[0], (10, 1, 5, 5), 1 * 5 * 5),
        "b1": unif(ks[1], (10,), 1 * 5 * 5),
        "w2": unif(ks[2], (20, 10, 5, 5), 10 * 5 * 5),
        "b2": unif(ks[3], (20,), 10 * 5 * 5),
        "wf1": unif(ks[4], (50, 320), 320),
        "bf1": unif(ks[5], (50,), 320),
        "wf2": unif(ks[6], (10, 50), 50),
        "bf2": unif(ks[7], (10,), 50),
    }


if __name__ == "__main__":
    key = jax.random.PRNGKey(0)
    pkey, xkey, xkey2 = jax.random.split(key, 3)
    params = init_params(pkey)
    prep = prepare_params(params)               # one-time weight prep (outside jit)

    fwd = jax.jit(net_forward)

    # Small batch (uses the 16-wide batch tile, single grid step).
    x = jax.random.normal(xkey, (2, 1, 28, 28), dtype=jnp.float32)
    out = jax.block_until_ready(fwd(prep, x))
    ref = ref_forward(params, x)
    assert out.shape == (2, 10), out.shape
    # bf16 MXU operands vs f32 reference -> modest tolerance.
    assert jnp.allclose(out, ref, atol=7e-2, rtol=7e-2), float(jnp.max(jnp.abs(out - ref)))
    assert jnp.allclose(jnp.exp(out).sum(axis=1), 1.0, atol=1e-3)

    # Larger batch (32-wide batch tile, 2 grid steps -> megacore-friendly path).
    xb = jax.random.normal(xkey2, (64, 1, 28, 28), dtype=jnp.float32)
    outb = jax.block_until_ready(fwd(prep, xb))
    refb = ref_forward(params, xb)
    assert outb.shape == (64, 10), outb.shape
    assert jnp.allclose(outb, refb, atol=1e-1, rtol=1e-1), float(jnp.max(jnp.abs(outb - refb)))
    assert jnp.allclose(jnp.exp(outb).sum(axis=1), 1.0, atol=1e-3)

    print("KERNEL_OK")
</pallas_src>

<mosaic_0001>
module attributes {stable_mosaic.version = 11 : i64} {
  func.func @_fused_kernel(%arg0: i32, %arg1: memref<24x16x256xbf16, #tpu.memory_space<vmem>>, %arg2: memref<256x768xbf16, #tpu.memory_space<vmem>>, %arg3: memref<1x384xf32, #tpu.memory_space<vmem>>, %arg4: memref<5x384x256xbf16, #tpu.memory_space<vmem>>, %arg5: memref<1x128xf32, #tpu.memory_space<vmem>>, %arg6: memref<4x128x128xbf16, #tpu.memory_space<vmem>>, %arg7: memref<1x128xf32, #tpu.memory_space<vmem>>, %arg8: memref<128x128xbf16, #tpu.memory_space<vmem>>, %arg9: memref<1x128xf32, #tpu.memory_space<vmem>>, %arg10: memref<16x128xf32, #tpu.memory_space<vmem>>, %arg11: memref<12x16x384xbf16, #tpu.memory_space<vmem>>, %arg12: memref<128x256xf32, #tpu.memory_space<vmem>>) attributes {dimension_semantics = [#tpu.dimension_semantics<parallel>], iteration_bounds = array<i64: 1>, scalar_prefetch = 0 : i64, scratch_operands = 2 : i64, tpu.core_type = #tpu.core_type<tc>, window_params = [{transform_indices = @transform_0, window_bounds = array<i64: 24, 16, 256>}, {pipeline_mode = #tpu.pipeline_mode<synchronous>, transform_indices = @transform_1, window_bounds = array<i64: 256, 768>}, {pipeline_mode = #tpu.pipeline_mode<synchronous>, transform_indices = @transform_2, window_bounds = array<i64: 1, 384>}, {pipeline_mode = #tpu.pipeline_mode<synchronous>, transform_indices = @transform_3, window_bounds = array<i64: 5, 384, 256>}, {pipeline_mode = #tpu.pipeline_mode<synchronous>, transform_indices = @transform_4, window_bounds = array<i64: 1, 128>}, {pipeline_mode = #tpu.pipeline_mode<synchronous>, transform_indices = @transform_5, window_bounds = array<i64: 4, 128, 128>}, {pipeline_mode = #tpu.pipeline_mode<synchronous>, transform_indices = @transform_6, window_bounds = array<i64: 1, 128>}, {pipeline_mode = #tpu.pipeline_mode<synchronous>, transform_indices = @transform_7, window_bounds = array<i64: 128, 128>}, {pipeline_mode = #tpu.pipeline_mode<synchronous>, transform_indices = @transform_8, window_bounds = array<i64: 1, 128>}, {transform_indices = @transform_9, window_bounds = array<i64: 16, 128>}]} {
    %c0 = arith.constant 0 : index
    %c0_0 = arith.constant 0 : index
    %c0_1 = arith.constant 0 : index
    %0 = vector.load %arg1[%c0, %c0_0, %c0_1] : memref<24x16x256xbf16, #tpu.memory_space<vmem>>, vector<12x16x256xbf16>
    %1 = vector.shape_cast %0 : vector<12x16x256xbf16> to vector<192x256xbf16>
    %c0_2 = arith.constant 0 : index
    %c0_3 = arith.constant 0 : index
    %2 = vector.load %arg2[%c0_2, %c0_3] : memref<256x768xbf16, #tpu.memory_space<vmem>>, vector<256x768xbf16>
    %cst = arith.constant dense<0.000000e+00> : vector<192x768xf32>
    %3 = tpu.matmul %1, %2, %cst {dimension_numbers = #tpu.dot_dimension_numbers<[1], [0], [0], [1], [0, 0, 1, 1], [], []>} : vector<192x256xbf16>, vector<256x768xbf16>, vector<192x768xf32> -> vector<192x768xf32>
    %c12 = arith.constant 12 : index
    %c0_4 = arith.constant 0 : index
    %c0_5 = arith.constant 0 : index
    %4 = vector.load %arg1[%c12, %c0_4, %c0_5] : memref<24x16x256xbf16, #tpu.memory_space<vmem>>, vector<12x16x256xbf16>
    %5 = vector.shape_cast %4 : vector<12x16x256xbf16> to vector<192x256xbf16>
    %c0_6 = arith.constant 0 : index
    %c0_7 = arith.constant 0 : index
    %6 = vector.load %arg2[%c0_6, %c0_7] : memref<256x768xbf16, #tpu.memory_space<vmem>>, vector<256x768xbf16>
    %cst_8 = arith.constant dense<0.000000e+00> : vector<192x768xf32>
    %7 = tpu.matmul %5, %6, %cst_8 {dimension_numbers = #tpu.dot_dimension_numbers<[1], [0], [0], [1], [0, 0, 1, 1], [], []>} : vector<192x256xbf16>, vector<256x768xbf16>, vector<192x768xf32> -> vector<192x768xf32>
    %8 = arith.maximumf %3, %7 : vector<192x768xf32>
    %9 = vector.extract_strided_slice %8 {offsets = [0, 0], sizes = [192, 384], strides = [1, 1]} : vector<192x768xf32> to vector<192x384xf32>
    %10 = vector.extract_strided_slice %8 {offsets = [0, 384], sizes = [192, 384], strides = [1, 1]} : vector<192x768xf32> to vector<192x384xf32>
    %11 = arith.maximumf %9, %10 : vector<192x384xf32>
    %c0_9 = arith.constant 0 : index
    %c0_10 = arith.constant 0 : index
    %12 = vector.load %arg3[%c0_9, %c0_10] : memref<1x384xf32, #tpu.memory_space<vmem>>, vector<1x384xf32>
    %13 = vector.broadcast %12 : vector<1x384xf32> to vector<192x384xf32>
    %14 = arith.addf %11, %13 : vector<192x384xf32>
    %cst_11 = arith.constant 0.000000e+00 : f32
    %15 = vector.broadcast %cst_11 : f32 to vector<192x384xf32>
    %16 = arith.maximumf %14, %15 : vector<192x384xf32>
    %17 = arith.truncf %16 : vector<192x384xf32> to vector<192x384xbf16>
    %18 = vector.shape_cast %17 : vector<192x384xbf16> to vector<12x16x384xbf16>
    %c0_12 = arith.constant 0 : index
    %c0_13 = arith.constant 0 : index
    %c0_14 = arith.constant 0 : index
    %19 = vector.load %arg11[%c0_12, %c0_13, %c0_14] : memref<12x16x384xbf16, #tpu.memory_space<vmem>>, vector<12x16x384xbf16>
    tpu.vector_store %arg11[%c0_12, %c0_13, %c0_14], %18 {strides = array<i32>} : memref<12x16x384xbf16, #tpu.memory_space<vmem>>, vector<12x16x384xbf16>,
    %c0_15 = arith.constant 0 : index
    %c0_16 = arith.constant 0 : index
    %c0_17 = arith.constant 0 : index
    %20 = vector.load %arg11[%c0_15, %c0_16, %c0_17] : memref<12x16x384xbf16, #tpu.memory_space<vmem>>, vector<4x16x384xbf16>
    %21 = vector.shape_cast %20 : vector<4x16x384xbf16> to vector<64x384xbf16>
    %c0_18 = arith.constant 0 : index
    %c0_19 = arith.constant 0 : index
    %c0_20 = arith.constant 0 : index
    %22 = vector.load %arg4[%c0_18, %c0_19, %c0_20] : memref<5x384x256xbf16, #tpu.memory_space<vmem>>, vector<1x384x256xbf16>
    %23 = vector.shape_cast %22 : vector<1x384x256xbf16> to vector<384x256xbf16>
    %cst_21 = arith.constant dense<0.000000e+00> : vector<64x256xf32>
    %24 = tpu.matmul %21, %23, %cst_21 {dimension_numbers = #tpu.dot_dimension_numbers<[1], [0], [0], [1], [0, 0, 1, 1], [], []>} : vector<64x384xbf16>, vector<384x256xbf16>, vector<64x256xf32> -> vector<64x256xf32>
    %c0_22 = arith.constant 0 : index
    %c0_23 = arith.constant 0 : index
    %25 = vector.load %arg12[%c0_22, %c0_23] : memref<128x256xf32, #tpu.memory_space<vmem>>, vector<64x256xf32>
    tpu.vector_store %arg12[%c0_22, %c0_23], %24 {strides = array<i32>} : memref<128x256xf32, #tpu.memory_space<vmem>>, vector<64x256xf32>,
    %c6 = arith.constant 6 : index
    %c0_24 = arith.constant 0 : index
    %c0_25 = arith.constant 0 : index
    %26 = vector.load %arg11[%c6, %c0_24, %c0_25] : memref<12x16x384xbf16, #tpu.memory_space<vmem>>, vector<4x16x384xbf16>
    %27 = vector.shape_cast %26 : vector<4x16x384xbf16> to vector<64x384xbf16>
    %c1 = arith.constant 1 : index
    %c0_26 = arith.constant 0 : index
    %c0_27 = arith.constant 0 : index
    %28 = vector.load %arg4[%c1, %c0_26, %c0_27] : memref<5x384x256xbf16, #tpu.memory_space<vmem>>, vector<1x384x256xbf16>
    %29 = vector.shape_cast %28 : vector<1x384x256xbf16> to vector<384x256xbf16>
    %cst_28 = arith.constant dense<0.000000e+00> : vector<64x256xf32>
    %30 = tpu.matmul %27, %29, %cst_28 {dimension_numbers = #tpu.dot_dimension_numbers<[1], [0], [0], [1], [0, 0, 1, 1], [], []>} : vector<64x384xbf16>, vector<384x256xbf16>, vector<64x256xf32> -> vector<64x256xf32>
    %c0_29 = arith.constant 0 : index
    %c0_30 = arith.constant 0 : index
    %31 = vector.load %arg12[%c0_29, %c0_30] : memref<128x256xf32, #tpu.memory_space<vmem>>, vector<64x256xf32>
    %32 = arith.addf %31, %30 : vector<64x256xf32>
    %c0_31 = arith.constant 0 : index
    %c0_32 = arith.constant 0 : index
    %33 = vector.load %arg12[%c0_31, %c0_32] : memref<128x256xf32, #tpu.memory_space<vmem>>, vector<64x256xf32>
    tpu.vector_store %arg12[%c0_31, %c0_32], %32 {strides = array<i32>} : memref<128x256xf32, #tpu.memory_space<vmem>>, vector<64x256xf32>,
    %c1_33 = arith.constant 1 : index
    %c0_34 = arith.constant 0 : index
    %c0_35 = arith.constant 0 : index
    %34 = vector.load %arg11[%c1_33, %c0_34, %c0_35] : memref<12x16x384xbf16, #tpu.memory_space<vmem>>, vector<4x16x384xbf16>
    %35 = vector.shape_cast %34 : vector<4x16x384xbf16> to vector<64x384xbf16>
    %c2 = arith.constant 2 : index
    %c0_36 = arith.constant 0 : index
    %c0_37 = arith.constant 0 : index
    %36 = vector.load %arg4[%c2, %c0_36, %c0_37] : memref<5x384x256xbf16, #tpu.memory_space<vmem>>, vector<1x384x256xbf16>
    %37 = vector.shape_cast %36 : vector<1x384x256xbf16> to vector<384x256xbf16>
    %cst_38 = arith.constant dense<0.000000e+00> : vector<64x256xf32>
    %38 = tpu.matmul %35, %37, %cst_38 {dimension_numbers = #tpu.dot_dimension_numbers<[1], [0], [0], [1], [0, 0, 1, 1], [], []>} : vector<64x384xbf16>, vector<384x256xbf16>, vector<64x256xf32> -> vector<64x256xf32>
    %c0_39 = arith.constant 0 : index
    %c0_40 = arith.constant 0 : index
    %39 = vector.load %arg12[%c0_39, %c0_40] : memref<128x256xf32, #tpu.memory_space<vmem>>, vector<64x256xf32>
    %40 = arith.addf %39, %38 : vector<64x256xf32>
    %c0_41 = arith.constant 0 : index
    %c0_42 = arith.constant 0 : index
    %41 = vector.load %arg12[%c0_41, %c0_42] : memref<128x256xf32, #tpu.memory_space<vmem>>, vector<64x256xf32>
    tpu.vector_store %arg12[%c0_41, %c0_42], %40 {strides = array<i32>} : memref<128x256xf32, #tpu.memory_space<vmem>>, vector<64x256xf32>,
    %c7 = arith.constant 7 : index
    %c0_43 = arith.constant 0 : index
    %c0_44 = arith.constant 0 : index
    %42 = vector.load %arg11[%c7, %c0_43, %c0_44] : memref<12x16x384xbf16, #tpu.memory_space<vmem>>, vector<4x16x384xbf16>
    %43 = vector.shape_cast %42 : vector<4x16x384xbf16> to vector<64x384xbf16>
    %c3 = arith.constant 3 : index
    %c0_45 = arith.constant 0 : index
    %c0_46 = arith.constant 0 : index
    %44 = vector.load %arg4[%c3, %c0_45, %c0_46] : memref<5x384x256xbf16, #tpu.memory_space<vmem>>, vector<1x384x256xbf16>
    %45 = vector.shape_cast %44 : vector<1x384x256xbf16> to vector<384x256xbf16>
    %cst_47 = arith.constant dense<0.000000e+00> : vector<64x256xf32>
    %46 = tpu.matmul %43, %45, %cst_47 {dimension_numbers = #tpu.dot_dimension_numbers<[1], [0], [0], [1], [0, 0, 1, 1], [], []>} : vector<64x384xbf16>, vector<384x256xbf16>, vector<64x256xf32> -> vector<64x256xf32>
    %c0_48 = arith.constant 0 : index
    %c0_49 = arith.constant 0 : index
    %47 = vector.load %arg12[%c0_48, %c0_49] : memref<128x256xf32, #tpu.memory_space<vmem>>, vector<64x256xf32>
    %48 = arith.addf %47, %46 : vector<64x256xf32>
    %c0_50 = arith.constant 0 : index
    %c0_51 = arith.constant 0 : index
    %49 = vector.load %arg12[%c0_50, %c0_51] : memref<128x256xf32, #tpu.memory_space<vmem>>, vector<64x256xf32>
    tpu.vector_store %arg12[%c0_50, %c0_51], %48 {strides = array<i32>} : memref<128x256xf32, #tpu.memory_space<vmem>>, vector<64x256xf32>,
    %c2_52 = arith.constant 2 : index
    %c0_53 = arith.constant 0 : index
    %c0_54 = arith.constant 0 : index
    %50 = vector.load %arg11[%c2_52, %c0_53, %c0_54] : memref<12x16x384xbf16, #tpu.memory_space<vmem>>, vector<4x16x384xbf16>
    %51 = vector.shape_cast %50 : vector<4x16x384xbf16> to vector<64x384xbf16>
    %c4 = arith.constant 4 : index
    %c0_55 = arith.constant 0 : index
    %c0_56 = arith.constant 0 : index
    %52 = vector.load %arg4[%c4, %c0_55, %c0_56] : memref<5x384x256xbf16, #tpu.memory_space<vmem>>, vector<1x384x256xbf16>
    %53 = vector.shape_cast %52 : vector<1x384x256xbf16> to vector<384x256xbf16>
    %cst_57 = arith.constant dense<0.000000e+00> : vector<64x256xf32>
    %54 = tpu.matmul %51, %53, %cst_57 {dimension_numbers = #tpu.dot_dimension_numbers<[1], [0], [0], [1], [0, 0, 1, 1], [], []>} : vector<64x384xbf16>, vector<384x256xbf16>, vector<64x256xf32> -> vector<64x256xf32>
    %c0_58 = arith.constant 0 : index
    %c0_59 = arith.constant 0 : index
    %55 = vector.load %arg12[%c0_58, %c0_59] : memref<128x256xf32, #tpu.memory_space<vmem>>, vector<64x256xf32>
    %56 = arith.addf %55, %54 : vector<64x256xf32>
    %c0_60 = arith.constant 0 : index
    %c0_61 = arith.constant 0 : index
    %57 = vector.load %arg12[%c0_60, %c0_61] : memref<128x256xf32, #tpu.memory_space<vmem>>, vector<64x256xf32>
    tpu.vector_store %arg12[%c0_60, %c0_61], %56 {strides = array<i32>} : memref<128x256xf32, #tpu.memory_space<vmem>>, vector<64x256xf32>,
    %c6_62 = arith.constant 6 : index
    %c0_63 = arith.constant 0 : index
    %c0_64 = arith.constant 0 : index
    %58 = vector.load %arg11[%c6_62, %c0_63, %c0_64] : memref<12x16x384xbf16, #tpu.memory_space<vmem>>, vector<4x16x384xbf16>
    %59 = vector.shape_cast %58 : vector<4x16x384xbf16> to vector<64x384xbf16>
    %c0_65 = arith.constant 0 : index
    %c0_66 = arith.constant 0 : index
    %c0_67 = arith.constant 0 : index
    %60 = vector.load %arg4[%c0_65, %c0_66, %c0_67] : memref<5x384x256xbf16, #tpu.memory_space<vmem>>, vector<1x384x256xbf16>
    %61 = vector.shape_cast %60 : vector<1x384x256xbf16> to vector<384x256xbf16>
    %cst_68 = arith.constant dense<0.000000e+00> : vector<64x256xf32>
    %62 = tpu.matmul %59, %61, %cst_68 {dimension_numbers = #tpu.dot_dimension_numbers<[1], [0], [0], [1], [0, 0, 1, 1], [], []>} : vector<64x384xbf16>, vector<384x256xbf16>, vector<64x256xf32> -> vector<64x256xf32>
    %c64 = arith.constant 64 : index
    %c0_69 = arith.constant 0 : index
    %63 = vector.load %arg12[%c64, %c0_69] : memref<128x256xf32, #tpu.memory_space<vmem>>, vector<64x256xf32>
    tpu.vector_store %arg12[%c64, %c0_69], %62 {strides = array<i32>} : memref<128x256xf32, #tpu.memory_space<vmem>>, vector<64x256xf32>,
    %c1_70 = arith.constant 1 : index
    %c0_71 = arith.constant 0 : index
    %c0_72 = arith.constant 0 : index
    %64 = vector.load %arg11[%c1_70, %c0_71, %c0_72] : memref<12x16x384xbf16, #tpu.memory_space<vmem>>, vector<4x16x384xbf16>
    %65 = vector.shape_cast %64 : vector<4x16x384xbf16> to vector<64x384xbf16>
    %c1_73 = arith.constant 1 : index
    %c0_74 = arith.constant 0 : index
    %c0_75 = arith.constant 0 : index
    %66 = vector.load %arg4[%c1_73, %c0_74, %c0_75] : memref<5x384x256xbf16, #tpu.memory_space<vmem>>, vector<1x384x256xbf16>
    %67 = vector.shape_cast %66 : vector<1x384x256xbf16> to vector<384x256xbf16>
    %cst_76 = arith.constant dense<0.000000e+00> : vector<64x256xf32>
    %68 = tpu.matmul %65, %67, %cst_76 {dimension_numbers = #tpu.dot_dimension_numbers<[1], [0], [0], [1], [0, 0, 1, 1], [], []>} : vector<64x384xbf16>, vector<384x256xbf16>, vector<64x256xf32> -> vector<64x256xf32>
    %c64_77 = arith.constant 64 : index
    %c0_78 = arith.constant 0 : index
    %69 = vector.load %arg12[%c64_77, %c0_78] : memref<128x256xf32, #tpu.memory_space<vmem>>, vector<64x256xf32>
    %70 = arith.addf %69, %68 : vector<64x256xf32>
    %c64_79 = arith.constant 64 : index
    %c0_80 = arith.constant 0 : index
    %71 = vector.load %arg12[%c64_79, %c0_80] : memref<128x256xf32, #tpu.memory_space<vmem>>, vector<64x256xf32>
    tpu.vector_store %arg12[%c64_79, %c0_80], %70 {strides = array<i32>} : memref<128x256xf32, #tpu.memory_space<vmem>>, vector<64x256xf32>,
    %c7_81 = arith.constant 7 : index
    %c0_82 = arith.constant 0 : index
    %c0_83 = arith.constant 0 : index
    %72 = vector.load %arg11[%c7_81, %c0_82, %c0_83] : memref<12x16x384xbf16, #tpu.memory_space<vmem>>, vector<4x16x384xbf16>
    %73 = vector.shape_cast %72 : vector<4x16x384xbf16> to vector<64x384xbf16>
    %c2_84 = arith.constant 2 : index
    %c0_85 = arith.constant 0 : index
    %c0_86 = arith.constant 0 : index
    %74 = vector.load %arg4[%c2_84, %c0_85, %c0_86] : memref<5x384x256xbf16, #tpu.memory_space<vmem>>, vector<1x384x256xbf16>
    %75 = vector.shape_cast %74 : vector<1x384x256xbf16> to vector<384x256xbf16>
    %cst_87 = arith.constant dense<0.000000e+00> : vector<64x256xf32>
    %76 = tpu.matmul %73, %75, %cst_87 {dimension_numbers = #tpu.dot_dimension_numbers<[1], [0], [0], [1], [0, 0, 1, 1], [], []>} : vector<64x384xbf16>, vector<384x256xbf16>, vector<64x256xf32> -> vector<64x256xf32>
    %c64_88 = arith.constant 64 : index
    %c0_89 = arith.constant 0 : index
    %77 = vector.load %arg12[%c64_88, %c0_89] : memref<128x256xf32, #tpu.memory_space<vmem>>, vector<64x256xf32>
    %78 = arith.addf %77, %76 : vector<64x256xf32>
    %c64_90 = arith.constant 64 : index
    %c0_91 = arith.constant 0 : index
    %79 = vector.load %arg12[%c64_90, %c0_91] : memref<128x256xf32, #tpu.memory_space<vmem>>, vector<64x256xf32>
    tpu.vector_store %arg12[%c64_90, %c0_91], %78 {strides = array<i32>} : memref<128x256xf32, #tpu.memory_space<vmem>>, vector<64x256xf32>,
    %c2_92 = arith.constant 2 : index
    %c0_93 = arith.constant 0 : index
    %c0_94 = arith.constant 0 : index
    %80 = vector.load %arg11[%c2_92, %c0_93, %c0_94] : memref<12x16x384xbf16, #tpu.memory_space<vmem>>, vector<4x16x384xbf16>
    %81 = vector.shape_cast %80 : vector<4x16x384xbf16> to vector<64x384xbf16>
    %c3_95 = arith.constant 3 : index
    %c0_96 = arith.constant 0 : index
    %c0_97 = arith.constant 0 : index
    %82 = vector.load %arg4[%c3_95, %c0_96, %c0_97] : memref<5x384x256xbf16, #tpu.memory_space<vmem>>, vector<1x384x256xbf16>
    %83 = vector.shape_cast %82 : vector<1x384x256xbf16> to vector<384x256xbf16>
    %cst_98 = arith.constant dense<0.000000e+00> : vector<64x256xf32>
    %84 = tpu.matmul %81, %83, %cst_98 {dimension_numbers = #tpu.dot_dimension_numbers<[1], [0], [0], [1], [0, 0, 1, 1], [], []>} : vector<64x384xbf16>, vector<384x256xbf16>, vector<64x256xf32> -> vector<64x256xf32>
    %c64_99 = arith.constant 64 : index
    %c0_100 = arith.constant 0 : index
    %85 = vector.load %arg12[%c64_99, %c0_100] : memref<128x256xf32, #tpu.memory_space<vmem>>, vector<64x256xf32>
    %86 = arith.addf %85, %84 : vector<64x256xf32>
    %c64_101 = arith.constant 64 : index
    %c0_102 = arith.constant 0 : index
    %87 = vector.load %arg12[%c64_101, %c0_102] : memref<128x256xf32, #tpu.memory_space<vmem>>, vector<64x256xf32>
    tpu.vector_store %arg12[%c64_101, %c0_102], %86 {strides = array<i32>} : memref<128x256xf32, #tpu.memory_space<vmem>>, vector<64x256xf32>,
    %c8 = arith.constant 8 : index
    %c0_103 = arith.constant 0 : index
    %c0_104 = arith.constant 0 : index
    %88 = vector.load %arg11[%c8, %c0_103, %c0_104] : memref<12x16x384xbf16, #tpu.memory_space<vmem>>, vector<4x16x384xbf16>
    %89 = vector.shape_cast %88 : vector<4x16x384xbf16> to vector<64x384xbf16>
    %c4_105 = arith.constant 4 : index
    %c0_106 = arith.constant 0 : index
    %c0_107 = arith.constant 0 : index
    %90 = vector.load %arg4[%c4_105, %c0_106, %c0_107] : memref<5x384x256xbf16, #tpu.memory_space<vmem>>, vector<1x384x256xbf16>
    %91 = vector.shape_cast %90 : vector<1x384x256xbf16> to vector<384x256xbf16>
    %cst_108 = arith.constant dense<0.000000e+00> : vector<64x256xf32>
    %92 = tpu.matmul %89, %91, %cst_108 {dimension_numbers = #tpu.dot_dimension_numbers<[1], [0], [0], [1], [0, 0, 1, 1], [], []>} : vector<64x384xbf16>, vector<384x256xbf16>, vector<64x256xf32> -> vector<64x256xf32>
    %c64_109 = arith.constant 64 : index
    %c0_110 = arith.constant 0 : index
    %93 = vector.load %arg12[%c64_109, %c0_110] : memref<128x256xf32, #tpu.memory_space<vmem>>, vector<64x256xf32>
    %94 = arith.addf %93, %92 : vector<64x256xf32>
    %c64_111 = arith.constant 64 : index
    %c0_112 = arith.constant 0 : index
    %95 = vector.load %arg12[%c64_111, %c0_112] : memref<128x256xf32, #tpu.memory_space<vmem>>, vector<64x256xf32>
    tpu.vector_store %arg12[%c64_111, %c0_112], %94 {strides = array<i32>} : memref<128x256xf32, #tpu.memory_space<vmem>>, vector<64x256xf32>,
    %c0_113 = arith.constant 0 : index
    %c0_114 = arith.constant 0 : index
    %96 = vector.load %arg12[%c0_113, %c0_114] : memref<128x256xf32, #tpu.memory_space<vmem>>, vector<128x256xf32>
    %97 = vector.extract_strided_slice %96 {offsets = [0, 0], sizes = [64, 256], strides = [1, 1]} : vector<128x256xf32> to vector<64x256xf32>
    %98 = vector.extract_strided_slice %96 {offsets = [64, 0], sizes = [64, 256], strides = [1, 1]} : vector<128x256xf32> to vector<64x256xf32>
    %99 = arith.maximumf %97, %98 : vector<64x256xf32>
    %100 = vector.extract_strided_slice %99 {offsets = [0, 0], sizes = [64, 128], strides = [1, 1]} : vector<64x256xf32> to vector<64x128xf32>
    %101 = vector.extract_strided_slice %99 {offsets = [0, 128], sizes = [64, 128], strides = [1, 1]} : vector<64x256xf32> to vector<64x128xf32>
    %102 = arith.maximumf %100, %101 : vector<64x128xf32>
    %c0_115 = arith.constant 0 : index
    %c0_116 = arith.constant 0 : index
    %103 = vector.load %arg5[%c0_115, %c0_116] : memref<1x128xf32, #tpu.memory_space<vmem>>, vector<1x128xf32>
    %104 = vector.broadcast %103 : vector<1x128xf32> to vector<64x128xf32>
    %105 = arith.addf %102, %104 : vector<64x128xf32>
    %cst_117 = arith.constant 0.000000e+00 : f32
    %106 = vector.broadcast %cst_117 : f32 to vector<64x128xf32>
    %107 = arith.maximumf %105, %106 : vector<64x128xf32>
    %108 = arith.truncf %107 : vector<64x128xf32> to vector<64x128xbf16>
    %109 = vector.extract_strided_slice %108 {offsets = [0, 0], sizes = [16, 128], strides = [1, 1]} : vector<64x128xbf16> to vector<16x128xbf16>
    %c0_118 = arith.constant 0 : index
    %c0_119 = arith.constant 0 : index
    %c0_120 = arith.constant 0 : index
    %110 = vector.load %arg6[%c0_118, %c0_119, %c0_120] : memref<4x128x128xbf16, #tpu.memory_space<vmem>>, vector<1x128x128xbf16>
    %111 = vector.shape_cast %110 : vector<1x128x128xbf16> to vector<128x128xbf16>
    %cst_121 = arith.constant dense<0.000000e+00> : vector<16x128xf32>
    %112 = tpu.matmul %109, %111, %cst_121 {dimension_numbers = #tpu.dot_dimension_numbers<[1], [0], [0], [1], [0, 0, 1, 1], [], []>} : vector<16x128xbf16>, vector<128x128xbf16>, vector<16x128xf32> -> vector<16x128xf32>
    %113 = vector.extract_strided_slice %108 {offsets = [16, 0], sizes = [16, 128], strides = [1, 1]} : vector<64x128xbf16> to vector<16x128xbf16>
    %c1_122 = arith.constant 1 : index
    %c0_123 = arith.constant 0 : index
    %c0_124 = arith.constant 0 : index
    %114 = vector.load %arg6[%c1_122, %c0_123, %c0_124] : memref<4x128x128xbf16, #tpu.memory_space<vmem>>, vector<1x128x128xbf16>
    %115 = vector.shape_cast %114 : vector<1x128x128xbf16> to vector<128x128xbf16>
    %cst_125 = arith.constant dense<0.000000e+00> : vector<16x128xf32>
    %116 = tpu.matmul %113, %115, %cst_125 {dimension_numbers = #tpu.dot_dimension_numbers<[1], [0], [0], [1], [0, 0, 1, 1], [], []>} : vector<16x128xbf16>, vector<128x128xbf16>, vector<16x128xf32> -> vector<16x128xf32>
    %117 = arith.addf %112, %116 : vector<16x128xf32>
    %118 = vector.extract_strided_slice %108 {offsets = [32, 0], sizes = [16, 128], strides = [1, 1]} : vector<64x128xbf16> to vector<16x128xbf16>
    %c2_126 = arith.constant 2 : index
    %c0_127 = arith.constant 0 : index
    %c0_128 = arith.constant 0 : index
    %119 = vector.load %arg6[%c2_126, %c0_127, %c0_128] : memref<4x128x128xbf16, #tpu.memory_space<vmem>>, vector<1x128x128xbf16>
    %120 = vector.shape_cast %119 : vector<1x128x128xbf16> to vector<128x128xbf16>
    %cst_129 = arith.constant dense<0.000000e+00> : vector<16x128xf32>
    %121 = tpu.matmul %118, %120, %cst_129 {dimension_numbers = #tpu.dot_dimension_numbers<[1], [0], [0], [1], [0, 0, 1, 1], [], []>} : vector<16x128xbf16>, vector<128x128xbf16>, vector<16x128xf32> -> vector<16x128xf32>
    %122 = arith.addf %117, %121 : vector<16x128xf32>
    %123 = vector.extract_strided_slice %108 {offsets = [48, 0], sizes = [16, 128], strides = [1, 1]} : vector<64x128xbf16> to vector<16x128xbf16>
    %c3_130 = arith.constant 3 : index
    %c0_131 = arith.constant 0 : index
    %c0_132 = arith.constant 0 : index
    %124 = vector.load %arg6[%c3_130, %c0_131, %c0_132] : memref<4x128x128xbf16, #tpu.memory_space<vmem>>, vector<1x128x128xbf16>
    %125 = vector.shape_cast %124 : vector<1x128x128xbf16> to vector<128x128xbf16>
    %cst_133 = arith.constant dense<0.000000e+00> : vector<16x128xf32>
    %126 = tpu.matmul %123, %125, %cst_133 {dimension_numbers = #tpu.dot_dimension_numbers<[1], [0], [0], [1], [0, 0, 1, 1], [], []>} : vector<16x128xbf16>, vector<128x128xbf16>, vector<16x128xf32> -> vector<16x128xf32>
    %127 = arith.addf %122, %126 : vector<16x128xf32>
    %c0_134 = arith.constant 0 : index
    %c0_135 = arith.constant 0 : index
    %128 = vector.load %arg7[%c0_134, %c0_135] : memref<1x128xf32, #tpu.memory_space<vmem>>, vector<1x128xf32>
    %129 = vector.broadcast %128 : vector<1x128xf32> to vector<16x128xf32>
    %130 = arith.addf %127, %129 : vector<16x128xf32>
    %cst_136 = arith.constant 0.000000e+00 : f32
    %131 = vector.broadcast %cst_136 : f32 to vector<16x128xf32>
    %132 = arith.maximumf %130, %131 : vector<16x128xf32>
    %133 = arith.truncf %132 : vector<16x128xf32> to vector<16x128xbf16>
    %c0_137 = arith.constant 0 : index
    %c0_138 = arith.constant 0 : index
    %134 = vector.load %arg8[%c0_137, %c0_138] : memref<128x128xbf16, #tpu.memory_space<vmem>>, vector<128x128xbf16>
    %cst_139 = arith.constant dense<0.000000e+00> : vector<16x128xf32>
    %135 = tpu.matmul %133, %134, %cst_139 {dimension_numbers = #tpu.dot_dimension_numbers<[1], [0], [0], [1], [0, 0, 1, 1], [], []>} : vector<16x128xbf16>, vector<128x128xbf16>, vector<16x128xf32> -> vector<16x128xf32>
    %c0_140 = arith.constant 0 : index
    %c0_141 = arith.constant 0 : index
    %136 = vector.load %arg9[%c0_140, %c0_141] : memref<1x128xf32, #tpu.memory_space<vmem>>, vector<1x128xf32>
    %137 = vector.broadcast %136 : vector<1x128xf32> to vector<16x128xf32>
    %138 = arith.addf %135, %137 : vector<16x128xf32>
    %cst_142 = arith.constant dense<0xFF800000> : vector<16xf32>
    %139 = vector.multi_reduction <maximumf>, %138, %cst_142 [1] : vector<16x128xf32> to vector<16xf32>
    %140 = vector.shape_cast %139 : vector<16xf32> to vector<16x1xf32>
    %141 = vector.broadcast %140 : vector<16x1xf32> to vector<16x128xf32>
    %142 = arith.subf %138, %141 : vector<16x128xf32>
    %143 = math.exp %142 : vector<16x128xf32>
    %cst_143 = arith.constant dense<0.000000e+00> : vector<16xf32>
    %144 = vector.multi_reduction <add>, %143, %cst_143 [1] : vector<16x128xf32> to vector<16xf32>
    %145 = vector.shape_cast %144 : vector<16xf32> to vector<16x1xf32>
    %146 = math.log %145 : vector<16x1xf32>
    %147 = vector.broadcast %146 : vector<16x1xf32> to vector<16x128xf32>
    %148 = arith.subf %142, %147 : vector<16x128xf32>
    %c0_144 = arith.constant 0 : index
    %c0_145 = arith.constant 0 : index
    %149 = vector.load %arg10[%c0_144, %c0_145] : memref<16x128xf32, #tpu.memory_space<vmem>>, vector<16x128xf32>
    tpu.vector_store %arg10[%c0_144, %c0_145], %148 {strides = array<i32>} : memref<16x128xf32, #tpu.memory_space<vmem>>, vector<16x128xf32>,
    return
  }
  func.func @transform_0(%arg0: i32) -> (i32, i32, i32) {
    %c0_i32 = arith.constant 0 : i32
    %c0_i32_0 = arith.constant 0 : i32
    %c0_i32_1 = arith.constant 0 : i32
    return %c0_i32, %arg0, %c0_i32_0 : i32, i32, i32
  }
  func.func @transform_1(%arg0: i32) -> (i32, i32) {
    %c0_i32 = arith.constant 0 : i32
    %c0_i32_0 = arith.constant 0 : i32
    %c0_i32_1 = arith.constant 0 : i32
    return %c0_i32, %c0_i32_0 : i32, i32
  }
  func.func @transform_2(%arg0: i32) -> (i32, i32) {
    %c0_i32 = arith.constant 0 : i32
    %c0_i32_0 = arith.constant 0 : i32
    %c0_i32_1 = arith.constant 0 : i32
    return %c0_i32, %c0_i32_0 : i32, i32
  }
  func.func @transform_3(%arg0: i32) -> (i32, i32, i32) {
    %c0_i32 = arith.constant 0 : i32
    %c0_i32_0 = arith.constant 0 : i32
    %c0_i32_1 = arith.constant 0 : i32
    %c0_i32_2 = arith.constant 0 : i32
    return %c0_i32, %c0_i32_0, %c0_i32_1 : i32, i32, i32
  }
  func.func @transform_4(%arg0: i32) -> (i32, i32) {
    %c0_i32 = arith.constant 0 : i32
    %c0_i32_0 = arith.constant 0 : i32
    %c0_i32_1 = arith.constant 0 : i32
    return %c0_i32, %c0_i32_0 : i32, i32
  }
  func.func @transform_5(%arg0: i32) -> (i32, i32, i32) {
    %c0_i32 = arith.constant 0 : i32
    %c0_i32_0 = arith.constant 0 : i32
    %c0_i32_1 = arith.constant 0 : i32
    %c0_i32_2 = arith.constant 0 : i32
    return %c0_i32, %c0_i32_0, %c0_i32_1 : i32, i32, i32
  }
  func.func @transform_6(%arg0: i32) -> (i32, i32) {
    %c0_i32 = arith.constant 0 : i32
    %c0_i32_0 = arith.constant 0 : i32
    %c0_i32_1 = arith.constant 0 : i32
    return %c0_i32, %c0_i32_0 : i32, i32
  }
  func.func @transform_7(%arg0: i32) -> (i32, i32) {
    %c0_i32 = arith.constant 0 : i32
    %c0_i32_0 = arith.constant 0 : i32
    %c0_i32_1 = arith.constant 0 : i32
    return %c0_i32, %c0_i32_0 : i32, i32
  }
  func.func @transform_8(%arg0: i32) -> (i32, i32) {
    %c0_i32 = arith.constant 0 : i32
    %c0_i32_0 = arith.constant 0 : i32
    %c0_i32_1 = arith.constant 0 : i32
    return %c0_i32, %c0_i32_0 : i32, i32
  }
  func.func @transform_9(%arg0: i32) -> (i32, i32) {
    %c0_i32 = arith.constant 0 : i32
    %c0_i32_0 = arith.constant 0 : i32
    return %arg0, %c0_i32 : i32, i32
  }
}

</mosaic_0001>

<bundles_post_ra>
// kernel: net_forward.1
= control target key start
LH: loop header
LB: loop body
LE: loop exit
PB: predicated region body
PF: predicated region fallthrough
CT: control target
= control target key end

     0   :  { %vm11295_vm0 = vmmov 0   ;;  %s15701_s1 = inlined_call_operand.vmem [shape: bf16[256,768], index: 1, kind: input, shape index: {}]   ;;  %s15702_s0 = inlined_call_operand.vmem [shape: bf16[24,16,256], index: 0, kind: input, shape index: {}]   ;;  %s15703_s3 = inlined_call_operand.vmem [shape: bf16[5,384,256], index: 3, kind: input, shape index: {}]   ;;  %s15704_s2 = inlined_call_operand.vmem [shape: f32[1,384], index: 2, kind: input, shape index: {}]   ;;  %s15705_s5 = inlined_call_operand.vmem [shape: bf16[4,128,128], index: 5, kind: input, shape index: {}]   ;;  %s15706_s4 = inlined_call_operand.vmem [shape: f32[1,128], index: 4, kind: input, shape index: {}]   ;;  %s15707_s7 = inlined_call_operand.vmem [shape: bf16[128,128], index: 7, kind: input, shape index: {}]   ;;  %s15708_s6 = inlined_call_operand.vmem [shape: f32[1,128], index: 6, kind: input, shape index: {}]   ;;  %s15709_s8 = inlined_call_operand.vmem [shape: f32[1,128], index: 8, kind: input, shape index: {}]   ;;  %s15710_s9 = inlined_call_operand.vmem [shape: f32[16,128], index: 9, kind: output, shape index: {}]  }
   0x1   :  { %v11349_v0 = vld [vmem:[%s15701_s1 + $0x154] ss:$24 sps:$4 sm:$0xff]   ;;  %v11360_v2 = vld [vmem:[%s15701_s1 + $0x150] ss:$24 sps:$4 sm:$0xff]   ;;  %v11371_v4 = vld [vmem:[%s15701_s1 + $0x124] ss:$24 sps:$4 sm:$0xff]  }
   0x2   :  { %v11354_v1 = vld [vmem:[%s15701_s1 + $0x15c] ss:$24 sps:$4 sm:$0xff]   ;;  %753 = vmatprep.subr.bf16.mxu0 %v11349_v0  ;;  %v11365_v3 = vld [vmem:[%s15701_s1 + $0x158] ss:$24 sps:$4 sm:$0xff]   ;;  %v11378_v5 = vld [vmem:[%s15701_s1 + $0x12c] ss:$24 sps:$4 sm:$0xff]  }
   0x3   :  { %906 = vmatprep.subr.bf16.mxu1 %v11354_v1  ;;  %754 = vmatpush1.bf16.msra.mxu0 %v11360_v2  ;;  %v11383_v6 = vld [vmem:[%s15701_s1 + $0x120] ss:$24 sps:$4 sm:$0xff]   ;;  %v11395_v8 = vld [vmem:[%s15701_s1 + $0xf4] ss:$24 sps:$4 sm:$0xff]   ;;  %v11405_v10 = vld [vmem:[%s15701_s1 + $0xf0] ss:$24 sps:$4 sm:$0xff]  }
   0x4   :  { %907 = vmatpush1.bf16.msra.mxu1 %v11365_v3  ;;  %755 = vmatprep.subr.bf16.mxu0 %v11371_v4  ;;  %v11389_v7 = vld [vmem:[%s15701_s1 + $0x128] ss:$24 sps:$4 sm:$0xff]   ;;  %v11400_v9 = vld [vmem:[%s15701_s1 + $0xfc] ss:$24 sps:$4 sm:$0xff]   ;;  %v11410_v11 = vld [vmem:[%s15701_s1 + $0xf8] ss:$24 sps:$4 sm:$0xff]  }
   0x5   :  { %908 = vmatprep.subr.bf16.mxu1 %v11378_v5  ;;  %v11417_v12 = vld [vmem:[%s15701_s1 + $0xc4] ss:$24 sps:$4 sm:$0xff]   ;;  %v11429_v14 = vld [vmem:[%s15701_s1 + $0xc0] ss:$24 sps:$4 sm:$0xff]   ;;  %v11441_v16 = vld [vmem:[%s15701_s1 + $0x94] ss:$24 sps:$4 sm:$0xff]  }
   0x6   :  { %v11424_v13 = vld [vmem:[%s15701_s1 + $0xcc] ss:$24 sps:$4 sm:$0xff]   ;;  %v11436_v15 = vld [vmem:[%s15701_s1 + $0xc8] ss:$24 sps:$4 sm:$0xff]   ;;  %v11448_v17 = vld [vmem:[%s15701_s1 + $0x9c] ss:$24 sps:$4 sm:$0xff]  }
   0x7   :  { %756 = vmatpush1.bf16.msra.mxu0 %v11383_v6  ;;  %v11453_v18 = vld [vmem:[%s15701_s1 + $0x90] ss:$24 sps:$4 sm:$0xff]   ;;  %v11465_v20 = vld [vmem:[%s15701_s1 + $0x64] ss:$24 sps:$4 sm:$0xff]   ;;  %v11477_v22 = vld [vmem:[%s15701_s1 + $0x60] ss:$24 sps:$4 sm:$0xff]  }
   0x8   :  { %909 = vmatpush1.bf16.msra.mxu1 %v11389_v7  ;;  %757 = vmatprep.subr.bf16.mxu0 %v11395_v8  ;;  %v11458_v19 = vld [vmem:[%s15701_s1 + $0x98] ss:$24 sps:$4 sm:$0xff]   ;;  %v11472_v21 = vld [vmem:[%s15701_s1 + $0x6c] ss:$24 sps:$4 sm:$0xff]   ;;  %v11484_v23 = vld [vmem:[%s15701_s1 + $0x68] ss:$24 sps:$4 sm:$0xff]  }
   0x9   :  { %910 = vmatprep.subr.bf16.mxu1 %v11400_v9  ;;  %v11489_v24 = vld [vmem:[%s15701_s1 + $0x34] ss:$24 sps:$4 sm:$0xff]   ;;  %v11501_v26 = vld [vmem:[%s15701_s1 + $0x30] ss:$24 sps:$4 sm:$0xff]   ;;  %v11513_v28 = vld [vmem:[%s15701_s1 + $0x4] ss:$24 sps:$4 sm:$0xff]  }
   0xa   :  { %v11496_v25 = vld [vmem:[%s15701_s1 + $0x3c] ss:$24 sps:$4 sm:$0xff]   ;;  %v11506_v27 = vld [vmem:[%s15701_s1 + $0x38] ss:$24 sps:$4 sm:$0xff]   ;;  %v11520_v29 = vld [vmem:[%s15701_s1 + $0xc] ss:$24 sps:$4 sm:$0xff]  }
   0xb   :  { %758 = vmatpush1.bf16.msra.mxu0 %v11405_v10  ;;  %v11525_v30 = vld [vmem:[%s15701_s1] ss:$24 sps:$4 sm:$0xff]   ;;  %v11537_v32 = vld [vmem:[%s15701_s1 + $0x2d4] ss:$24 sps:$4 sm:$0xff]   ;;  %v11549_v34 = vld [vmem:[%s15701_s1 + $0x2d0] ss:$24 sps:$4 sm:$0xff]  }
   0xc   :  { %911 = vmatpush1.bf16.msra.mxu1 %v11410_v11  ;;  %759 = vmatprep.subr.bf16.mxu0 %v11417_v12  ;;  %v11532_v31 = vld [vmem:[%s15701_s1 + $0x8] ss:$24 sps:$4 sm:$0xff]   ;;  %v11544_v33 = vld [vmem:[%s15701_s1 + $0x2dc] ss:$24 sps:$4 sm:$0xff]   ;;  %v11554_v35 = vld [vmem:[%s15701_s1 + $0x2d8] ss:$24 sps:$4 sm:$0xff]  }
   0xd   :  { %912 = vmatprep.subr.bf16.mxu1 %v11424_v13  ;;  %15798 = vst [vmem:[#allocation4_spill] sm:$0xff] %v11554_v35  ;;  %v11561_v36 = vld [vmem:[%s15701_s1 + $0x2a4] ss:$24 sps:$4 sm:$0xff]   ;;  %v11573_v38 = vld [vmem:[%s15701_s1 + $0x2a0] ss:$24 sps:$4 sm:$0xff]  }
   0xe   :  { %v11568_v37 = vld [vmem:[%s15701_s1 + $0x2ac] ss:$24 sps:$4 sm:$0xff]   ;;  %v11580_v39 = vld [vmem:[%s15701_s1 + $0x2a8] ss:$24 sps:$4 sm:$0xff]   ;;  %v11592_v41 = vld [vmem:[%s15701_s1 + $0x27c] ss:$24 sps:$4 sm:$0xff]  }
   0xf   :  { %760 = vmatpush1.bf16.msra.mxu0 %v11429_v14  ;;  %15799 = vst [vmem:[#allocation5_spill] sm:$0xff] %v11568_v37  ;;  %15800 = vst [vmem:[#allocation6_spill] sm:$0xff] %v11580_v39  ;;  %v11585_v40 = vld [vmem:[%s15701_s1 + $0x274] ss:$24 sps:$4 sm:$0xff]   ;;  %v11597_v42 = vld [vmem:[%s15701_s1 + $0x270] ss:$24 sps:$4 sm:$0xff]  }
  0x10   :  { %913 = vmatpush1.bf16.msra.mxu1 %v11436_v15  ;;  %761 = vmatprep.subr.bf16.mxu0 %v11441_v16  ;;  %15801 = vst [vmem:[#allocation7_spill] sm:$0xff] %v11592_v41  ;;  %v11602_v43 = vld [vmem:[%s15701_s1 + $0x278] ss:$24 sps:$4 sm:$0xff]   ;;  %v11609_v44 = vld [vmem:[%s15701_s1 + $0x244] ss:$24 sps:$4 sm:$0xff]  }
  0x11   :  { %914 = vmatprep.subr.bf16.mxu1 %v11448_v17  ;;  %15802 = vst [vmem:[#allocation8_spill] sm:$0xff] %v11602_v43  ;;  %v11616_v45 = vld [vmem:[%s15701_s1 + $0x24c] ss:$24 sps:$4 sm:$0xff]   ;;  %v11621_v46 = vld [vmem:[%s15701_s1 + $0x240] ss:$24 sps:$4 sm:$0xff]  }
  0x12   :  { %15803 = vst [vmem:[#allocation9_spill] sm:$0xff] %v11616_v45  ;;  %v11626_v47 = vld [vmem:[%s15701_s1 + $0x248] ss:$24 sps:$4 sm:$0xff]   ;;  %v11631_v48 = vld [vmem:[%s15702_s0 + $0x4] ss:$8 sps:$4 sm:$0xff]  }
  0x13   :  { %762 = vmatpush1.bf16.msra.mxu0 %v11453_v18  ;;  %15804 = vst [vmem:[#allocation10_spill] sm:$0xff] %v11626_v47  ;;  %v11638_v49 = vld [vmem:[%s15701_s1 + $0x214] ss:$24 sps:$4 sm:$0xff]   ;;  %785 = vmatprep.mubr.bf16.mxu0 %v11631_v48  ;;  %v11652_v51 = vld [vmem:[%s15701_s1 + $0x210] ss:$24 sps:$4 sm:$0xff]  }
  0x14   :  { %915 = vmatpush1.bf16.msra.mxu1 %v11458_v19  ;;  %763 = vmatprep.subr.bf16.mxu0 %v11465_v20  ;;  %v11645_v50 = vld [vmem:[%s15701_s1 + $0x21c] ss:$24 sps:$4 sm:$0xff]   ;;  %v11657_v52 = vld [vmem:[%s15701_s1 + $0x218] ss:$24 sps:$4 sm:$0xff]   ;;  %v11671_v54 = vld [vmem:[%s15701_s1 + $0x1ec] ss:$24 sps:$4 sm:$0xff]  }
  0x15   :  { %916 = vmatprep.subr.bf16.mxu1 %v11472_v21  ;;  %15805 = vst [vmem:[#allocation11_spill] sm:$0xff] %v11645_v50  ;;  %938 = vmatprep.mubr.bf16.mxu1 %v11631_v48  ;;  %15806 = vst [vmem:[#allocation12_spill] sm:$0xff] %v11657_v52  ;;  %v11664_v53 = vld [vmem:[%s15701_s1 + $0x1e4] ss:$24 sps:$4 sm:$0xff]   ;;  %v11676_v55 = vld [vmem:[%s15701_s1 + $0x1e0] ss:$24 sps:$4 sm:$0xff]  }
  0x16   :  { %15807 = vst [vmem:[#allocation13_spill] sm:$0xff] %v11671_v54  ;;  %v11681_v56 = vld [vmem:[%s15701_s1 + $0x1e8] ss:$24 sps:$4 sm:$0xff]   ;;  %v11688_v57 = vld [vmem:[%s15701_s1 + $0x1b4] ss:$24 sps:$4 sm:$0xff]  }
  0x17   :  { %764 = vmatpush1.bf16.msra.mxu0 %v11477_v22  ;;  %15808 = vst [vmem:[#allocation14_spill] sm:$0xff] %v11681_v56  ;;  %v11695_v58 = vld [vmem:[%s15701_s1 + $0x1bc] ss:$24 sps:$4 sm:$0xff]   ;;  %v11700_v59 = vld [vmem:[%s15701_s1 + $0x1b0] ss:$24 sps:$4 sm:$0xff]  }
  0x18   :  { %917 = vmatpush1.bf16.msra.mxu1 %v11484_v23  ;;  %765 = vmatprep.subr.bf16.mxu0 %v11489_v24  ;;  %15809 = vst [vmem:[#allocation15_spill] sm:$0xff] %v11695_v58  ;;  %v11705_v60 = vld [vmem:[%s15701_s1 + $0x1b8] ss:$24 sps:$4 sm:$0xff]   ;;  %v11712_v61 = vld [vmem:[%s15701_s1 + $0x184] ss:$24 sps:$4 sm:$0xff]  }
  0x19   :  { %918 = vmatprep.subr.bf16.mxu1 %v11496_v25  ;;  %15810 = vst [vmem:[#allocation16_spill] sm:$0xff] %v11705_v60  ;;  %v11719_v62 = vld [vmem:[%s15701_s1 + $0x18c] ss:$24 sps:$4 sm:$0xff]   ;;  %v11724_v63 = vld [vmem:[%s15701_s1 + $0x180] ss:$24 sps:$4 sm:$0xff]  }
  0x1a   :  { %15811 = vst [vmem:[#allocation17_spill] sm:$0xff] %v11719_v62 }
  0x1b   :  { %766 = vmatpush1.bf16.msra.mxu0 %v11501_v26 }
  0x1c   :  { %919 = vmatpush1.bf16.msra.mxu1 %v11506_v27  ;;  %767 = vmatprep.subr.bf16.mxu0 %v11513_v28 }
  0x1d   :  { %920 = vmatprep.subr.bf16.mxu1 %v11520_v29 }
  0x1f   :  { %768 = vmatpush1.bf16.msra.mxu0 %v11525_v30 }
  0x20   :  { %921 = vmatpush1.bf16.msra.mxu1 %v11532_v31  ;;  %769 = vmatprep.subr.bf16.mxu0 %v11537_v32 }
  0x21   :  { %922 = vmatprep.subr.bf16.mxu1 %v11544_v33 }
  0x23   :  { %770 = vmatpush2.bf16.msra.mxu0 %v11549_v34 }
  0x24   :  { %923 = vmatpush2.bf16.msra.mxu1 %v11554_v35  ;;  %771 = vmatprep.subr.bf16.mxu0 %v11561_v36  ;;  %v11930_v35 = vld [vmem:[%s15701_s1 + $0x2b4] ss:$24 sps:$4 sm:$0xff]  }
  0x25   :  { %924 = vmatprep.subr.bf16.mxu1 %v11568_v37  ;;  %v11911_v37 = vld [vmem:[%s15702_s0 + $0x40] ss:$8 sps:$4 sm:$0xff]   ;;  %15814 = vst [vmem:[#allocation20_spill] sm:$0xff] %v11930_v35 }
  0x27   :  { %772 = vmatpush2.bf16.msra.mxu0 %v11573_v38 }
  0x28   :  { %925 = vmatpush2.bf16.msra.mxu1 %v11580_v39  ;;  %773 = vmatprep.subr.bf16.mxu0 %v11585_v40  ;;  %v11888_v39 = vld [vmem:[%s15701_s1 + $0x14] ss:$24 sps:$4 sm:$0xff]  }
  0x29   :  { %926 = vmatprep.subr.bf16.mxu1 %v11592_v41  ;;  %v11869_v41 = vld [vmem:[%s15702_s0 + $0x30] ss:$8 sps:$4 sm:$0xff]  }
  0x2b   :  { %774 = vmatpush2.bf16.msra.mxu0 %v11597_v42 }
  0x2c   :  { %927 = vmatpush2.bf16.msra.mxu1 %v11602_v43  ;;  %775 = vmatprep.subr.bf16.mxu0 %v11609_v44  ;;  %v11839_v43 = vld [vmem:[%s15701_s1 + $0xa0] ss:$24 sps:$4 sm:$0xff]  }
  0x2d   :  { %928 = vmatprep.subr.bf16.mxu1 %v11616_v45  ;;  %v11827_v45 = vld [vmem:[%s15702_s0 + $0x20] ss:$8 sps:$4 sm:$0xff]  }
  0x2f   :  { %776 = vmatpush2.bf16.msra.mxu0 %v11621_v46 }
  0x30   :  { %929 = vmatpush2.bf16.msra.mxu1 %v11626_v47  ;;  %777 = vmatprep.subr.bf16.mxu0 %v11638_v49  ;;  %v11797_v47 = vld [vmem:[%s15702_s0 + $0x24] ss:$8 sps:$4 sm:$0xff]  }
  0x31   :  { %930 = vmatprep.subr.bf16.mxu1 %v11645_v50  ;;  %v11790_v50 = vld [vmem:[%s15701_s1 + $0x100] ss:$24 sps:$4 sm:$0xff]  }
  0x33   :  { %778 = vmatpush2.bf16.msra.mxu0 %v11652_v51 }
  0x34   :  { %931 = vmatpush2.bf16.msra.mxu1 %v11657_v52  ;;  %779 = vmatprep.subr.bf16.mxu0 %v11664_v53  ;;  %v11762_v52 = vld [vmem:[%s15702_s0 + $0x14] ss:$8 sps:$4 sm:$0xff]  }
  0x35   :  { %932 = vmatprep.subr.bf16.mxu1 %v11671_v54  ;;  %v11743_v54 = vld [vmem:[%s15702_s0] ss:$8 sps:$4 sm:$0xff]  }
  0x37   :  { %780 = vmatpush2.bf16.msra.mxu0 %v11676_v55 }
  0x38   :  { %933 = vmatpush2.bf16.msra.mxu1 %v11681_v56  ;;  %781 = vmatprep.subr.bf16.mxu0 %v11688_v57  ;;  %v11731_v56 = vld [vmem:[%s15701_s1 + $0x188] ss:$24 sps:$4 sm:$0xff]  }
  0x39   :  { %934 = vmatprep.subr.bf16.mxu1 %v11695_v58  ;;  %15812 = vst [vmem:[#allocation18_spill] sm:$0xff] %v11731_v56  ;;  %v11738_v58 = vld [vmem:[%s15701_s1 + $0x164] ss:$24 sps:$4 sm:$0xff]  }
  0x3b   :  { %782 = vmatpush2.bf16.msra.mxu0 %v11700_v59 }
  0x3c   :  { %935 = vmatpush2.bf16.msra.mxu1 %v11705_v60  ;;  %783 = vmatprep.subr.bf16.mxu0 %v11712_v61  ;;  %v11748_v60 = vld [vmem:[%s15701_s1 + $0x160] ss:$24 sps:$4 sm:$0xff]  }
  0x3d   :  { %936 = vmatprep.subr.bf16.mxu1 %v11719_v62  ;;  %v11755_v62 = vld [vmem:[%s15701_s1 + $0x134] ss:$24 sps:$4 sm:$0xff]  }
  0x3f   :  { %784 = vmatpush2.bf16.msra.mxu0 %v11724_v63 }
  0x40   :  { %937 = vmatpush2.bf16.msra.mxu1 %v11731_v56  ;;  %1059 = vmatprep.subr.bf16.mxu0 %v11738_v58  ;;  %v11771_v56 = vld [vmem:[%s15701_s1 + $0x130] ss:$24 sps:$4 sm:$0xff]  }
  0x41   :  { %1357 = vmatprep.subr.bf16.mxu1 %v11349_v0  ;;  %v11778_v0 = vld [vmem:[%s15701_s1 + $0x104] ss:$24 sps:$4 sm:$0xff]  }
  0x42   :  { %786 = vmatmul.mubr.bf16.vlgmr.msra.gmra.mxu0 %v11743_v54 }
  0x43   :  { %939 = vmatmul.mubr.bf16.vlgmr.msra.gmra.mxu1 %v11743_v54  ;;  %1060 = vmatpush1.bf16.msra.mxu0 %v11748_v60 }
  0x44   :  { %1358 = vmatpush1.bf16.msra.mxu1 %v11360_v2  ;;  %1061 = vmatprep.subr.bf16.mxu0 %v11755_v62  ;;  %v11785_v2 = vld [vmem:[%s15702_s0 + $0x10] ss:$8 sps:$4 sm:$0xff]  }
  0x45   :  { %795 = vmatprep.mubr.bf16.mxu0 %v11762_v52  ;;  %948 = vmatprep.mubr.bf16.mxu1 %v11762_v52 }
  0x46   :  { %1359 = vmatprep.subr.bf16.mxu1 %v11371_v4  ;;  %v11804_v4 = vld [vmem:[%s15701_s1 + $0xd4] ss:$24 sps:$4 sm:$0xff]  }
  0x47   :  { %1062 = vmatpush1.bf16.msra.mxu0 %v11771_v56 }
  0x48   :  { %1360 = vmatpush1.bf16.msra.mxu1 %v11383_v6  ;;  %1063 = vmatprep.subr.bf16.mxu0 %v11778_v0  ;;  %v11813_v6 = vld [vmem:[%s15701_s1 + $0xd0] ss:$24 sps:$4 sm:$0xff]  }
  0x49   :  { %1361 = vmatprep.subr.bf16.mxu1 %v11395_v8  ;;  %v11820_v8 = vld [vmem:[%s15701_s1 + $0xa4] ss:$24 sps:$4 sm:$0xff]  }
  0x4a   :  { %796 = vmatmul.mubr.bf16.gmra.mxu0 %v11785_v2 }
  0x4b   :  { %949 = vmatmul.mubr.bf16.gmra.mxu1 %v11785_v2  ;;  %1064 = vmatpush1.bf16.msra.mxu0 %v11790_v50 }
  0x4c   :  { %805 = vmatprep.mubr.bf16.mxu0 %v11797_v47  ;;  %958 = vmatprep.mubr.bf16.mxu1 %v11797_v47 }
  0x4d   :  { %1362 = vmatpush1.bf16.msra.mxu1 %v11405_v10  ;;  %1065 = vmatprep.subr.bf16.mxu0 %v11804_v4  ;;  %v11833_v10 = vld [vmem:[%s15702_s0 + $0x34] ss:$8 sps:$4 sm:$0xff]  }
  0x4e   :  { %1363 = vmatprep.subr.bf16.mxu1 %v11417_v12  ;;  %v11846_v12 = vld [vmem:[%s15701_s1 + $0x74] ss:$24 sps:$4 sm:$0xff]  }
  0x4f   :  { %1066 = vmatpush1.bf16.msra.mxu0 %v11813_v6 }
  0x50   :  { %1067 = vmatprep.subr.bf16.mxu0 %v11820_v8 }
  0x51   :  { %1364 = vmatpush1.bf16.msra.mxu1 %v11429_v14  ;;  %v11857_v14 = vld [vmem:[%s15701_s1 + $0x70] ss:$24 sps:$4 sm:$0xff]  }
  0x52   :  { %1365 = vmatprep.subr.bf16.mxu1 %v11441_v16  ;;  %806 = vmatmul.mubr.bf16.gmra.mxu0 %v11827_v45  ;;  %v11864_v16 = vld [vmem:[%s15701_s1 + $0x44] ss:$24 sps:$4 sm:$0xff]  }
  0x53   :  { %959 = vmatmul.mubr.bf16.gmra.mxu1 %v11827_v45  ;;  %815 = vmatprep.mubr.bf16.mxu0 %v11833_v10 }
  0x54   :  { %968 = vmatprep.mubr.bf16.mxu1 %v11833_v10  ;;  %1068 = vmatpush1.bf16.msra.mxu0 %v11839_v43 }
  0x55   :  { %1366 = vmatpush1.bf16.msra.mxu1 %v11453_v18  ;;  %1069 = vmatprep.subr.bf16.mxu0 %v11846_v12  ;;  %v11874_v18 = vld [vmem:[%s15702_s0 + $0x44] ss:$8 sps:$4 sm:$0xff]  }
  0x56   :  { %1367 = vmatprep.subr.bf16.mxu1 %v11465_v20  ;;  %v11881_v20 = vld [vmem:[%s15701_s1 + $0x40] ss:$24 sps:$4 sm:$0xff]  }
  0x58   :  { %1070 = vmatpush1.bf16.msra.mxu0 %v11857_v14 }
  0x59   :  { %1368 = vmatpush1.bf16.msra.mxu1 %v11477_v22  ;;  %1071 = vmatprep.subr.bf16.mxu0 %v11864_v16  ;;  %v11899_v22 = vld [vmem:[%s15701_s1 + $0x10] ss:$24 sps:$4 sm:$0xff]  }
  0x5a   :  { %1369 = vmatprep.subr.bf16.mxu1 %v11489_v24  ;;  %816 = vmatmul.mubr.bf16.gmra.mxu0 %v11869_v41  ;;  %v11906_v24 = vld [vmem:[%s15701_s1 + $0x2e4] ss:$24 sps:$4 sm:$0xff]  }
  0x5b   :  { %969 = vmatmul.mubr.bf16.gmra.mxu1 %v11869_v41  ;;  %825 = vmatprep.mubr.bf16.mxu0 %v11874_v18 }
  0x5c   :  { %978 = vmatprep.mubr.bf16.mxu1 %v11874_v18  ;;  %1072 = vmatpush1.bf16.msra.mxu0 %v11881_v20 }
  0x5d   :  { %1370 = vmatpush1.bf16.msra.mxu1 %v11501_v26  ;;  %1073 = vmatprep.subr.bf16.mxu0 %v11888_v39  ;;  %v11916_v26 = vld [vmem:[%s15702_s0 + $0x54] ss:$8 sps:$4 sm:$0xff]  }
  0x5e   :  { %1371 = vmatprep.subr.bf16.mxu1 %v11513_v28  ;;  %v11923_v28 = vld [vmem:[%s15701_s1 + $0x2e0] ss:$24 sps:$4 sm:$0xff]  }
  0x5f   :  { %15813 = vst [vmem:[#allocation19_spill] sm:$0xff] %v11923_v28 }
  0x60   :  { %1074 = vmatpush1.bf16.msra.mxu0 %v11899_v22 }
  0x61   :  { %1372 = vmatpush1.bf16.msra.mxu1 %v11525_v30  ;;  %1075 = vmatprep.subr.bf16.mxu0 %v11906_v24  ;;  %v11941_v30 = vld [vmem:[%s15701_s1 + $0x2b0] ss:$24 sps:$4 sm:$0xff]  }
  0x62   :  { %1373 = vmatprep.subr.bf16.mxu1 %v11537_v32  ;;  %826 = vmatmul.mubr.bf16.gmra.mxu0 %v11911_v37  ;;  %v11948_v32 = vld [vmem:[%s15701_s1 + $0x284] ss:$24 sps:$4 sm:$0xff]  }
  0x63   :  { %979 = vmatmul.mubr.bf16.gmra.mxu1 %v11911_v37  ;;  %835 = vmatprep.mubr.bf16.mxu0 %v11916_v26 }
  0x64   :  { %988 = vmatprep.mubr.bf16.mxu1 %v11916_v26  ;;  %1076 = vmatpush2.bf16.msra.mxu0 %v11923_v28  ;;  %v11953_v28 = vld [vmem:[%s15702_s0 + $0x50] ss:$8 sps:$4 sm:$0xff]  }
  0x65   :  { %1374 = vmatpush2.bf16.msra.mxu1 %v11549_v34  ;;  %1077 = vmatprep.subr.bf16.mxu0 %v11930_v35  ;;  %v11958_v34 = vld [vmem:[%s15702_s0 + $0x64] ss:$8 sps:$4 sm:$0xff]  }
  0x66   :  { %1375 = vmatprep.subr.bf16.mxu1 %v11561_v36  ;;  %v11965_v36 = vld [vmem:[%s15701_s1 + $0x280] ss:$24 sps:$4 sm:$0xff]   ;;  %v11972_v35 = vld [vmem:[%s15701_s1 + $0x254] ss:$24 sps:$4 sm:$0xff]  }
  0x67   :  { %15815 = vst [vmem:[#allocation21_spill] sm:$0xff] %v11965_v36  ;;  %15816 = vst [vmem:[#allocation22_spill] sm:$0xff] %v11972_v35 }
  0x68   :  { %1078 = vmatpush2.bf16.msra.mxu0 %v11941_v30 }
  0x69   :  { %1376 = vmatpush2.bf16.msra.mxu1 %v11573_v38  ;;  %1079 = vmatprep.subr.bf16.mxu0 %v11948_v32  ;;  %v11983_v38 = vld [vmem:[%s15701_s1 + $0x250] ss:$24 sps:$4 sm:$0xff]  }
  0x6a   :  { %1377 = vmatprep.subr.bf16.mxu1 %v11585_v40  ;;  %836 = vmatmul.mubr.bf16.gmra.mxu0 %v11953_v28  ;;  %v11990_v40 = vld [vmem:[%s15701_s1 + $0x224] ss:$24 sps:$4 sm:$0xff]  }
  0x6b   :  { %989 = vmatmul.mubr.bf16.gmra.mxu1 %v11953_v28  ;;  %845 = vmatprep.mubr.bf16.mxu0 %v11958_v34 }
  0x6c   :  { %998 = vmatprep.mubr.bf16.mxu1 %v11958_v34  ;;  %1080 = vmatpush2.bf16.msra.mxu0 %v11965_v36  ;;  %v11995_v36 = vld [vmem:[%s15702_s0 + $0x60] ss:$8 sps:$4 sm:$0xff]  }
  0x6d   :  { %1378 = vmatpush2.bf16.msra.mxu1 %v11597_v42  ;;  %1081 = vmatprep.subr.bf16.mxu0 %v11972_v35  ;;  %v12000_v42 = vld [vmem:[%s15702_s0 + $0x74] ss:$8 sps:$4 sm:$0xff]  }
  0x6e   :  { %1379 = vmatprep.subr.bf16.mxu1 %v11609_v44  ;;  %v12007_v44 = vld [vmem:[%s15701_s1 + $0x220] ss:$24 sps:$4 sm:$0xff]   ;;  %v12014_v35 = vld [vmem:[%s15701_s1 + $0x1f4] ss:$24 sps:$4 sm:$0xff]  }
  0x6f   :  { %15817 = vst [vmem:[#allocation23_spill] sm:$0xff] %v12007_v44  ;;  %15818 = vst [vmem:[#allocation24_spill] sm:$0xff] %v12014_v35 }
  0x70   :  { %1082 = vmatpush2.bf16.msra.mxu0 %v11983_v38 }
  0x71   :  { %1380 = vmatpush2.bf16.msra.mxu1 %v11621_v46  ;;  %1083 = vmatprep.subr.bf16.mxu0 %v11990_v40  ;;  %v12025_v46 = vld [vmem:[%s15701_s1 + $0x1f0] ss:$24 sps:$4 sm:$0xff]  }
  0x72   :  { %1381 = vmatprep.subr.bf16.mxu1 %v11638_v49  ;;  %846 = vmatmul.mubr.bf16.gmra.mxu0 %v11995_v36  ;;  %v12032_v49 = vld [vmem:[%s15701_s1 + $0x1c4] ss:$24 sps:$4 sm:$0xff]  }
  0x73   :  { %999 = vmatmul.mubr.bf16.gmra.mxu1 %v11995_v36  ;;  %855 = vmatprep.mubr.bf16.mxu0 %v12000_v42 }
  0x74   :  { %1008 = vmatprep.mubr.bf16.mxu1 %v12000_v42  ;;  %1084 = vmatpush2.bf16.msra.mxu0 %v12007_v44  ;;  %v12037_v44 = vld [vmem:[%s15702_s0 + $0x70] ss:$8 sps:$4 sm:$0xff]  }
  0x75   :  { %1382 = vmatpush2.bf16.msra.mxu1 %v11652_v51  ;;  %1085 = vmatprep.subr.bf16.mxu0 %v12014_v35  ;;  %v12042_v51 = vld [vmem:[%s15702_s0 + $0x84] ss:$8 sps:$4 sm:$0xff]  }
  0x76   :  { %1383 = vmatprep.subr.bf16.mxu1 %v11664_v53  ;;  %v12049_v53 = vld [vmem:[%s15701_s1 + $0x1c0] ss:$24 sps:$4 sm:$0xff]   ;;  %v12056_v35 = vld [vmem:[%s15701_s1 + $0x194] ss:$24 sps:$4 sm:$0xff]  }
  0x77   :  { %15819 = vst [vmem:[#allocation25_spill] sm:$0xff] %v12049_v53 }
  0x78   :  { %1086 = vmatpush2.bf16.msra.mxu0 %v12025_v46 }
  0x79   :  { %1384 = vmatpush2.bf16.msra.mxu1 %v11676_v55  ;;  %1087 = vmatprep.subr.bf16.mxu0 %v12032_v49  ;;  %v12067_v55 = vld [vmem:[%s15701_s1 + $0x190] ss:$24 sps:$4 sm:$0xff]  }
  0x7a   :  { %1385 = vmatprep.subr.bf16.mxu1 %v11688_v57  ;;  %856 = vmatmul.mubr.bf16.gmra.mxu0 %v12037_v44  ;;  %v12074_v57 = vld [vmem:[%s15702_s0 + $0x80] ss:$8 sps:$4 sm:$0xff]  }
  0x7b   :  { %1009 = vmatmul.mubr.bf16.gmra.mxu1 %v12037_v44  ;;  %865 = vmatprep.mubr.bf16.mxu0 %v12042_v51 }
  0x7c   :  { %1018 = vmatprep.mubr.bf16.mxu1 %v12042_v51  ;;  %1088 = vmatpush2.bf16.msra.mxu0 %v12049_v53  ;;  %v12079_v53 = vld [vmem:[%s15702_s0 + $0x94] ss:$8 sps:$4 sm:$0xff]  }
  0x7d   :  { %1386 = vmatpush2.bf16.msra.mxu1 %v11700_v59  ;;  %1089 = vmatprep.subr.bf16.mxu0 %v12056_v35  ;;  %v12092_v59 = vld [vmem:[%s15702_s0 + $0x90] ss:$8 sps:$4 sm:$0xff]  }
  0x7e   :  { %1387 = vmatprep.subr.bf16.mxu1 %v11712_v61  ;;  %v12097_v61 = vld [vmem:[%s15702_s0 + $0xa4] ss:$8 sps:$4 sm:$0xff]  }
  0x7f   :  { %15820 = vst [vmem:[#allocation26_spill] sm:$0xff] %v12097_v61 }
  0x80   :  { %1090 = vmatpush2.bf16.msra.mxu0 %v12067_v55 }
  0x81   :  { %1388 = vmatpush2.bf16.msra.mxu1 %v11724_v63  ;;  %1510 = vmatprep.subr.bf16.mxu0 %v11354_v1  ;;  %v12106_v1 = vld [vmem:[%s15702_s0 + $0xa0] ss:$8 sps:$4 sm:$0xff]   ;;  %v12120_v63 = vld [vmem:[%s15702_s0 + $0xb0] ss:$8 sps:$4 sm:$0xff]  }
  0x82   :  { %1663 = vmatprep.subr.bf16.mxu1 %v11738_v58  ;;  %866 = vmatmul.mubr.bf16.gmra.mxu0 %v12074_v57  ;;  %15821 = vst [vmem:[#allocation27_spill] sm:$0xff] %v12106_v1  ;;  %v12111_v58 = vld [vmem:[%s15702_s0 + $0xb4] ss:$8 sps:$4 sm:$0xff]  }
  0x83   :  { %1019 = vmatmul.mubr.bf16.gmra.mxu1 %v12074_v57  ;;  %875 = vmatprep.mubr.bf16.mxu0 %v12079_v53  ;;  %15822 = vst [vmem:[#allocation28_spill] sm:$0xff] %v12111_v58 }
  0x84   :  { %1028 = vmatprep.mubr.bf16.mxu1 %v12079_v53 }
  0x8a   :  { %876 = vmatmul.mubr.bf16.gmra.mxu0 %v12092_v59 }
  0x8b   :  { %1029 = vmatmul.mubr.bf16.gmra.mxu1 %v12092_v59  ;;  %885 = vmatprep.mubr.bf16.mxu0 %v12097_v61 }
  0x8c   :  { %1038 = vmatprep.mubr.bf16.mxu1 %v12097_v61  ;;  %v12125_v61 = vld [vmem:[%s15702_s0 + $0xc4] ss:$8 sps:$4 sm:$0xff]  }
  0x92   :  { %886 = vmatmul.mubr.bf16.gmra.mxu0 %v12106_v1 }
  0x93   :  { %1039 = vmatmul.mubr.bf16.gmra.mxu1 %v12106_v1  ;;  %895 = vmatprep.mubr.bf16.mxu0 %v12111_v58  ;;  %v12139_v1 = vld [vmem:[%s15702_s0 + $0xd4] ss:$8 sps:$4 sm:$0xff]  }
  0x94   :  { %1048 = vmatprep.mubr.bf16.mxu1 %v12111_v58  ;;  %v12134_v58 = vld [vmem:[%s15702_s0 + $0xc0] ss:$8 sps:$4 sm:$0xff]  }
  0x9a   :  { %896 = vmatmul.mubr.bf16.gmra.mxu0 %v12120_v63 }
  0x9b   :  { %1049 = vmatmul.mubr.bf16.gmra.mxu1 %v12120_v63  ;;  %1091 = vmatprep.mubr.bf16.mxu0 %v11631_v48  ;;  %v12152_v48 = vld [vmem:[%s15702_s0 + $0xd0] ss:$8 sps:$4 sm:$0xff]  }
  0x9c   :  { %1389 = vmatprep.mubr.bf16.mxu1 %v12125_v61 }
  0xa2   :  { %1092 = vmatmul.mubr.bf16.vlgmr.msra.gmra.mxu0 %v11743_v54  ;;  %v15836_v54 = vld [vmem:[#allocation23_spill] sm:$0xff] }
  0xa3   :  { %1390 = vmatmul.mubr.bf16.vlgmr.msra.gmra.mxu1 %v12134_v58  ;;  %1511 = vmatpush1.bf16.msra.mxu0 %v11365_v3  ;;  %v12161_v3 = vld [vmem:[%s15702_s0 + $0xe4] ss:$8 sps:$4 sm:$0xff]  }
  0xa4   :  { %1664 = vmatpush1.bf16.msra.mxu1 %v11748_v60  ;;  %1512 = vmatprep.subr.bf16.mxu0 %v11378_v5  ;;  %v12174_v5 = vld [vmem:[%s15702_s0 + $0xe0] ss:$8 sps:$4 sm:$0xff]  }
  0xa5   :  { %1101 = vmatprep.mubr.bf16.mxu0 %v11762_v52  ;;  %1399 = vmatprep.mubr.bf16.mxu1 %v12139_v1  ;;  %v15835_v52 = vld [vmem:[#allocation12_spill] sm:$0xff] }
  0xa6   :  { %1665 = vmatprep.subr.bf16.mxu1 %v11755_v62  ;;  %v15838_v60 = vld [vmem:[#allocation24_spill] sm:$0xff]  ;;  %v12284_v62 = vld [vmem:[%s15702_s0 + $0x130] ss:$8 sps:$4 sm:$0xff]  }
  0xa7   :  { %1513 = vmatpush1.bf16.msra.mxu0 %v11389_v7  ;;  %v12180_v7 = vld [vmem:[%s15702_s0 + $0xf4] ss:$8 sps:$4 sm:$0xff]  }
  0xa8   :  { %1666 = vmatpush1.bf16.msra.mxu1 %v11771_v56  ;;  %1514 = vmatprep.subr.bf16.mxu0 %v11400_v9  ;;  %v12196_v9 = vld [vmem:[%s15702_s0 + $0xf0] ss:$8 sps:$4 sm:$0xff]   ;;  %v15837_v56 = vld [vmem:[#allocation13_spill] sm:$0xff] }
  0xa9   :  { %1667 = vmatprep.subr.bf16.mxu1 %v11778_v0  ;;  %v12289_v0 = vld [vmem:[%s15702_s0 + $0x144] ss:$8 sps:$4 sm:$0xff]  }
  0xaa   :  { %1102 = vmatmul.mubr.bf16.gmra.mxu0 %v11785_v2  ;;  %v15839_v2 = vld [vmem:[#allocation14_spill] sm:$0xff] }
  0xab   :  { %1400 = vmatmul.mubr.bf16.gmra.mxu1 %v12152_v48  ;;  %1515 = vmatpush1.bf16.msra.mxu0 %v11410_v11  ;;  %v12201_v11 = vld [vmem:[%s15702_s0 + $0x104] ss:$8 sps:$4 sm:$0xff]  }
  0xac   :  { %1111 = vmatprep.mubr.bf16.mxu0 %v11797_v47  ;;  %1409 = vmatprep.mubr.bf16.mxu1 %v12161_v3  ;;  %v15833_v47 = vld [vmem:[#allocation10_spill] sm:$0xff] }
  0xad   :  { %1668 = vmatpush1.bf16.msra.mxu1 %v11790_v50  ;;  %1516 = vmatprep.subr.bf16.mxu0 %v11424_v13  ;;  %v12218_v13 = vld [vmem:[%s15702_s0 + $0x100] ss:$8 sps:$4 sm:$0xff]   ;;  %v15834_v50 = vld [vmem:[#allocation11_spill] sm:$0xff] }
  0xae   :  { %1669 = vmatprep.subr.bf16.mxu1 %v11804_v4  ;;  %v15840_v4 = vld [vmem:[#allocation15_spill] sm:$0xff] }
  0xaf   :  { %1517 = vmatpush1.bf16.msra.mxu0 %v11436_v15  ;;  %v12223_v15 = vld [vmem:[%s15702_s0 + $0x114] ss:$8 sps:$4 sm:$0xff]  }
  0xb0   :  { %1518 = vmatprep.subr.bf16.mxu0 %v11448_v17  ;;  %v15823_v17 = vld [vmem:[#allocation4_spill] sm:$0xff] }
  0xb1   :  { %1670 = vmatpush1.bf16.msra.mxu1 %v11813_v6  ;;  %v15841_v6 = vld [vmem:[#allocation16_spill] sm:$0xff] }
  0xb2   :  { %1671 = vmatprep.subr.bf16.mxu1 %v11820_v8  ;;  %1112 = vmatmul.mubr.bf16.gmra.mxu0 %v11827_v45  ;;  %v12267_v45 = vld [vmem:[%s15702_s0 + $0x134] ss:$8 sps:$4 sm:$0xff]   ;;  %v15842_v8 = vld [vmem:[#allocation25_spill] sm:$0xff] }
  0xb3   :  { %1410 = vmatmul.mubr.bf16.gmra.mxu1 %v12174_v5  ;;  %1121 = vmatprep.mubr.bf16.mxu0 %v11833_v10  ;;  %v15843_v10 = vld [vmem:[#allocation17_spill] sm:$0xff] }
  0xb4   :  { %1419 = vmatprep.mubr.bf16.mxu1 %v12180_v7  ;;  %1519 = vmatpush1.bf16.msra.mxu0 %v11458_v19  ;;  %v15824_v19 = vld [vmem:[#allocation19_spill] sm:$0xff] }
  0xb5   :  { %1672 = vmatpush1.bf16.msra.mxu1 %v11839_v43  ;;  %1520 = vmatprep.subr.bf16.mxu0 %v11472_v21  ;;  %v15825_v21 = vld [vmem:[#allocation5_spill] sm:$0xff] }
  0xb6   :  { %1673 = vmatprep.subr.bf16.mxu1 %v11846_v12  ;;  %v12262_v43 = vld [vmem:[%s15702_s0 + $0x120] ss:$8 sps:$4 sm:$0xff]  }
  0xb7   :  { %v12306_v12 = vld [vmem:[%s15702_s0 + $0x140] ss:$8 sps:$4 sm:$0xff]  }
  0xb8   :  { %1521 = vmatpush1.bf16.msra.mxu0 %v11484_v23  ;;  %v15826_v23 = vld [vmem:[#allocation20_spill] sm:$0xff] }
  0xb9   :  { %1674 = vmatpush1.bf16.msra.mxu1 %v11857_v14  ;;  %1522 = vmatprep.subr.bf16.mxu0 %v11496_v25  ;;  %v12240_v25 = vld [vmem:[%s15702_s0 + $0x110] ss:$8 sps:$4 sm:$0xff]   ;;  %v12311_v14 = vld [vmem:[%s15702_s0 + $0x154] ss:$8 sps:$4 sm:$0xff]  }
  0xba   :  { %1675 = vmatprep.subr.bf16.mxu1 %v11864_v16  ;;  %1122 = vmatmul.mubr.bf16.gmra.mxu0 %v11869_v41  ;;  %v15832_v41 = vld [vmem:[#allocation22_spill] sm:$0xff] }
  0xbb   :  { %1420 = vmatmul.mubr.bf16.gmra.mxu1 %v12196_v9  ;;  %1131 = vmatprep.mubr.bf16.mxu0 %v11874_v18  ;;  %v15844_v16 = vld [vmem:[#allocation18_spill] sm:$0xff]  ;;  %v12327_v18 = vld [vmem:[%s15702_s0 + $0x164] ss:$8 sps:$4 sm:$0xff]  }
  0xbc   :  { %1429 = vmatprep.mubr.bf16.mxu1 %v12201_v11  ;;  %1523 = vmatpush1.bf16.msra.mxu0 %v11506_v27  ;;  %v12245_v27 = vld [vmem:[%s15702_s0 + $0x124] ss:$8 sps:$4 sm:$0xff]  }
  0xbd   :  { %1676 = vmatpush1.bf16.msra.mxu1 %v11881_v20  ;;  %1524 = vmatprep.subr.bf16.mxu0 %v11520_v29  ;;  %v15827_v29 = vld [vmem:[#allocation6_spill] sm:$0xff] }
  0xbe   :  { %1677 = vmatprep.subr.bf16.mxu1 %v11888_v39  ;;  %v15831_v39 = vld [vmem:[#allocation9_spill] sm:$0xff]  ;;  %v15845_v20 = vld [vmem:[#allocation26_spill] sm:$0xff] }
  0xc0   :  { %1525 = vmatpush1.bf16.msra.mxu0 %v11532_v31  ;;  %v15828_v31 = vld [vmem:[#allocation7_spill] sm:$0xff] }
  0xc1   :  { %1678 = vmatpush1.bf16.msra.mxu1 %v11899_v22  ;;  %1526 = vmatprep.subr.bf16.mxu0 %v11544_v33  ;;  %v15829_v33 = vld [vmem:[#allocation8_spill] sm:$0xff] }
  0xc2   :  { %1679 = vmatprep.subr.bf16.mxu1 %v11906_v24  ;;  %1132 = vmatmul.mubr.bf16.gmra.mxu0 %v11911_v37  ;;  %v15830_v37 = vld [vmem:[#allocation21_spill] sm:$0xff]  ;;  %v12341_v24 = vld [vmem:[%s15702_s0 + $0x174] ss:$8 sps:$4 sm:$0xff]  }
  0xc3   :  { %1430 = vmatmul.mubr.bf16.gmra.mxu1 %v12218_v13  ;;  %1141 = vmatprep.mubr.bf16.mxu0 %v11916_v26  ;;  %v12336_v22 = vld [vmem:[%s15702_s0 + $0x160] ss:$8 sps:$4 sm:$0xff]   ;;  %v15846_v26 = vld [vmem:[#allocation27_spill] sm:$0xff] }
  0xc4   :  { %1439 = vmatprep.mubr.bf16.mxu1 %v12223_v15  ;;  %1527 = vmatpush2.bf16.msra.mxu0 %v15823_v17 }
  0xc5   :  { %1680 = vmatpush2.bf16.msra.mxu1 %v15824_v19  ;;  %1528 = vmatprep.subr.bf16.mxu0 %v15825_v21  ;;  %v10418_v21 = vld [vmem:[%s15703_s3 + $0x40] ss:$8 sps:$4 sm:$0xff]  }
  0xc6   :  { %1681 = vmatprep.subr.bf16.mxu1 %v15826_v23  ;;  %v10420_v23 = vld [vmem:[%s15703_s3 + $0x44] ss:$8 sps:$4 sm:$0xff]  }
  0xc8   :  { %1529 = vmatpush2.bf16.msra.mxu0 %v15827_v29 }
  0xc9   :  { %1682 = vmatpush2.bf16.msra.mxu1 %v11941_v30  ;;  %1530 = vmatprep.subr.bf16.mxu0 %v15828_v31  ;;  %v12350_v30 = vld [vmem:[%s15702_s0 + $0x170] ss:$8 sps:$4 sm:$0xff]  }
  0xca   :  { %1683 = vmatprep.subr.bf16.mxu1 %v11948_v32  ;;  %1142 = vmatmul.mubr.bf16.gmra.mxu0 %v11953_v28  ;;  %v15847_v28 = vld [vmem:[#allocation28_spill] sm:$0xff]  ;;  %v10409_v32 = vld [vmem:[%s15703_s3 + $0x70] ss:$8 sps:$4 sm:$0xff]  }
  0xcb   :  { %1440 = vmatmul.mubr.bf16.gmra.mxu1 %v12240_v25  ;;  %1151 = vmatprep.mubr.bf16.mxu0 %v11958_v34  ;;  %v10411_v34 = vld [vmem:[%s15703_s3 + $0x74] ss:$8 sps:$4 sm:$0xff]  }
  0xcc   :  { %1449 = vmatprep.mubr.bf16.mxu1 %v12245_v27  ;;  %1531 = vmatpush2.bf16.msra.mxu0 %v15829_v33 }
  0xcd   :  { %1684 = vmatpush2.bf16.msra.mxu1 %v15830_v37  ;;  %1532 = vmatprep.subr.bf16.mxu0 %v15831_v39 }
  0xce   :  { %1685 = vmatprep.subr.bf16.mxu1 %v15832_v41 }
  0xd0   :  { %1533 = vmatpush2.bf16.msra.mxu0 %v15833_v47  ;;  %v10421_v47 = vld [vmem:[%s15703_s3 + $0x30] ss:$8 sps:$4 sm:$0xff]  }
  0xd1   :  { %1686 = vmatpush2.bf16.msra.mxu1 %v11983_v38  ;;  %1534 = vmatprep.subr.bf16.mxu0 %v15834_v50 }
  0xd2   :  { %1687 = vmatprep.subr.bf16.mxu1 %v11990_v40  ;;  %1152 = vmatmul.mubr.bf16.gmra.mxu0 %v11995_v36 }
  0xd3   :  { %1450 = vmatmul.mubr.bf16.gmra.mxu1 %v12262_v43  ;;  %1161 = vmatprep.mubr.bf16.mxu0 %v12000_v42 }
  0xd4   :  { %1459 = vmatprep.mubr.bf16.mxu1 %v12267_v45  ;;  %1535 = vmatpush2.bf16.msra.mxu0 %v15835_v52 }
  0xd5   :  { %1688 = vmatpush2.bf16.msra.mxu1 %v15836_v54  ;;  %1536 = vmatprep.subr.bf16.mxu0 %v15837_v56 }
  0xd6   :  { %1689 = vmatprep.subr.bf16.mxu1 %v15838_v60 }
  0xd8   :  { %1537 = vmatpush2.bf16.msra.mxu0 %v15839_v2  ;;  %v10424_v2 = vld [vmem:[%s15703_s3 + $0x20] ss:$8 sps:$4 sm:$0xff]  }
  0xd9   :  { %1690 = vmatpush2.bf16.msra.mxu1 %v12025_v46  ;;  %1538 = vmatprep.subr.bf16.mxu0 %v15840_v4  ;;  %v10414_v46 = vld [vmem:[%s15703_s3 + $0x64] ss:$8 sps:$4 sm:$0xff]  }
  0xda   :  { %1691 = vmatprep.subr.bf16.mxu1 %v12032_v49  ;;  %1162 = vmatmul.mubr.bf16.gmra.mxu0 %v12037_v44  ;;  %v10412_v44 = vld [vmem:[%s15703_s3 + $0x60] ss:$8 sps:$4 sm:$0xff]   ;;  %v10426_v4 = vld [vmem:[%s15703_s3 + $0x24] ss:$8 sps:$4 sm:$0xff]  }
  0xdb   :  { %1460 = vmatmul.mubr.bf16.gmra.mxu1 %v12284_v62  ;;  %1171 = vmatprep.mubr.bf16.mxu0 %v12042_v51 }
  0xdc   :  { %1469 = vmatprep.mubr.bf16.mxu1 %v12289_v0  ;;  %1539 = vmatpush2.bf16.msra.mxu0 %v15841_v6 }
  0xdd   :  { %1692 = vmatpush2.bf16.msra.mxu1 %v15842_v8  ;;  %1540 = vmatprep.subr.bf16.mxu0 %v15843_v10  ;;  %v10429_v8 = vld [vmem:[%s15703_s3 + $0x174] ss:$8 sps:$4 sm:$0xff]  }
  0xde   :  { %1693 = vmatprep.subr.bf16.mxu1 %v12056_v35  ;;  %v12322_v35 = vld [vmem:[%s15702_s0 + $0x150] ss:$8 sps:$4 sm:$0xff]  }
  0xe0   :  { %1541 = vmatpush2.bf16.msra.mxu0 %v15844_v16 }
  0xe1   :  { %1694 = vmatpush2.bf16.msra.mxu1 %v12067_v55  ;;  %2849 = vmatprep.subr.bf16.mxu0 %v10411_v34 }
  0xe2   :  { %1172 = vmatmul.mubr.bf16.gmra.mxu0 %v12074_v57  ;;  %2922 = vmatprep.subr.bf16.mxu1 %v10429_v8 }
  0xe3   :  { %1470 = vmatmul.mubr.bf16.gmra.mxu1 %v12306_v12  ;;  %1181 = vmatprep.mubr.bf16.mxu0 %v12079_v53 }
  0xe4   :  { %1479 = vmatprep.mubr.bf16.mxu1 %v12311_v14 }
  0xea   :  { %1182 = vmatmul.mubr.bf16.gmra.mxu0 %v12092_v59 }
  0xeb   :  { %1480 = vmatmul.mubr.bf16.gmra.mxu1 %v12322_v35  ;;  %1191 = vmatprep.mubr.bf16.mxu0 %v15845_v20 }
  0xec   :  { %1489 = vmatprep.mubr.bf16.mxu1 %v12327_v18 }
  0xf2   :  { %1192 = vmatmul.mubr.bf16.gmra.mxu0 %v15846_v26 }
  0xf3   :  { %1490 = vmatmul.mubr.bf16.gmra.mxu1 %v12336_v22  ;;  %1201 = vmatprep.mubr.bf16.mxu0 %v15847_v28  ;;  %v10430_v28 = vld [vmem:[%s15703_s3 + $0x10] ss:$8 sps:$4 sm:$0xff]  }
  0xf4   :  { %1499 = vmatprep.mubr.bf16.mxu1 %v12341_v24 }
  0xfa   :  { %1202 = vmatmul.mubr.bf16.gmra.mxu0 %v12120_v63 }
  0xfb   :  { %1500 = vmatmul.mubr.bf16.gmra.mxu1 %v12350_v30  ;;  %1542 = vmatprep.mubr.bf16.mxu0 %v12125_v61 }
  0xfc   :  { %1695 = vmatprep.mubr.bf16.mxu1 %v12125_v61  ;;  %v10415_v61 = vld [vmem:[%s15703_s3 + $0x50] ss:$8 sps:$4 sm:$0xff]  }
 0x102   :  { %v12362_v36 = vpop.f32.mrf.mxu0  ;;  %1543 = vmatmul.mubr.bf16.vlgmr.msra.gmra.mxu0 %v12134_v58 }
 0x103   :  { %v12364_v38 = vpop.f32.mrf.mxu1  ;;  %1696 = vmatmul.mubr.bf16.vlgmr.msra.gmra.mxu1 %v12134_v58  ;;  %1552 = vmatprep.mubr.bf16.mxu0 %v12139_v1 }
 0x104   :  { %15848 = vst [vmem:[#allocation4_spill] sm:$0xff] %v12364_v38  ;;  %1705 = vmatprep.mubr.bf16.mxu1 %v12139_v1  ;;  %v12370_v40 = vpop.f32.mrf.mxu0  ;;  %2850 = vmatpush1.bf16.msra.mxu0 %v10409_v32  ;;  %v10417_v1 = vld [vmem:[%s15703_s3 + $0x54] ss:$8 sps:$4 sm:$0xff]  }
 0x105   :  { %v12372_v42 = vpop.f32.mrf.mxu1  ;;  %2851 = vmatprep.subr.bf16.mxu0 %v10414_v46  ;;  %v10432_v32 = vld [vmem:[%s15703_s3 + $0x14] ss:$8 sps:$4 sm:$0xff]  }
 0x106   :  { %15849 = vst [vmem:[#allocation19_spill] sm:$0xff] %v12372_v42  ;;  %v12380_v49 = vpop.f32.mrf.mxu0 }
 0x107   :  { %v12382_v51 = vpop.f32.mrf.mxu1 }
 0x108   :  { %15850 = vst [vmem:[#allocation5_spill] sm:$0xff] %v12382_v51  ;;  %v12384_v53 = vpop.f32.mrf.mxu0  ;;  %2852 = vmatpush1.bf16.msra.mxu0 %v10412_v44 }
 0x109   :  { %v12386_v55 = vpop.f32.mrf.mxu1  ;;  %2853 = vmatprep.subr.bf16.mxu0 %v10417_v1  ;;  %v10433_v1 = vld [vmem:[%s15703_s3] ss:$8 sps:$4 sm:$0xff]  }
 0x10a   :  { %15851 = vst [vmem:[#allocation20_spill] sm:$0xff] %v12386_v55  ;;  %v12388_v57 = vpop.f32.mrf.mxu0  ;;  %1553 = vmatmul.mubr.bf16.gmra.mxu0 %v12152_v48 }
 0x10b   :  { %v12390_v59 = vpop.f32.mrf.mxu1  ;;  %1706 = vmatmul.mubr.bf16.gmra.mxu1 %v12152_v48  ;;  %1562 = vmatprep.mubr.bf16.mxu0 %v12161_v3 }
 0x10c   :  { %15852 = vst [vmem:[#allocation6_spill] sm:$0xff] %v12390_v59  ;;  %1715 = vmatprep.mubr.bf16.mxu1 %v12161_v3  ;;  %v12402_v58 = vpop.f32.mrf.mxu0  ;;  %2854 = vmatpush1.bf16.msra.mxu0 %v10415_v61 }
 0x10d   :  { %v12404_v63 = vpop.f32.mrf.mxu1  ;;  %2855 = vmatprep.subr.bf16.mxu0 %v10420_v23 }
 0x10e   :  { %15853 = vst [vmem:[#allocation7_spill] sm:$0xff] %v12404_v63  ;;  %v12406_v17 = vpop.f32.mrf.mxu0  ;;  %v10497_v63 = vld [vmem:[%s15703_s3 + $0x2f4] ss:$8 sps:$4 sm:$0xff]  }
 0x10f   :  { %v12408_v48 = vpop.f32.mrf.mxu1 }
 0x110   :  { %15854 = vst [vmem:[#allocation8_spill] sm:$0xff] %v12408_v48  ;;  %v12410_v19 = vpop.f32.mrf.mxu0  ;;  %2856 = vmatpush1.bf16.msra.mxu0 %v10418_v21  ;;  %v10435_v21 = vld [vmem:[%s15703_s3 + $0x4] ss:$8 sps:$4 sm:$0xff]  }
 0x111   :  { %v12412_v3 = vpop.f32.mrf.mxu1 }
 0x112   :  { %15855 = vst [vmem:[#allocation21_spill] sm:$0xff] %v12412_v3  ;;  %v12420_v29 = vpop.f32.mrf.mxu0  ;;  %1563 = vmatmul.mubr.bf16.gmra.mxu0 %v12174_v5 }
 0x113   :  { %v12422_v31 = vpop.f32.mrf.mxu1  ;;  %1716 = vmatmul.mubr.bf16.gmra.mxu1 %v12174_v5  ;;  %1572 = vmatprep.mubr.bf16.mxu0 %v12180_v7  ;;  %v10423_v5 = vld [vmem:[%s15703_s3 + $0x34] ss:$8 sps:$4 sm:$0xff]  }
 0x114   :  { %15856 = vst [vmem:[#allocation9_spill] sm:$0xff] %v12422_v31  ;;  %1725 = vmatprep.mubr.bf16.mxu1 %v12180_v7  ;;  %v12428_v33 = vpop.f32.mrf.mxu0  ;;  %2857 = vmatprep.subr.bf16.mxu0 %v10423_v5  ;;  %v10436_v5 = vld [vmem:[%s15703_s3 + $0x160] ss:$8 sps:$4 sm:$0xff]  }
 0x115   :  { %v12430_v37 = vpop.f32.mrf.mxu1  ;;  %2858 = vmatpush1.bf16.msra.mxu0 %v10421_v47 }
 0x116   :  { %15857 = vst [vmem:[#allocation22_spill] sm:$0xff] %v12430_v37  ;;  %v12432_v39 = vpop.f32.mrf.mxu0  ;;  %2859 = vmatprep.subr.bf16.mxu0 %v10426_v4 }
 0x117   :  { %v12434_v41 = vpop.f32.mrf.mxu1 }
 0x118   :  { %15858 = vst [vmem:[#allocation10_spill] sm:$0xff] %v12434_v41  ;;  %v12442_v50 = vpop.f32.mrf.mxu0 }
 0x119   :  { %v12444_v7 = vpop.f32.mrf.mxu1  ;;  %2860 = vmatpush1.bf16.msra.mxu0 %v10424_v2  ;;  %v10438_v2 = vld [vmem:[%s15703_s3 + $0x164] ss:$8 sps:$4 sm:$0xff]  }
 0x11a   :  { %15859 = vst [vmem:[#allocation11_spill] sm:$0xff] %v12444_v7  ;;  %v12446_v52 = vpop.f32.mrf.mxu0  ;;  %1573 = vmatmul.mubr.bf16.gmra.mxu0 %v12196_v9  ;;  %2861 = vmatprep.subr.bf16.mxu0 %v10432_v32 }
 0x11b   :  { %v12448_v54 = vpop.f32.mrf.mxu1  ;;  %1726 = vmatmul.mubr.bf16.gmra.mxu1 %v12196_v9  ;;  %1582 = vmatprep.mubr.bf16.mxu0 %v12201_v11 }
 0x11c   :  { %15860 = vst [vmem:[#allocation12_spill] sm:$0xff] %v12448_v54  ;;  %1735 = vmatprep.mubr.bf16.mxu1 %v12201_v11  ;;  %v12454_v56 = vpop.f32.mrf.mxu0  ;;  %v10427_v11 = vld [vmem:[%s15703_s3 + $0x170] ss:$8 sps:$4 sm:$0xff]  }
 0x11d   :  { %v12456_v60 = vpop.f32.mrf.mxu1  ;;  %2923 = vmatpush1.bf16.msra.mxu1 %v10427_v11  ;;  %2862 = vmatpush1.bf16.msra.mxu0 %v10430_v28  ;;  %v10441_v28 = vld [vmem:[%s15703_s3 + $0xf4] ss:$8 sps:$4 sm:$0xff]  }
 0x11e   :  { %15861 = vst [vmem:[#allocation23_spill] sm:$0xff] %v12456_v60  ;;  %v12464_v6 = vpop.f32.mrf.mxu0  ;;  %2863 = vmatprep.subr.bf16.mxu0 %v10435_v21  ;;  %2924 = vmatprep.subr.bf16.mxu1 %v10438_v2 }
 0x11f   :  { %v12466_v9 = vpop.f32.mrf.mxu1 }
 0x120   :  { %15862 = vst [vmem:[#allocation13_spill] sm:$0xff] %v12466_v9  ;;  %v12474_v10 = vpop.f32.mrf.mxu0 }
 0x121   :  { %v12476_v16 = vpop.f32.mrf.mxu1  ;;  %2864 = vmatpush1.bf16.msra.mxu0 %v10433_v1  ;;  %2925 = vmatpush1.bf16.msra.mxu1 %v10436_v5 }
 0x122   :  { %15863 = vst [vmem:[#allocation24_spill] sm:$0xff] %v12476_v16  ;;  %v12478_v20 = vpop.f32.mrf.mxu0  ;;  %1583 = vmatmul.mubr.bf16.gmra.mxu0 %v12218_v13  ;;  %2865 = vmatprep.subr.bf16.mxu0 %v10441_v28  ;;  %v10442_v28 = vld [vmem:[%s15703_s3 + $0xe0] ss:$8 sps:$4 sm:$0xff]  }
 0x123   :  { %v12480_v26 = vpop.f32.mrf.mxu1  ;;  %1736 = vmatmul.mubr.bf16.gmra.mxu1 %v12218_v13  ;;  %1592 = vmatprep.mubr.bf16.mxu0 %v12223_v15 }
 0x124   :  { %15864 = vst [vmem:[#allocation14_spill] sm:$0xff] %v12480_v26  ;;  %1745 = vmatprep.mubr.bf16.mxu1 %v12223_v15  ;;  %v12492_v34 = vpop.f32.mrf.mxu0  ;;  %v10462_v26 = vld [vmem:[%s15703_s3 + $0xa4] ss:$8 sps:$4 sm:$0xff]  }
 0x125   :  { %v12494_v44 = vpop.f32.mrf.mxu1 }
 0x126   :  { %15865 = vst [vmem:[#allocation15_spill] sm:$0xff] %v12494_v44  ;;  %v12496_v46 = vpop.f32.mrf.mxu0  ;;  %v10451_v44 = vld [vmem:[%s15703_s3 + $0xc0] ss:$8 sps:$4 sm:$0xff]  }
 0x127   :  { %15866 = vst [vmem:[#allocation16_spill] sm:$0xff] %v12496_v46  ;;  %v12498_v13 = vpop.f32.mrf.mxu1 }
 0x128   :  { %15867 = vst [vmem:[#allocation25_spill] sm:$0xff] %v12498_v13  ;;  %v12500_v15 = vpop.f32.mrf.mxu0 }
 0x129   :  { %15868 = vst [vmem:[#allocation17_spill] sm:$0xff] %v12500_v15  ;;  %v12502_v61 = vpop.f32.mrf.mxu1 }
 0x12a   :  { %15869 = vst [vmem:[#allocation18_spill] sm:$0xff] %v12502_v61  ;;  %v12510_v23 = vpop.f32.mrf.mxu0  ;;  %1593 = vmatmul.mubr.bf16.gmra.mxu0 %v12240_v25 }
 0x12b   :  { %15870 = vst [vmem:[#allocation26_spill] sm:$0xff] %v12510_v23  ;;  %v12512_v47 = vpop.f32.mrf.mxu1  ;;  %1746 = vmatmul.mubr.bf16.gmra.mxu1 %v12240_v25  ;;  %1602 = vmatprep.mubr.bf16.mxu0 %v12245_v27 }
 0x12c   :  { %15871 = vst [vmem:[#allocation27_spill] sm:$0xff] %v12512_v47  ;;  %1755 = vmatprep.mubr.bf16.mxu1 %v12245_v27  ;;  %v12524_v4 = vpop.f32.mrf.mxu0  ;;  %v10439_v27 = vld [vmem:[%s15703_s3 + $0xf0] ss:$8 sps:$4 sm:$0xff]  }
 0x12d   :  { %15872 = vst [vmem:[#allocation28_spill] sm:$0xff] %v12524_v4  ;;  %v12526_v11 = vpop.f32.mrf.mxu1  ;;  %2866 = vmatpush2.bf16.msra.mxu0 %v10439_v27  ;;  %v10447_v27 = vld [vmem:[%s15703_s3 + $0x154] ss:$8 sps:$4 sm:$0xff]  }
 0x12e   :  { %15873 = vst [vmem:[#allocation29_spill] sm:$0xff] %v12526_v11  ;;  %v12528_v25 = vpop.f32.mrf.mxu0  ;;  %2926 = vmatprep.subr.bf16.mxu1 %v10447_v27 }
 0x12f   :  { %15874 = vst [vmem:[#allocation30_spill] sm:$0xff] %v12528_v25  ;;  %v12530_v8 = vpop.f32.mrf.mxu1 }
 0x130   :  { %15875 = vst [vmem:[#allocation31_spill] sm:$0xff] %v12530_v8  ;;  %v12538_v32 = vpop.f32.mrf.mxu0 }
 0x131   :  { %15876 = vst [vmem:[#allocation32_spill] sm:$0xff] %v12538_v32  ;;  %v12540_v47 = vpop.f32.mrf.mxu1 }
 0x132   :  { %15877 = vst [vmem:[#allocation33_spill] sm:$0xff] %v12540_v47  ;;  %v12542_v1 = vpop.f32.mrf.mxu0  ;;  %1603 = vmatmul.mubr.bf16.gmra.mxu0 %v12262_v43 }
 0x133   :  { %15878 = vst [vmem:[#allocation34_spill] sm:$0xff] %v12542_v1  ;;  %v12544_v21 = vpop.f32.mrf.mxu1  ;;  %1756 = vmatmul.mubr.bf16.gmra.mxu1 %v12262_v43  ;;  %1612 = vmatprep.mubr.bf16.mxu0 %v12267_v45  ;;  %v16045_v1 = vld [vmem:[#allocation5_spill] sm:$0xff] }
 0x134   :  { %15879 = vst [vmem:[#allocation35_spill] sm:$0xff] %v12544_v21  ;;  %1765 = vmatprep.mubr.bf16.mxu1 %v12267_v45  ;;  %v12550_v5 = vpop.f32.mrf.mxu0  ;;  %v10444_v21 = vld [vmem:[%s15703_s3 + $0xe4] ss:$8 sps:$4 sm:$0xff]   ;;  %v10445_v45 = vld [vmem:[%s15703_s3 + $0x150] ss:$8 sps:$4 sm:$0xff]  }
 0x135   :  { %15880 = vst [vmem:[#allocation36_spill] sm:$0xff] %v12550_v5  ;;  %v12552_v2 = vpop.f32.mrf.mxu1  ;;  %2867 = vmatprep.subr.bf16.mxu0 %v10444_v21  ;;  %v10448_v21 = vld [vmem:[%s15703_s3 + $0xd0] ss:$8 sps:$4 sm:$0xff]   ;;  %2927 = vmatpush1.bf16.msra.mxu1 %v10445_v45 }
 0x136   :  { %15881 = vst [vmem:[#allocation37_spill] sm:$0xff] %v12552_v2  ;;  %v12560_v47 = vpop.f32.mrf.mxu0  ;;  %2868 = vmatpush2.bf16.msra.mxu0 %v10442_v28  ;;  %v10450_v28 = vld [vmem:[%s15703_s3 + $0xd4] ss:$8 sps:$4 sm:$0xff]  }
 0x137   :  { %15882 = vst [vmem:[#allocation38_spill] sm:$0xff] %v12560_v47  ;;  %v12562_v43 = vpop.f32.mrf.mxu1  ;;  %2869 = vmatprep.subr.bf16.mxu0 %v10450_v28 }
 0x138   :  { %15883 = vst [vmem:[#allocation39_spill] sm:$0xff] %v12562_v43  ;;  %v12570_v2 = vpop.f32.mrf.mxu0 }
 0x139   :  { %15884 = vst [vmem:[#allocation40_spill] sm:$0xff] %v12570_v2  ;;  %v12572_v8 = vpop.f32.mrf.mxu1 }
 0x13a   :  { %15885 = vst [vmem:[#allocation41_spill] sm:$0xff] %v12572_v8  ;;  %v12574_v11 = vpop.f32.mrf.mxu0  ;;  %1613 = vmatmul.mubr.bf16.gmra.mxu0 %v12284_v62 }
 0x13b   :  { %15886 = vst [vmem:[#allocation42_spill] sm:$0xff] %v12574_v11  ;;  %v12576_v61 = vpop.f32.mrf.mxu1  ;;  %1766 = vmatmul.mubr.bf16.gmra.mxu1 %v12284_v62  ;;  %1622 = vmatprep.mubr.bf16.mxu0 %v12289_v0 }
 0x13c   :  { %15887 = vst [vmem:[#allocation43_spill] sm:$0xff] %v12576_v61  ;;  %1775 = vmatprep.mubr.bf16.mxu1 %v12289_v0  ;;  %v12588_v27 = vpop.f32.mrf.mxu0  ;;  %2870 = vmatpush2.bf16.msra.mxu0 %v10448_v21  ;;  %v10453_v0 = vld [vmem:[%s15703_s3 + $0xc4] ss:$8 sps:$4 sm:$0xff]  }
 0x13d   :  { %15888 = vst [vmem:[#allocation44_spill] sm:$0xff] %v12588_v27  ;;  %v12590_v43 = vpop.f32.mrf.mxu1  ;;  %2871 = vmatprep.subr.bf16.mxu0 %v10453_v0  ;;  %v10459_v0 = vld [vmem:[%s15703_s3 + $0xb4] ss:$8 sps:$4 sm:$0xff]  }
 0x13e   :  { %15889 = vst [vmem:[#allocation45_spill] sm:$0xff] %v12590_v43  ;;  %v12592_v61 = vpop.f32.mrf.mxu0 }
 0x13f   :  { %15890 = vst [vmem:[#allocation46_spill] sm:$0xff] %v12592_v61  ;;  %v12594_v62 = vpop.f32.mrf.mxu1 }
 0x140   :  { %15891 = vst [vmem:[#allocation47_spill] sm:$0xff] %v12594_v62  ;;  %v12599_v8 = vpop.f32.mrf.mxu0  ;;  %2872 = vmatpush2.bf16.msra.mxu0 %v10451_v44  ;;  %v10454_v44 = vld [vmem:[%s15703_s3 + $0x140] ss:$8 sps:$4 sm:$0xff]  }
 0x141   :  { %15892 = vst [vmem:[#allocation48_spill] sm:$0xff] %v12599_v8  ;;  %v12601_v13 = vpop.f32.mrf.mxu1  ;;  %2873 = vmatprep.subr.bf16.mxu0 %v10459_v0 }
 0x142   :  { %15893 = vst [vmem:[#allocation49_spill] sm:$0xff] %v12601_v13  ;;  %v12606_v45 = vpop.f32.mrf.mxu0  ;;  %1623 = vmatmul.mubr.bf16.gmra.mxu0 %v12306_v12 }
 0x143   :  { %15894 = vst [vmem:[#allocation50_spill] sm:$0xff] %v12606_v45  ;;  %v12608_v28 = vpop.f32.mrf.mxu1  ;;  %1776 = vmatmul.mubr.bf16.gmra.mxu1 %v12306_v12  ;;  %1632 = vmatprep.mubr.bf16.mxu0 %v12311_v14 }
 0x144   :  { %15895 = vst [vmem:[#allocation51_spill] sm:$0xff] %v12608_v28  ;;  %1785 = vmatprep.mubr.bf16.mxu1 %v12311_v14  ;;  %v12614_v21 = vpop.f32.mrf.mxu0  ;;  %v10457_v28 = vld [vmem:[%s15703_s3 + $0xb0] ss:$8 sps:$4 sm:$0xff]   ;;  %v10456_v14 = vld [vmem:[%s15703_s3 + $0x144] ss:$8 sps:$4 sm:$0xff]  }
 0x145   :  { %15896 = vst [vmem:[#allocation52_spill] sm:$0xff] %v12614_v21  ;;  %v12616_v13 = vpop.f32.mrf.mxu1  ;;  %2928 = vmatprep.subr.bf16.mxu1 %v10456_v14  ;;  %2874 = vmatpush2.bf16.msra.mxu0 %v10457_v28  ;;  %v10465_v28 = vld [vmem:[%s15703_s3 + $0x134] ss:$8 sps:$4 sm:$0xff]  }
 0x146   :  { %15897 = vst [vmem:[#allocation53_spill] sm:$0xff] %v12616_v13  ;;  %v12624_v62 = vpop.f32.mrf.mxu0  ;;  %2929 = vmatpush1.bf16.msra.mxu1 %v10454_v44  ;;  %2875 = vmatprep.subr.bf16.mxu0 %v10462_v26  ;;  %v10468_v26 = vld [vmem:[%s15703_s3 + $0x124] ss:$8 sps:$4 sm:$0xff]  }
 0x147   :  { %15898 = vst [vmem:[#allocation54_spill] sm:$0xff] %v12624_v62  ;;  %v12626_v12 = vpop.f32.mrf.mxu1  ;;  %2930 = vmatprep.subr.bf16.mxu1 %v10465_v28  ;;  %v10477_v28 = vld [vmem:[%s15703_s3 + $0x84] ss:$8 sps:$4 sm:$0xff]  }
 0x148   :  { %15899 = vst [vmem:[#allocation55_spill] sm:$0xff] %v12626_v12  ;;  %v12634_v13 = vpop.f32.mrf.mxu0  ;;  %v10460_v12 = vld [vmem:[%s15703_s3 + $0xa0] ss:$8 sps:$4 sm:$0xff]  }
 0x149   :  { %15900 = vst [vmem:[#allocation56_spill] sm:$0xff] %v12634_v13  ;;  %v12636_v43 = vpop.f32.mrf.mxu1  ;;  %2876 = vmatpush2.bf16.msra.mxu0 %v10460_v12  ;;  %v10466_v12 = vld [vmem:[%s15703_s3 + $0x120] ss:$8 sps:$4 sm:$0xff]  }
 0x14a   :  { %15901 = vst [vmem:[#allocation57_spill] sm:$0xff] %v12636_v43  ;;  %v12644_v0 = vpop.f32.mrf.mxu0  ;;  %1633 = vmatmul.mubr.bf16.gmra.mxu0 %v12322_v35 }
 0x14b   :  { %15902 = vst [vmem:[#allocation58_spill] sm:$0xff] %v12644_v0  ;;  %v12646_v16 = vpop.f32.mrf.mxu1  ;;  %1786 = vmatmul.mubr.bf16.gmra.mxu1 %v12322_v35  ;;  %1642 = vmatprep.mubr.bf16.mxu0 %v12327_v18  ;;  %v10471_v35 = vld [vmem:[%s15703_s3 + $0x94] ss:$8 sps:$4 sm:$0xff]  }
 0x14c   :  { %15903 = vst [vmem:[#allocation59_spill] sm:$0xff] %v12646_v16  ;;  %1795 = vmatprep.mubr.bf16.mxu1 %v12327_v18  ;;  %v12655_v14 = vpop.f32.mrf.mxu0  ;;  %v10463_v16 = vld [vmem:[%s15703_s3 + $0x130] ss:$8 sps:$4 sm:$0xff]   ;;  %2877 = vmatprep.subr.bf16.mxu0 %v10471_v35 }
 0x14d   :  { %15904 = vst [vmem:[#allocation60_spill] sm:$0xff] %v12655_v14  ;;  %v12657_v44 = vpop.f32.mrf.mxu1  ;;  %v10469_v18 = vld [vmem:[%s15703_s3 + $0x90] ss:$8 sps:$4 sm:$0xff]   ;;  %2931 = vmatpush1.bf16.msra.mxu1 %v10463_v16  ;;  %v10475_v16 = vld [vmem:[%s15703_s3 + $0x80] ss:$8 sps:$4 sm:$0xff]  }
 0x14e   :  { %15905 = vst [vmem:[#allocation61_spill] sm:$0xff] %v12657_v44  ;;  %v12668_v43 = vpop.f32.mrf.mxu0  ;;  %2932 = vmatprep.subr.bf16.mxu1 %v10468_v26  ;;  %2878 = vmatpush2.bf16.msra.mxu0 %v10469_v18  ;;  %v10474_v18 = vld [vmem:[%s15703_s3 + $0x114] ss:$8 sps:$4 sm:$0xff]  }
 0x14f   :  { %15906 = vst [vmem:[#allocation62_spill] sm:$0xff] %v12668_v43  ;;  %v12670_v9 = vpop.f32.mrf.mxu1  ;;  %2879 = vmatprep.subr.bf16.mxu0 %v10477_v28  ;;  %v10484_v28 = vld [vmem:[%s15703_s3 + $0x1f4] ss:$8 sps:$4 sm:$0xff]  }
 0x150   :  { %15907 = vst [vmem:[#allocation63_spill] sm:$0xff] %v12670_v9  ;;  %v12675_v44 = vpop.f32.mrf.mxu0 }
 0x151   :  { %15908 = vst [vmem:[#allocation64_spill] sm:$0xff] %v12675_v44  ;;  %v12677_v60 = vpop.f32.mrf.mxu1  ;;  %2933 = vmatpush1.bf16.msra.mxu1 %v10466_v12  ;;  %v10478_v12 = vld [vmem:[%s15703_s3 + $0x100] ss:$8 sps:$4 sm:$0xff]  }
 0x152   :  { %15909 = vst [vmem:[#allocation65_spill] sm:$0xff] %v12677_v60  ;;  %v12688_v35 = vpop.f32.mrf.mxu0  ;;  %1643 = vmatmul.mubr.bf16.gmra.mxu0 %v12336_v22  ;;  %2934 = vmatprep.subr.bf16.mxu1 %v10474_v18 }
 0x153   :  { %15910 = vst [vmem:[#allocation66_spill] sm:$0xff] %v12688_v35  ;;  %v12690_v9 = vpop.f32.mrf.mxu1  ;;  %1796 = vmatmul.mubr.bf16.gmra.mxu1 %v12336_v22  ;;  %1652 = vmatprep.mubr.bf16.mxu0 %v12341_v24 }
 0x154   :  { %15911 = vst [vmem:[#allocation67_spill] sm:$0xff] %v12690_v9  ;;  %1805 = vmatprep.mubr.bf16.mxu1 %v12341_v24  ;;  %v12699_v26 = vpop.f32.mrf.mxu0  ;;  %v10472_v9 = vld [vmem:[%s15703_s3 + $0x110] ss:$8 sps:$4 sm:$0xff]   ;;  %2880 = vmatpush2.bf16.msra.mxu0 %v10475_v16  ;;  %v10480_v24 = vld [vmem:[%s15703_s3 + $0x104] ss:$8 sps:$4 sm:$0xff]  }
 0x155   :  { %15912 = vst [vmem:[#allocation68_spill] sm:$0xff] %v12699_v26  ;;  %v12701_v60 = vpop.f32.mrf.mxu1  ;;  %2935 = vmatpush1.bf16.msra.mxu1 %v10472_v9  ;;  %3381 = vmatprep.subr.bf16.mxu0 %v10484_v28 }
 0x156   :  { %15913 = vst [vmem:[#allocation69_spill] sm:$0xff] %v12701_v60  ;;  %v12706_v22 = vpop.f32.mrf.mxu0  ;;  %2936 = vmatprep.subr.bf16.mxu1 %v10480_v24 }
 0x157   :  { %15914 = vst [vmem:[#allocation70_spill] sm:$0xff] %v12706_v22  ;;  %v12708_v54 = vpop.f32.mrf.mxu1 }
 0x158   :  { %15915 = vst [vmem:[#allocation71_spill] sm:$0xff] %v12708_v54  ;;  %v12713_v7 = vpop.f32.mrf.mxu0  ;;  %v15737_v54 = vmov 0  }
 0x159   :  { %15916 = vst [vmem:[#allocation72_spill] sm:$0xff] %v12713_v7  ;;  %v12715_v41 = vpop.f32.mrf.mxu1  ;;  %2937 = vmatpush1.bf16.msra.mxu1 %v10478_v12 }
 0x15a   :  { %15917 = vst [vmem:[#allocation73_spill] sm:$0xff] %v12715_v41  ;;  %v12723_v16 = vpop.f32.mrf.mxu0  ;;  %1653 = vmatmul.mubr.bf16.gmra.mxu0 %v12350_v30  ;;  %3454 = vmatprep.subr.bf16.mxu1 %v10497_v63 }
 0x15b   :  { %15918 = vst [vmem:[#allocation74_spill] sm:$0xff] %v12723_v16  ;;  %v12725_v18 = vpop.f32.mrf.mxu1  ;;  %1806 = vmatmul.mubr.bf16.gmra.mxu1 %v12350_v30 }
 0x15c   :  { %15919 = vst [vmem:[#allocation75_spill] sm:$0xff] %v12725_v18  ;;  %v12729_v41 = vpop.f32.mrf.mxu0  ;;  %2954 = vmatprep.mubr.bf16.mxu1 %v15737_v54 }
 0x15d   :  { %15920 = vst [vmem:[#allocation76_spill] sm:$0xff] %v12729_v41  ;;  %v12731_v9 = vpop.f32.mrf.mxu1 }
 0x15e   :  { %15921 = vst [vmem:[#allocation77_spill] sm:$0xff] %v12731_v9  ;;  %v12734_v60 = vpop.f32.mrf.mxu0 }
 0x15f   :  { %15922 = vst [vmem:[#allocation78_spill] sm:$0xff] %v12734_v60  ;;  %v12736_v24 = vpop.f32.mrf.mxu1 }
 0x160   :  { %15923 = vst [vmem:[#allocation79_spill] sm:$0xff] %v12736_v24  ;;  %v12738_v37 = vpop.f32.mrf.mxu0 }
 0x161   :  { %15924 = vst [vmem:[#allocation80_spill] sm:$0xff] %v12738_v37  ;;  %v12740_v18 = vpop.f32.mrf.mxu1 }
 0x162   :  { %15925 = vst [vmem:[#allocation81_spill] sm:$0xff] %v12740_v18  ;;  %v12742_v31 = vpop.f32.mrf.mxu0 }
 0x163   :  { %15926 = vst [vmem:[#allocation82_spill] sm:$0xff] %v12742_v31  ;;  %v12744_v30 = vpop.f32.mrf.mxu1 }
 0x164   :  { %v12746_v28 = vpop.f32.mrf.mxu0 }
 0x165   :  { %15927 = vst [vmem:[#allocation83_spill] sm:$0xff] %v12746_v28  ;;  %v12748_v41 = vpop.f32.mrf.mxu1 }
 0x166   :  { %v12750_v12 = vpop.f32.mrf.mxu0  ;;  %v1817_v5 = vmax.f32 %v12370_v40, %v12748_v41 }
 0x167   :  { %15928 = vst [vmem:[#allocation84_spill] sm:$0xff] %v12750_v12  ;;  %v12752_v9 = vpop.f32.mrf.mxu1 }
 0x168   :  { %v12754_v54 = vpop.f32.mrf.mxu0 }
 0x169   :  { %15929 = vst [vmem:[#allocation85_spill] sm:$0xff] %v12754_v54  ;;  %v12756_v60 = vpop.f32.mrf.mxu1 }
 0x16a   :  { %v12758_v24 = vpop.f32.mrf.mxu0  ;;  %v16046_v41 = vmax.f32 %v12384_v53, %v12756_v60 }
 0x16b   :  { %15930 = vst [vmem:[#allocation86_spill] sm:$0xff] %v12758_v24  ;;  %v12760_v37 = vpop.f32.mrf.mxu1 }
 0x16c   :  { %v12762_v18 = vpop.f32.mrf.mxu0 }
 0x16d   :  { %15931 = vst [vmem:[#allocation87_spill] sm:$0xff] %v12762_v18  ;;  %v12764_v3 = vpop.f32.mrf.mxu1 }
 0x16e   :  { %v12766_v48 = vpop.f32.mrf.mxu0  ;;  %v16040_v46 = vld [vmem:[#allocation84_spill] sm:$0xff] }
 0x16f   :  { %15932 = vst [vmem:[#allocation88_spill] sm:$0xff] %v12766_v48  ;;  %v12768_v59 = vpop.f32.mrf.mxu1 }
 0x170   :  { %v12773_v16 = vpop.f32.mrf.mxu0 }
 0x171   :  { %15933 = vst [vmem:[#allocation89_spill] sm:$0xff] %v12773_v16  ;;  %v12775_v54 = vpop.f32.mrf.mxu1 }
 0x172   :  { %v12777_v24 = vpop.f32.mrf.mxu0  ;;  %v16050_v60 = vld [vmem:[#allocation86_spill] sm:$0xff] }
 0x173   :  { %15934 = vst [vmem:[#allocation90_spill] sm:$0xff] %v12777_v24  ;;  %v12779_v51 = vpop.f32.mrf.mxu1 }
 0x174   :  { %v12781_v18 = vpop.f32.mrf.mxu0 }
 0x175   :  { %15935 = vst [vmem:[#allocation91_spill] sm:$0xff] %v12781_v18  ;;  %v12783_v7 = vpop.f32.mrf.mxu1 }
 0x176   :  { %v12785_v48 = vpop.f32.mrf.mxu0 }
 0x177   :  { %15936 = vst [vmem:[#allocation92_spill] sm:$0xff] %v12785_v48  ;;  %v12787_v55 = vpop.f32.mrf.mxu1 }
 0x178   :  { %v12789_v22 = vpop.f32.mrf.mxu0 }
 0x179   :  { %15937 = vst [vmem:[#allocation93_spill] sm:$0xff] %v12789_v22  ;;  %v12791_v12 = vpop.f32.mrf.mxu1 }
 0x17a   :  { %v12793_v16 = vpop.f32.mrf.mxu0 }
 0x17b   :  { %15938 = vst [vmem:[#allocation94_spill] sm:$0xff] %v12793_v16  ;;  %v12795_v26 = vpop.f32.mrf.mxu1 }
 0x17c   :  { %v12797_v63 = vpop.f32.mrf.mxu0 }
 0x17d   :  { %15939 = vst [vmem:[#allocation95_spill] sm:$0xff] %v12797_v63  ;;  %v12799_v24 = vpop.f32.mrf.mxu1 }
 0x17e   :  { %v12801_v35 = vpop.f32.mrf.mxu0 }
 0x17f   :  { %15940 = vst [vmem:[#allocation96_spill] sm:$0xff] %v12801_v35  ;;  %v12803_v18 = vpop.f32.mrf.mxu1 }
 0x180   :  { %v12805_v44 = vpop.f32.mrf.mxu0 }
 0x181   :  { %15941 = vst [vmem:[#allocation97_spill] sm:$0xff] %v12805_v44  ;;  %v12807_v48 = vpop.f32.mrf.mxu1 }
 0x182   :  { %v12809_v43 = vpop.f32.mrf.mxu0 }
 0x183   :  { %15942 = vst [vmem:[#allocation98_spill] sm:$0xff] %v12809_v43  ;;  %v12811_v22 = vpop.f32.mrf.mxu1 }
 0x184   :  { %v12813_v14 = vpop.f32.mrf.mxu0 }
 0x185   :  { %15943 = vst [vmem:[#allocation99_spill] sm:$0xff] %v12813_v14  ;;  %v12815_v16 = vpop.f32.mrf.mxu1 }
 0x186   :  { %v12817_v0 = vpop.f32.mrf.mxu0 }
 0x187   :  { %15944 = vst [vmem:[#allocation100_spill] sm:$0xff] %v12817_v0  ;;  %v12819_v63 = vpop.f32.mrf.mxu1 }
 0x188   :  { %15945 = vst [vmem:[#allocation101_spill] sm:$0xff] %v12819_v63  ;;  %v12821_v13 = vpop.f32.mrf.mxu0 }
 0x189   :  { %15946 = vst [vmem:[#allocation102_spill] sm:$0xff] %v12821_v13  ;;  %v12823_v35 = vpop.f32.mrf.mxu1 }
 0x18a   :  { %15947 = vst [vmem:[#allocation103_spill] sm:$0xff] %v12823_v35  ;;  %v12825_v62 = vpop.f32.mrf.mxu0 }
 0x18b   :  { %15948 = vst [vmem:[#allocation104_spill] sm:$0xff] %v12825_v62  ;;  %v12827_v44 = vpop.f32.mrf.mxu1 }
 0x18c   :  { %15949 = vst [vmem:[#allocation105_spill] sm:$0xff] %v12827_v44  ;;  %v12829_v28 = vpop.f32.mrf.mxu0 }
 0x18d   :  { %15950 = vst [vmem:[#allocation106_spill] sm:$0xff] %v12829_v28  ;;  %v12831_v43 = vpop.f32.mrf.mxu1 }
 0x18e   :  { %15951 = vst [vmem:[#allocation107_spill] sm:$0xff] %v12831_v43  ;;  %v12833_v42 = vpop.f32.mrf.mxu0 }
 0x18f   :  { %15952 = vst [vmem:[#allocation108_spill] sm:$0xff] %v12833_v42  ;;  %v12835_v14 = vpop.f32.mrf.mxu1 }
 0x190   :  { %15953 = vst [vmem:[#allocation109_spill] sm:$0xff] %v12835_v14  ;;  %v12837_v38 = vpop.f32.mrf.mxu0 }
 0x191   :  { %15954 = vst [vmem:[#allocation110_spill] sm:$0xff] %v12837_v38  ;;  %v12839_v0 = vpop.f32.mrf.mxu1 }
 0x192   :  { %15955 = vst [vmem:[#allocation111_spill] sm:$0xff] %v12839_v0  ;;  %v12841_v21 = vpop.f32.mrf.mxu0  ;;  %v16012_v0 = vld [vmem:[#allocation82_spill] sm:$0xff] }
 0x193   :  { %15956 = vst [vmem:[#allocation112_spill] sm:$0xff] %v12841_v21  ;;  %v12843_v13 = vpop.f32.mrf.mxu1 }
 0x194   :  { %15957 = vst [vmem:[#allocation113_spill] sm:$0xff] %v12843_v13  ;;  %v12845_v45 = vpop.f32.mrf.mxu0 }
 0x195   :  { %15958 = vst [vmem:[#allocation114_spill] sm:$0xff] %v12845_v45  ;;  %v12847_v62 = vpop.f32.mrf.mxu1 }
 0x196   :  { %15959 = vst [vmem:[#allocation115_spill] sm:$0xff] %v12847_v62  ;;  %v12849_v8 = vpop.f32.mrf.mxu0 }
 0x197   :  { %15960 = vst [vmem:[#allocation116_spill] sm:$0xff] %v12849_v8  ;;  %v12851_v28 = vpop.f32.mrf.mxu1 }
 0x198   :  { %15961 = vst [vmem:[#allocation117_spill] sm:$0xff] %v12851_v28  ;;  %v12853_v61 = vpop.f32.mrf.mxu0 }
 0x199   :  { %15962 = vst [vmem:[#allocation118_spill] sm:$0xff] %v12853_v61  ;;  %v12855_v42 = vpop.f32.mrf.mxu1 }
 0x19a   :  { %15963 = vst [vmem:[#allocation119_spill] sm:$0xff] %v12855_v42  ;;  %v12857_v31 = vpop.f32.mrf.mxu0 }
 0x19b   :  { %15964 = vst [vmem:[#allocation120_spill] sm:$0xff] %v12857_v31  ;;  %v12859_v38 = vpop.f32.mrf.mxu1 }
 0x19c   :  { %15965 = vst [vmem:[#allocation121_spill] sm:$0xff] %v12859_v38  ;;  %v12861_v27 = vpop.f32.mrf.mxu0 }
 0x19d   :  { %15966 = vst [vmem:[#allocation122_spill] sm:$0xff] %v12861_v27  ;;  %v12863_v21 = vpop.f32.mrf.mxu1 }
 0x19e   :  { %15967 = vst [vmem:[#allocation123_spill] sm:$0xff] %v12863_v21  ;;  %v12865_v11 = vpop.f32.mrf.mxu0 }
 0x19f   :  { %15968 = vst [vmem:[#allocation124_spill] sm:$0xff] %v12865_v11  ;;  %v12867_v45 = vpop.f32.mrf.mxu1 }
 0x1a0   :  { %15969 = vst [vmem:[#allocation125_spill] sm:$0xff] %v12867_v45  ;;  %v12869_v2 = vpop.f32.mrf.mxu0 }
 0x1a1   :  { %15970 = vst [vmem:[#allocation126_spill] sm:$0xff] %v12869_v2  ;;  %v12871_v8 = vpop.f32.mrf.mxu1 }
 0x1a2   :  { %15971 = vst [vmem:[#allocation127_spill] sm:$0xff] %v12871_v8  ;;  %v12873_v47 = vpop.f32.mrf.mxu0 }
 0x1a3   :  { %15972 = vst [vmem:[#allocation128_spill] sm:$0xff] %v12873_v47  ;;  %v12875_v61 = vpop.f32.mrf.mxu1 }
 0x1a4   :  { %15973 = vst [vmem:[#allocation129_spill] sm:$0xff] %v12875_v61  ;;  %v12877_v42 = vpop.f32.mrf.mxu0 }
 0x1a5   :  { %15974 = vst [vmem:[#allocation130_spill] sm:$0xff] %v12877_v42  ;;  %v12879_v31 = vpop.f32.mrf.mxu1 }
 0x1a6   :  { %15975 = vst [vmem:[#allocation131_spill] sm:$0xff] %v12879_v31  ;;  %v12881_v38 = vpop.f32.mrf.mxu0  ;;  %v2034_v31 = vlaneseq }
 0x1a7   :  { %15976 = vst [vmem:[#allocation132_spill] sm:$0xff] %v12881_v38  ;;  %v12883_v27 = vpop.f32.mrf.mxu1 }
 0x1a8   :  { %15977 = vst [vmem:[#allocation133_spill] sm:$0xff] %v12883_v27  ;;  %v12885_v21 = vpop.f32.mrf.mxu0 }
 0x1a9   :  { %15978 = vst [vmem:[#allocation134_spill] sm:$0xff] %v12885_v21  ;;  %v12887_v11 = vpop.f32.mrf.mxu1 }
 0x1aa   :  { %15979 = vst [vmem:[#allocation135_spill] sm:$0xff] %v12887_v11  ;;  %v12889_v45 = vpop.f32.mrf.mxu0 }
 0x1ab   :  { %15980 = vst [vmem:[#allocation136_spill] sm:$0xff] %v12889_v45  ;;  %v12891_v2 = vpop.f32.mrf.mxu1  ;;  %v2035_v45 = vshrl.u32 %v2034_v31, 7 }
 0x1ac   :  { %15981 = vst [vmem:[#allocation137_spill] sm:$0xff] %v12891_v2  ;;  %v12893_v8 = vpop.f32.mrf.mxu0 }
 0x1ad   :  { %15982 = vst [vmem:[#allocation138_spill] sm:$0xff] %v12893_v8  ;;  %v12895_v47 = vpop.f32.mrf.mxu1 }
 0x1ae   :  { %15983 = vst [vmem:[#allocation139_spill] sm:$0xff] %v12895_v47  ;;  %v12897_v61 = vpop.f32.mrf.mxu0 }
 0x1af   :  { %15984 = vst [vmem:[#allocation140_spill] sm:$0xff] %v12897_v61  ;;  %v12899_v42 = vpop.f32.mrf.mxu1  ;;  %v2032_v61 = vld [vmem:[%s15704_s2] sm:$0x7] }
 0x1b0   :  { %15985 = vst [vmem:[#allocation141_spill] sm:$0xff] %v12899_v42  ;;  %v12901_v38 = vpop.f32.mrf.mxu0  ;;  %v2036_v42 = vsub.s32 0, %v2035_v45 }
 0x1b1   :  { %15986 = vst [vmem:[#allocation142_spill] sm:$0xff] %v12901_v38  ;;  %v12903_v27 = vpop.f32.mrf.mxu1  ;;  %v2040_v38 = vsub.s32 1, %v2035_v45 }
 0x1b2   :  { %15987 = vst [vmem:[#allocation143_spill] sm:$0xff] %v12903_v27  ;;  %v12905_v21 = vpop.f32.mrf.mxu0 }
 0x1b3   :  { %15988 = vst [vmem:[#allocation144_spill] sm:$0xff] %v12905_v21  ;;  %v12907_v11 = vpop.f32.mrf.mxu1 }
 0x1b4   :  { %15989 = vst [vmem:[#allocation145_spill] sm:$0xff] %v12907_v11  ;;  %v12909_v28 = vpop.f32.mrf.mxu0  ;;  %v2044_v11 = vsub.s32 2, %v2035_v45 }
 0x1b5   :  { %15990 = vst [vmem:[#allocation146_spill] sm:$0xff] %v12909_v28  ;;  %v12911_v2 = vpop.f32.mrf.mxu1 }
 0x1b6   :  { %15991 = vst [vmem:[#allocation147_spill] sm:$0xff] %v12911_v2  ;;  %v12913_v8 = vpop.f32.mrf.mxu0  ;;  %v12928_v2 = vrot.slane %v2032_v61, %v2040_v38  ;;  %v16022_v38 = vld [vmem:[#allocation19_spill] sm:$0xff] }
 0x1b7   :  { %15992 = vst [vmem:[#allocation148_spill] sm:$0xff] %v12913_v8  ;;  %v12915_v47 = vpop.f32.mrf.mxu1  ;;  %v12930_v8 = vrot.slane %v2032_v61, %v2036_v42 }
 0x1b8   :  { %15993 = vst [vmem:[#allocation149_spill] sm:$0xff] %v12915_v47  ;;  %v12920_v27 = vpop.f32.mrf.mxu0  ;;  %v1816_v47 = vmax.f32 %v12362_v36, %v12744_v30 }
 0x1b9   :  { %15994 = vst [vmem:[#allocation150_spill] sm:$0xff] %v12920_v27  ;;  %v12922_v21 = vpop.f32.mrf.mxu1 }
 0x1ba   :  { %v12924_v31 = vpop.f32.mrf.mxu0 }
 0x1bb   :  { %15995 = vst [vmem:[#allocation151_spill] sm:$0xff] %v12924_v31  ;;  %v12926_v28 = vpop.f32.mrf.mxu1  ;;  %v12942_v31 = vrot.slane %v2032_v61, %v2044_v11  ;;  %v16021_v11 = vld [vmem:[#allocation4_spill] sm:$0xff] }
 0x1bc   :  { %v12938_v62 = vpop.f32.mrf.mxu0 }
 0x1bd   :  { %15996 = vst [vmem:[#allocation152_spill] sm:$0xff] %v12938_v62  ;;  %v12940_v45 = vpop.f32.mrf.mxu1 }
 0x1be   :  { %15997 = vst [vmem:[#allocation153_spill] sm:$0xff] %v12940_v45  ;;  %v12960_v27 = vpop.f32.mrf.mxu0 }
 0x1bf   :  { %15998 = vst [vmem:[#allocation154_spill] sm:$0xff] %v12960_v27  ;;  %v12962_v42 = vpop.f32.mrf.mxu1 }
 0x1c0   :  { %15999 = vst [vmem:[#allocation155_spill] sm:$0xff] %v12962_v42  ;;  %v12980_v27 = vpop.f32.mrf.mxu0 }
 0x1c1   :  { %16000 = vst [vmem:[#allocation156_spill] sm:$0xff] %v12980_v27  ;;  %v12982_v40 = vpop.f32.mrf.mxu1 }
 0x1c2   :  { %16001 = vst [vmem:[#allocation157_spill] sm:$0xff] %v12982_v40  ;;  %v1544_v63 = vpop.f32.mrf.mxu0 }
 0x1c3   :  { %v1697_v30 = vpop.f32.mrf.mxu1  ;;  %v1818_v43 = vmax.f32 %v16021_v11, %v1544_v63  ;;  %v16034_v11 = vld [vmem:[#allocation143_spill] sm:$0xff] }
 0x1c4   :  { %v1820_v32 = vmax.f32 %v16012_v0, %v1697_v30  ;;  %v1546_v44 = vpop.f32.mrf.mxu0  ;;  %v16023_v0 = vld [vmem:[#allocation83_spill] sm:$0xff] }
 0x1c5   :  { %v1699_v23 = vpop.f32.mrf.mxu1  ;;  %v1819_v14 = vmax.f32 %v16022_v38, %v1546_v44 }
 0x1c6   :  { %v1961_v4 = vmax.f32 %v1817_v5, %v1820_v32  ;;  %v1821_v30 = vmax.f32 %v16023_v0, %v1699_v23  ;;  %v1548_v35 = vpop.f32.mrf.mxu0  ;;  %v16033_v32 = vld [vmem:[#allocation62_spill] sm:$0xff]  ;;  %v16035_v0 = vld [vmem:[#allocation64_spill] sm:$0xff] }
 0x1c7   :  { %v1701_v15 = vpop.f32.mrf.mxu1  ;;  %v1960_v23 = vmax.f32 %v1816_v47, %v1819_v14  ;;  %v16042_v5 = vld [vmem:[#allocation70_spill] sm:$0xff]  ;;  %v1824_v40 = vmax.f32 %v16045_v1, %v1548_v35 }
 0x1c8   :  { %v13029_v44 = vadd.f32 %v12928_v2, %v1961_v4  ;;  %v1962_v38 = vmax.f32 %v1818_v43, %v1821_v30  ;;  %v1826_v42 = vmax.f32 %v16040_v46, %v1701_v15  ;;  %v1550_v61 = vpop.f32.mrf.mxu0  ;;  %v16043_v43 = vld [vmem:[#allocation20_spill] sm:$0xff]  ;;  %v16047_v15 = vld [vmem:[#allocation85_spill] sm:$0xff] }
 0x1c9   :  { %v1703_v13 = vpop.f32.mrf.mxu1  ;;  %v2049_v4 = vadd.f32 %v12930_v8, %v1960_v23  ;;  %v1825_v14 = vmax.f32 %v16043_v43, %v1550_v61  ;;  %v16044_v30 = vld [vmem:[#allocation72_spill] sm:$0xff]  ;;  %v16048_v61 = vmax.f32 %v12380_v49, %v12752_v9  ;;  %v16049_v43 = vld [vmem:[#allocation74_spill] sm:$0xff] }
 0x1ca   :  { %v2051_v47 = vadd.f32 %v12942_v31, %v1962_v38  ;;  %v1964_v46 = vmax.f32 %v16046_v41, %v1826_v42  ;;  %v1827_v25 = vmax.f32 %v16047_v15, %v1703_v13  ;;  %v1554_v45 = vpop.f32.mrf.mxu0  ;;  %v16052_v49 = vld [vmem:[#allocation6_spill] sm:$0xff] }
 0x1cb   :  { %v1707_v27 = vpop.f32.mrf.mxu1  ;;  %v2121_v23 = vmax.f32 %v2049_v4, 0.0  ;;  %v1963_v38 = vmax.f32 %v16048_v61, %v1825_v14  ;;  %v16051_v4 = vld [vmem:[#allocation7_spill] sm:$0xff]  ;;  %v1830_v9 = vmax.f32 %v16052_v49, %v1554_v45  ;;  %v16053_v14 = vmax.f32 %v12402_v58, %v12764_v3  ;;  %v16057_v3 = vld [vmem:[#allocation8_spill] sm:$0xff] }
 0x1cc   :  { %v2123_v62 = vmax.f32 %v2051_v47, 0.0  ;;  %v13057_v1 = vadd.f32 %v12928_v2, %v1964_v46  ;;  %v1965_v53 = vmax.f32 %v1824_v40, %v1827_v25  ;;  %v1832_v35 = vmax.f32 %v16050_v60, %v1707_v27  ;;  %v1556_v13 = vpop.f32.mrf.mxu0  ;;  %v16054_v46 = vld [vmem:[#allocation87_spill] sm:$0xff] }
 0x1cd   :  { %v1709_v42 = vpop.f32.mrf.mxu1  ;;  %v2052_v15 = vadd.f32 %v12930_v8, %v1963_v38  ;;  %v1831_v47 = vmax.f32 %v16051_v4, %v1556_v13  ;;  %v16055_v38 = vmax.f32 %v12388_v57, %v12760_v37  ;;  %v16056_v13 = vld [vmem:[#allocation88_spill] sm:$0xff]  ;;  %v16059_v57 = vld [vmem:[#allocation21_spill] sm:$0xff] }
 0x1ce   :  { %v9998_v41 = vpack.c.bf16 %v2123_v62, %v2123_v62  ;;  %v2054_v63 = vadd.f32 %v12942_v31, %v1965_v53  ;;  %v1967_v61 = vmax.f32 %v16053_v14, %v1832_v35  ;;  %v1833_v36 = vmax.f32 %v16054_v46, %v1709_v42  ;;  %v1558_v25 = vpop.f32.mrf.mxu0 }
 0x1cf   :  { %v1711_v40 = vpop.f32.mrf.mxu1  ;;  %v2125_v27 = vmax.f32 %v13057_v1, 0.0  ;;  %v2124_v62 = vmax.f32 %v2052_v15, 0.0  ;;  %v1966_v60 = vmax.f32 %v16055_v38, %v1831_v47  ;;  %v1836_v35 = vmax.f32 %v16057_v3, %v1558_v25  ;;  %v16062_v38 = vld [vmem:[#allocation9_spill] sm:$0xff] }
 0x1d0   :  { %2434 = vst [vmem:[#allocation2 + $0x8] sm:$0xf] %v9998_v41  ;;  %v1838_v53 = vmax.f32 %v16056_v13, %v1711_v40  ;;  %v2126_v4 = vmax.f32 %v2054_v63, 0.0  ;;  %v13074_v45 = vadd.f32 %v12928_v2, %v1967_v61  ;;  %v1968_v58 = vmax.f32 %v1830_v9, %v1833_v36  ;;  %v1560_v42 = vpop.f32.mrf.mxu0  ;;  %v16060_v61 = vld [vmem:[#allocation89_spill] sm:$0xff] }
 0x1d1   :  { %v1713_v49 = vpop.f32.mrf.mxu1  ;;  %v13078_v41 = vadd.f32 %v12930_v8, %v1966_v60  ;;  %v16058_v1 = vmax.f32 %v12410_v19, %v12775_v54  ;;  %v1837_v37 = vmax.f32 %v16059_v57, %v1560_v42  ;;  %v16061_v19 = vmax.f32 %v12406_v17, %v12768_v59  ;;  %v16064_v57 = vld [vmem:[#allocation22_spill] sm:$0xff] }
 0x1d2   :  { %v10000_v47 = vpack.c.bf16 %v2126_v4, %v2126_v4  ;;  %v2128_v63 = vmax.f32 %v13074_v45, 0.0  ;;  %v2057_v14 = vadd.f32 %v12942_v31, %v1968_v58  ;;  %v1839_v36 = vmax.f32 %v16060_v61, %v1713_v49  ;;  %v1564_v9 = vpop.f32.mrf.mxu0  ;;  %v16063_v4 = vld [vmem:[#allocation90_spill] sm:$0xff] }
 0x1d3   :  { %v1970_v15 = vmax.f32 %v16058_v1, %v1838_v53  ;;  %v1717_v46 = vpop.f32.mrf.mxu1  ;;  %v2127_v25 = vmax.f32 %v13078_v41, 0.0  ;;  %v1969_v54 = vmax.f32 %v16061_v19, %v1837_v37  ;;  %v1842_v60 = vmax.f32 %v16062_v38, %v1564_v9  ;;  %v16068_v19 = vld [vmem:[#allocation10_spill] sm:$0xff]  ;;  %v16069_v38 = vld [vmem:[#allocation92_spill] sm:$0xff] }
 0x1d4   :  { %2436 = vst [vmem:[#allocation2 + $0x14] sm:$0xf] %v10000_v47  ;;  %v2129_v13 = vmax.f32 %v2057_v14, 0.0  ;;  %v1971_v53 = vmax.f32 %v1836_v35, %v1839_v36  ;;  %v1844_v58 = vmax.f32 %v16063_v4, %v1717_v46  ;;  %v1566_v3 = vpop.f32.mrf.mxu0  ;;  %v11277_v49 = vpack.c.bf16 %v2124_v62, %v2121_v23  ;;  %v16066_v14 = vld [vmem:[#allocation91_spill] sm:$0xff] }
 0x1d5   :  { %v13089_v40 = vadd.f32 %v12928_v2, %v1970_v15  ;;  %v1719_v42 = vpop.f32.mrf.mxu1  ;;  %v10001_v41 = vpack.c.bf16 %v2128_v63, %v2127_v25  ;;  %v2058_v15 = vadd.f32 %v12930_v8, %v1969_v54  ;;  %v1843_v59 = vmax.f32 %v16064_v57, %v1566_v3 }
 0x1d6   :  { %v10002_v17 = vpack.c.bf16 %v2129_v13, %v2129_v13  ;;  %v2060_v37 = vadd.f32 %v12942_v31, %v1971_v53  ;;  %v16065_v35 = vmax.f32 %v12428_v33, %v12783_v7  ;;  %v1845_v61 = vmax.f32 %v16066_v14, %v1719_v42  ;;  %v1568_v36 = vpop.f32.mrf.mxu0 }
 0x1d7   :  { %v2131_v1 = vmax.f32 %v13089_v40, 0.0  ;;  %v1721_v23 = vpop.f32.mrf.mxu1  ;;  %2437 = vst [vmem:[#allocation2 + $0x18] sm:$0xff] %v10001_v41  ;;  %v2130_v62 = vmax.f32 %v2058_v15, 0.0  ;;  %v16067_v9 = vmax.f32 %v12420_v29, %v12779_v51  ;;  %v1848_v54 = vmax.f32 %v16068_v19, %v1568_v36  ;;  %v10482_v51 = vld [vmem:[%s15703_s3 + $0x1f0] ss:$8 sps:$4 sm:$0xff]  }
 0x1d8   :  { %v1973_v47 = vmax.f32 %v16065_v35, %v1844_v58  ;;  %v1850_v13 = vmax.f32 %v16069_v38, %v1721_v23  ;;  %2438 = vst [vmem:[#allocation2 + $0x20] sm:$0xf] %v10002_v17  ;;  %v2132_v53 = vmax.f32 %v2060_v37, 0.0  ;;  %v1974_v33 = vmax.f32 %v1842_v60, %v1845_v61  ;;  %v1570_v7 = vpop.f32.mrf.mxu0  ;;  %v16072_v60 = vld [vmem:[#allocation11_spill] sm:$0xff]  ;;  %v16073_v35 = vld [vmem:[#allocation93_spill] sm:$0xff] }
 0x1d9   :  { %v1972_v46 = vmax.f32 %v16067_v9, %v1843_v59  ;;  %v1723_v58 = vpop.f32.mrf.mxu1  ;;  %v16070_v3 = vmax.f32 %v13029_v44, 0.0  ;;  %v10003_v29 = vpack.c.bf16 %v2131_v1, %v2130_v62  ;;  %v16071_v15 = vmax.f32 %v12442_v50, %v12791_v12  ;;  %v10487_v44 = vld [vmem:[%s15703_s3 + $0x1e4] ss:$8 sps:$4 sm:$0xff]   ;;  %v10495_v50 = vld [vmem:[%s15703_s3 + $0x2f0] ss:$8 sps:$4 sm:$0xff]  }
 0x1da   :  { %v13112_v4 = vadd.f32 %v12928_v2, %v1973_v47  ;;  %v1849_v59 = vmax.f32 %v16072_v60, %v1570_v7  ;;  %v2063_v37 = vadd.f32 %v12942_v31, %v1974_v33  ;;  %v1851_v47 = vmax.f32 %v16073_v35, %v1723_v58  ;;  %v1574_v14 = vpop.f32.mrf.mxu0  ;;  %v16076_v33 = vld [vmem:[#allocation94_spill] sm:$0xff] }
 0x1db   :  { %v11278_v42 = vpack.c.bf16 %v2125_v27, %v16070_v3  ;;  %v13122_v41 = vadd.f32 %v12930_v8, %v1972_v46  ;;  %v1976_v57 = vmax.f32 %v16071_v15, %v1850_v13  ;;  %v10004_v27 = vpack.c.bf16 %v2132_v53, %v2132_v53  ;;  %v1727_v61 = vpop.f32.mrf.mxu1  ;;  %2439 = vst [vmem:[#allocation2 + $0x24] sm:$0xff] %v10003_v29  ;;  %v16075_v46 = vld [vmem:[#allocation12_spill] sm:$0xff]  ;;  %v10481_v38 = vld [vmem:[#allocation2 + $0x8] ss:$12 sps:$4 sm:$0xff]   ;;  %v16077_v15 = vld [vmem:[#allocation23_spill] sm:$0xff] }
 0x1dc   :  { %v2134_v17 = vmax.f32 %v13112_v4, 0.0  ;;  %v16074_v23 = vmax.f32 %v12432_v39, %v12787_v55  ;;  %v1854_v19 = vmax.f32 %v16075_v46, %v1574_v14  ;;  %v2135_v13 = vmax.f32 %v2063_v37, 0.0  ;;  %v1576_v58 = vpop.f32.mrf.mxu0  ;;  %v10504_v55 = vld [vmem:[%s15703_s3 + $0x2e4] ss:$8 sps:$4 sm:$0xff]   ;;  %2955 = vmatmul.mubr.bf16.vlgmr.msra.gmra.mxu1 %v10481_v38 }
 0x1dd   :  { %2881 = vmatprep.mubr.bf16.mxu0 %v11278_v42  ;;  %v2133_v12 = vmax.f32 %v13122_v41, 0.0  ;;  %v13139_v36 = vadd.f32 %v12928_v2, %v1976_v57  ;;  %2440 = vst [vmem:[#allocation2 + $0x2c] sm:$0xf] %v10004_v27  ;;  %v1977_v53 = vmax.f32 %v1848_v54, %v1851_v47  ;;  %v1856_v7 = vmax.f32 %v16076_v33, %v1727_v61  ;;  %v1729_v3 = vpop.f32.mrf.mxu1  ;;  %v10485_v42 = vld [vmem:[%s15703_s3 + $0x1e0] ss:$8 sps:$4 sm:$0xff]   ;;  %v16079_v27 = vld [vmem:[#allocation95_spill] sm:$0xff] }
 0x1de   :  { %v1975_v9 = vmax.f32 %v16074_v23, %v1849_v59  ;;  %2882 = vmatmul.mubr.bf16.vlgmr.msra.gmra.mxu0 %v11277_v49  ;;  %v11279_v29 = vpack.c.bf16 %v2130_v62, %v2127_v25  ;;  %v10491_v25 = vld [vmem:[%s15703_s3 + $0x1d4] ss:$8 sps:$4 sm:$0xff]   ;;  %v10006_v62 = vpack.c.bf16 %v2135_v13, %v2135_v13  ;;  %v16078_v60 = vmax.f32 %v12454_v56, %v12799_v24  ;;  %v1578_v35 = vpop.f32.mrf.mxu0  ;;  %v16082_v46 = vld [vmem:[#allocation13_spill] sm:$0xff]  ;;  %v16083_v56 = vld [vmem:[#allocation96_spill] sm:$0xff] }
 0x1df   :  { %3382 = vmatpush1.bf16.msra.mxu0 %v10482_v51  ;;  %v10005_v39 = vpack.c.bf16 %v2134_v17, %v2133_v12  ;;  %v2137_v49 = vmax.f32 %v13139_v36, 0.0  ;;  %v1855_v51 = vmax.f32 %v16077_v15, %v1576_v58  ;;  %v2066_v57 = vadd.f32 %v12942_v31, %v1977_v53  ;;  %v1731_v47 = vpop.f32.mrf.mxu1  ;;  %3455 = vmatpush1.bf16.msra.mxu1 %v10495_v50  ;;  %v10510_v50 = vld [vmem:[%s15703_s3 + $0x2d4] ss:$8 sps:$4 sm:$0xff]   ;;  %v16086_v15 = vld [vmem:[#allocation97_spill] sm:$0xff] }
 0x1e0   :  { %v2064_v54 = vadd.f32 %v12930_v8, %v1975_v9  ;;  %3383 = vmatprep.subr.bf16.mxu0 %v10487_v44  ;;  %v1979_v59 = vmax.f32 %v16078_v60, %v1856_v7  ;;  %v1857_v37 = vmax.f32 %v16079_v27, %v1729_v3  ;;  %v16080_v14 = vmov 0   ;;  %v10502_v44 = vld [vmem:[%s15703_s3 + $0x2e0] ss:$8 sps:$4 sm:$0xff]   ;;  %2442 = vst [vmem:[#allocation2 + $0x38] sm:$0xf] %v10006_v62  ;;  %v1580_v7 = vpop.f32.mrf.mxu0  ;;  %v16099_v36 = vld [vmem:[#allocation18_spill] sm:$0xff] }
 0x1e1   :  { %2964 = vmatprep.mubr.bf16.mxu1 %v16080_v14  ;;  %2441 = vst [vmem:[#allocation2 + $0x30] sm:$0xff] %v10005_v39  ;;  %v16081_v23 = vmax.f32 %v12446_v52, %v12795_v26  ;;  %v1860_v38 = vmax.f32 %v16082_v46, %v1578_v35  ;;  %v1862_v24 = vmax.f32 %v16083_v56, %v1731_v47  ;;  %v2138_v13 = vmax.f32 %v2066_v57, 0.0  ;;  %v1733_v58 = vpop.f32.mrf.mxu1  ;;  %v10489_v26 = vld [vmem:[%s15703_s3 + $0x1d0] ss:$8 sps:$4 sm:$0xff]   ;;  %v10501_v41 = vld [vmem:[%s15703_s3 + $0x1b4] ss:$8 sps:$4 sm:$0xff]  }
 0x1e2   :  { %v2136_v61 = vmax.f32 %v2064_v54, 0.0  ;;  %v13177_v53 = vadd.f32 %v12928_v2, %v1979_v59  ;;  %v1980_v33 = vmax.f32 %v1854_v19, %v1857_v37  ;;  %v11280_v52 = vpack.c.bf16 %v2131_v1, %v2128_v63  ;;  %3456 = vmatprep.subr.bf16.mxu1 %v10504_v55  ;;  %v16085_v63 = vld [vmem:[#allocation24_spill] sm:$0xff]  ;;  %v1584_v62 = vpop.f32.mrf.mxu0  ;;  %v16088_v37 = vld [vmem:[#allocation14_spill] sm:$0xff] }
 0x1e3   :  { %v1978_v9 = vmax.f32 %v16081_v23, %v1855_v51  ;;  %3384 = vmatpush1.bf16.msra.mxu0 %v10485_v42  ;;  %v16084_v45 = vmax.f32 %v12474_v10, %v12807_v48  ;;  %v1861_v1 = vmax.f32 %v16085_v63, %v1580_v7  ;;  %v10494_v42 = vld [vmem:[%s15703_s3 + $0x1c4] ss:$8 sps:$4 sm:$0xff]   ;;  %v10008_v55 = vpack.c.bf16 %v2138_v13, %v2138_v13  ;;  %v1737_v57 = vpop.f32.mrf.mxu1  ;;  %v10492_v48 = vld [vmem:[%s15703_s3 + $0x1c0] ss:$8 sps:$4 sm:$0xff]   ;;  %v10508_v10 = vld [vmem:[%s15703_s3 + $0x2d0] ss:$8 sps:$4 sm:$0xff]  }
 0x1e4   :  { %v10007_v19 = vpack.c.bf16 %v2137_v49, %v2136_v61  ;;  %3385 = vmatprep.subr.bf16.mxu0 %v10491_v25  ;;  %v2140_v39 = vmax.f32 %v13177_v53, 0.0  ;;  %v2069_v54 = vadd.f32 %v12942_v31, %v1980_v33  ;;  %v1863_v51 = vmax.f32 %v16086_v15, %v1733_v58  ;;  %2891 = vmatprep.mubr.bf16.mxu0 %v11280_v52  ;;  %v10488_v47 = vld [vmem:[#allocation2 + $0x20] ss:$12 sps:$4 sm:$0xff]   ;;  %v16089_v46 = vld [vmem:[#allocation98_spill] sm:$0xff] }
 0x1e5   :  { %v13192_v3 = vadd.f32 %v12930_v8, %v1978_v9  ;;  %v1982_v40 = vmax.f32 %v16084_v45, %v1862_v24  ;;  %v16087_v59 = vmax.f32 %v12464_v6, %v12803_v18  ;;  %v1866_v35 = vmax.f32 %v16088_v37, %v1584_v62  ;;  %3457 = vmatpush1.bf16.msra.mxu1 %v10502_v44  ;;  %v1586_v24 = vpop.f32.mrf.mxu0  ;;  %v1739_v13 = vpop.f32.mrf.mxu1  ;;  %v10517_v6 = vld [vmem:[%s15703_s3 + $0x2c4] ss:$8 sps:$4 sm:$0xff]  }
 0x1e6   :  { %2443 = vst [vmem:[#allocation2 + $0x3c] sm:$0xff] %v10007_v19  ;;  %2892 = vmatmul.mubr.bf16.gmra.mxu0 %v11279_v29  ;;  %2444 = vst [vmem:[#allocation2 + $0x44] sm:$0xf] %v10008_v55  ;;  %v2141_v23 = vmax.f32 %v2069_v54, 0.0  ;;  %v1983_v9 = vmax.f32 %v1860_v38, %v1863_v51  ;;  %v1868_v56 = vmax.f32 %v16089_v46, %v1737_v57  ;;  %3458 = vmatprep.subr.bf16.mxu1 %v10510_v50  ;;  %v16090_v38 = vld [vmem:[#allocation15_spill] sm:$0xff]  ;;  %v16094_v55 = vld [vmem:[#allocation25_spill] sm:$0xff] }
 0x1e7   :  { %v2139_v25 = vmax.f32 %v13192_v3, 0.0  ;;  %v13212_v60 = vadd.f32 %v12928_v2, %v1982_v40  ;;  %v1981_v27 = vmax.f32 %v16087_v59, %v1861_v1  ;;  %3386 = vmatpush1.bf16.msra.mxu0 %v10489_v26  ;;  %v11281_v33 = vpack.c.bf16 %v2136_v61, %v2133_v12  ;;  %2965 = vmatmul.mubr.bf16.gmra.mxu1 %v10488_v47  ;;  %v16092_v26 = vld [vmem:[#allocation99_spill] sm:$0xff]  ;;  %v1588_v19 = vpop.f32.mrf.mxu0  ;;  %v1741_v45 = vpop.f32.mrf.mxu1  ;;  %v10515_v40 = vld [vmem:[%s15703_s3 + $0x2c0] ss:$8 sps:$4 sm:$0xff]  }
 0x1e8   :  { %v1867_v7 = vmax.f32 %v16090_v38, %v1586_v24  ;;  %3387 = vmatprep.subr.bf16.mxu0 %v10494_v42  ;;  %v10010_v12 = vpack.c.bf16 %v2141_v23, %v2141_v23  ;;  %v2072_v61 = vadd.f32 %v12942_v31, %v1983_v9  ;;  %v16091_v58 = vmax.f32 %v12492_v34, %v12815_v16  ;;  %v16095_v34 = vld [vmem:[#allocation100_spill] sm:$0xff]  ;;  %v16119_v53 = vld [vmem:[#allocation33_spill] sm:$0xff] }
 0x1e9   :  { %v10009_v18 = vpack.c.bf16 %v2140_v39, %v2139_v25  ;;  %v2143_v29 = vmax.f32 %v13212_v60, 0.0  ;;  %v2070_v44 = vadd.f32 %v12930_v8, %v1981_v27  ;;  %v1869_v50 = vmax.f32 %v16092_v26, %v1739_v13  ;;  %2974 = vmatprep.mubr.bf16.mxu1 %v16080_v14  ;;  %3459 = vmatpush1.bf16.msra.mxu1 %v10508_v10  ;;  %v1590_v57 = vpop.f32.mrf.mxu0  ;;  %v1743_v59 = vpop.f32.mrf.mxu1 }
 0x1ea   :  { %v1985_v52 = vmax.f32 %v16091_v58, %v1868_v56  ;;  %v16093_v1 = vmax.f32 %v12478_v20, %v12811_v22  ;;  %v1872_v54 = vmax.f32 %v16094_v55, %v1588_v19  ;;  %v1874_v16 = vmax.f32 %v16095_v34, %v1741_v45  ;;  %2446 = vst [vmem:[#allocation2 + $0x50] sm:$0xf] %v10010_v12  ;;  %v10499_v20 = vld [vmem:[%s15703_s3 + $0x1b0] ss:$8 sps:$4 sm:$0xff]   ;;  %v10523_v22 = vld [vmem:[%s15703_s3 + $0x2b4] ss:$8 sps:$4 sm:$0xff]  }
 0x1eb   :  { %2445 = vst [vmem:[#allocation2 + $0x48] sm:$0xff] %v10009_v18  ;;  %v2142_v63 = vmax.f32 %v2070_v44, 0.0  ;;  %v2144_v15 = vmax.f32 %v2072_v61, 0.0  ;;  %v1986_v62 = vmax.f32 %v1866_v35, %v1869_v50  ;;  %3388 = vmatpush1.bf16.msra.mxu0 %v10492_v48  ;;  %v11282_v27 = vpack.c.bf16 %v2137_v49, %v2134_v17  ;;  %3460 = vmatprep.subr.bf16.mxu1 %v10517_v6  ;;  %v16096_v48 = vld [vmem:[#allocation17_spill] sm:$0xff]  ;;  %v16097_v35 = vld [vmem:[#allocation103_spill] sm:$0xff]  ;;  %v16100_v56 = vld [vmem:[#allocation102_spill] sm:$0xff]  ;;  %v1594_v13 = vpop.f32.mrf.mxu0  ;;  %v1747_v6 = vpop.f32.mrf.mxu1 }
 0x1ec   :  { %v1984_v42 = vmax.f32 %v16093_v1, %v1867_v7  ;;  %v2074_v51 = vadd.f32 %v12928_v2, %v1985_v52  ;;  %v16098_v4 = vmax.f32 %v16096_v48, %v16097_v35  ;;  %v1873_v17 = vmax.f32 %v16099_v36, %v1590_v57  ;;  %3389 = vmatprep.subr.bf16.mxu0 %v10501_v41  ;;  %v10507_v49 = vld [vmem:[%s15703_s3 + $0x1a4] ss:$8 sps:$4 sm:$0xff]   ;;  %v10505_v18 = vld [vmem:[%s15703_s3 + $0x1a0] ss:$8 sps:$4 sm:$0xff]   ;;  %v10521_v44 = vld [vmem:[%s15703_s3 + $0x2b0] ss:$8 sps:$4 sm:$0xff]  }
 0x1ed   :  { %v10011_v10 = vpack.c.bf16 %v2143_v29, %v2142_v63  ;;  %v10012_v23 = vpack.c.bf16 %v2144_v15, %v2144_v15  ;;  %v2075_v46 = vadd.f32 %v12942_v31, %v1986_v62  ;;  %v1875_v24 = vmax.f32 %v16100_v56, %v1743_v59  ;;  %2901 = vmatprep.mubr.bf16.mxu0 %v11282_v27  ;;  %v16101_v41 = vld [vmem:[#allocation16_spill] sm:$0xff]  ;;  %v16102_v12 = vld [vmem:[#allocation101_spill] sm:$0xff]  ;;  %v16104_v52 = vld [vmem:[#allocation27_spill] sm:$0xff]  ;;  %v1596_v55 = vpop.f32.mrf.mxu0  ;;  %v1749_v34 = vpop.f32.mrf.mxu1 }
 0x1ee   :  { %v2073_v37 = vadd.f32 %v12930_v8, %v1984_v42  ;;  %v1988_v47 = vmax.f32 %v16098_v4, %v1874_v16  ;;  %v2146_v9 = vmax.f32 %v2074_v51, 0.0  ;;  %v16103_v61 = vmax.f32 %v16101_v41, %v16102_v12  ;;  %v10498_v50 = vld [vmem:[#allocation2 + $0x38] ss:$12 sps:$4 sm:$0xff]   ;;  %2902 = vmatmul.mubr.bf16.gmra.mxu0 %v11281_v33  ;;  %3461 = vmatpush1.bf16.msra.mxu1 %v10515_v40  ;;  %v16106_v40 = vld [vmem:[#allocation29_spill] sm:$0xff] }
 0x1ef   :  { %2447 = vst [vmem:[#allocation2 + $0x54] sm:$0xff] %v10011_v10  ;;  %v1878_v26 = vmax.f32 %v16104_v52, %v1594_v13  ;;  %2448 = vst [vmem:[#allocation2 + $0x5c] sm:$0xf] %v10012_v23  ;;  %v2147_v19 = vmax.f32 %v2075_v46, 0.0  ;;  %v1989_v45 = vmax.f32 %v1872_v54, %v1875_v24  ;;  %v16105_v1 = vld [vmem:[#allocation104_spill] sm:$0xff]  ;;  %3390 = vmatpush1.bf16.msra.mxu0 %v10499_v20  ;;  %3462 = vmatprep.subr.bf16.mxu1 %v10523_v22  ;;  %v16110_v22 = vld [vmem:[#allocation106_spill] sm:$0xff]  ;;  %v1751_v48 = vpop.f32.mrf.mxu1 }
 0x1f0   :  { %v2145_v38 = vmax.f32 %v2073_v37, 0.0  ;;  %v2077_v7 = vadd.f32 %v12928_v2, %v1988_v47  ;;  %v1987_v58 = vmax.f32 %v16103_v61, %v1873_v17  ;;  %v1880_v42 = vmax.f32 %v16105_v1, %v1747_v6  ;;  %v10529_v15 = vld [vmem:[%s15703_s3 + $0x2a4] ss:$8 sps:$4 sm:$0xff]   ;;  %2975 = vmatmul.mubr.bf16.gmra.mxu1 %v10498_v50  ;;  %3391 = vmatprep.subr.bf16.mxu0 %v10507_v49  ;;  %v10514_v54 = vld [vmem:[%s15703_s3 + $0x194] ss:$8 sps:$4 sm:$0xff]   ;;  %v1598_v37 = vpop.f32.mrf.mxu0 }
 0x1f1   :  { %v11283_v16 = vpack.c.bf16 %v2142_v63, %v2139_v25  ;;  %v1879_v57 = vmax.f32 %v16106_v40, %v1596_v55  ;;  %v10014_v59 = vpack.c.bf16 %v2147_v19, %v2147_v19  ;;  %v2078_v3 = vadd.f32 %v12942_v31, %v1989_v45  ;;  %v16107_v25 = vld [vmem:[#allocation28_spill] sm:$0xff]  ;;  %v16108_v63 = vld [vmem:[#allocation107_spill] sm:$0xff]  ;;  %2984 = vmatprep.mubr.bf16.mxu1 %v16080_v14  ;;  %v16111_v47 = vld [vmem:[#allocation26_spill] sm:$0xff] }
 0x1f2   :  { %v10013_v51 = vpack.c.bf16 %v2146_v9, %v2145_v38  ;;  %v2149_v62 = vmax.f32 %v2077_v7, 0.0  ;;  %v2076_v33 = vadd.f32 %v12930_v8, %v1987_v58  ;;  %v16109_v27 = vmax.f32 %v16107_v25, %v16108_v63  ;;  %v10527_v35 = vld [vmem:[%s15703_s3 + $0x2a0] ss:$8 sps:$4 sm:$0xff]   ;;  %v16114_v23 = vld [vmem:[#allocation31_spill] sm:$0xff]  ;;  %3463 = vmatpush1.bf16.msra.mxu1 %v10521_v44  ;;  %v1600_v38 = vpop.f32.mrf.mxu0  ;;  %v1753_v7 = vpop.f32.mrf.mxu1  ;;  %v16120_v1 = vld [vmem:[#allocation110_spill] sm:$0xff] }
 0x1f3   :  { %v1881_v10 = vmax.f32 %v16110_v22, %v1749_v34  ;;  %v16112_v36 = vld [vmem:[#allocation105_spill] sm:$0xff]  ;;  %v1884_v9 = vmax.f32 %v16114_v23, %v1598_v37  ;;  %v16115_v46 = vld [vmem:[#allocation108_spill] sm:$0xff]  ;;  %2450 = vst [vmem:[#allocation2 + $0x68] sm:$0xf] %v10014_v59  ;;  %v2150_v24 = vmax.f32 %v2078_v3, 0.0  ;;  %3392 = vmatpush1.bf16.msra.mxu0 %v10505_v18  ;;  %v11284_v41 = vpack.c.bf16 %v2143_v29, %v2140_v39  ;;  %v16123_v59 = vld [vmem:[#allocation30_spill] sm:$0xff] }
 0x1f4   :  { %v1991_v20 = vmax.f32 %v16109_v27, %v1880_v42  ;;  %2449 = vst [vmem:[#allocation2 + $0x60] sm:$0xff] %v10013_v51  ;;  %v2148_v4 = vmax.f32 %v2076_v33, 0.0  ;;  %v16113_v17 = vmax.f32 %v16111_v47, %v16112_v36  ;;  %v1886_v56 = vmax.f32 %v16115_v46, %v1751_v48  ;;  %v10512_v12 = vld [vmem:[%s15703_s3 + $0x190] ss:$8 sps:$4 sm:$0xff]   ;;  %3464 = vmatprep.subr.bf16.mxu1 %v10529_v15  ;;  %v10535_v44 = vld [vmem:[%s15703_s3 + $0x294] ss:$8 sps:$4 sm:$0xff]   ;;  %v1604_v55 = vpop.f32.mrf.mxu0  ;;  %v1757_v34 = vpop.f32.mrf.mxu1 }
 0x1f5   :  { %v1992_v6 = vmax.f32 %v1878_v26, %v1881_v10  ;;  %v16116_v52 = vld [vmem:[#allocation32_spill] sm:$0xff]  ;;  %v16117_v26 = vld [vmem:[#allocation111_spill] sm:$0xff]  ;;  %v1885_v19 = vmax.f32 %v16119_v53, %v1600_v38  ;;  %3393 = vmatprep.subr.bf16.mxu0 %v10514_v54  ;;  %v10016_v60 = vpack.c.bf16 %v2150_v24, %v2150_v24  ;;  %v1887_v42 = vmax.f32 %v16120_v1, %v1753_v7  ;;  %v16124_v3 = vld [vmem:[#allocation109_spill] sm:$0xff] }
 0x1f6   :  { %v1990_v49 = vmax.f32 %v16113_v17, %v1879_v57  ;;  %v2080_v13 = vadd.f32 %v12928_v2, %v1991_v20  ;;  %v10015_v61 = vpack.c.bf16 %v2149_v62, %v2148_v4  ;;  %v16118_v18 = vmax.f32 %v16116_v52, %v16117_v26  ;;  %v10520_v39 = vld [vmem:[%s15703_s3 + $0x184] ss:$8 sps:$4 sm:$0xff]   ;;  %2911 = vmatprep.mubr.bf16.mxu0 %v11284_v41  ;;  %v10518_v15 = vld [vmem:[%s15703_s3 + $0x180] ss:$8 sps:$4 sm:$0xff]   ;;  %v10533_v51 = vld [vmem:[%s15703_s3 + $0x290] ss:$8 sps:$4 sm:$0xff]   ;;  %v1606_v47 = vpop.f32.mrf.mxu0  ;;  %v1759_v36 = vpop.f32.mrf.mxu1 }
 0x1f7   :  { %v2081_v45 = vadd.f32 %v12942_v31, %v1992_v6  ;;  %v16121_v62 = vld [vmem:[#allocation153_spill] sm:$0xff]  ;;  %v16122_v33 = vld [vmem:[#allocation76_spill] sm:$0xff]  ;;  %v16125_v25 = vmax.f32 %v16123_v59, %v16124_v3  ;;  %v10511_v27 = vld [vmem:[#allocation2 + $0x50] ss:$12 sps:$4 sm:$0xff]   ;;  %2912 = vmatmul.mubr.bf16.gmra.mxu0 %v11283_v16  ;;  %3465 = vmatpush1.bf16.msra.mxu1 %v10527_v35  ;;  %2452 = vst [vmem:[#allocation2 + $0x74] sm:$0xf] %v10016_v60 }
 0x1f8   :  { %v2079_v58 = vadd.f32 %v12930_v8, %v1990_v49  ;;  %v1994_v50 = vmax.f32 %v16118_v18, %v1886_v56  ;;  %v2152_v29 = vmax.f32 %v2080_v13, 0.0  ;;  %v1949_v40 = vmax.f32 %v16122_v33, %v16121_v62  ;;  %2451 = vst [vmem:[#allocation2 + $0x6c] sm:$0xff] %v10015_v61  ;;  %v16126_v10 = vld [vmem:[#allocation35_spill] sm:$0xff]  ;;  %v16127_v48 = vld [vmem:[#allocation112_spill] sm:$0xff]  ;;  %3394 = vmatpush1.bf16.msra.mxu0 %v10512_v12  ;;  %v16128_v16 = vld [vmem:[#allocation37_spill] sm:$0xff]  ;;  %v1608_v12 = vpop.f32.mrf.mxu0 }
 0x1f9   :  { %v1993_v63 = vmax.f32 %v16125_v25, %v1885_v19  ;;  %v2153_v20 = vmax.f32 %v2081_v45, 0.0  ;;  %v1995_v22 = vmax.f32 %v1884_v9, %v1887_v42  ;;  %v1890_v37 = vmax.f32 %v16126_v10, %v1604_v55  ;;  %3466 = vmatprep.subr.bf16.mxu1 %v10535_v44  ;;  %v10541_v17 = vld [vmem:[%s15703_s3 + $0x284] ss:$8 sps:$4 sm:$0xff]   ;;  %2985 = vmatmul.mubr.bf16.gmra.mxu1 %v10511_v27  ;;  %v10526_v9 = vld [vmem:[%s15703_s3 + $0x274] ss:$8 sps:$4 sm:$0xff]   ;;  %v1761_v44 = vpop.f32.mrf.mxu1 }
 0x1fa   :  { %v2151_v57 = vmax.f32 %v2079_v58, 0.0  ;;  %v2083_v54 = vadd.f32 %v12928_v2, %v1994_v50  ;;  %v1892_v4 = vmax.f32 %v16127_v48, %v1757_v34  ;;  %v1891_v35 = vmax.f32 %v16128_v16, %v1606_v47  ;;  %3395 = vmatprep.subr.bf16.mxu0 %v10520_v39  ;;  %v16129_v24 = vld [vmem:[#allocation36_spill] sm:$0xff]  ;;  %v16130_v13 = vld [vmem:[#allocation115_spill] sm:$0xff]  ;;  %v16132_v7 = vld [vmem:[#allocation114_spill] sm:$0xff]  ;;  %3486 = vmatprep.mubr.bf16.mxu1 %v16080_v14  ;;  %v1610_v34 = vpop.f32.mrf.mxu0 }
 0x1fb   :  { %v2082_v23 = vadd.f32 %v12930_v8, %v1993_v63  ;;  %v10018_v46 = vpack.c.bf16 %v2153_v20, %v2153_v20  ;;  %v2084_v56 = vadd.f32 %v12942_v31, %v1995_v22  ;;  %v16131_v6 = vmax.f32 %v16129_v24, %v16130_v13  ;;  %v10539_v61 = vld [vmem:[%s15703_s3 + $0x280] ss:$8 sps:$4 sm:$0xff]   ;;  %v16133_v26 = vld [vmem:[#allocation34_spill] sm:$0xff]  ;;  %3467 = vmatpush1.bf16.msra.mxu1 %v10533_v51  ;;  %v16137_v60 = vld [vmem:[#allocation155_spill] sm:$0xff] }
 0x1fc   :  { %v10017_v49 = vpack.c.bf16 %v2152_v29, %v2151_v57  ;;  %v1893_v41 = vmax.f32 %v16132_v7, %v1759_v36  ;;  %v2155_v58 = vmax.f32 %v2083_v54, 0.0  ;;  %v16134_v18 = vld [vmem:[#allocation113_spill] sm:$0xff]  ;;  %v16136_v19 = vld [vmem:[#allocation116_spill] sm:$0xff]  ;;  %v16138_v29 = vld [vmem:[#allocation78_spill] sm:$0xff]  ;;  %v1763_v57 = vpop.f32.mrf.mxu1  ;;  %3396 = vmatpush1.bf16.msra.mxu0 %v10518_v15  ;;  %3468 = vmatprep.subr.bf16.mxu1 %v10541_v17 }
 0x1fd   :  { %v1997_v38 = vmax.f32 %v16131_v6, %v1892_v4  ;;  %v2154_v52 = vmax.f32 %v2082_v23, 0.0  ;;  %v16135_v50 = vmax.f32 %v16133_v26, %v16134_v18  ;;  %v1898_v39 = vmax.f32 %v16136_v19, %v1761_v44  ;;  %2454 = vst [vmem:[#allocation2 + $0x80] sm:$0xf] %v10018_v46  ;;  %v10524_v54 = vld [vmem:[%s15703_s3 + $0x270] ss:$8 sps:$4 sm:$0xff]   ;;  %v16139_v25 = vld [vmem:[#allocation40_spill] sm:$0xff]  ;;  %3397 = vmatprep.subr.bf16.mxu0 %v10526_v9 }
 0x1fe   :  { %2453 = vst [vmem:[#allocation2 + $0x78] sm:$0xff] %v10017_v49  ;;  %v1954_v45 = vmax.f32 %v16138_v29, %v16137_v60  ;;  %v2156_v1 = vmax.f32 %v2084_v56, 0.0  ;;  %v1998_v55 = vmax.f32 %v1890_v37, %v1893_v41  ;;  %v10547_v51 = vld [vmem:[%s15703_s3 + $0x374] ss:$8 sps:$4 sm:$0xff]   ;;  %v16142_v22 = vld [vmem:[#allocation41_spill] sm:$0xff]  ;;  %v1614_v49 = vpop.f32.mrf.mxu0  ;;  %v1767_v23 = vpop.f32.mrf.mxu1  ;;  %v16150_v44 = vld [vmem:[#allocation120_spill] sm:$0xff] }
 0x1ff   :  { %v1996_v53 = vmax.f32 %v16135_v50, %v1891_v35  ;;  %v13366_v42 = vadd.f32 %v12928_v2, %v1997_v38  ;;  %v10019_v59 = vpack.c.bf16 %v2155_v58, %v2154_v52  ;;  %v16140_v63 = vld [vmem:[#allocation119_spill] sm:$0xff]  ;;  %v1897_v10 = vmax.f32 %v16142_v22, %v1610_v34  ;;  %v10532_v15 = vld [vmem:[%s15703_s3 + $0x264] ss:$8 sps:$4 sm:$0xff]   ;;  %v16144_v36 = vld [vmem:[#allocation118_spill] sm:$0xff]  ;;  %3469 = vmatpush1.bf16.msra.mxu1 %v10539_v61 }
 0x200   :  { %v16141_v27 = vmax.f32 %v16139_v25, %v16140_v63  ;;  %v10020_v37 = vpack.c.bf16 %v2156_v1, %v2156_v1  ;;  %v2087_v48 = vadd.f32 %v12942_v31, %v1998_v55  ;;  %v16143_v4 = vld [vmem:[#allocation39_spill] sm:$0xff]  ;;  %v1899_v17 = vmax.f32 %v16144_v36, %v1763_v57  ;;  %v16145_v46 = vld [vmem:[#allocation38_spill] sm:$0xff]  ;;  %v16146_v56 = vld [vmem:[#allocation117_spill] sm:$0xff]  ;;  %v1616_v52 = vpop.f32.mrf.mxu0  ;;  %v1769_v26 = vpop.f32.mrf.mxu1  ;;  %3398 = vmatpush2.bf16.msra.mxu0 %v10524_v54 }
 0x201   :  { %v13375_v3 = vadd.f32 %v12930_v8, %v1996_v53  ;;  %v1896_v47 = vmax.f32 %v16143_v4, %v1608_v12  ;;  %2455 = vst [vmem:[#allocation2 + $0x84] sm:$0xff] %v10019_v59  ;;  %v2158_v16 = vmax.f32 %v13366_v42, 0.0  ;;  %v16147_v24 = vmax.f32 %v16145_v46, %v16146_v56  ;;  %v16148_v6 = vld [vmem:[#allocation157_spill] sm:$0xff]  ;;  %v16149_v38 = vld [vmem:[#allocation80_spill] sm:$0xff]  ;;  %3945 = vmatprep.subr.bf16.mxu1 %v10547_v51  ;;  %v16151_v53 = vld [vmem:[#allocation43_spill] sm:$0xff] }
 0x202   :  { %v2000_v20 = vmax.f32 %v16141_v27, %v1898_v39  ;;  %v1955_v7 = vmax.f32 %v16149_v38, %v16148_v6  ;;  %2456 = vst [vmem:[#allocation2 + $0x8c] sm:$0xf] %v10020_v37  ;;  %v2159_v41 = vmax.f32 %v2087_v48, 0.0  ;;  %v1904_v58 = vmax.f32 %v16150_v44, %v1767_v23  ;;  %v10530_v18 = vld [vmem:[%s15703_s3 + $0x260] ss:$8 sps:$4 sm:$0xff]   ;;  %3399 = vmatprep.subr.bf16.mxu0 %v10532_v15  ;;  %v16154_v51 = vld [vmem:[#allocation123_spill] sm:$0xff]  ;;  %v1771_v22 = vpop.f32.mrf.mxu1 }
 0x203   :  { %v2157_v35 = vmax.f32 %v13375_v3, 0.0  ;;  %v1999_v13 = vmax.f32 %v16147_v24, %v1897_v10  ;;  %v2001_v12 = vmax.f32 %v1896_v47, %v1899_v17  ;;  %v1902_v19 = vmax.f32 %v16151_v53, %v1614_v49  ;;  %v16152_v39 = vld [vmem:[#allocation45_spill] sm:$0xff]  ;;  %v10538_v55 = vld [vmem:[%s15703_s3 + $0x254] ss:$8 sps:$4 sm:$0xff]   ;;  %v16153_v54 = vld [vmem:[#allocation44_spill] sm:$0xff] }
 0x204   :  { %v13390_v9 = vadd.f32 %v12928_v2, %v2000_v20  ;;  %v1903_v1 = vmax.f32 %v16152_v39, %v1616_v52  ;;  %v10022_v34 = vpack.c.bf16 %v2159_v41, %v2159_v41  ;;  %v16155_v59 = vmax.f32 %v16153_v54, %v16154_v51  ;;  %v16156_v63 = vld [vmem:[#allocation122_spill] sm:$0xff]  ;;  %v1618_v20 = vpop.f32.mrf.mxu0  ;;  %v16158_v48 = vld [vmem:[#allocation121_spill] sm:$0xff]  ;;  %v16160_v36 = vld [vmem:[#allocation124_spill] sm:$0xff]  ;;  %3400 = vmatpush2.bf16.msra.mxu0 %v10530_v18 }
 0x205   :  { %v10021_v61 = vpack.c.bf16 %v2158_v16, %v2157_v35  ;;  %v2088_v50 = vadd.f32 %v12930_v8, %v1999_v13  ;;  %v2090_v57 = vadd.f32 %v12942_v31, %v2001_v12  ;;  %v1905_v27 = vmax.f32 %v16156_v63, %v1769_v26  ;;  %v16157_v15 = vld [vmem:[#allocation42_spill] sm:$0xff]  ;;  %v16161_v24 = vld [vmem:[#allocation47_spill] sm:$0xff]  ;;  %v1773_v12 = vpop.f32.mrf.mxu1  ;;  %v16162_v52 = vld [vmem:[#allocation48_spill] sm:$0xff]  ;;  %3401 = vmatprep.subr.bf16.mxu0 %v10538_v55 }
 0x206   :  { %v2003_v25 = vmax.f32 %v16155_v59, %v1904_v58  ;;  %v2161_v10 = vmax.f32 %v13390_v9, 0.0  ;;  %v16159_v4 = vmax.f32 %v16157_v15, %v16158_v48  ;;  %v1910_v17 = vmax.f32 %v16160_v36, %v1771_v22  ;;  %v10536_v49 = vld [vmem:[%s15703_s3 + $0x250] ss:$8 sps:$4 sm:$0xff]   ;;  %2458 = vst [vmem:[#allocation2 + $0x98] sm:$0xf] %v10022_v34  ;;  %v1620_v41 = vpop.f32.mrf.mxu0  ;;  %v16165_v53 = vld [vmem:[#allocation49_spill] sm:$0xff] }
 0x207   :  { %2457 = vst [vmem:[#allocation2 + $0x90] sm:$0xff] %v10021_v61  ;;  %v2160_v37 = vmax.f32 %v2088_v50, 0.0  ;;  %v2162_v23 = vmax.f32 %v2090_v57, 0.0  ;;  %v2004_v56 = vmax.f32 %v1902_v19, %v1905_v27  ;;  %v1908_v13 = vmax.f32 %v16161_v24, %v1618_v20  ;;  %v16163_v26 = vld [vmem:[#allocation127_spill] sm:$0xff]  ;;  %v10544_v19 = vld [vmem:[%s15703_s3 + $0x244] ss:$8 sps:$4 sm:$0xff]   ;;  %v1777_v59 = vpop.f32.mrf.mxu1 }
 0x208   :  { %v2002_v47 = vmax.f32 %v16159_v4, %v1903_v1  ;;  %v13425_v46 = vadd.f32 %v12928_v2, %v2003_v25  ;;  %v16164_v61 = vmax.f32 %v16162_v52, %v16163_v26  ;;  %v1909_v39 = vmax.f32 %v16165_v53, %v1620_v41  ;;  %v16166_v57 = vld [vmem:[#allocation126_spill] sm:$0xff]  ;;  %v1624_v51 = vpop.f32.mrf.mxu0  ;;  %v16168_v27 = vld [vmem:[#allocation125_spill] sm:$0xff]  ;;  %v16170_v15 = vld [vmem:[#allocation51_spill] sm:$0xff]  ;;  %3402 = vmatpush2.bf16.msra.mxu0 %v10536_v49 }
 0x209   :  { %v10023_v44 = vpack.c.bf16 %v2161_v10, %v2160_v37  ;;  %v10024_v1 = vpack.c.bf16 %v2162_v23, %v2162_v23  ;;  %v2093_v34 = vadd.f32 %v12942_v31, %v2004_v56  ;;  %v1911_v54 = vmax.f32 %v16166_v57, %v1773_v12  ;;  %v16167_v55 = vld [vmem:[#allocation46_spill] sm:$0xff]  ;;  %v16171_v36 = vld [vmem:[#allocation128_spill] sm:$0xff]  ;;  %v1779_v56 = vpop.f32.mrf.mxu1  ;;  %v16172_v52 = vld [vmem:[#allocation53_spill] sm:$0xff]  ;;  %3403 = vmatprep.subr.bf16.mxu0 %v10544_v19 }
 0x20a   :  { %v13431_v58 = vadd.f32 %v12930_v8, %v2002_v47  ;;  %v2006_v50 = vmax.f32 %v16164_v61, %v1910_v17  ;;  %v2164_v18 = vmax.f32 %v13425_v46, 0.0  ;;  %v16169_v20 = vmax.f32 %v16167_v55, %v16168_v27  ;;  %v1626_v23 = vpop.f32.mrf.mxu0  ;;  %v10542_v24 = vld [vmem:[%s15703_s3 + $0x240] ss:$8 sps:$4 sm:$0xff]   ;;  %v10550_v49 = vld [vmem:[%s15703_s3 + $0x234] ss:$8 sps:$4 sm:$0xff]  }
 0x20b   :  { %2459 = vst [vmem:[#allocation2 + $0x9c] sm:$0xff] %v10023_v44  ;;  %v1914_v48 = vmax.f32 %v16170_v15, %v1624_v51  ;;  %2460 = vst [vmem:[#allocation2 + $0xa4] sm:$0xf] %v10024_v1  ;;  %v2165_v4 = vmax.f32 %v2093_v34, 0.0  ;;  %v2007_v47 = vmax.f32 %v1908_v13, %v1911_v54  ;;  %v1916_v17 = vmax.f32 %v16171_v36, %v1777_v59  ;;  %v1781_v57 = vpop.f32.mrf.mxu1  ;;  %v16177_v51 = vld [vmem:[#allocation50_spill] sm:$0xff]  ;;  %v16178_v59 = vld [vmem:[#allocation129_spill] sm:$0xff] }
 0x20c   :  { %v2163_v25 = vmax.f32 %v13431_v58, 0.0  ;;  %v13445_v63 = vadd.f32 %v12928_v2, %v2006_v50  ;;  %v2005_v22 = vmax.f32 %v16169_v20, %v1909_v39  ;;  %v13457_v41 = vpack.c.bf16 %v2160_v37, %v2157_v35  ;;  %v16173_v35 = vld [vmem:[#allocation52_spill] sm:$0xff]  ;;  %v16174_v37 = vld [vmem:[#allocation131_spill] sm:$0xff]  ;;  %v16176_v39 = vld [vmem:[#allocation130_spill] sm:$0xff]  ;;  %v1628_v34 = vpop.f32.mrf.mxu0  ;;  %3404 = vmatpush2.bf16.msra.mxu0 %v10542_v24 }
 0x20d   :  { %v1915_v26 = vmax.f32 %v16172_v52, %v1626_v23  ;;  %v10026_v61 = vpack.c.bf16 %v2165_v4, %v2165_v4  ;;  %v2096_v3 = vadd.f32 %v12942_v31, %v2007_v47  ;;  %v16175_v50 = vmax.f32 %v16173_v35, %v16174_v37  ;;  %v16180_v27 = vld [vmem:[#allocation55_spill] sm:$0xff]  ;;  %v1783_v23 = vpop.f32.mrf.mxu1  ;;  %v16185_v24 = vld [vmem:[#allocation57_spill] sm:$0xff]  ;;  %3405 = vmatprep.subr.bf16.mxu0 %v10550_v49 }
 0x20e   :  { %v10025_v12 = vpack.c.bf16 %v2164_v18, %v2163_v25  ;;  %v2167_v13 = vmax.f32 %v13445_v63, 0.0  ;;  %v2094_v44 = vadd.f32 %v12930_v8, %v2005_v22  ;;  %v1917_v1 = vmax.f32 %v16176_v39, %v1779_v56  ;;  %v16181_v22 = vld [vmem:[#allocation132_spill] sm:$0xff]  ;;  %v10548_v56 = vld [vmem:[%s15703_s3 + $0x230] ss:$8 sps:$4 sm:$0xff]  }
 0x20f   :  { %v2009_v53 = vmax.f32 %v16175_v50, %v1916_v17  ;;  %v16179_v19 = vmax.f32 %v16177_v51, %v16178_v59  ;;  %v1920_v20 = vmax.f32 %v16180_v27, %v1628_v34  ;;  %v1922_v15 = vmax.f32 %v16181_v22, %v1781_v57  ;;  %2462 = vst [vmem:[#allocation2 + $0xb0] sm:$0xf] %v10026_v61  ;;  %v1630_v17 = vpop.f32.mrf.mxu0  ;;  %v10557_v42 = vld [vmem:[%s15703_s3 + $0x224] ss:$8 sps:$4 sm:$0xff]   ;;  %v1787_v39 = vpop.f32.mrf.mxu1  ;;  %v16187_v51 = vld [vmem:[#allocation54_spill] sm:$0xff]  ;;  %v16190_v27 = vld [vmem:[#allocation59_spill] sm:$0xff] }
 0x210   :  { %2461 = vst [vmem:[#allocation2 + $0xa8] sm:$0xff] %v10025_v12  ;;  %v2166_v54 = vmax.f32 %v2094_v44, 0.0  ;;  %v2168_v4 = vmax.f32 %v2096_v3, 0.0  ;;  %v2010_v36 = vmax.f32 %v1914_v48, %v1917_v1  ;;  %v11286_v12 = vpack.c.bf16 %v2161_v10, %v2158_v16  ;;  %v16183_v48 = vld [vmem:[#allocation135_spill] sm:$0xff]  ;;  %v16186_v10 = vld [vmem:[#allocation134_spill] sm:$0xff]  ;;  %v16188_v59 = vld [vmem:[#allocation133_spill] sm:$0xff]  ;;  %3406 = vmatpush2.bf16.msra.mxu0 %v10548_v56 }
 0x211   :  { %v2008_v55 = vmax.f32 %v16179_v19, %v1915_v26  ;;  %v13480_v47 = vadd.f32 %v12928_v2, %v2009_v53  ;;  %v16182_v26 = vld [vmem:[#allocation56_spill] sm:$0xff]  ;;  %v1921_v35 = vmax.f32 %v16185_v24, %v1630_v17  ;;  %v1923_v50 = vmax.f32 %v16186_v10, %v1783_v23  ;;  %v1634_v53 = vpop.f32.mrf.mxu0  ;;  %v10545_v1 = vld [vmem:[%s15703_s3 + $0x370] ss:$8 sps:$4 sm:$0xff]   ;;  %v16192_v24 = vld [vmem:[#allocation61_spill] sm:$0xff]  ;;  %3407 = vmatprep.subr.bf16.mxu0 %v10557_v42 }
 0x212   :  { %v10027_v44 = vpack.c.bf16 %v2167_v13, %v2166_v54  ;;  %v16184_v61 = vmax.f32 %v16182_v26, %v16183_v48  ;;  %v10028_v37 = vpack.c.bf16 %v2168_v4, %v2168_v4  ;;  %v2099_v9 = vadd.f32 %v12942_v31, %v2010_v36  ;;  %3413 = vmatprep.mubr.bf16.mxu0 %v11286_v12  ;;  %v10554_v49 = vld [vmem:[%s15703_s3 + $0x364] ss:$8 sps:$4 sm:$0xff]   ;;  %v1789_v26 = vpop.f32.mrf.mxu1  ;;  %v10563_v56 = vld [vmem:[%s15703_s3 + $0x214] ss:$8 sps:$4 sm:$0xff]   ;;  %v10552_v42 = vld [vmem:[%s15703_s3 + $0x360] ss:$8 sps:$4 sm:$0xff]  }
 0x213   :  { %v13492_v52 = vadd.f32 %v12930_v8, %v2008_v55  ;;  %v2170_v16 = vmax.f32 %v13480_v47, 0.0  ;;  %v16189_v19 = vmax.f32 %v16187_v51, %v16188_v59  ;;  %v1926_v22 = vmax.f32 %v16190_v27, %v1634_v53  ;;  %v16191_v17 = vld [vmem:[#allocation136_spill] sm:$0xff]  ;;  %v1636_v12 = vpop.f32.mrf.mxu0  ;;  %v10560_v59 = vld [vmem:[%s15703_s3 + $0x354] ss:$8 sps:$4 sm:$0xff]   ;;  %v16198_v27 = vld [vmem:[#allocation137_spill] sm:$0xff] }
 0x214   :  { %v2012_v3 = vmax.f32 %v16184_v61, %v1922_v15  ;;  %2463 = vst [vmem:[#allocation2 + $0xb4] sm:$0xff] %v10027_v44  ;;  %v10551_v15 = vld [vmem:[#allocation2 + $0x98] ss:$12 sps:$4 sm:$0xff]   ;;  %2464 = vst [vmem:[#allocation2 + $0xbc] sm:$0xf] %v10028_v37  ;;  %v2171_v4 = vmax.f32 %v2099_v9, 0.0  ;;  %v2013_v36 = vmax.f32 %v1920_v20, %v1923_v50  ;;  %v1928_v23 = vmax.f32 %v16191_v17, %v1787_v39  ;;  %v1791_v51 = vpop.f32.mrf.mxu1 }
 0x215   :  { %v2169_v34 = vmax.f32 %v13492_v52, 0.0  ;;  %v2011_v55 = vmax.f32 %v16189_v19, %v1921_v35  ;;  %v10555_v44 = vld [vmem:[%s15703_s3 + $0x220] ss:$8 sps:$4 sm:$0xff]   ;;  %v13524_v48 = vpack.c.bf16 %v2166_v54, %v2163_v25  ;;  %v1927_v35 = vmax.f32 %v16192_v24, %v1636_v12  ;;  %3487 = vmatmul.mubr.bf16.vlgmr.msra.gmra.mxu1 %v10551_v15  ;;  %v16194_v37 = vld [vmem:[#allocation139_spill] sm:$0xff]  ;;  %v16196_v50 = vld [vmem:[#allocation138_spill] sm:$0xff]  ;;  %v1638_v39 = vpop.f32.mrf.mxu0 }
 0x216   :  { %v13512_v57 = vadd.f32 %v12928_v2, %v2012_v3  ;;  %v10030_v58 = vpack.c.bf16 %v2171_v4, %v2171_v4  ;;  %v2102_v25 = vadd.f32 %v12942_v31, %v2013_v36  ;;  %v16193_v54 = vld [vmem:[#allocation60_spill] sm:$0xff]  ;;  %v1929_v53 = vmax.f32 %v16196_v50, %v1789_v26  ;;  %3946 = vmatpush1.bf16.msra.mxu1 %v10545_v1  ;;  %v16200_v36 = vld [vmem:[#allocation63_spill] sm:$0xff] }
 0x217   :  { %v10029_v61 = vpack.c.bf16 %v2170_v16, %v2169_v34  ;;  %v2100_v3 = vadd.f32 %v12930_v8, %v2011_v55  ;;  %v16195_v9 = vmax.f32 %v16193_v54, %v16194_v37  ;;  %v16197_v55 = vld [vmem:[#allocation58_spill] sm:$0xff]  ;;  %v1932_v17 = vmax.f32 %v16200_v36, %v1638_v39  ;;  %3947 = vmatprep.subr.bf16.mxu1 %v10554_v49  ;;  %v1640_v54 = vpop.f32.mrf.mxu0  ;;  %v10570_v46 = vld [vmem:[%s15703_s3 + $0x204] ss:$8 sps:$4 sm:$0xff]   ;;  %v16229_v33 = vld [vmem:[#allocation79_spill] sm:$0xff] }
 0x218   :  { %v2173_v20 = vmax.f32 %v13512_v57, 0.0  ;;  %v16199_v15 = vmax.f32 %v16197_v55, %v16198_v27  ;;  %3496 = vmatprep.mubr.bf16.mxu1 %v16080_v14  ;;  %2466 = vst [vmem:[#allocation2 + $0xc8] sm:$0xf] %v10030_v58  ;;  %v2174_v12 = vmax.f32 %v2102_v25, 0.0  ;;  %v2016_v24 = vmax.f32 %v1926_v22, %v1929_v53  ;;  %3408 = vmatpush2.bf16.msra.mxu0 %v10555_v44  ;;  %v16203_v25 = vld [vmem:[#allocation65_spill] sm:$0xff]  ;;  %v16207_v27 = vld [vmem:[#allocation67_spill] sm:$0xff] }
 0x219   :  { %v2015_v10 = vmax.f32 %v16195_v9, %v1928_v23  ;;  %2465 = vst [vmem:[#allocation2 + $0xc0] sm:$0xff] %v10029_v61  ;;  %v2172_v19 = vmax.f32 %v2100_v3, 0.0  ;;  %v16201_v23 = vld [vmem:[#allocation140_spill] sm:$0xff]  ;;  %v1793_v61 = vpop.f32.mrf.mxu1  ;;  %v10561_v3 = vld [vmem:[%s15703_s3 + $0x210] ss:$8 sps:$4 sm:$0xff]   ;;  %v13563_v49 = vpack.c.bf16 %v2167_v13, %v2164_v18  ;;  %v16202_v22 = vmax.f32 %v16035_v0, %v16034_v11  ;;  %3409 = vmatprep.subr.bf16.mxu0 %v10563_v56  ;;  %v1644_v50 = vpop.f32.mrf.mxu0 }
 0x21a   :  { %v2014_v4 = vmax.f32 %v16199_v15, %v1927_v35  ;;  %v1934_v1 = vmax.f32 %v16201_v23, %v1791_v51  ;;  %v1933_v37 = vmax.f32 %v16203_v25, %v1640_v54  ;;  %v10032_v63 = vpack.c.bf16 %v2174_v12, %v2174_v12  ;;  %v16204_v9 = vld [vmem:[#allocation142_spill] sm:$0xff]  ;;  %3948 = vmatpush1.bf16.msra.mxu1 %v10552_v42  ;;  %v10567_v0 = vld [vmem:[%s15703_s3 + $0x344] ss:$8 sps:$4 sm:$0xff]   ;;  %v16211_v25 = vld [vmem:[#allocation147_spill] sm:$0xff] }
 0x21b   :  { %v13554_v26 = vadd.f32 %v12928_v2, %v2015_v10  ;;  %v10031_v35 = vpack.c.bf16 %v2173_v20, %v2172_v19  ;;  %v2105_v13 = vadd.f32 %v12942_v31, %v2016_v24  ;;  %v1935_v10 = vmax.f32 %v16204_v9, %v1793_v61  ;;  %v1797_v53 = vpop.f32.mrf.mxu1  ;;  %v10558_v11 = vld [vmem:[%s15703_s3 + $0x350] ss:$8 sps:$4 sm:$0xff]   ;;  %v16205_v51 = vld [vmem:[#allocation141_spill] sm:$0xff]  ;;  %3949 = vmatprep.subr.bf16.mxu1 %v10560_v59  ;;  %v1646_v24 = vpop.f32.mrf.mxu0  ;;  %v10577_v52 = vld [vmem:[%s15703_s3 + $0x474] ss:$8 sps:$4 sm:$0xff]  }
 0x21c   :  { %v13568_v58 = vadd.f32 %v12930_v8, %v2014_v4  ;;  %v2018_v44 = vmax.f32 %v16202_v22, %v1934_v1  ;;  %v16206_v55 = vmax.f32 %v16033_v32, %v16205_v51  ;;  %v1938_v15 = vmax.f32 %v16207_v27, %v1644_v50  ;;  %v10564_v4 = vld [vmem:[#allocation2 + $0xb0] ss:$12 sps:$4 sm:$0xff]   ;;  %2468 = vst [vmem:[#allocation2 + $0xd4] sm:$0xf] %v10032_v63  ;;  %v16208_v1 = vld [vmem:[#allocation144_spill] sm:$0xff]  ;;  %v16209_v22 = vld [vmem:[#allocation69_spill] sm:$0xff] }
 0x21d   :  { %v2176_v18 = vmax.f32 %v13554_v26, 0.0  ;;  %2467 = vst [vmem:[#allocation2 + $0xcc] sm:$0xff] %v10031_v35  ;;  %v2177_v36 = vmax.f32 %v2105_v13, 0.0  ;;  %v2019_v23 = vmax.f32 %v1932_v17, %v1935_v10  ;;  %v1940_v12 = vmax.f32 %v16208_v1, %v1797_v53  ;;  %v1799_v54 = vpop.f32.mrf.mxu1  ;;  %3410 = vmatpush2.bf16.msra.mxu0 %v10561_v3  ;;  %v10568_v61 = vld [vmem:[%s15703_s3 + $0x200] ss:$8 sps:$4 sm:$0xff]   ;;  %3497 = vmatmul.mubr.bf16.gmra.mxu1 %v10564_v4  ;;  %v16213_v13 = vld [vmem:[#allocation146_spill] sm:$0xff]  ;;  %v1648_v10 = vpop.f32.mrf.mxu0 }
 0x21e   :  { %v2175_v56 = vmax.f32 %v13568_v58, 0.0  ;;  %v13588_v39 = vadd.f32 %v12928_v2, %v2018_v44  ;;  %v2017_v42 = vmax.f32 %v16206_v55, %v1933_v37  ;;  %v13600_v32 = vpack.c.bf16 %v2172_v19, %v2169_v34  ;;  %3411 = vmatprep.subr.bf16.mxu0 %v10570_v46  ;;  %v16210_v44 = vld [vmem:[#allocation68_spill] sm:$0xff]  ;;  %3950 = vmatpush1.bf16.msra.mxu1 %v10558_v11  ;;  %v10573_v53 = vld [vmem:[%s15703_s3 + $0x334] ss:$8 sps:$4 sm:$0xff]  }
 0x21f   :  { %v1939_v3 = vmax.f32 %v16209_v22, %v1646_v24  ;;  %v10034_v34 = vpack.c.bf16 %v2177_v36, %v2177_v36  ;;  %v2108_v19 = vadd.f32 %v12942_v31, %v2019_v23  ;;  %v16212_v37 = vmax.f32 %v16210_v44, %v16211_v25  ;;  %v1801_v50 = vpop.f32.mrf.mxu1  ;;  %v10565_v46 = vld [vmem:[%s15703_s3 + $0x340] ss:$8 sps:$4 sm:$0xff]   ;;  %v16214_v55 = vld [vmem:[#allocation66_spill] sm:$0xff]  ;;  %v16217_v36 = vld [vmem:[#allocation71_spill] sm:$0xff]  ;;  %3951 = vmatprep.subr.bf16.mxu1 %v10567_v0  ;;  %v1650_v22 = vpop.f32.mrf.mxu0 }
 0x220   :  { %v10033_v59 = vpack.c.bf16 %v2176_v18, %v2175_v56  ;;  %v2179_v17 = vmax.f32 %v13588_v39, 0.0  ;;  %v13608_v35 = vadd.f32 %v12930_v8, %v2017_v42  ;;  %v1941_v9 = vmax.f32 %v16213_v13, %v1799_v54  ;;  %v16215_v42 = vld [vmem:[#allocation145_spill] sm:$0xff]  ;;  %v16218_v11 = vld [vmem:[#allocation148_spill] sm:$0xff]  ;;  %3506 = vmatprep.mubr.bf16.mxu1 %v16080_v14 }
 0x221   :  { %v2021_v63 = vmax.f32 %v16212_v37, %v1940_v12  ;;  %v16216_v27 = vmax.f32 %v16214_v55, %v16215_v42  ;;  %v1944_v23 = vmax.f32 %v16217_v36, %v1648_v10  ;;  %v1946_v1 = vmax.f32 %v16218_v11, %v1801_v50  ;;  %2470 = vst [vmem:[#allocation2 + $0xe0] sm:$0xf] %v10034_v34  ;;  %v10583_v47 = vld [vmem:[%s15703_s3 + $0x464] ss:$8 sps:$4 sm:$0xff]   ;;  %v16224_v42 = vld [vmem:[#allocation75_spill] sm:$0xff] }
 0x222   :  { %2469 = vst [vmem:[#allocation2 + $0xd8] sm:$0xff] %v10033_v59  ;;  %v2178_v51 = vmax.f32 %v13608_v35, 0.0  ;;  %v2180_v12 = vmax.f32 %v2108_v19, 0.0  ;;  %v2022_v54 = vmax.f32 %v1938_v15, %v1941_v9  ;;  %v1803_v59 = vpop.f32.mrf.mxu1  ;;  %3412 = vmatpush2.bf16.msra.mxu0 %v10568_v61  ;;  %v10575_v35 = vld [vmem:[%s15703_s3 + $0x470] ss:$8 sps:$4 sm:$0xff]   ;;  %v16219_v15 = vmax.f32 %v16044_v30, %v12922_v21  ;;  %v16220_v61 = vld [vmem:[#allocation73_spill] sm:$0xff]  ;;  %3952 = vmatpush1.bf16.msra.mxu1 %v10565_v46 }
 0x223   :  { %v2020_v4 = vmax.f32 %v16216_v27, %v1939_v3  ;;  %v2110_v24 = vadd.f32 %v12928_v2, %v2021_v63  ;;  %v13640_v3 = vpack.c.bf16 %v2173_v20, %v2170_v16  ;;  %v1945_v44 = vmax.f32 %v16220_v61, %v1650_v22  ;;  %4018 = vmatprep.subr.bf16.mxu0 %v10577_v52  ;;  %v16221_v20 = vld [vmem:[#allocation150_spill] sm:$0xff]  ;;  %v1654_v63 = vpop.f32.mrf.mxu0  ;;  %v10580_v30 = vld [vmem:[%s15703_s3 + $0x324] ss:$8 sps:$4 sm:$0xff]   ;;  %v16225_v11 = vld [vmem:[#allocation151_spill] sm:$0xff] }
 0x224   :  { %v10035_v0 = vpack.c.bf16 %v2179_v17, %v2178_v51  ;;  %v2024_v19 = vmax.f32 %v16219_v15, %v1946_v1  ;;  %v10036_v25 = vpack.c.bf16 %v2180_v12, %v2180_v12  ;;  %v2111_v16 = vadd.f32 %v12942_v31, %v2022_v54  ;;  %v1807_v13 = vpop.f32.mrf.mxu1  ;;  %v10571_v21 = vld [vmem:[%s15703_s3 + $0x330] ss:$8 sps:$4 sm:$0xff]   ;;  %v16222_v10 = vld [vmem:[#allocation149_spill] sm:$0xff]  ;;  %3953 = vmatprep.subr.bf16.mxu1 %v10573_v53  ;;  %v10586_v61 = vld [vmem:[%s15703_s3 + $0x314] ss:$8 sps:$4 sm:$0xff]  }
 0x225   :  { %v2109_v34 = vadd.f32 %v12930_v8, %v2020_v4  ;;  %v2182_v57 = vmax.f32 %v2110_v24, 0.0  ;;  %v1947_v37 = vmax.f32 %v16221_v20, %v1803_v59  ;;  %v16223_v50 = vmax.f32 %v16042_v5, %v16222_v10  ;;  %3414 = vmatmul.mubr.bf16.vlgmr.msra.gmra.mxu0 %v13457_v41  ;;  %v10574_v27 = vld [vmem:[#allocation2 + $0xc8] ss:$12 sps:$4 sm:$0xff]   ;;  %v1656_v12 = vpop.f32.mrf.mxu0  ;;  %v16232_v39 = vld [vmem:[#allocation156_spill] sm:$0xff] }
 0x226   :  { %2471 = vst [vmem:[#allocation2 + $0xe4] sm:$0xff] %v10035_v0  ;;  %v2113_v9 = vadd.f32 %v12928_v2, %v2024_v19  ;;  %v1950_v46 = vmax.f32 %v16224_v42, %v1654_v63  ;;  %2472 = vst [vmem:[#allocation2 + $0xec] sm:$0xf] %v10036_v25  ;;  %v2183_v4 = vmax.f32 %v2111_v16, 0.0  ;;  %v1952_v1 = vmax.f32 %v16225_v11, %v1807_v13  ;;  %v1809_v24 = vpop.f32.mrf.mxu1  ;;  %v10581_v5 = vld [vmem:[%s15703_s3 + $0x460] ss:$8 sps:$4 sm:$0xff]  }
 0x227   :  { %v2181_v52 = vmax.f32 %v2109_v34, 0.0  ;;  %v2023_v55 = vmax.f32 %v16223_v50, %v1945_v44  ;;  %v2025_v36 = vmax.f32 %v1944_v23, %v1947_v37  ;;  %3423 = vmatprep.mubr.bf16.mxu0 %v13563_v49  ;;  %4019 = vmatpush1.bf16.msra.mxu0 %v10575_v35  ;;  %v13673_v53 = vpack.c.bf16 %v2178_v51, %v2175_v56  ;;  %v16226_v23 = vld [vmem:[#allocation77_spill] sm:$0xff]  ;;  %v10590_v49 = vld [vmem:[%s15703_s3 + $0x454] ss:$8 sps:$4 sm:$0xff]   ;;  %v16227_v56 = vld [vmem:[#allocation152_spill] sm:$0xff]  ;;  %v1658_v34 = vpop.f32.mrf.mxu0 }
 0x228   :  { %v2185_v54 = vmax.f32 %v2113_v9, 0.0  ;;  %v1951_v59 = vmax.f32 %v16226_v23, %v1656_v12  ;;  %3507 = vmatmul.mubr.bf16.gmra.mxu1 %v10574_v27  ;;  %4020 = vmatprep.subr.bf16.mxu0 %v10583_v47  ;;  %v10038_v35 = vpack.c.bf16 %v2183_v4, %v2183_v4  ;;  %v2027_v58 = vmax.f32 %v1949_v40, %v1952_v1  ;;  %v1811_v15 = vpop.f32.mrf.mxu1  ;;  %v10578_v19 = vld [vmem:[%s15703_s3 + $0x320] ss:$8 sps:$4 sm:$0xff]   ;;  %v16230_v25 = vld [vmem:[#allocation154_spill] sm:$0xff]  ;;  %v10599_v50 = vld [vmem:[%s15703_s3 + $0x444] ss:$8 sps:$4 sm:$0xff]  }
 0x229   :  { %v10037_v41 = vpack.c.bf16 %v2182_v57, %v2181_v52  ;;  %v2112_v22 = vadd.f32 %v12930_v8, %v2023_v55  ;;  %v2114_v0 = vadd.f32 %v12942_v31, %v2025_v36  ;;  %v1953_v51 = vmax.f32 %v16227_v56, %v1809_v24  ;;  %3954 = vmatpush1.bf16.msra.mxu1 %v10571_v21  ;;  %v1660_v63 = vpop.f32.mrf.mxu0  ;;  %v16231_v9 = vld [vmem:[#allocation81_spill] sm:$0xff]  ;;  %v10600_v23 = vld [vmem:[%s15703_s3 + $0x3f0] ss:$8 sps:$4 sm:$0xff]  }
 0x22a   :  { %v16228_v47 = vmax.f32 %v16049_v43, %v12926_v28  ;;  %v1956_v40 = vmax.f32 %v16229_v33, %v1658_v34  ;;  %v1958_v57 = vmax.f32 %v16230_v25, %v1811_v15  ;;  %3955 = vmatprep.subr.bf16.mxu1 %v10580_v30  ;;  %3516 = vmatprep.mubr.bf16.mxu1 %v16080_v14  ;;  %v1813_v13 = vpop.f32.mrf.mxu1  ;;  %v10588_v28 = vld [vmem:[%s15703_s3 + $0x450] ss:$8 sps:$4 sm:$0xff]   ;;  %v10596_v6 = vld [vmem:[%s15703_s3 + $0x304] ss:$8 sps:$4 sm:$0xff]   ;;  %v10597_v38 = vld [vmem:[%s15703_s3 + $0x440] ss:$8 sps:$4 sm:$0xff]  }
 0x22b   :  { %2473 = vst [vmem:[#allocation2 + $0xf0] sm:$0xff] %v10037_v41  ;;  %v2184_v44 = vmax.f32 %v2112_v22, 0.0  ;;  %2474 = vst [vmem:[#allocation2 + $0xf8] sm:$0xf] %v10038_v35  ;;  %v2186_v16 = vmax.f32 %v2114_v0, 0.0  ;;  %v2116_v20 = vadd.f32 %v12928_v2, %v2027_v58  ;;  %v2028_v37 = vmax.f32 %v1950_v46, %v1953_v51  ;;  %4021 = vmatpush1.bf16.msra.mxu0 %v10581_v5 }
 0x22c   :  { %v2026_v62 = vmax.f32 %v16228_v47, %v1951_v59  ;;  %v11292_v43 = vpack.c.bf16 %v2179_v17, %v2176_v18  ;;  %v2030_v52 = vmax.f32 %v1955_v7, %v1958_v57  ;;  %v1957_v10 = vmax.f32 %v16231_v9, %v1660_v63  ;;  %4022 = vmatprep.subr.bf16.mxu0 %v10590_v49  ;;  %v10584_v17 = vld [vmem:[%s15703_s3 + $0x310] ss:$8 sps:$4 sm:$0xff]   ;;  %v10593_v1 = vld [vmem:[#allocation2 + $0x1c] ss:$12 sps:$4 sm:$0xff]   ;;  %v10608_v59 = vld [vmem:[%s15703_s3 + $0x3e4] ss:$8 sps:$4 sm:$0xff]  }
 0x22d   :  { %v10039_v21 = vpack.c.bf16 %v2185_v54, %v2184_v44  ;;  %v10040_v55 = vpack.c.bf16 %v2186_v16, %v2186_v16  ;;  %v2188_v42 = vmax.f32 %v2116_v20, 0.0  ;;  %v2117_v26 = vadd.f32 %v12942_v31, %v2028_v37  ;;  %3956 = vmatpush1.bf16.msra.mxu1 %v10578_v19  ;;  %3424 = vmatmul.mubr.bf16.gmra.mxu0 %v13524_v48  ;;  %v10587_v4 = vld [vmem:[#allocation2 + $0xe0] ss:$12 sps:$4 sm:$0xff]   ;;  %v10602_v48 = vld [vmem:[%s15703_s3 + $0x3f4] ss:$8 sps:$4 sm:$0xff]  }
 0x22e   :  { %v2115_v30 = vadd.f32 %v12930_v8, %v2026_v62  ;;  %v1959_v18 = vmax.f32 %v16232_v39, %v1813_v13  ;;  %v2119_v46 = vadd.f32 %v12928_v2, %v2030_v52  ;;  %v2029_v27 = vmax.f32 %v1954_v45, %v1957_v10  ;;  %3957 = vmatprep.subr.bf16.mxu1 %v10586_v61  ;;  %v10605_v2 = vld [vmem:[%s15703_s3 + $0x434] ss:$8 sps:$4 sm:$0xff]   ;;  %v10594_v45 = vld [vmem:[%s15703_s3 + $0x300] ss:$8 sps:$4 sm:$0xff]   ;;  %v10611_v54 = vld [vmem:[%s15703_s3 + $0x424] ss:$8 sps:$4 sm:$0xff]  }
 0x22f   :  { %2475 = vst [vmem:[#allocation2 + $0xfc] sm:$0xff] %v10039_v21  ;;  %2476 = vst [vmem:[#allocation2 + $0x104] sm:$0xf] %v10040_v55  ;;  %v2189_v36 = vmax.f32 %v2117_v26, 0.0  ;;  %3433 = vmatprep.mubr.bf16.mxu0 %v13640_v3  ;;  %4023 = vmatpush1.bf16.msra.mxu0 %v10588_v28  ;;  %v10609_v49 = vld [vmem:[%s15703_s3 + $0x420] ss:$8 sps:$4 sm:$0xff]  }
 0x230   :  { %v2187_v7 = vmax.f32 %v2115_v30, 0.0  ;;  %v2031_v11 = vmax.f32 %v1956_v40, %v1959_v18  ;;  %v2118_v24 = vadd.f32 %v12930_v8, %v2029_v27  ;;  %3517 = vmatmul.mubr.bf16.gmra.mxu1 %v10587_v4  ;;  %4024 = vmatprep.subr.bf16.mxu0 %v10599_v50  ;;  %v2191_v8 = vmax.f32 %v2119_v46, 0.0  ;;  %v10617_v35 = vld [vmem:[%s15703_s3 + $0x414] ss:$8 sps:$4 sm:$0xff]   ;;  %v10615_v58 = vld [vmem:[%s15703_s3 + $0x410] ss:$8 sps:$4 sm:$0xff]  }
 0x231   :  { %v10042_v60 = vpack.c.bf16 %v2189_v36, %v2189_v36  ;;  %3958 = vmatpush1.bf16.msra.mxu1 %v10584_v17  ;;  %3977 = vmatprep.mubr.bf16.mxu1 %v10593_v1  ;;  %v10614_v0 = vld [vmem:[%s15703_s3 + $0x3d4] ss:$8 sps:$4 sm:$0xff]   ;;  %v10623_v56 = vld [vmem:[%s15703_s3 + $0x404] ss:$8 sps:$4 sm:$0xff]   ;;  %v10612_v51 = vld [vmem:[%s15703_s3 + $0x3d0] ss:$8 sps:$4 sm:$0xff]  }
 0x232   :  { %v10041_v12 = vpack.c.bf16 %v2188_v42, %v2187_v7  ;;  %v2120_v29 = vadd.f32 %v12942_v31, %v2031_v11  ;;  %v2190_v3 = vmax.f32 %v2118_v24, 0.0  ;;  %3959 = vmatprep.subr.bf16.mxu1 %v10596_v6  ;;  %v10603_v31 = vld [vmem:[%s15703_s3 + $0x430] ss:$8 sps:$4 sm:$0xff]   ;;  %v10620_v34 = vld [vmem:[%s15703_s3 + $0x3c4] ss:$8 sps:$4 sm:$0xff]  }
 0x233   :  { %2478 = vst [vmem:[#allocation2 + $0x110] sm:$0xf] %v10042_v60  ;;  %4025 = vmatpush1.bf16.msra.mxu0 %v10597_v38  ;;  %v10621_v15 = vld [vmem:[%s15703_s3 + $0x400] ss:$8 sps:$4 sm:$0xff]   ;;  %v10630_v19 = vld [vmem:[%s15703_s3 + $0x4f4] ss:$8 sps:$4 sm:$0xff]  }
 0x234   :  { %2477 = vst [vmem:[#allocation2 + $0x108] sm:$0xff] %v10041_v12  ;;  %v2192_v5 = vmax.f32 %v2120_v29, 0.0  ;;  %v10043_v41 = vpack.c.bf16 %v2191_v8, %v2190_v3  ;;  %4026 = vmatprep.subr.bf16.mxu0 %v10605_v2  ;;  %v10626_v61 = vld [vmem:[%s15703_s3 + $0x3b4] ss:$8 sps:$4 sm:$0xff]   ;;  %v10628_v44 = vld [vmem:[%s15703_s3 + $0x4f0] ss:$8 sps:$4 sm:$0xff]  }
 0x235   :  { %3960 = vmatpush1.bf16.msra.mxu1 %v10594_v45  ;;  %3434 = vmatmul.mubr.bf16.gmra.mxu0 %v13600_v32  ;;  %v10606_v32 = vld [vmem:[%s15703_s3 + $0x3e0] ss:$8 sps:$4 sm:$0xff]   ;;  %v10636_v62 = vld [vmem:[%s15703_s3 + $0x4e4] ss:$8 sps:$4 sm:$0xff]   ;;  %v10624_v33 = vld [vmem:[%s15703_s3 + $0x3b0] ss:$8 sps:$4 sm:$0xff]  }
 0x236   :  { %v10044_v22 = vpack.c.bf16 %v2192_v5, %v2192_v5  ;;  %2479 = vst [vmem:[#allocation2 + $0x114] sm:$0xff] %v10043_v41  ;;  %3961 = vmatprep.subr.bf16.mxu1 %v10602_v48  ;;  %3443 = vmatprep.mubr.bf16.mxu0 %v11292_v43  ;;  %v10627_v47 = vld [vmem:[#allocation2 + $0x20] ss:$12 sps:$4 sm:$0xff]   ;;  %v10643_v57 = vld [vmem:[%s15703_s3 + $0x4d4] ss:$8 sps:$4 sm:$0xff]  }
 0x237   :  { %4027 = vmatpush1.bf16.msra.mxu0 %v10603_v31  ;;  %v10633_v40 = vld [vmem:[%s15703_s3 + $0x3a4] ss:$8 sps:$4 sm:$0xff]   ;;  %v10634_v25 = vld [vmem:[%s15703_s3 + $0x4e0] ss:$8 sps:$4 sm:$0xff]   ;;  %v10639_v20 = vld [vmem:[%s15703_s3 + $0x394] ss:$8 sps:$4 sm:$0xff]  }
 0x238   :  { %2480 = vst [vmem:[#allocation2 + $0x11c] sm:$0xf] %v10044_v22  ;;  %4028 = vmatprep.subr.bf16.mxu0 %v10611_v54  ;;  %v10631_v16 = vld [vmem:[%s15703_s3 + $0x3a0] ss:$8 sps:$4 sm:$0xff]   ;;  %v10641_v37 = vld [vmem:[%s15703_s3 + $0x4d0] ss:$8 sps:$4 sm:$0xff]  }
 0x239   :  { %3962 = vmatpush2.bf16.msra.mxu1 %v10600_v23  ;;  %v10649_v63 = vld [vmem:[%s15703_s3 + $0x4c4] ss:$8 sps:$4 sm:$0xff]   ;;  %v10637_v28 = vld [vmem:[%s15703_s3 + $0x390] ss:$8 sps:$4 sm:$0xff]   ;;  %v10647_v21 = vld [vmem:[%s15703_s3 + $0x4c0] ss:$8 sps:$4 sm:$0xff]  }
 0x23a   :  { %3963 = vmatprep.subr.bf16.mxu1 %v10608_v59  ;;  %v10640_v13 = vld [vmem:[#allocation2 + $0x38] ss:$12 sps:$4 sm:$0xff]   ;;  %v10659_v30 = vld [vmem:[%s15703_s3 + $0x4b4] ss:$8 sps:$4 sm:$0xff]   ;;  %v10644_v52 = vld [vmem:[%s15703_s3 + $0x380] ss:$8 sps:$4 sm:$0xff]  }
 0x23b   :  { %4029 = vmatpush1.bf16.msra.mxu0 %v10609_v49  ;;  %v10646_v43 = vld [vmem:[%s15703_s3 + $0x384] ss:$8 sps:$4 sm:$0xff]   ;;  %v10652_v9 = vld [vmem:[%s15703_s3 + $0x5f4] ss:$8 sps:$4 sm:$0xff]   ;;  %v10657_v10 = vld [vmem:[%s15703_s3 + $0x4b0] ss:$8 sps:$4 sm:$0xff]  }
 0x23c   :  { %4030 = vmatprep.subr.bf16.mxu0 %v10617_v35  ;;  %v10650_v50 = vld [vmem:[%s15703_s3 + $0x5f0] ss:$8 sps:$4 sm:$0xff]   ;;  %v10665_v55 = vld [vmem:[%s15703_s3 + $0x4a4] ss:$8 sps:$4 sm:$0xff]   ;;  %v10663_v39 = vld [vmem:[%s15703_s3 + $0x4a0] ss:$8 sps:$4 sm:$0xff]  }
 0x23d   :  { %3964 = vmatpush2.bf16.msra.mxu1 %v10606_v32  ;;  %3444 = vmatmul.mubr.bf16.gmra.mxu0 %v13673_v53  ;;  %v10618_v53 = vld [vmem:[%s15703_s3 + $0x3c0] ss:$8 sps:$4 sm:$0xff]   ;;  %v10656_v42 = vld [vmem:[#allocation2 + $0x50] ss:$12 sps:$4 sm:$0xff]   ;;  %v10662_v26 = vld [vmem:[%s15703_s3 + $0x5e4] ss:$8 sps:$4 sm:$0xff]  }
 0x23e   :  { %3965 = vmatprep.subr.bf16.mxu1 %v10614_v0  ;;  %4050 = vmatprep.mubr.bf16.mxu0 %v16080_v14  ;;  %v10591_v18 = vld [vmem:[#allocation2 + $0x18] ss:$12 sps:$4 sm:$0xff]   ;;  %v13857_v17 = vld [vmem:[#allocation2 + $0x34] ss:$12 sps:$4 sm:$0xff]   ;;  %v13879_v1 = vld [vmem:[#allocation2 + $0x30] ss:$12 sps:$4 sm:$0xff]  }
 0x23f   :  { %4031 = vmatpush1.bf16.msra.mxu0 %v10615_v58  ;;  %v10675_v6 = vld [vmem:[%s15703_s3 + $0x494] ss:$8 sps:$4 sm:$0xff]   ;;  %v10660_v38 = vld [vmem:[%s15703_s3 + $0x5e0] ss:$8 sps:$4 sm:$0xff]   ;;  %v10673_v46 = vld [vmem:[%s15703_s3 + $0x490] ss:$8 sps:$4 sm:$0xff]  }
 0x240   :  { %4032 = vmatprep.subr.bf16.mxu0 %v10623_v56  ;;  %v10668_v7 = vld [vmem:[%s15703_s3 + $0x5d4] ss:$8 sps:$4 sm:$0xff]   ;;  %v10684_v4 = vld [vmem:[%s15703_s3 + $0x484] ss:$8 sps:$4 sm:$0xff]   ;;  %v10666_v36 = vld [vmem:[%s15703_s3 + $0x5d0] ss:$8 sps:$4 sm:$0xff]  }
 0x241   :  { %3966 = vmatpush2.bf16.msra.mxu1 %v10612_v51  ;;  %v10672_v27 = vld [vmem:[#allocation2 + $0x68] ss:$12 sps:$4 sm:$0xff]   ;;  %v10678_v11 = vld [vmem:[#allocation2 + $0xac] ss:$12 sps:$4 sm:$0xff]   ;;  %v13914_v41 = vld [vmem:[#allocation2 + $0x64] ss:$12 sps:$4 sm:$0xff]  }
 0x242   :  { %3967 = vmatprep.subr.bf16.mxu1 %v10620_v34  ;;  %v10681_v12 = vld [vmem:[%s15703_s3 + $0x5c4] ss:$8 sps:$4 sm:$0xff]   ;;  %v10682_v2 = vld [vmem:[%s15703_s3 + $0x480] ss:$8 sps:$4 sm:$0xff]   ;;  %v10693_v60 = vld [vmem:[%s15703_s3 + $0x574] ss:$8 sps:$4 sm:$0xff]  }
 0x243   :  { %4033 = vmatpush1.bf16.msra.mxu0 %v10621_v15  ;;  %v13884_v24 = vld [vmem:[#allocation2 + $0x4c] ss:$12 sps:$4 sm:$0xff]   ;;  %v10679_v29 = vld [vmem:[%s15703_s3 + $0x5c0] ss:$8 sps:$4 sm:$0xff]   ;;  %v10687_v45 = vld [vmem:[%s15703_s3 + $0x5b4] ss:$8 sps:$4 sm:$0xff]  }
 0x244   :  { %4509 = vmatprep.subr.bf16.mxu0 %v10630_v19  ;;  %v10691_v48 = vld [vmem:[%s15703_s3 + $0x570] ss:$8 sps:$4 sm:$0xff]   ;;  %v10699_v8 = vld [vmem:[%s15703_s3 + $0x564] ss:$8 sps:$4 sm:$0xff]   ;;  %v13909_v5 = vld [vmem:[#allocation2 + $0x48] ss:$12 sps:$4 sm:$0xff]  }
 0x245   :  { %3968 = vmatpush2.bf16.msra.mxu1 %v10618_v53  ;;  %v10685_v3 = vld [vmem:[%s15703_s3 + $0x5b0] ss:$8 sps:$4 sm:$0xff]   ;;  %v10696_v31 = vld [vmem:[%s15703_s3 + $0x5a4] ss:$8 sps:$4 sm:$0xff]   ;;  %v10697_v54 = vld [vmem:[%s15703_s3 + $0x560] ss:$8 sps:$4 sm:$0xff]  }
 0x246   :  { %3969 = vmatprep.subr.bf16.mxu1 %v10626_v61  ;;  %4051 = vmatmul.mubr.bf16.vlgmr.msra.gmra.mxu0 %v10627_v47  ;;  %v10705_v22 = vld [vmem:[%s15703_s3 + $0x554] ss:$8 sps:$4 sm:$0xff]   ;;  %v10694_v23 = vld [vmem:[%s15703_s3 + $0x5a0] ss:$8 sps:$4 sm:$0xff]   ;;  %v10703_v49 = vld [vmem:[%s15703_s3 + $0x550] ss:$8 sps:$4 sm:$0xff]  }
 0x247   :  { %4510 = vmatpush1.bf16.msra.mxu0 %v10628_v44  ;;  %4060 = vmatprep.mubr.bf16.mxu0 %v16080_v14  ;;  %v10702_v59 = vld [vmem:[%s15703_s3 + $0x594] ss:$8 sps:$4 sm:$0xff]   ;;  %v10711_v35 = vld [vmem:[%s15703_s3 + $0x544] ss:$8 sps:$4 sm:$0xff]   ;;  %v10700_v32 = vld [vmem:[%s15703_s3 + $0x590] ss:$8 sps:$4 sm:$0xff]  }
 0x248   :  { %4511 = vmatprep.subr.bf16.mxu0 %v10636_v62  ;;  %v13939_v0 = vld [vmem:[#allocation2 + $0x60] ss:$12 sps:$4 sm:$0xff]   ;;  %v10718_v51 = vld [vmem:[%s15703_s3 + $0x534] ss:$8 sps:$4 sm:$0xff]   ;;  %v10716_v19 = vld [vmem:[%s15703_s3 + $0x530] ss:$8 sps:$4 sm:$0xff]  }
 0x249   :  { %3970 = vmatpush2.bf16.msra.mxu1 %v10624_v33  ;;  %v10708_v58 = vld [vmem:[%s15703_s3 + $0x584] ss:$8 sps:$4 sm:$0xff]   ;;  %v10709_v56 = vld [vmem:[%s15703_s3 + $0x540] ss:$8 sps:$4 sm:$0xff]   ;;  %v10715_v15 = vld [vmem:[%s15703_s3 + $0x674] ss:$8 sps:$4 sm:$0xff]  }
 0x24a   :  { %3971 = vmatprep.subr.bf16.mxu1 %v10633_v40  ;;  %v10706_v34 = vld [vmem:[%s15703_s3 + $0x580] ss:$8 sps:$4 sm:$0xff]   ;;  %v10724_v53 = vld [vmem:[%s15703_s3 + $0x524] ss:$8 sps:$4 sm:$0xff]   ;;  %v10713_v61 = vld [vmem:[%s15703_s3 + $0x670] ss:$8 sps:$4 sm:$0xff]  }
 0x24b   :  { %4512 = vmatpush1.bf16.msra.mxu0 %v10634_v25  ;;  %v10712_v44 = vld [vmem:[#allocation2 + $0xb0] ss:$12 sps:$4 sm:$0xff]   ;;  %v10721_v47 = vld [vmem:[%s15703_s3 + $0x664] ss:$8 sps:$4 sm:$0xff]   ;;  %v10722_v62 = vld [vmem:[%s15703_s3 + $0x520] ss:$8 sps:$4 sm:$0xff]  }
 0x24c   :  { %4513 = vmatprep.subr.bf16.mxu0 %v10643_v57  ;;  %v10731_v33 = vld [vmem:[%s15703_s3 + $0x514] ss:$8 sps:$4 sm:$0xff]   ;;  %v10719_v40 = vld [vmem:[%s15703_s3 + $0x660] ss:$8 sps:$4 sm:$0xff]   ;;  %v10729_v57 = vld [vmem:[%s15703_s3 + $0x510] ss:$8 sps:$4 sm:$0xff]  }
 0x24d   :  { %3972 = vmatpush2.bf16.msra.mxu1 %v10631_v16  ;;  %v10728_v25 = vld [vmem:[%s15703_s3 + $0x654] ss:$8 sps:$4 sm:$0xff]   ;;  %v10737_v16 = vld [vmem:[%s15703_s3 + $0x504] ss:$8 sps:$4 sm:$0xff]  }
 0x24e   :  { %3973 = vmatprep.subr.bf16.mxu1 %v10639_v20  ;;  %4061 = vmatmul.mubr.bf16.gmra.mxu0 %v10640_v13  ;;  %v10726_v20 = vld [vmem:[%s15703_s3 + $0x650] ss:$8 sps:$4 sm:$0xff]   ;;  %v10735_v13 = vld [vmem:[%s15703_s3 + $0x500] ss:$8 sps:$4 sm:$0xff]  }
 0x24f   :  { %4514 = vmatpush1.bf16.msra.mxu0 %v10641_v37  ;;  %4070 = vmatprep.mubr.bf16.mxu0 %v16080_v14  ;;  %v10725_v37 = vld [vmem:[#allocation2 + $0xc8] ss:$12 sps:$4 sm:$0xff]  }
 0x250   :  { %4515 = vmatprep.subr.bf16.mxu0 %v10649_v63  ;;  %v10734_v63 = vld [vmem:[%s15703_s3 + $0x644] ss:$8 sps:$4 sm:$0xff]  }
 0x251   :  { %3974 = vmatpush2.bf16.msra.mxu1 %v10637_v28  ;;  %v10744_v28 = vld [vmem:[%s15703_s3 + $0x774] ss:$8 sps:$4 sm:$0xff]  }
 0x252   :  { %3975 = vmatprep.subr.bf16.mxu1 %v10646_v43  ;;  %v10732_v43 = vld [vmem:[%s15703_s3 + $0x640] ss:$8 sps:$4 sm:$0xff]  }
 0x253   :  { %4516 = vmatpush1.bf16.msra.mxu0 %v10647_v21  ;;  %v10741_v21 = vld [vmem:[%s15703_s3 + $0x634] ss:$8 sps:$4 sm:$0xff]  }
 0x254   :  { %4517 = vmatprep.subr.bf16.mxu0 %v10659_v30  ;;  %v10742_v30 = vld [vmem:[%s15703_s3 + $0x770] ss:$8 sps:$4 sm:$0xff]  }
 0x255   :  { %3976 = vmatpush2.bf16.msra.mxu1 %v10644_v52  ;;  %v10676_v52 = vld [vmem:[#allocation2 + $0xa8] ss:$12 sps:$4 sm:$0xff]  }
 0x256   :  { %4582 = vmatprep.subr.bf16.mxu1 %v10652_v9  ;;  %4071 = vmatmul.mubr.bf16.gmra.mxu0 %v10656_v42  ;;  %v10753_v9 = vld [vmem:[%s15703_s3 + $0x764] ss:$8 sps:$4 sm:$0xff]  }
 0x257   :  { %4518 = vmatpush1.bf16.msra.mxu0 %v10657_v10  ;;  %4080 = vmatprep.mubr.bf16.mxu0 %v16080_v14  ;;  %v10739_v10 = vld [vmem:[%s15703_s3 + $0x630] ss:$8 sps:$4 sm:$0xff]   ;;  %v10750_v42 = vld [vmem:[%s15703_s3 + $0x624] ss:$8 sps:$4 sm:$0xff]  }
 0x258   :  { %3978 = vmatmul.mubr.bf16.vlgmr.msra.gmra.mxu1 %v10591_v18  ;;  %4519 = vmatprep.subr.bf16.mxu0 %v10665_v55  ;;  %v10738_v55 = vld [vmem:[#allocation2 + $0xe0] ss:$12 sps:$4 sm:$0xff]  }
 0x259   :  { %3987 = vmatprep.mubr.bf16.mxu1 %v13857_v17  ;;  %4583 = vmatpush1.bf16.msra.mxu1 %v10650_v50  ;;  %v14017_v50 = vld [vmem:[#allocation2 + $0xc4] ss:$12 sps:$4 sm:$0xff]   ;;  %v10748_v18 = vld [vmem:[%s15703_s3 + $0x620] ss:$8 sps:$4 sm:$0xff]  }
 0x25a   :  { %4584 = vmatprep.subr.bf16.mxu1 %v10662_v26  ;;  %v10751_v26 = vld [vmem:[%s15703_s3 + $0x760] ss:$8 sps:$4 sm:$0xff]  }
 0x25b   :  { %4520 = vmatpush1.bf16.msra.mxu0 %v10663_v39  ;;  %v10760_v39 = vld [vmem:[%s15703_s3 + $0x754] ss:$8 sps:$4 sm:$0xff]  }
 0x25c   :  { %4521 = vmatprep.subr.bf16.mxu0 %v10675_v6  ;;  %v10757_v6 = vld [vmem:[%s15703_s3 + $0x614] ss:$8 sps:$4 sm:$0xff]  }
 0x25d   :  { %4585 = vmatpush1.bf16.msra.mxu1 %v10660_v38  ;;  %v10758_v38 = vld [vmem:[%s15703_s3 + $0x750] ss:$8 sps:$4 sm:$0xff]  }
 0x25e   :  { %4586 = vmatprep.subr.bf16.mxu1 %v10668_v7  ;;  %4081 = vmatmul.mubr.bf16.gmra.mxu0 %v10672_v27  ;;  %v14039_v7 = vld [vmem:[#allocation2 + $0xc0] ss:$12 sps:$4 sm:$0xff]   ;;  %v10755_v27 = vld [vmem:[%s15703_s3 + $0x610] ss:$8 sps:$4 sm:$0xff]  }
 0x25f   :  { %4522 = vmatpush1.bf16.msra.mxu0 %v10673_v46  ;;  %4541 = vmatprep.mubr.bf16.mxu0 %v10678_v11  ;;  %v10769_v46 = vld [vmem:[%s15703_s3 + $0x744] ss:$8 sps:$4 sm:$0xff]  }
 0x260   :  { %3988 = vmatmul.mubr.bf16.gmra.mxu1 %v13879_v1  ;;  %4523 = vmatprep.subr.bf16.mxu0 %v10684_v4  ;;  %v14047_v4 = vld [vmem:[#allocation2 + $0xdc] ss:$12 sps:$4 sm:$0xff]   ;;  %v10766_v11 = vld [vmem:[%s15703_s3 + $0x604] ss:$8 sps:$4 sm:$0xff]  }
 0x261   :  { %3997 = vmatprep.mubr.bf16.mxu1 %v13884_v24  ;;  %4587 = vmatpush1.bf16.msra.mxu1 %v10666_v36  ;;  %v10754_v36 = vld [vmem:[#allocation2 + $0xf8] ss:$12 sps:$4 sm:$0xff]  }
 0x262   :  { %4588 = vmatprep.subr.bf16.mxu1 %v10681_v12  ;;  %v10767_v12 = vld [vmem:[%s15703_s3 + $0x740] ss:$8 sps:$4 sm:$0xff]  }
 0x263   :  { %4524 = vmatpush1.bf16.msra.mxu0 %v10682_v2  ;;  %v10775_v2 = vld [vmem:[%s15703_s3 + $0x734] ss:$8 sps:$4 sm:$0xff]  }
 0x264   :  { %4525 = vmatprep.subr.bf16.mxu0 %v10693_v60  ;;  %v10764_v60 = vld [vmem:[%s15703_s3 + $0x600] ss:$8 sps:$4 sm:$0xff]  }
 0x265   :  { %4589 = vmatpush1.bf16.msra.mxu1 %v10679_v29  ;;  %v10772_v29 = vld [vmem:[%s15703_s3 + $0x6f4] ss:$8 sps:$4 sm:$0xff]  }
 0x266   :  { %4590 = vmatprep.subr.bf16.mxu1 %v10687_v45  ;;  %v10773_v45 = vld [vmem:[%s15703_s3 + $0x730] ss:$8 sps:$4 sm:$0xff]  }
 0x267   :  { %4526 = vmatpush2.bf16.msra.mxu0 %v10691_v48  ;;  %v14070_v48 = vld [vmem:[#allocation2 + $0xd8] ss:$12 sps:$4 sm:$0xff]  }
 0x268   :  { %3998 = vmatmul.mubr.bf16.gmra.mxu1 %v13909_v5  ;;  %4527 = vmatprep.subr.bf16.mxu0 %v10699_v8  ;;  %v10770_v8 = vld [vmem:[%s15703_s3 + $0x6f0] ss:$8 sps:$4 sm:$0xff]  }
 0x269   :  { %4007 = vmatprep.mubr.bf16.mxu1 %v13914_v41  ;;  %4591 = vmatpush1.bf16.msra.mxu1 %v10685_v3  ;;  %v10778_v3 = vld [vmem:[#allocation2 + $0xf4] ss:$12 sps:$4 sm:$0xff]  }
 0x26a   :  { %4592 = vmatprep.subr.bf16.mxu1 %v10696_v31  ;;  %v10781_v31 = vld [vmem:[%s15703_s3 + $0x6e4] ss:$8 sps:$4 sm:$0xff]  }
 0x26b   :  { %4528 = vmatpush2.bf16.msra.mxu0 %v10697_v54  ;;  %v10782_v54 = vld [vmem:[%s15703_s3 + $0x720] ss:$8 sps:$4 sm:$0xff]  }
 0x26c   :  { %4529 = vmatprep.subr.bf16.mxu0 %v10705_v22  ;;  %v10790_v22 = vld [vmem:[%s15703_s3 + $0x714] ss:$8 sps:$4 sm:$0xff]  }
 0x26d   :  { %4593 = vmatpush1.bf16.msra.mxu1 %v10694_v23  ;;  %v10779_v23 = vld [vmem:[%s15703_s3 + $0x6e0] ss:$8 sps:$4 sm:$0xff]  }
 0x26e   :  { %4594 = vmatprep.subr.bf16.mxu1 %v10702_v59  ;;  %v10787_v59 = vld [vmem:[%s15703_s3 + $0x6d4] ss:$8 sps:$4 sm:$0xff]  }
 0x26f   :  { %4530 = vmatpush2.bf16.msra.mxu0 %v10703_v49  ;;  %v10788_v49 = vld [vmem:[%s15703_s3 + $0x710] ss:$8 sps:$4 sm:$0xff]  }
 0x270   :  { %4008 = vmatmul.mubr.bf16.gmra.mxu1 %v13939_v0  ;;  %4531 = vmatprep.subr.bf16.mxu0 %v10711_v35  ;;  %v10776_v35 = vld [vmem:[#allocation2 + $0xf0] ss:$12 sps:$4 sm:$0xff]  }
 0x271   :  { %4595 = vmatpush1.bf16.msra.mxu1 %v10700_v32  ;;  %4614 = vmatprep.mubr.bf16.mxu1 %v16080_v14  ;;  %v10796_v32 = vld [vmem:[%s15703_s3 + $0x704] ss:$8 sps:$4 sm:$0xff]  }
 0x272   :  { %4596 = vmatprep.subr.bf16.mxu1 %v10708_v58  ;;  %v10785_v58 = vld [vmem:[%s15703_s3 + $0x6d0] ss:$8 sps:$4 sm:$0xff]  }
 0x273   :  { %4532 = vmatpush2.bf16.msra.mxu0 %v10709_v56  ;;  %v10793_v56 = vld [vmem:[%s15703_s3 + $0x6c4] ss:$8 sps:$4 sm:$0xff]  }
 0x274   :  { %4533 = vmatprep.subr.bf16.mxu0 %v10718_v51  ;;  %v10794_v51 = vld [vmem:[%s15703_s3 + $0x700] ss:$8 sps:$4 sm:$0xff]  }
 0x275   :  { %4597 = vmatpush1.bf16.msra.mxu1 %v10706_v34  ;;  %v10803_v34 = vld [vmem:[%s15703_s3 + $0x74] ss:$8 sps:$4 sm:$0xff]  }
 0x276   :  { %5073 = vmatprep.subr.bf16.mxu1 %v10715_v15  ;;  %v10791_v15 = vld [vmem:[%s15703_s3 + $0x6c0] ss:$8 sps:$4 sm:$0xff]  }
 0x277   :  { %4534 = vmatpush2.bf16.msra.mxu0 %v10716_v19  ;;  %v10799_v19 = vld [vmem:[%s15703_s3 + $0x6b4] ss:$8 sps:$4 sm:$0xff]  }
 0x278   :  { %4615 = vmatmul.mubr.bf16.vlgmr.msra.gmra.mxu1 %v10712_v44  ;;  %4535 = vmatprep.subr.bf16.mxu0 %v10724_v53  ;;  %v10801_v53 = vld [vmem:[%s15703_s3 + $0x70] ss:$8 sps:$4 sm:$0xff]   ;;  %v10809_v44 = vld [vmem:[%s15703_s3 + $0x64] ss:$8 sps:$4 sm:$0xff]  }
 0x279   :  { %5074 = vmatpush1.bf16.msra.mxu1 %v10713_v61  ;;  %4624 = vmatprep.mubr.bf16.mxu1 %v16080_v14  ;;  %v10800_v61 = vld [vmem:[#allocation2 + $0x38] ss:$12 sps:$4 sm:$0xff]  }
 0x27a   :  { %5075 = vmatprep.subr.bf16.mxu1 %v10721_v47  ;;  %v10797_v47 = vld [vmem:[%s15703_s3 + $0x6b0] ss:$8 sps:$4 sm:$0xff]  }
 0x27b   :  { %4536 = vmatpush2.bf16.msra.mxu0 %v10722_v62 }
 0x27c   :  { %4537 = vmatprep.subr.bf16.mxu0 %v10731_v33  ;;  %v10806_v33 = vld [vmem:[%s15703_s3 + $0x6a4] ss:$8 sps:$4 sm:$0xff]  }
 0x27d   :  { %5076 = vmatpush1.bf16.msra.mxu1 %v10719_v40  ;;  %v10807_v40 = vld [vmem:[%s15703_s3 + $0x60] ss:$8 sps:$4 sm:$0xff]  }
 0x27e   :  { %5077 = vmatprep.subr.bf16.mxu1 %v10728_v25 }
 0x27f   :  { %4538 = vmatpush2.bf16.msra.mxu0 %v10729_v57 }
 0x280   :  { %4625 = vmatmul.mubr.bf16.gmra.mxu1 %v10725_v37  ;;  %4539 = vmatprep.subr.bf16.mxu0 %v10737_v16  ;;  %v10816_v16 = vld [vmem:[%s15703_s3 + $0x54] ss:$8 sps:$4 sm:$0xff]   ;;  %v10804_v37 = vld [vmem:[%s15703_s3 + $0x6a0] ss:$8 sps:$4 sm:$0xff]  }
 0x281   :  { %5078 = vmatpush1.bf16.msra.mxu1 %v10726_v20  ;;  %4634 = vmatprep.mubr.bf16.mxu1 %v16080_v14 }
 0x282   :  { %5079 = vmatprep.subr.bf16.mxu1 %v10734_v63 }
 0x283   :  { %4540 = vmatpush2.bf16.msra.mxu0 %v10735_v13 }
 0x284   :  { %5146 = vmatprep.subr.bf16.mxu0 %v10744_v28  ;;  %v10812_v28 = vld [vmem:[%s15703_s3 + $0x694] ss:$8 sps:$4 sm:$0xff]  }
 0x285   :  { %5080 = vmatpush1.bf16.msra.mxu1 %v10732_v43 }
 0x286   :  { %5081 = vmatprep.subr.bf16.mxu1 %v10741_v21  ;;  %4542 = vmatmul.mubr.bf16.vlgmr.msra.gmra.mxu0 %v10676_v52  ;;  %v10814_v21 = vld [vmem:[%s15703_s3 + $0x50] ss:$8 sps:$4 sm:$0xff]  }
 0x287   :  { %4551 = vmatprep.mubr.bf16.mxu0 %v14017_v50  ;;  %5147 = vmatpush1.bf16.msra.mxu0 %v10742_v30 }
 0x288   :  { %4635 = vmatmul.mubr.bf16.gmra.mxu1 %v10738_v55  ;;  %5148 = vmatprep.subr.bf16.mxu0 %v10753_v9  ;;  %v10813_v9 = vld [vmem:[#allocation2 + $0x50] ss:$12 sps:$4 sm:$0xff]  }
 0x289   :  { %5082 = vmatpush1.bf16.msra.mxu1 %v10739_v10  ;;  %4644 = vmatprep.mubr.bf16.mxu1 %v16080_v14  ;;  %v10822_v10 = vld [vmem:[%s15703_s3 + $0x44] ss:$8 sps:$4 sm:$0xff]  }
 0x28a   :  { %5083 = vmatprep.subr.bf16.mxu1 %v10750_v42  ;;  %v10810_v42 = vld [vmem:[%s15703_s3 + $0x690] ss:$8 sps:$4 sm:$0xff]  }
 0x28b   :  { %5149 = vmatpush1.bf16.msra.mxu0 %v10751_v26 }
 0x28c   :  { %5150 = vmatprep.subr.bf16.mxu0 %v10760_v39 }
 0x28d   :  { %5084 = vmatpush1.bf16.msra.mxu1 %v10748_v18  ;;  %v10819_v18 = vld [vmem:[%s15703_s3 + $0x684] ss:$8 sps:$4 sm:$0xff]  }
 0x28e   :  { %5085 = vmatprep.subr.bf16.mxu1 %v10757_v6  ;;  %4552 = vmatmul.mubr.bf16.gmra.mxu0 %v14039_v7  ;;  %v10820_v6 = vld [vmem:[%s15703_s3 + $0x40] ss:$8 sps:$4 sm:$0xff]  }
 0x28f   :  { %4561 = vmatprep.mubr.bf16.mxu0 %v14047_v4  ;;  %5151 = vmatpush1.bf16.msra.mxu0 %v10758_v38 }
 0x290   :  { %4645 = vmatmul.mubr.bf16.gmra.mxu1 %v10754_v36  ;;  %5152 = vmatprep.subr.bf16.mxu0 %v10769_v46 }
 0x291   :  { %5086 = vmatpush1.bf16.msra.mxu1 %v10755_v27  ;;  %5105 = vmatprep.mubr.bf16.mxu1 %v13857_v17  ;;  %v10784_v17 = vld [vmem:[%s15703_s3 + $0x724] ss:$8 sps:$4 sm:$0xff]   ;;  %v10829_v27 = vld [vmem:[%s15703_s3 + $0x34] ss:$8 sps:$4 sm:$0xff]  }
 0x292   :  { %5087 = vmatprep.subr.bf16.mxu1 %v10766_v11  ;;  %v10817_v11 = vld [vmem:[%s15703_s3 + $0x680] ss:$8 sps:$4 sm:$0xff]  }
 0x293   :  { %5153 = vmatpush1.bf16.msra.mxu0 %v10767_v12 }
 0x294   :  { %5154 = vmatprep.subr.bf16.mxu0 %v10775_v2 }
 0x295   :  { %5088 = vmatpush1.bf16.msra.mxu1 %v10764_v60  ;;  %v10825_v60 = vld [vmem:[%s15703_s3 + $0x174] ss:$8 sps:$4 sm:$0xff]  }
 0x296   :  { %5089 = vmatprep.subr.bf16.mxu1 %v10772_v29  ;;  %4562 = vmatmul.mubr.bf16.gmra.mxu0 %v14070_v48 }
 0x297   :  { %4571 = vmatprep.mubr.bf16.mxu0 %v10778_v3  ;;  %5155 = vmatpush1.bf16.msra.mxu0 %v10773_v45  ;;  %v10827_v45 = vld [vmem:[%s15703_s3 + $0x30] ss:$8 sps:$4 sm:$0xff]   ;;  %v10826_v3 = vld [vmem:[#allocation2 + $0x68] ss:$12 sps:$4 sm:$0xff]  }
 0x298   :  { %5156 = vmatprep.subr.bf16.mxu0 %v10784_v17 }
 0x299   :  { %5090 = vmatpush2.bf16.msra.mxu1 %v10770_v8 }
 0x29a   :  { %5091 = vmatprep.subr.bf16.mxu1 %v10781_v31  ;;  %v10835_v31 = vld [vmem:[%s15703_s3 + $0x24] ss:$8 sps:$4 sm:$0xff]  }
 0x29b   :  { %5157 = vmatpush1.bf16.msra.mxu0 %v10782_v54 }
 0x29c   :  { %5158 = vmatprep.subr.bf16.mxu0 %v10790_v22  ;;  %v2956_v25 = vpop.f32.mrf.mxu1  ;;  %v10823_v22 = vld [vmem:[%s15703_s3 + $0x170] ss:$8 sps:$4 sm:$0xff]  }
 0x29d   :  { %5092 = vmatpush2.bf16.msra.mxu1 %v10779_v23 }
 0x29e   :  { %5093 = vmatprep.subr.bf16.mxu1 %v10787_v59  ;;  %4572 = vmatmul.mubr.bf16.gmra.mxu0 %v10776_v35  ;;  %v2883_v62 = vpop.f32.mrf.mxu0  ;;  %v2958_v63 = vpop.f32.mrf.mxu1  ;;  %v10833_v35 = vld [vmem:[%s15703_s3 + $0x20] ss:$8 sps:$4 sm:$0xff]  }
 0x29f   :  { %5159 = vmatpush1.bf16.msra.mxu0 %v10788_v49  ;;  %5178 = vmatprep.mubr.bf16.mxu0 %v16080_v14  ;;  %v14138_v20 = vadd.f32 %v2956_v25, %v2883_v62  ;;  %v10832_v49 = vld [vmem:[%s15703_s3 + $0x164] ss:$8 sps:$4 sm:$0xff]   ;;  %v10845_v25 = vld [vmem:[#allocation2 + $0x94] ss:$12 sps:$4 sm:$0xff]  }
 0x2a0   :  { %5160 = vmatprep.subr.bf16.mxu0 %v10796_v32  ;;  %v2885_v57 = vpop.f32.mrf.mxu0  ;;  %v2960_v30 = vpop.f32.mrf.mxu1  ;;  %v10851_v62 = vld [vmem:[%s15703_s3 + $0x4] ss:$8 sps:$4 sm:$0xff]  }
 0x2a1   :  { %5094 = vmatpush2.bf16.msra.mxu1 %v10785_v58  ;;  %v14146_v43 = vadd.f32 %v2958_v63, %v2885_v57  ;;  %v10849_v63 = vld [vmem:[%s15703_s3] ss:$8 sps:$4 sm:$0xff]  }
 0x2a2   :  { %5095 = vmatprep.subr.bf16.mxu1 %v10793_v56  ;;  %v2887_v13 = vpop.f32.mrf.mxu0  ;;  %v14161_v26 = vpop.f32.mrf.mxu1  ;;  %v10842_v56 = vld [vmem:[%s15703_s3 + $0x14] ss:$8 sps:$4 sm:$0xff]  }
 0x2a3   :  { %5161 = vmatpush1.bf16.msra.mxu0 %v10794_v51  ;;  %v14156_v55 = vadd.f32 %v2960_v30, %v2887_v13 }
 0x2a4   :  { %5635 = vmatprep.subr.bf16.mxu0 %v10803_v34  ;;  %v14151_v52 = vpop.f32.mrf.mxu0  ;;  %v10830_v34 = vld [vmem:[%s15703_s3 + $0x160] ss:$8 sps:$4 sm:$0xff]  }
 0x2a5   :  { %5096 = vmatpush2.bf16.msra.mxu1 %v10791_v15 }
 0x2a6   :  { %5097 = vmatprep.subr.bf16.mxu1 %v10799_v19  ;;  %5179 = vmatmul.mubr.bf16.vlgmr.msra.gmra.mxu0 %v10800_v61  ;;  %v2893_v39 = vpop.f32.mrf.mxu0 }
 0x2a7   :  { %5636 = vmatpush1.bf16.msra.mxu0 %v10801_v53  ;;  %5188 = vmatprep.mubr.bf16.mxu0 %v16080_v14  ;;  %v2966_v38 = vpop.f32.mrf.mxu1 }
 0x2a8   :  { %5637 = vmatprep.subr.bf16.mxu0 %v10809_v44  ;;  %v2895_v46 = vpop.f32.mrf.mxu0  ;;  %v14173_v36 = vadd.f32 %v2966_v38, %v2893_v39 }
 0x2a9   :  { %5098 = vmatpush2.bf16.msra.mxu1 %v10797_v47  ;;  %v2968_v12 = vpop.f32.mrf.mxu1  ;;  %v10839_v47 = vld [vmem:[#allocation2 + $0x80] ss:$12 sps:$4 sm:$0xff]  }
 0x2aa   :  { %5099 = vmatprep.subr.bf16.mxu1 %v10806_v33  ;;  %v2897_v2 = vpop.f32.mrf.mxu0  ;;  %v14181_v29 = vadd.f32 %v2968_v12, %v2895_v46  ;;  %v10852_v46 = vld [vmem:[%s15703_s3 + $0x130] ss:$8 sps:$4 sm:$0xff]   ;;  %v10864_v12 = vld [vmem:[%s15703_s3 + $0xe0] ss:$8 sps:$4 sm:$0xff]  }
 0x2ab   :  { %5638 = vmatpush1.bf16.msra.mxu0 %v10807_v40  ;;  %v2970_v17 = vpop.f32.mrf.mxu1  ;;  %v10836_v40 = vld [vmem:[%s15703_s3 + $0x150] ss:$8 sps:$4 sm:$0xff]  }
 0x2ac   :  { %5639 = vmatprep.subr.bf16.mxu0 %v10816_v16  ;;  %v14186_v8 = vpop.f32.mrf.mxu0  ;;  %v14191_v54 = vadd.f32 %v2970_v17, %v2897_v2  ;;  %v10872_v2 = vld [vmem:[%s15703_s3 + $0xd4] ss:$8 sps:$4 sm:$0xff]   ;;  %v10878_v17 = vld [vmem:[%s15703_s3 + $0xc4] ss:$8 sps:$4 sm:$0xff]  }
 0x2ad   :  { %5100 = vmatpush2.bf16.msra.mxu1 %v10804_v37  ;;  %16233 = vst [vmem:[#allocation82_spill] sm:$0xff] %v14186_v8  ;;  %v14196_v23 = vpop.f32.mrf.mxu1  ;;  %v10848_v37 = vld [vmem:[%s15703_s3 + $0x144] ss:$8 sps:$4 sm:$0xff]  }
 0x2ae   :  { %5101 = vmatprep.subr.bf16.mxu1 %v10812_v28  ;;  %5189 = vmatmul.mubr.bf16.gmra.mxu0 %v10813_v9  ;;  %16234 = vst [vmem:[#allocation4_spill] sm:$0xff] %v14196_v23  ;;  %v2903_v59 = vpop.f32.mrf.mxu0  ;;  %v10846_v9 = vld [vmem:[%s15703_s3 + $0x140] ss:$8 sps:$4 sm:$0xff]  }
 0x2af   :  { %5640 = vmatpush1.bf16.msra.mxu0 %v10814_v21  ;;  %5198 = vmatprep.mubr.bf16.mxu0 %v16080_v14  ;;  %v10860_v21 = vld [vmem:[%s15703_s3 + $0xf4] ss:$8 sps:$4 sm:$0xff]  }
 0x2b0   :  { %5641 = vmatprep.subr.bf16.mxu0 %v10822_v10  ;;  %v2976_v32 = vpop.f32.mrf.mxu1  ;;  %v2905_v58 = vpop.f32.mrf.mxu0 }
 0x2b1   :  { %5102 = vmatpush2.bf16.msra.mxu1 %v10810_v42  ;;  %v14210_v51 = vadd.f32 %v2976_v32, %v2903_v59  ;;  %v10876_v59 = vld [vmem:[%s15703_s3 + $0xc0] ss:$8 sps:$4 sm:$0xff]   ;;  %v10882_v32 = vld [vmem:[%s15703_s3 + $0x1f4] ss:$8 sps:$4 sm:$0xff]  }
 0x2b2   :  { %5103 = vmatprep.subr.bf16.mxu1 %v10819_v18  ;;  %v2978_v15 = vpop.f32.mrf.mxu1  ;;  %v2907_v19 = vpop.f32.mrf.mxu0 }
 0x2b3   :  { %5642 = vmatpush1.bf16.msra.mxu0 %v10820_v6  ;;  %v14218_v53 = vadd.f32 %v2978_v15, %v2905_v58  ;;  %v10866_v6 = vld [vmem:[%s15703_s3 + $0xe4] ss:$8 sps:$4 sm:$0xff]   ;;  %v10883_v58 = vld [vmem:[%s15703_s3 + $0xb0] ss:$8 sps:$4 sm:$0xff]  }
 0x2b4   :  { %5643 = vmatprep.subr.bf16.mxu0 %v10829_v27  ;;  %v2980_v61 = vpop.f32.mrf.mxu1  ;;  %v14223_v44 = vpop.f32.mrf.mxu0  ;;  %v10863_v27 = vld [vmem:[%s15703_s3 + $0x124] ss:$8 sps:$4 sm:$0xff]  }
 0x2b5   :  { %5104 = vmatpush2.bf16.msra.mxu1 %v10817_v11  ;;  %v14228_v33 = vadd.f32 %v2980_v61, %v2907_v19  ;;  %v10857_v11 = vld [vmem:[#allocation2 + $0x7c] ss:$12 sps:$4 sm:$0xff]   ;;  %v10879_v19 = vld [vmem:[#allocation2 + $0x98] ss:$12 sps:$4 sm:$0xff]  }
 0x2b6   :  { %5708 = vmatprep.subr.bf16.mxu1 %v10825_v60  ;;  %5199 = vmatmul.mubr.bf16.gmra.mxu0 %v10826_v3  ;;  %v14233_v57 = vpop.f32.mrf.mxu1  ;;  %v10861_v60 = vld [vmem:[%s15703_s3 + $0x120] ss:$8 sps:$4 sm:$0xff]   ;;  %v10867_v3 = vld [vmem:[%s15703_s3 + $0x110] ss:$8 sps:$4 sm:$0xff]  }
 0x2b7   :  { %5644 = vmatpush1.bf16.msra.mxu0 %v10827_v45  ;;  %5208 = vmatprep.mubr.bf16.mxu0 %v16080_v14  ;;  %v2913_v16 = vpop.f32.mrf.mxu0  ;;  %v10869_v45 = vld [vmem:[%s15703_s3 + $0x114] ss:$8 sps:$4 sm:$0xff]  }
 0x2b8   :  { %5106 = vmatmul.mubr.bf16.vlgmr.msra.gmra.mxu1 %v13879_v1  ;;  %5645 = vmatprep.subr.bf16.mxu0 %v10835_v31  ;;  %v10838_v1 = vld [vmem:[%s15703_s3 + $0x154] ss:$8 sps:$4 sm:$0xff]   ;;  %v10855_v31 = vld [vmem:[#allocation2 + $0x78] ss:$12 sps:$4 sm:$0xff]  }
 0x2b9   :  { %5115 = vmatprep.mubr.bf16.mxu1 %v13884_v24  ;;  %5709 = vmatpush1.bf16.msra.mxu1 %v10823_v22  ;;  %v10840_v24 = vld [vmem:[%s15703_s3 + $0x10] ss:$8 sps:$4 sm:$0xff]   ;;  %v2986_v13 = vpop.f32.mrf.mxu1  ;;  %v2915_v28 = vpop.f32.mrf.mxu0  ;;  %v10875_v22 = vld [vmem:[%s15703_s3 + $0x104] ss:$8 sps:$4 sm:$0xff]  }
 0x2ba   :  { %5710 = vmatprep.subr.bf16.mxu1 %v10832_v49  ;;  %v14246_v30 = vadd.f32 %v2986_v13, %v2913_v16  ;;  %v10885_v49 = vld [vmem:[%s15703_s3 + $0xb4] ss:$8 sps:$4 sm:$0xff]   ;;  %v10896_v16 = vld [vmem:[%s15703_s3 + $0x90] ss:$8 sps:$4 sm:$0xff]  }
 0x2bb   :  { %5646 = vmatpush1.bf16.msra.mxu0 %v10833_v35  ;;  %v2988_v10 = vpop.f32.mrf.mxu1  ;;  %v2917_v18 = vpop.f32.mrf.mxu0  ;;  %v10873_v35 = vld [vmem:[%s15703_s3 + $0x100] ss:$8 sps:$4 sm:$0xff]   ;;  %v10893_v13 = vld [vmem:[%s15703_s3 + $0x1d0] ss:$8 sps:$4 sm:$0xff]  }
 0x2bc   :  { %5647 = vmatprep.subr.bf16.mxu0 %v10842_v56  ;;  %v14254_v42 = vadd.f32 %v2988_v10, %v2915_v28  ;;  %v10891_v56 = vld [vmem:[%s15703_s3 + $0xa4] ss:$8 sps:$4 sm:$0xff]   ;;  %v10902_v10 = vld [vmem:[%s15703_s3 + $0x80] ss:$8 sps:$4 sm:$0xff]  }
 0x2bd   :  { %5711 = vmatpush1.bf16.msra.mxu1 %v10830_v34  ;;  %v2990_v39 = vpop.f32.mrf.mxu1  ;;  %v10880_v34 = vld [vmem:[%s15703_s3 + $0x1f0] ss:$8 sps:$4 sm:$0xff]  }
 0x2be   :  { %5712 = vmatprep.subr.bf16.mxu1 %v10838_v1  ;;  %5209 = vmatmul.mubr.bf16.gmra.mxu0 %v10839_v47  ;;  %v14262_v38 = vadd.f32 %v2990_v39, %v2917_v18  ;;  %v10888_v1 = vld [vmem:[%s15703_s3 + $0x1e4] ss:$8 sps:$4 sm:$0xff]   ;;  %v10898_v47 = vld [vmem:[%s15703_s3 + $0x94] ss:$8 sps:$4 sm:$0xff]   ;;  %v10899_v39 = vld [vmem:[%s15703_s3 + $0x1c0] ss:$8 sps:$4 sm:$0xff]  }
 0x2bf   :  { %5648 = vmatpush1.bf16.msra.mxu0 %v10840_v24  ;;  %5667 = vmatprep.mubr.bf16.mxu0 %v10845_v25  ;;  %v14317_v15 = vpop.f32.mrf.mxu1  ;;  %v10889_v24 = vld [vmem:[%s15703_s3 + $0xa0] ss:$8 sps:$4 sm:$0xff]   ;;  %v10895_v25 = vld [vmem:[%s15703_s3 + $0x1d4] ss:$8 sps:$4 sm:$0xff]  }
 0x2c0   :  { %5116 = vmatmul.mubr.bf16.gmra.mxu1 %v13909_v5  ;;  %5649 = vmatprep.subr.bf16.mxu0 %v10851_v62  ;;  %v10854_v5 = vld [vmem:[%s15703_s3 + $0x134] ss:$8 sps:$4 sm:$0xff]   ;;  %v10886_v62 = vld [vmem:[%s15703_s3 + $0x1e0] ss:$8 sps:$4 sm:$0xff]  }
 0x2c1   :  { %5125 = vmatprep.mubr.bf16.mxu1 %v13914_v41  ;;  %5713 = vmatpush1.bf16.msra.mxu1 %v10836_v40  ;;  %v10858_v41 = vld [vmem:[%s15703_s3 + $0xf0] ss:$8 sps:$4 sm:$0xff]  }
 0x2c2   :  { %5714 = vmatprep.subr.bf16.mxu1 %v10848_v37 }
 0x2c3   :  { %5650 = vmatpush1.bf16.msra.mxu0 %v10849_v63  ;;  %v10904_v63 = vld [vmem:[%s15703_s3 + $0x84] ss:$8 sps:$4 sm:$0xff]  }
 0x2c4   :  { %5651 = vmatprep.subr.bf16.mxu0 %v10860_v21  ;;  %v10892_v21 = vld [vmem:[#allocation2 + $0xb0] ss:$12 sps:$4 sm:$0xff]  }
 0x2c5   :  { %5715 = vmatpush1.bf16.msra.mxu1 %v10846_v9  ;;  %v10901_v9 = vld [vmem:[%s15703_s3 + $0x1c4] ss:$8 sps:$4 sm:$0xff]  }
 0x2c6   :  { %5716 = vmatprep.subr.bf16.mxu1 %v10854_v5 }
 0x2c7   :  { %5652 = vmatpush2.bf16.msra.mxu0 %v10858_v41  ;;  %v10911_v41 = vld [vmem:[%s15703_s3 + $0x2f4] ss:$8 sps:$4 sm:$0xff]  }
 0x2c8   :  { %5126 = vmatmul.mubr.bf16.gmra.mxu1 %v13939_v0  ;;  %5653 = vmatprep.subr.bf16.mxu0 %v10866_v6  ;;  %v10870_v0 = vld [vmem:[%s15703_s3 + $0xd0] ss:$8 sps:$4 sm:$0xff]   ;;  %v10908_v6 = vld [vmem:[%s15703_s3 + $0x1b4] ss:$8 sps:$4 sm:$0xff]  }
 0x2c9   :  { %5135 = vmatprep.mubr.bf16.mxu1 %v10857_v11  ;;  %5717 = vmatpush1.bf16.msra.mxu1 %v10852_v46  ;;  %v10909_v46 = vld [vmem:[%s15703_s3 + $0x2f0] ss:$8 sps:$4 sm:$0xff]   ;;  %v14367_v11 = vpop.f32.mrf.mxu0 }
 0x2ca   :  { %5718 = vmatprep.subr.bf16.mxu1 %v10863_v27  ;;  %v10843_v27 = vld [vmem:[#allocation2 + $0x90] ss:$12 sps:$4 sm:$0xff]  }
 0x2cb   :  { %5654 = vmatpush2.bf16.msra.mxu0 %v10864_v12 }
 0x2cc   :  { %5655 = vmatprep.subr.bf16.mxu0 %v10872_v2  ;;  %v10920_v2 = vld [vmem:[%s15703_s3 + $0x2e4] ss:$8 sps:$4 sm:$0xff]  }
 0x2cd   :  { %5719 = vmatpush1.bf16.msra.mxu1 %v10861_v60  ;;  %v10906_v60 = vld [vmem:[%s15703_s3 + $0x1b0] ss:$8 sps:$4 sm:$0xff]  }
 0x2ce   :  { %5720 = vmatprep.subr.bf16.mxu1 %v10869_v45  ;;  %v14377_v45 = vld [vmem:[#allocation2 + $0xac] ss:$12 sps:$4 sm:$0xff]  }
 0x2cf   :  { %5656 = vmatpush2.bf16.msra.mxu0 %v10870_v0 }
 0x2d0   :  { %5136 = vmatmul.mubr.bf16.gmra.mxu1 %v10855_v31  ;;  %5657 = vmatprep.subr.bf16.mxu0 %v10878_v17  ;;  %v10905_v17 = vld [vmem:[#allocation2 + $0xc8] ss:$12 sps:$4 sm:$0xff]   ;;  %v10917_v31 = vld [vmem:[%s15703_s3 + $0x1a4] ss:$8 sps:$4 sm:$0xff]  }
 0x2d1   :  { %5721 = vmatpush1.bf16.msra.mxu1 %v10867_v3  ;;  %5740 = vmatprep.mubr.bf16.mxu1 %v16080_v14 }
 0x2d2   :  { %5722 = vmatprep.subr.bf16.mxu1 %v10875_v22 }
 0x2d3   :  { %5658 = vmatpush2.bf16.msra.mxu0 %v10876_v59  ;;  %v10918_v59 = vld [vmem:[%s15703_s3 + $0x2e0] ss:$8 sps:$4 sm:$0xff]  }
 0x2d4   :  { %5659 = vmatprep.subr.bf16.mxu0 %v10885_v49 }
 0x2d5   :  { %5723 = vmatpush1.bf16.msra.mxu1 %v10873_v35  ;;  %v3488_v61 = vpop.f32.mrf.mxu1  ;;  %v10930_v35 = vld [vmem:[%s15703_s3 + $0x2d4] ss:$8 sps:$4 sm:$0xff]  }
 0x2d6   :  { %6165 = vmatprep.subr.bf16.mxu1 %v10882_v32 }
 0x2d7   :  { %5660 = vmatpush2.bf16.msra.mxu0 %v10883_v58  ;;  %v3490_v40 = vpop.f32.mrf.mxu1 }
 0x2d8   :  { %5741 = vmatmul.mubr.bf16.vlgmr.msra.gmra.mxu1 %v10879_v19  ;;  %5661 = vmatprep.subr.bf16.mxu0 %v10891_v56  ;;  %v10915_v56 = vld [vmem:[%s15703_s3 + $0x1a0] ss:$8 sps:$4 sm:$0xff]  }
 0x2d9   :  { %6166 = vmatpush1.bf16.msra.mxu1 %v10880_v34  ;;  %5750 = vmatprep.mubr.bf16.mxu1 %v16080_v14  ;;  %v3492_v37 = vpop.f32.mrf.mxu1 }
 0x2da   :  { %6167 = vmatprep.subr.bf16.mxu1 %v10888_v1  ;;  %v10924_v1 = vld [vmem:[%s15703_s3 + $0x194] ss:$8 sps:$4 sm:$0xff]  }
 0x2db   :  { %5662 = vmatpush2.bf16.msra.mxu0 %v10889_v24  ;;  %v14344_v28 = vpop.f32.mrf.mxu1 }
 0x2dc   :  { %5663 = vmatprep.subr.bf16.mxu0 %v10898_v47  ;;  %v14407_v47 = vld [vmem:[#allocation2 + $0xa8] ss:$12 sps:$4 sm:$0xff]  }
 0x2dd   :  { %6168 = vmatpush1.bf16.msra.mxu1 %v10886_v62  ;;  %v3498_v5 = vpop.f32.mrf.mxu1 }
 0x2de   :  { %6169 = vmatprep.subr.bf16.mxu1 %v10895_v25 }
 0x2df   :  { %5664 = vmatpush2.bf16.msra.mxu0 %v10896_v16  ;;  %v14359_v18 = vpop.f32.mrf.mxu1 }
 0x2e0   :  { %5751 = vmatmul.mubr.bf16.gmra.mxu1 %v10892_v21  ;;  %5665 = vmatprep.subr.bf16.mxu0 %v10904_v63 }
 0x2e1   :  { %6170 = vmatpush1.bf16.msra.mxu1 %v10893_v13  ;;  %5760 = vmatprep.mubr.bf16.mxu1 %v16080_v14  ;;  %v14369_v12 = vpop.f32.mrf.mxu1  ;;  %v10933_v13 = vld [vmem:[%s15703_s3 + $0x184] ss:$8 sps:$4 sm:$0xff]  }
 0x2e2   :  { %6171 = vmatprep.subr.bf16.mxu1 %v10901_v9  ;;  %v10927_v9 = vld [vmem:[#allocation2 + $0x1c] ss:$12 sps:$4 sm:$0xff]  }
 0x2e3   :  { %5666 = vmatpush2.bf16.msra.mxu0 %v10902_v10  ;;  %v14379_v0 = vpop.f32.mrf.mxu1 }
 0x2e4   :  { %6238 = vmatprep.subr.bf16.mxu0 %v10911_v41  ;;  %16235 = vst [vmem:[#allocation19_spill] sm:$0xff] %v14379_v0  ;;  %v10942_v41 = vld [vmem:[%s15703_s3 + $0x2b4] ss:$8 sps:$4 sm:$0xff]  }
 0x2e5   :  { %6172 = vmatpush1.bf16.msra.mxu1 %v10899_v39  ;;  %v3415_v3 = vpop.f32.mrf.mxu0 }
 0x2e6   :  { %6173 = vmatprep.subr.bf16.mxu1 %v10908_v6  ;;  %5668 = vmatmul.mubr.bf16.vlgmr.msra.gmra.mxu0 %v10843_v27  ;;  %v3489_v22 = vadd.f32 %v3488_v61, %v3415_v3  ;;  %v10928_v61 = vld [vmem:[%s15703_s3 + $0x2d0] ss:$8 sps:$4 sm:$0xff]   ;;  %v10939_v27 = vld [vmem:[%s15703_s3 + $0x274] ss:$8 sps:$4 sm:$0xff]  }
 0x2e7   :  { %5677 = vmatprep.mubr.bf16.mxu0 %v14377_v45  ;;  %6239 = vmatpush1.bf16.msra.mxu0 %v10909_v46  ;;  %v3417_v49 = vpop.f32.mrf.mxu0 }
 0x2e8   :  { %5761 = vmatmul.mubr.bf16.gmra.mxu1 %v10905_v17  ;;  %6240 = vmatprep.subr.bf16.mxu0 %v10920_v2  ;;  %v14392_v32 = vadd.f32 %v3489_v22, %v14138_v20  ;;  %v3491_v58 = vadd.f32 %v3490_v40, %v3417_v49  ;;  %v3508_v34 = vpop.f32.mrf.mxu1  ;;  %v10936_v40 = vld [vmem:[%s15703_s3 + $0x2c4] ss:$8 sps:$4 sm:$0xff]  }
 0x2e9   :  { %6174 = vmatpush1.bf16.msra.mxu1 %v10906_v60  ;;  %5770 = vmatprep.mubr.bf16.mxu1 %v16080_v14  ;;  %v3419_v19 = vpop.f32.mrf.mxu0  ;;  %v10948_v17 = vld [vmem:[%s15703_s3 + $0x2a4] ss:$8 sps:$4 sm:$0xff]  }
 0x2ea   :  { %6175 = vmatprep.subr.bf16.mxu1 %v10917_v31  ;;  %v14402_v24 = vadd.f32 %v3491_v58, %v14146_v43  ;;  %v3493_v20 = vadd.f32 %v3492_v37, %v3419_v19  ;;  %v10922_v43 = vld [vmem:[%s15703_s3 + $0x190] ss:$8 sps:$4 sm:$0xff]   ;;  %v3510_v16 = vpop.f32.mrf.mxu1  ;;  %v10921_v37 = vld [vmem:[#allocation2 + $0xe0] ss:$12 sps:$4 sm:$0xff]   ;;  %v10951_v19 = vld [vmem:[%s15703_s3 + $0x254] ss:$8 sps:$4 sm:$0xff]  }
 0x2eb   :  { %6241 = vmatpush1.bf16.msra.mxu0 %v10918_v59  ;;  %v14409_v62 = vpop.f32.mrf.mxu0  ;;  %v10945_v22 = vld [vmem:[%s15703_s3 + $0x264] ss:$8 sps:$4 sm:$0xff]  }
 0x2ec   :  { %6242 = vmatprep.subr.bf16.mxu0 %v10930_v35  ;;  %v14415_v25 = vadd.f32 %v3493_v20, %v14156_v55  ;;  %v10934_v55 = vld [vmem:[%s15703_s3 + $0x2c0] ss:$8 sps:$4 sm:$0xff]   ;;  %v3512_v6 = vpop.f32.mrf.mxu1  ;;  %v10954_v35 = vld [vmem:[%s15703_s3 + $0x294] ss:$8 sps:$4 sm:$0xff]  }
 0x2ed   :  { %6176 = vmatpush1.bf16.msra.mxu1 %v10915_v56  ;;  %v3425_v63 = vpop.f32.mrf.mxu0 }
 0x2ee   :  { %6177 = vmatprep.subr.bf16.mxu1 %v10924_v1  ;;  %5678 = vmatmul.mubr.bf16.gmra.mxu0 %v14407_v47  ;;  %v3499_v21 = vadd.f32 %v3498_v5, %v3425_v63  ;;  %v10957_v63 = vld [vmem:[%s15703_s3 + $0x244] ss:$8 sps:$4 sm:$0xff]  }
 0x2ef   :  { %5687 = vmatprep.mubr.bf16.mxu0 %v14017_v50  ;;  %6243 = vmatpush1.bf16.msra.mxu0 %v10928_v61  ;;  %v3427_v10 = vpop.f32.mrf.mxu0  ;;  %v10931_v50 = vld [vmem:[%s15703_s3 + $0x180] ss:$8 sps:$4 sm:$0xff]  }
 0x2f0   :  { %5771 = vmatmul.mubr.bf16.gmra.mxu1 %v10921_v37  ;;  %6244 = vmatprep.subr.bf16.mxu0 %v10936_v40  ;;  %v14432_v39 = vadd.f32 %v3499_v21, %v14173_v36  ;;  %v3501_v5 = vadd.f32 %v14359_v18, %v3427_v10  ;;  %v10940_v18 = vld [vmem:[%s15703_s3 + $0x2b0] ss:$8 sps:$4 sm:$0xff]   ;;  %v10960_v40 = vld [vmem:[%s15703_s3 + $0x284] ss:$8 sps:$4 sm:$0xff]   ;;  %v10955_v10 = vld [vmem:[%s15703_s3 + $0x240] ss:$8 sps:$4 sm:$0xff]  }
 0x2f1   :  { %6178 = vmatpush1.bf16.msra.mxu1 %v10922_v43  ;;  %6197 = vmatprep.mubr.bf16.mxu1 %v10927_v9  ;;  %v3429_v46 = vpop.f32.mrf.mxu0  ;;  %v10967_v9 = vld [vmem:[%s15703_s3 + $0x374] ss:$8 sps:$4 sm:$0xff]  }
 0x2f2   :  { %6179 = vmatprep.subr.bf16.mxu1 %v10933_v13  ;;  %v14442_v2 = vadd.f32 %v3501_v5, %v14181_v29  ;;  %v3503_v36 = vadd.f32 %v14369_v12, %v3429_v46  ;;  %v10937_v29 = vld [vmem:[%s15703_s3 + $0x270] ss:$8 sps:$4 sm:$0xff]   ;;  %v14459_v12 = vpop.f32.mrf.mxu1 }
 0x2f3   :  { %6245 = vmatpush1.bf16.msra.mxu0 %v10934_v55  ;;  %v14448_v60 = vpop.f32.mrf.mxu0 }
 0x2f4   :  { %6246 = vmatprep.subr.bf16.mxu0 %v10942_v41  ;;  %v14454_v3 = vadd.f32 %v3503_v36, %v14191_v54  ;;  %v10946_v54 = vld [vmem:[%s15703_s3 + $0x2a0] ss:$8 sps:$4 sm:$0xff]   ;;  %v3518_v56 = vpop.f32.mrf.mxu1 }
 0x2f5   :  { %6180 = vmatpush1.bf16.msra.mxu1 %v10931_v50  ;;  %v3435_v31 = vpop.f32.mrf.mxu0  ;;  %v10963_v50 = vld [vmem:[%s15703_s3 + $0x234] ss:$8 sps:$4 sm:$0xff]   ;;  %v10964_v36 = vld [vmem:[#allocation2 + $0x20] ss:$12 sps:$4 sm:$0xff]  }
 0x2f6   :  { %6181 = vmatprep.subr.bf16.mxu1 %v10939_v27  ;;  %5688 = vmatmul.mubr.bf16.gmra.mxu0 %v14039_v7  ;;  %v3509_v59 = vadd.f32 %v3508_v34, %v3435_v31  ;;  %v10970_v31 = vld [vmem:[%s15703_s3 + $0x224] ss:$8 sps:$4 sm:$0xff]  }
 0x2f7   :  { %5697 = vmatprep.mubr.bf16.mxu0 %v14047_v4  ;;  %6247 = vmatpush1.bf16.msra.mxu0 %v10940_v18  ;;  %v3437_v49 = vpop.f32.mrf.mxu0  ;;  %v10943_v4 = vld [vmem:[%s15703_s3 + $0x260] ss:$8 sps:$4 sm:$0xff]   ;;  %v10973_v18 = vld [vmem:[%s15703_s3 + $0x364] ss:$8 sps:$4 sm:$0xff]  }
 0x2f8   :  { %6248 = vmatprep.subr.bf16.mxu0 %v10948_v17  ;;  %v14473_v7 = vadd.f32 %v3509_v59, %v14210_v51  ;;  %v3511_v58 = vadd.f32 %v3510_v16, %v3437_v49  ;;  %v10952_v51 = vld [vmem:[%s15703_s3 + $0x290] ss:$8 sps:$4 sm:$0xff]   ;;  %v3520_v16 = vpop.f32.mrf.mxu1  ;;  %v10980_v59 = vld [vmem:[%s15703_s3 + $0x354] ss:$8 sps:$4 sm:$0xff]  }
 0x2f9   :  { %6182 = vmatpush2.bf16.msra.mxu1 %v10937_v29  ;;  %v3439_v34 = vpop.f32.mrf.mxu0 }
 0x2fa   :  { %6183 = vmatprep.subr.bf16.mxu1 %v10945_v22  ;;  %v14482_v1 = vadd.f32 %v3511_v58, %v14218_v53  ;;  %v3513_v20 = vadd.f32 %v3512_v6, %v3439_v34  ;;  %v10949_v53 = vld [vmem:[%s15703_s3 + $0x250] ss:$8 sps:$4 sm:$0xff]   ;;  %v3522_v41 = vpop.f32.mrf.mxu1  ;;  %v10971_v22 = vld [vmem:[%s15703_s3 + $0x360] ss:$8 sps:$4 sm:$0xff]   ;;  %v10986_v34 = vld [vmem:[%s15703_s3 + $0x344] ss:$8 sps:$4 sm:$0xff]  }
 0x2fb   :  { %6249 = vmatpush1.bf16.msra.mxu0 %v10946_v54  ;;  %v14487_v61 = vpop.f32.mrf.mxu0  ;;  %v10968_v54 = vld [vmem:[%s15703_s3 + $0x220] ss:$8 sps:$4 sm:$0xff]   ;;  %v10978_v58 = vld [vmem:[%s15703_s3 + $0x350] ss:$8 sps:$4 sm:$0xff]  }
 0x2fc   :  { %6250 = vmatprep.subr.bf16.mxu0 %v10954_v35  ;;  %v14493_v43 = vadd.f32 %v3513_v20, %v14228_v33  ;;  %v10958_v33 = vld [vmem:[%s15703_s3 + $0x280] ss:$8 sps:$4 sm:$0xff]   ;;  %v10976_v35 = vld [vmem:[%s15703_s3 + $0x214] ss:$8 sps:$4 sm:$0xff]  }
 0x2fd   :  { %6184 = vmatpush2.bf16.msra.mxu1 %v10943_v4  ;;  %v3445_v37 = vpop.f32.mrf.mxu0 }
 0x2fe   :  { %6185 = vmatprep.subr.bf16.mxu1 %v10951_v19  ;;  %5698 = vmatmul.mubr.bf16.gmra.mxu0 %v14070_v48  ;;  %v3519_v13 = vadd.f32 %v3518_v56, %v3445_v37  ;;  %v10977_v56 = vld [vmem:[#allocation2 + $0x38] ss:$12 sps:$4 sm:$0xff]   ;;  %v10981_v37 = vld [vmem:[%s15703_s3 + $0x200] ss:$8 sps:$4 sm:$0xff]  }
 0x2ff   :  { %6251 = vmatpush1.bf16.msra.mxu0 %v10952_v51  ;;  %6270 = vmatprep.mubr.bf16.mxu0 %v16080_v14  ;;  %v3447_v21 = vpop.f32.mrf.mxu0  ;;  %v10974_v19 = vld [vmem:[%s15703_s3 + $0x210] ss:$8 sps:$4 sm:$0xff]   ;;  %v10983_v51 = vld [vmem:[%s15703_s3 + $0x204] ss:$8 sps:$4 sm:$0xff]  }
 0x300   :  { %6252 = vmatprep.subr.bf16.mxu0 %v10960_v40  ;;  %v14510_v48 = vadd.f32 %v3519_v13, %v14246_v30  ;;  %v3521_v55 = vadd.f32 %v3520_v16, %v3447_v21  ;;  %v10965_v30 = vld [vmem:[%s15703_s3 + $0x370] ss:$8 sps:$4 sm:$0xff]   ;;  %v10984_v40 = vld [vmem:[%s15703_s3 + $0x340] ss:$8 sps:$4 sm:$0xff]   ;;  %v10996_v16 = vld [vmem:[%s15703_s3 + $0x334] ss:$8 sps:$4 sm:$0xff]  }
 0x301   :  { %6186 = vmatpush2.bf16.msra.mxu1 %v10949_v53  ;;  %v3449_v5 = vpop.f32.mrf.mxu0  ;;  %v10994_v13 = vld [vmem:[%s15703_s3 + $0x330] ss:$8 sps:$4 sm:$0xff]  }
 0x302   :  { %6187 = vmatprep.subr.bf16.mxu1 %v10957_v63  ;;  %v14519_v6 = vadd.f32 %v3521_v55, %v14254_v42  ;;  %v3523_v46 = vadd.f32 %v3522_v41, %v3449_v5  ;;  %v10961_v42 = vld [vmem:[%s15703_s3 + $0x230] ss:$8 sps:$4 sm:$0xff]   ;;  %v10989_v63 = vld [vmem:[%s15703_s3 + $0x474] ss:$8 sps:$4 sm:$0xff]   ;;  %v14595_v41 = vpop.f32.mrf.mxu1  ;;  %v10999_v5 = vld [vmem:[%s15703_s3 + $0x464] ss:$8 sps:$4 sm:$0xff]  }
 0x303   :  { %6253 = vmatpush1.bf16.msra.mxu0 %v10958_v33  ;;  %v14524_v27 = vpop.f32.mrf.mxu0  ;;  %v10993_v21 = vld [vmem:[#allocation2 + $0x50] ss:$12 sps:$4 sm:$0xff]  }
 0x304   :  { %6727 = vmatprep.subr.bf16.mxu0 %v10967_v9  ;;  %v14530_v17 = vadd.f32 %v3523_v46, %v14262_v38  ;;  %v11002_v9 = vld [vmem:[%s15703_s3 + $0x324] ss:$8 sps:$4 sm:$0xff]   ;;  %v10987_v55 = vld [vmem:[%s15703_s3 + $0x470] ss:$8 sps:$4 sm:$0xff]   ;;  %v11000_v46 = vld [vmem:[%s15703_s3 + $0x320] ss:$8 sps:$4 sm:$0xff]  }
 0x305   :  { %6188 = vmatpush2.bf16.msra.mxu1 %v10955_v10  ;;  %v10925_v10 = vld [vmem:[#allocation2 + $0x18] ss:$12 sps:$4 sm:$0xff]  }
 0x306   :  { %6189 = vmatprep.subr.bf16.mxu1 %v10963_v50  ;;  %v4052_v29 = vpop.f32.mrf.mxu0  ;;  %6271 = vmatmul.mubr.bf16.vlgmr.msra.gmra.mxu0 %v10964_v36  ;;  %v14600_v50 = vld [vmem:[#allocation2 + $0x34] ss:$12 sps:$4 sm:$0xff]  }
 0x307   :  { %6728 = vmatpush1.bf16.msra.mxu0 %v10965_v30  ;;  %6280 = vmatprep.mubr.bf16.mxu0 %v16080_v14 }
 0x308   :  { %v4054_v38 = vpop.f32.mrf.mxu0  ;;  %6729 = vmatprep.subr.bf16.mxu0 %v10973_v18  ;;  %v11012_v18 = vld [vmem:[%s15703_s3 + $0x314] ss:$8 sps:$4 sm:$0xff]  }
 0x309   :  { %6190 = vmatpush2.bf16.msra.mxu1 %v10961_v42 }
 0x30a   :  { %6191 = vmatprep.subr.bf16.mxu1 %v10970_v31  ;;  %v14548_v49 = vpop.f32.mrf.mxu0  ;;  %v10997_v31 = vld [vmem:[%s15703_s3 + $0x460] ss:$8 sps:$4 sm:$0xff]  }
 0x30b   :  { %6730 = vmatpush1.bf16.msra.mxu0 %v10971_v22 }
 0x30c   :  { %v14556_v4 = vpop.f32.mrf.mxu0  ;;  %6731 = vmatprep.subr.bf16.mxu0 %v10980_v59  ;;  %v11005_v59 = vld [vmem:[%s15703_s3 + $0x454] ss:$8 sps:$4 sm:$0xff]  }
 0x30d   :  { %16236 = vst [vmem:[#allocation83_spill] sm:$0xff] %v14556_v4  ;;  %6192 = vmatpush2.bf16.msra.mxu1 %v10968_v54 }
 0x30e   :  { %6193 = vmatprep.subr.bf16.mxu1 %v10976_v35  ;;  %v14564_v20 = vpop.f32.mrf.mxu0  ;;  %6281 = vmatmul.mubr.bf16.gmra.mxu0 %v10977_v56 }
 0x30f   :  { %6732 = vmatpush1.bf16.msra.mxu0 %v10978_v58  ;;  %6290 = vmatprep.mubr.bf16.mxu0 %v16080_v14 }
 0x310   :  { %v14573_v53 = vpop.f32.mrf.mxu0  ;;  %6733 = vmatprep.subr.bf16.mxu0 %v10986_v34  ;;  %v11009_v34 = vld [vmem:[#allocation2 + $0x68] ss:$12 sps:$4 sm:$0xff]  }
 0x311   :  { %6194 = vmatpush2.bf16.msra.mxu1 %v10974_v19  ;;  %v11018_v19 = vld [vmem:[%s15703_s3 + $0x304] ss:$8 sps:$4 sm:$0xff]  }
 0x312   :  { %6195 = vmatprep.subr.bf16.mxu1 %v10983_v51  ;;  %v14587_v33 = vpop.f32.mrf.mxu0 }
 0x313   :  { %6734 = vmatpush1.bf16.msra.mxu0 %v10984_v40  ;;  %v14634_v40 = vld [vmem:[#allocation2 + $0x30] ss:$12 sps:$4 sm:$0xff]  }
 0x314   :  { %6735 = vmatprep.subr.bf16.mxu0 %v10996_v16  ;;  %v14606_v30 = vpop.f32.mrf.mxu0 }
 0x315   :  { %6196 = vmatpush2.bf16.msra.mxu1 %v10981_v37  ;;  %16237 = vst [vmem:[#allocation62_spill] sm:$0xff] %v14606_v30  ;;  %v11015_v37 = vld [vmem:[%s15703_s3 + $0x444] ss:$8 sps:$4 sm:$0xff]  }
 0x316   :  { %6800 = vmatprep.subr.bf16.mxu1 %v10989_v63  ;;  %6291 = vmatmul.mubr.bf16.gmra.mxu0 %v10993_v21  ;;  %v4072_v58 = vpop.f32.mrf.mxu0  ;;  %v14644_v63 = vld [vmem:[#allocation2 + $0x4c] ss:$12 sps:$4 sm:$0xff]  }
 0x317   :  { %6736 = vmatpush1.bf16.msra.mxu0 %v10994_v13  ;;  %6300 = vmatprep.mubr.bf16.mxu0 %v16080_v14 }
 0x318   :  { %v3979_v36 = vpop.f32.mrf.mxu1  ;;  %6198 = vmatmul.mubr.bf16.vlgmr.msra.gmra.mxu1 %v10925_v10  ;;  %6737 = vmatprep.subr.bf16.mxu0 %v11002_v9  ;;  %v4074_v13 = vpop.f32.mrf.mxu0  ;;  %v11027_v9 = vld [vmem:[%s15703_s3 + $0x3f4] ss:$8 sps:$4 sm:$0xff]  }
 0x319   :  { %v4053_v42 = vadd.f32 %v4052_v29, %v3979_v36  ;;  %6207 = vmatprep.mubr.bf16.mxu1 %v14600_v50  ;;  %6801 = vmatpush1.bf16.msra.mxu1 %v10987_v55  ;;  %v11010_v29 = vld [vmem:[%s15703_s3 + $0x310] ss:$8 sps:$4 sm:$0xff]   ;;  %v11021_v10 = vld [vmem:[%s15703_s3 + $0x434] ss:$8 sps:$4 sm:$0xff]  }
 0x31a   :  { %v3981_v22 = vpop.f32.mrf.mxu1  ;;  %6802 = vmatprep.subr.bf16.mxu1 %v10999_v5  ;;  %v4076_v36 = vpop.f32.mrf.mxu0 }
 0x31b   :  { %v14619_v54 = vadd.f32 %v4053_v42, %v14392_v32  ;;  %v4055_v35 = vadd.f32 %v4054_v38, %v3981_v22  ;;  %6738 = vmatpush1.bf16.msra.mxu0 %v11000_v46  ;;  %v11003_v38 = vld [vmem:[%s15703_s3 + $0x450] ss:$8 sps:$4 sm:$0xff]   ;;  %v11033_v42 = vld [vmem:[%s15703_s3 + $0x3e4] ss:$8 sps:$4 sm:$0xff]   ;;  %v14679_v22 = vld [vmem:[#allocation2 + $0x48] ss:$12 sps:$4 sm:$0xff]  }
 0x31c   :  { %v3983_v56 = vpop.f32.mrf.mxu1  ;;  %6739 = vmatprep.subr.bf16.mxu0 %v11012_v18 }
 0x31d   :  { %v14628_v51 = vadd.f32 %v4055_v35, %v14402_v24  ;;  %v4057_v32 = vadd.f32 %v14548_v49, %v3983_v56  ;;  %6803 = vmatpush1.bf16.msra.mxu1 %v10997_v31  ;;  %v11016_v49 = vld [vmem:[%s15703_s3 + $0x300] ss:$8 sps:$4 sm:$0xff]   ;;  %v11030_v35 = vld [vmem:[%s15703_s3 + $0x424] ss:$8 sps:$4 sm:$0xff]   ;;  %v14694_v56 = vpop.f32.mrf.mxu0 }
 0x31e   :  { %v14636_v16 = vpop.f32.mrf.mxu1  ;;  %6804 = vmatprep.subr.bf16.mxu1 %v11005_v59  ;;  %6301 = vmatmul.mubr.bf16.gmra.mxu0 %v11009_v34 }
 0x31f   :  { %16238 = vst [vmem:[#allocation143_spill] sm:$0xff] %v14636_v16  ;;  %v14642_v24 = vadd.f32 %v4057_v32, %v14415_v25  ;;  %6740 = vmatpush1.bf16.msra.mxu0 %v11010_v29  ;;  %6759 = vmatprep.mubr.bf16.mxu0 %v14377_v45  ;;  %v11013_v45 = vld [vmem:[%s15703_s3 + $0x440] ss:$8 sps:$4 sm:$0xff]  }
 0x320   :  { %v3989_v21 = vpop.f32.mrf.mxu1  ;;  %6208 = vmatmul.mubr.bf16.gmra.mxu1 %v14634_v40  ;;  %6741 = vmatprep.subr.bf16.mxu0 %v11018_v19  ;;  %v11039_v19 = vld [vmem:[%s15703_s3 + $0x3d4] ss:$8 sps:$4 sm:$0xff]  }
 0x321   :  { %v4063_v25 = vadd.f32 %v14564_v20, %v3989_v21  ;;  %6217 = vmatprep.mubr.bf16.mxu1 %v14644_v63  ;;  %6805 = vmatpush1.bf16.msra.mxu1 %v11003_v38  ;;  %v11025_v20 = vld [vmem:[%s15703_s3 + $0x3f0] ss:$8 sps:$4 sm:$0xff]  }
 0x322   :  { %v3991_v55 = vpop.f32.mrf.mxu1  ;;  %6806 = vmatprep.subr.bf16.mxu1 %v11015_v37  ;;  %v11036_v37 = vld [vmem:[%s15703_s3 + $0x414] ss:$8 sps:$4 sm:$0xff]  }
 0x323   :  { %v14663_v5 = vadd.f32 %v4063_v25, %v14432_v39  ;;  %v4065_v46 = vadd.f32 %v14573_v53, %v3991_v55  ;;  %6742 = vmatpush1.bf16.msra.mxu0 %v11016_v49  ;;  %v11019_v53 = vld [vmem:[%s15703_s3 + $0x430] ss:$8 sps:$4 sm:$0xff]  }
 0x324   :  { %v3993_v18 = vpop.f32.mrf.mxu1  ;;  %6743 = vmatprep.subr.bf16.mxu0 %v11027_v9  ;;  %v4082_v9 = vpop.f32.mrf.mxu0 }
 0x325   :  { %v14673_v31 = vadd.f32 %v4065_v46, %v14442_v2  ;;  %v4067_v39 = vadd.f32 %v14587_v33, %v3993_v18  ;;  %6807 = vmatpush1.bf16.msra.mxu1 %v11013_v45  ;;  %v14689_v2 = vld [vmem:[#allocation2 + $0x64] ss:$12 sps:$4 sm:$0xff]   ;;  %v11031_v33 = vld [vmem:[%s15703_s3 + $0x3e0] ss:$8 sps:$4 sm:$0xff]  }
 0x326   :  { %v14681_v59 = vpop.f32.mrf.mxu1  ;;  %6808 = vmatprep.subr.bf16.mxu1 %v11021_v10  ;;  %v11045_v45 = vld [vmem:[%s15703_s3 + $0x3c4] ss:$8 sps:$4 sm:$0xff]  }
 0x327   :  { %16239 = vst [vmem:[#allocation64_spill] sm:$0xff] %v14681_v59  ;;  %v14687_v29 = vadd.f32 %v4067_v39, %v14454_v3  ;;  %6744 = vmatpush2.bf16.msra.mxu0 %v11025_v20  ;;  %v11028_v3 = vld [vmem:[%s15703_s3 + $0x420] ss:$8 sps:$4 sm:$0xff]   ;;  %v11042_v20 = vld [vmem:[%s15703_s3 + $0x404] ss:$8 sps:$4 sm:$0xff]  }
 0x328   :  { %v3999_v34 = vpop.f32.mrf.mxu1  ;;  %6218 = vmatmul.mubr.bf16.gmra.mxu1 %v14679_v22  ;;  %6745 = vmatprep.subr.bf16.mxu0 %v11033_v42  ;;  %v11052_v39 = vld [vmem:[%s15703_s3 + $0x3b4] ss:$8 sps:$4 sm:$0xff]  }
 0x329   :  { %v4073_v32 = vadd.f32 %v4072_v58, %v3999_v34  ;;  %6227 = vmatprep.mubr.bf16.mxu1 %v14689_v2  ;;  %6809 = vmatpush1.bf16.msra.mxu1 %v11019_v53  ;;  %v11037_v58 = vld [vmem:[%s15703_s3 + $0x3d0] ss:$8 sps:$4 sm:$0xff]  }
 0x32a   :  { %v4001_v38 = vpop.f32.mrf.mxu1  ;;  %6810 = vmatprep.subr.bf16.mxu1 %v11030_v35 }
 0x32b   :  { %v14708_v49 = vadd.f32 %v4073_v32, %v14473_v7  ;;  %v4075_v21 = vadd.f32 %v4074_v13, %v4001_v38  ;;  %6746 = vmatpush2.bf16.msra.mxu0 %v11031_v33  ;;  %v11034_v7 = vld [vmem:[%s15703_s3 + $0x410] ss:$8 sps:$4 sm:$0xff]   ;;  %v14722_v13 = vld [vmem:[#allocation2 + $0x60] ss:$12 sps:$4 sm:$0xff]   ;;  %v11049_v33 = vld [vmem:[%s15703_s3 + $0x4f4] ss:$8 sps:$4 sm:$0xff]  }
 0x32c   :  { %v4003_v25 = vpop.f32.mrf.mxu1  ;;  %6747 = vmatprep.subr.bf16.mxu0 %v11039_v19  ;;  %v11050_v32 = vld [vmem:[%s15703_s3 + $0x3b0] ss:$8 sps:$4 sm:$0xff]  }
 0x32d   :  { %v14717_v55 = vadd.f32 %v4075_v21, %v14482_v1  ;;  %v4077_v10 = vadd.f32 %v4076_v36, %v4003_v25  ;;  %6811 = vmatpush1.bf16.msra.mxu1 %v11028_v3  ;;  %v11043_v1 = vld [vmem:[%s15703_s3 + $0x3c0] ss:$8 sps:$4 sm:$0xff]   ;;  %v4084_v36 = vpop.f32.mrf.mxu0  ;;  %v11046_v25 = vld [vmem:[#allocation2 + $0xb0] ss:$12 sps:$4 sm:$0xff]  }
 0x32e   :  { %v14724_v46 = vpop.f32.mrf.mxu1  ;;  %6812 = vmatprep.subr.bf16.mxu1 %v11036_v37  ;;  %v11058_v37 = vld [vmem:[%s15703_s3 + $0x3a4] ss:$8 sps:$4 sm:$0xff]  }
 0x32f   :  { %v14730_v18 = vadd.f32 %v4077_v10, %v14493_v43  ;;  %6748 = vmatpush2.bf16.msra.mxu0 %v11037_v58  ;;  %v11040_v43 = vld [vmem:[%s15703_s3 + $0x400] ss:$8 sps:$4 sm:$0xff]   ;;  %v4086_v3 = vpop.f32.mrf.mxu0 }
 0x330   :  { %v4009_v42 = vpop.f32.mrf.mxu1  ;;  %6228 = vmatmul.mubr.bf16.gmra.mxu1 %v14722_v13  ;;  %6749 = vmatprep.subr.bf16.mxu0 %v11045_v45  ;;  %v11055_v45 = vld [vmem:[%s15703_s3 + $0x4e4] ss:$8 sps:$4 sm:$0xff]  }
 0x331   :  { %v4083_v53 = vadd.f32 %v4082_v9, %v4009_v42  ;;  %6813 = vmatpush1.bf16.msra.mxu1 %v11034_v7  ;;  %6832 = vmatprep.mubr.bf16.mxu1 %v16080_v14  ;;  %v11063_v42 = vld [vmem:[%s15703_s3 + $0x390] ss:$8 sps:$4 sm:$0xff]  }
 0x332   :  { %v4011_v35 = vpop.f32.mrf.mxu1  ;;  %6814 = vmatprep.subr.bf16.mxu1 %v11042_v20  ;;  %v11065_v20 = vld [vmem:[%s15703_s3 + $0x394] ss:$8 sps:$4 sm:$0xff]  }
 0x333   :  { %v14747_v34 = vadd.f32 %v4083_v53, %v14510_v48  ;;  %v4085_v19 = vadd.f32 %v4084_v36, %v4011_v35  ;;  %6750 = vmatpush2.bf16.msra.mxu0 %v11043_v1  ;;  %v11047_v48 = vld [vmem:[%s15703_s3 + $0x4f0] ss:$8 sps:$4 sm:$0xff]   ;;  %v11053_v1 = vld [vmem:[%s15703_s3 + $0x4e0] ss:$8 sps:$4 sm:$0xff]   ;;  %v11062_v36 = vld [vmem:[%s15703_s3 + $0x4d4] ss:$8 sps:$4 sm:$0xff]  }
 0x334   :  { %v4013_v38 = vpop.f32.mrf.mxu1  ;;  %6751 = vmatprep.subr.bf16.mxu0 %v11052_v39  ;;  %v11071_v53 = vld [vmem:[%s15703_s3 + $0x384] ss:$8 sps:$4 sm:$0xff]  }
 0x335   :  { %v14756_v21 = vadd.f32 %v4085_v19, %v14519_v6  ;;  %v4087_v58 = vadd.f32 %v4086_v3, %v4013_v38  ;;  %6815 = vmatpush1.bf16.msra.mxu1 %v11040_v43  ;;  %v11056_v6 = vld [vmem:[%s15703_s3 + $0x3a0] ss:$8 sps:$4 sm:$0xff]   ;;  %v11060_v43 = vld [vmem:[%s15703_s3 + $0x4d0] ss:$8 sps:$4 sm:$0xff]   ;;  %v11068_v19 = vld [vmem:[%s15703_s3 + $0x4c4] ss:$8 sps:$4 sm:$0xff]  }
 0x336   :  { %v14761_v9 = vpop.f32.mrf.mxu1  ;;  %7289 = vmatprep.subr.bf16.mxu1 %v11049_v33  ;;  %v11059_v33 = vld [vmem:[#allocation2 + $0xc8] ss:$12 sps:$4 sm:$0xff]  }
 0x337   :  { %v14767_v10 = vadd.f32 %v4087_v58, %v14530_v17  ;;  %6752 = vmatpush2.bf16.msra.mxu0 %v11050_v32  ;;  %v11069_v32 = vld [vmem:[%s15703_s3 + $0x380] ss:$8 sps:$4 sm:$0xff]   ;;  %v11078_v38 = vld [vmem:[%s15703_s3 + $0x5f4] ss:$8 sps:$4 sm:$0xff]  }
 0x338   :  { %v4616_v7 = vpop.f32.mrf.mxu1  ;;  %6833 = vmatmul.mubr.bf16.vlgmr.msra.gmra.mxu1 %v11046_v25  ;;  %6753 = vmatprep.subr.bf16.mxu0 %v11058_v37  ;;  %v11066_v37 = vld [vmem:[%s15703_s3 + $0x4c0] ss:$8 sps:$4 sm:$0xff]   ;;  %v11076_v25 = vld [vmem:[%s15703_s3 + $0x5f0] ss:$8 sps:$4 sm:$0xff]  }
 0x339   :  { %7290 = vmatpush1.bf16.msra.mxu1 %v11047_v48  ;;  %6842 = vmatprep.mubr.bf16.mxu1 %v16080_v14  ;;  %v11075_v48 = vld [vmem:[%s15703_s3 + $0x4b4] ss:$8 sps:$4 sm:$0xff]  }
 0x33a   :  { %v4618_v17 = vpop.f32.mrf.mxu1  ;;  %7291 = vmatprep.subr.bf16.mxu1 %v11055_v45  ;;  %v14814_v45 = vpop.f32.mrf.mxu0 }
 0x33b   :  { %6754 = vmatpush2.bf16.msra.mxu0 %v11056_v6 }
 0x33c   :  { %v4620_v39 = vpop.f32.mrf.mxu1  ;;  %6755 = vmatprep.subr.bf16.mxu0 %v11065_v20  ;;  %v11087_v20 = vld [vmem:[%s15703_s3 + $0x5e4] ss:$8 sps:$4 sm:$0xff]  }
 0x33d   :  { %7292 = vmatpush1.bf16.msra.mxu1 %v11053_v1  ;;  %v11073_v1 = vld [vmem:[%s15703_s3 + $0x4b0] ss:$8 sps:$4 sm:$0xff]  }
 0x33e   :  { %v14791_v35 = vpop.f32.mrf.mxu1  ;;  %7293 = vmatprep.subr.bf16.mxu1 %v11062_v36  ;;  %v14824_v36 = vld [vmem:[#allocation2 + $0xc4] ss:$12 sps:$4 sm:$0xff]  }
 0x33f   :  { %16240 = vst [vmem:[#allocation84_spill] sm:$0xff] %v14791_v35  ;;  %6756 = vmatpush2.bf16.msra.mxu0 %v11063_v42 }
 0x340   :  { %v4626_v3 = vpop.f32.mrf.mxu1  ;;  %6843 = vmatmul.mubr.bf16.gmra.mxu1 %v11059_v33  ;;  %6757 = vmatprep.subr.bf16.mxu0 %v11071_v53  ;;  %v11072_v53 = vld [vmem:[#allocation2 + $0xe0] ss:$12 sps:$4 sm:$0xff]  }
 0x341   :  { %7294 = vmatpush1.bf16.msra.mxu1 %v11060_v43  ;;  %6852 = vmatprep.mubr.bf16.mxu1 %v16080_v14  ;;  %v11084_v33 = vld [vmem:[%s15703_s3 + $0x4a4] ss:$8 sps:$4 sm:$0xff]  }
 0x342   :  { %v14806_v58 = vpop.f32.mrf.mxu1  ;;  %7295 = vmatprep.subr.bf16.mxu1 %v11068_v19 }
 0x343   :  { %6758 = vmatpush2.bf16.msra.mxu0 %v11069_v32  ;;  %v11085_v32 = vld [vmem:[%s15703_s3 + $0x5e0] ss:$8 sps:$4 sm:$0xff]  }
 0x344   :  { %v14816_v6 = vpop.f32.mrf.mxu1  ;;  %7362 = vmatprep.subr.bf16.mxu0 %v11078_v38 }
 0x345   :  { %7296 = vmatpush1.bf16.msra.mxu1 %v11066_v37 }
 0x346   :  { %v14826_v42 = vpop.f32.mrf.mxu1  ;;  %7297 = vmatprep.subr.bf16.mxu1 %v11075_v48  ;;  %v4543_v43 = vpop.f32.mrf.mxu0  ;;  %6760 = vmatmul.mubr.bf16.vlgmr.msra.gmra.mxu0 %v14407_v47  ;;  %v11094_v47 = vld [vmem:[%s15703_s3 + $0x5d4] ss:$8 sps:$4 sm:$0xff]  }
 0x347   :  { %16241 = vst [vmem:[#allocation70_spill] sm:$0xff] %v14826_v42  ;;  %v4617_v19 = vadd.f32 %v4616_v7, %v4543_v43  ;;  %6769 = vmatprep.mubr.bf16.mxu0 %v14824_v36  ;;  %7363 = vmatpush1.bf16.msra.mxu0 %v11076_v25  ;;  %v11082_v25 = vld [vmem:[%s15703_s3 + $0x4a0] ss:$8 sps:$4 sm:$0xff]  }
 0x348   :  { %v14836_v38 = vpop.f32.mrf.mxu1  ;;  %6853 = vmatmul.mubr.bf16.gmra.mxu1 %v11072_v53  ;;  %v4545_v37 = vpop.f32.mrf.mxu0  ;;  %7364 = vmatprep.subr.bf16.mxu0 %v11087_v20  ;;  %v11091_v20 = vld [vmem:[%s15703_s3 + $0x494] ss:$8 sps:$4 sm:$0xff]  }
 0x349   :  { %v14842_v48 = vadd.f32 %v4617_v19, %v14619_v54  ;;  %7298 = vmatpush1.bf16.msra.mxu1 %v11073_v1  ;;  %v4619_v7 = vadd.f32 %v4618_v17, %v4545_v37  ;;  %6862 = vmatprep.mubr.bf16.mxu1 %v16080_v14  ;;  %v11092_v54 = vld [vmem:[%s15703_s3 + $0x5d0] ss:$8 sps:$4 sm:$0xff]   ;;  %v14857_v1 = vld [vmem:[#allocation2 + $0xc0] ss:$12 sps:$4 sm:$0xff]  }
 0x34a   :  { %7299 = vmatprep.subr.bf16.mxu1 %v11084_v33  ;;  %v4547_v43 = vpop.f32.mrf.mxu0  ;;  %v4638_v17 = vpop.f32.mrf.mxu1  ;;  %v11103_v33 = vld [vmem:[%s15703_s3 + $0x5c4] ss:$8 sps:$4 sm:$0xff]  }
 0x34b   :  { %v14852_v53 = vadd.f32 %v4619_v7, %v14628_v51  ;;  %v4621_v42 = vadd.f32 %v4620_v39, %v4547_v43  ;;  %7365 = vmatpush1.bf16.msra.mxu0 %v11085_v32  ;;  %v11089_v51 = vld [vmem:[%s15703_s3 + $0x490] ss:$8 sps:$4 sm:$0xff]   ;;  %v14870_v39 = vld [vmem:[#allocation2 + $0xdc] ss:$12 sps:$4 sm:$0xff]  }
 0x34c   :  { %v14859_v19 = vpop.f32.mrf.mxu0  ;;  %7366 = vmatprep.subr.bf16.mxu0 %v11094_v47  ;;  %v11088_v32 = vld [vmem:[#allocation2 + $0xf8] ss:$12 sps:$4 sm:$0xff]  }
 0x34d   :  { %16242 = vst [vmem:[#allocation20_spill] sm:$0xff] %v14859_v19  ;;  %v14865_v37 = vadd.f32 %v4621_v42, %v14642_v24  ;;  %7300 = vmatpush1.bf16.msra.mxu1 %v11082_v25  ;;  %v11100_v47 = vld [vmem:[%s15703_s3 + $0x484] ss:$8 sps:$4 sm:$0xff]   ;;  %v11101_v24 = vld [vmem:[%s15703_s3 + $0x5c0] ss:$8 sps:$4 sm:$0xff]   ;;  %v4640_v42 = vpop.f32.mrf.mxu1 }
 0x34e   :  { %7301 = vmatprep.subr.bf16.mxu1 %v11091_v20  ;;  %v4553_v7 = vpop.f32.mrf.mxu0  ;;  %6770 = vmatmul.mubr.bf16.gmra.mxu0 %v14857_v1  ;;  %v11109_v20 = vld [vmem:[%s15703_s3 + $0x5b4] ss:$8 sps:$4 sm:$0xff]  }
 0x34f   :  { %v4627_v43 = vadd.f32 %v4626_v3, %v4553_v7  ;;  %6779 = vmatprep.mubr.bf16.mxu0 %v14870_v39  ;;  %7367 = vmatpush1.bf16.msra.mxu0 %v11092_v54  ;;  %v11098_v54 = vld [vmem:[%s15703_s3 + $0x480] ss:$8 sps:$4 sm:$0xff]  }
 0x350   :  { %6863 = vmatmul.mubr.bf16.gmra.mxu1 %v11088_v32  ;;  %v4555_v25 = vpop.f32.mrf.mxu0  ;;  %7368 = vmatprep.subr.bf16.mxu0 %v11103_v33  ;;  %v11106_v33 = vld [vmem:[%s15703_s3 + $0x574] ss:$8 sps:$4 sm:$0xff]  }
 0x351   :  { %v14884_v30 = vadd.f32 %v4627_v43, %v14663_v5  ;;  %7302 = vmatpush1.bf16.msra.mxu1 %v11089_v51  ;;  %7321 = vmatprep.mubr.bf16.mxu1 %v14600_v50  ;;  %v4629_v3 = vadd.f32 %v14806_v58, %v4555_v25  ;;  %v11107_v50 = vld [vmem:[%s15703_s3 + $0x5b0] ss:$8 sps:$4 sm:$0xff]   ;;  %v14901_v58 = vpop.f32.mrf.mxu1  ;;  %v11118_v43 = vld [vmem:[%s15703_s3 + $0x5a4] ss:$8 sps:$4 sm:$0xff]   ;;  %v11160_v19 = vld [vmem:[#allocation2 + $0x68] ss:$12 sps:$4 sm:$0xff]  }
 0x352   :  { %7303 = vmatprep.subr.bf16.mxu1 %v11100_v47  ;;  %v4557_v32 = vpop.f32.mrf.mxu0  ;;  %v14903_v51 = vld [vmem:[#allocation2 + $0xd8] ss:$12 sps:$4 sm:$0xff]  }
 0x353   :  { %v14895_v7 = vadd.f32 %v4629_v3, %v14673_v31  ;;  %v4631_v5 = vadd.f32 %v14816_v6, %v4557_v32  ;;  %7369 = vmatpush1.bf16.msra.mxu0 %v11101_v24  ;;  %v11104_v6 = vld [vmem:[%s15703_s3 + $0x570] ss:$8 sps:$4 sm:$0xff]   ;;  %v14916_v24 = vld [vmem:[#allocation2 + $0xf4] ss:$12 sps:$4 sm:$0xff]  }
 0x354   :  { %v14905_v47 = vpop.f32.mrf.mxu0  ;;  %7370 = vmatprep.subr.bf16.mxu0 %v11109_v20  ;;  %v11115_v20 = vld [vmem:[%s15703_s3 + $0x564] ss:$8 sps:$4 sm:$0xff]  }
 0x355   :  { %16243 = vst [vmem:[#allocation72_spill] sm:$0xff] %v14905_v47  ;;  %v14911_v31 = vadd.f32 %v4631_v5, %v14687_v29  ;;  %7304 = vmatpush1.bf16.msra.mxu1 %v11098_v54  ;;  %v11116_v29 = vld [vmem:[%s15703_s3 + $0x5a0] ss:$8 sps:$4 sm:$0xff]   ;;  %v4646_v54 = vpop.f32.mrf.mxu1 }
 0x356   :  { %7305 = vmatprep.subr.bf16.mxu1 %v11106_v33  ;;  %v4563_v25 = vpop.f32.mrf.mxu0  ;;  %6780 = vmatmul.mubr.bf16.gmra.mxu0 %v14903_v51  ;;  %v11124_v33 = vld [vmem:[%s15703_s3 + $0x594] ss:$8 sps:$4 sm:$0xff]  }
 0x357   :  { %v4637_v3 = vadd.f32 %v14836_v38, %v4563_v25  ;;  %6789 = vmatprep.mubr.bf16.mxu0 %v14916_v24  ;;  %7371 = vmatpush1.bf16.msra.mxu0 %v11107_v50  ;;  %v11113_v38 = vld [vmem:[%s15703_s3 + $0x560] ss:$8 sps:$4 sm:$0xff]   ;;  %v11121_v25 = vld [vmem:[%s15703_s3 + $0x554] ss:$8 sps:$4 sm:$0xff]  }
 0x358   :  { %v4565_v32 = vpop.f32.mrf.mxu0  ;;  %7372 = vmatprep.subr.bf16.mxu0 %v11118_v43 }
 0x359   :  { %v14931_v5 = vadd.f32 %v4637_v3, %v14708_v49  ;;  %7306 = vmatpush2.bf16.msra.mxu1 %v11104_v6  ;;  %v4639_v47 = vadd.f32 %v4638_v17, %v4565_v32  ;;  %v11122_v49 = vld [vmem:[%s15703_s3 + $0x590] ss:$8 sps:$4 sm:$0xff]   ;;  %v4648_v17 = vpop.f32.mrf.mxu1 }
 0x35a   :  { %7307 = vmatprep.subr.bf16.mxu1 %v11115_v20  ;;  %v4567_v50 = vpop.f32.mrf.mxu0  ;;  %v14945_v6 = vld [vmem:[#allocation2 + $0xf0] ss:$12 sps:$4 sm:$0xff]   ;;  %v11130_v20 = vld [vmem:[%s15703_s3 + $0x584] ss:$8 sps:$4 sm:$0xff]  }
 0x35b   :  { %v14940_v43 = vadd.f32 %v4639_v47, %v14717_v55  ;;  %v4641_v59 = vadd.f32 %v4640_v42, %v4567_v50  ;;  %7373 = vmatpush1.bf16.msra.mxu0 %v11116_v29  ;;  %v11119_v55 = vld [vmem:[%s15703_s3 + $0x550] ss:$8 sps:$4 sm:$0xff]   ;;  %v11127_v47 = vld [vmem:[%s15703_s3 + $0x544] ss:$8 sps:$4 sm:$0xff]  }
 0x35c   :  { %v14947_v3 = vpop.f32.mrf.mxu0  ;;  %7374 = vmatprep.subr.bf16.mxu0 %v11124_v33 }
 0x35d   :  { %v14953_v32 = vadd.f32 %v4641_v59, %v14730_v18  ;;  %7308 = vmatpush2.bf16.msra.mxu1 %v11113_v38  ;;  %v11128_v59 = vld [vmem:[%s15703_s3 + $0x580] ss:$8 sps:$4 sm:$0xff]   ;;  %v4650_v18 = vpop.f32.mrf.mxu1  ;;  %v11137_v38 = vld [vmem:[%s15703_s3 + $0x674] ss:$8 sps:$4 sm:$0xff]  }
 0x35e   :  { %7309 = vmatprep.subr.bf16.mxu1 %v11121_v25  ;;  %v4573_v42 = vpop.f32.mrf.mxu0  ;;  %6790 = vmatmul.mubr.bf16.gmra.mxu0 %v14945_v6 }
 0x35f   :  { %v4647_v29 = vadd.f32 %v4646_v54, %v4573_v42  ;;  %7375 = vmatpush1.bf16.msra.mxu0 %v11122_v49  ;;  %7394 = vmatprep.mubr.bf16.mxu0 %v16080_v14  ;;  %v11125_v54 = vld [vmem:[%s15703_s3 + $0x540] ss:$8 sps:$4 sm:$0xff]   ;;  %v11133_v42 = vld [vmem:[%s15703_s3 + $0x534] ss:$8 sps:$4 sm:$0xff]  }
 0x360   :  { %v4575_v33 = vpop.f32.mrf.mxu0  ;;  %7376 = vmatprep.subr.bf16.mxu0 %v11130_v20 }
 0x361   :  { %v14970_v50 = vadd.f32 %v4647_v29, %v14747_v34  ;;  %7310 = vmatpush2.bf16.msra.mxu1 %v11119_v55  ;;  %v4649_v25 = vadd.f32 %v4648_v17, %v4575_v33  ;;  %v11135_v34 = vld [vmem:[%s15703_s3 + $0x670] ss:$8 sps:$4 sm:$0xff]   ;;  %v4652_v17 = vpop.f32.mrf.mxu1 }
 0x362   :  { %7311 = vmatprep.subr.bf16.mxu1 %v11127_v47  ;;  %v4577_v49 = vpop.f32.mrf.mxu0  ;;  %v11134_v29 = vld [vmem:[#allocation2 + $0x38] ss:$12 sps:$4 sm:$0xff]  }
 0x363   :  { %v14979_v20 = vadd.f32 %v4649_v25, %v14756_v21  ;;  %v4651_v35 = vadd.f32 %v4650_v18, %v4577_v49  ;;  %7377 = vmatpush1.bf16.msra.mxu0 %v11128_v59  ;;  %v11143_v47 = vld [vmem:[%s15703_s3 + $0x664] ss:$8 sps:$4 sm:$0xff]   ;;  %v11131_v59 = vld [vmem:[%s15703_s3 + $0x530] ss:$8 sps:$4 sm:$0xff]   ;;  %v11150_v25 = vld [vmem:[%s15703_s3 + $0x654] ss:$8 sps:$4 sm:$0xff]  }
 0x364   :  { %v4579_v55 = vpop.f32.mrf.mxu0  ;;  %7852 = vmatprep.subr.bf16.mxu0 %v11137_v38  ;;  %v11140_v38 = vld [vmem:[%s15703_s3 + $0x524] ss:$8 sps:$4 sm:$0xff]  }
 0x365   :  { %v14988_v33 = vadd.f32 %v4651_v35, %v14767_v10  ;;  %7312 = vmatpush2.bf16.msra.mxu1 %v11125_v54  ;;  %v14990_v21 = vadd.f32 %v4652_v17, %v4579_v55  ;;  %v11141_v10 = vld [vmem:[%s15703_s3 + $0x660] ss:$8 sps:$4 sm:$0xff]   ;;  %v11147_v55 = vld [vmem:[#allocation2 + $0x50] ss:$12 sps:$4 sm:$0xff]  }
 0x366   :  { %7313 = vmatprep.subr.bf16.mxu1 %v11133_v42  ;;  %v5180_v18 = vpop.f32.mrf.mxu0  ;;  %7395 = vmatmul.mubr.bf16.vlgmr.msra.gmra.mxu0 %v11134_v29  ;;  %v11138_v54 = vld [vmem:[%s15703_s3 + $0x520] ss:$8 sps:$4 sm:$0xff]   ;;  %v11146_v42 = vld [vmem:[%s15703_s3 + $0x514] ss:$8 sps:$4 sm:$0xff]   ;;  %v11156_v29 = vld [vmem:[%s15703_s3 + $0x644] ss:$8 sps:$4 sm:$0xff]  }
 0x367   :  { %7853 = vmatpush1.bf16.msra.mxu0 %v11135_v34  ;;  %7404 = vmatprep.mubr.bf16.mxu0 %v16080_v14  ;;  %v11148_v34 = vld [vmem:[%s15703_s3 + $0x650] ss:$8 sps:$4 sm:$0xff]  }
 0x368   :  { %v5182_v35 = vpop.f32.mrf.mxu0  ;;  %7854 = vmatprep.subr.bf16.mxu0 %v11143_v47  ;;  %v11144_v47 = vld [vmem:[%s15703_s3 + $0x510] ss:$8 sps:$4 sm:$0xff]  }
 0x369   :  { %7314 = vmatpush2.bf16.msra.mxu1 %v11131_v59 }
 0x36a   :  { %7315 = vmatprep.subr.bf16.mxu1 %v11140_v38  ;;  %v5184_v49 = vpop.f32.mrf.mxu0  ;;  %v11153_v38 = vld [vmem:[%s15703_s3 + $0x504] ss:$8 sps:$4 sm:$0xff]  }
 0x36b   :  { %7855 = vmatpush1.bf16.msra.mxu0 %v11141_v10  ;;  %v11154_v10 = vld [vmem:[%s15703_s3 + $0x640] ss:$8 sps:$4 sm:$0xff]  }
 0x36c   :  { %v15014_v17 = vpop.f32.mrf.mxu0  ;;  %7856 = vmatprep.subr.bf16.mxu0 %v11150_v25 }
 0x36d   :  { %7316 = vmatpush2.bf16.msra.mxu1 %v11138_v54  ;;  %v11163_v54 = vld [vmem:[%s15703_s3 + $0x634] ss:$8 sps:$4 sm:$0xff]  }
 0x36e   :  { %7317 = vmatprep.subr.bf16.mxu1 %v11146_v42  ;;  %v15022_v59 = vpop.f32.mrf.mxu0  ;;  %7405 = vmatmul.mubr.bf16.gmra.mxu0 %v11147_v55  ;;  %v11151_v42 = vld [vmem:[%s15703_s3 + $0x500] ss:$8 sps:$4 sm:$0xff]   ;;  %v11159_v55 = vld [vmem:[%s15703_s3 + $0x774] ss:$8 sps:$4 sm:$0xff]  }
 0x36f   :  { %7857 = vmatpush1.bf16.msra.mxu0 %v11148_v34  ;;  %7414 = vmatprep.mubr.bf16.mxu0 %v16080_v14 }
 0x370   :  { %v15031_v25 = vpop.f32.mrf.mxu0  ;;  %7858 = vmatprep.subr.bf16.mxu0 %v11156_v29  ;;  %v11161_v29 = vld [vmem:[%s15703_s3 + $0x630] ss:$8 sps:$4 sm:$0xff]  }
 0x371   :  { %7318 = vmatpush2.bf16.msra.mxu1 %v11144_v47  ;;  %v11169_v47 = vld [vmem:[%s15703_s3 + $0x624] ss:$8 sps:$4 sm:$0xff]  }
 0x372   :  { %7319 = vmatprep.subr.bf16.mxu1 %v11153_v38  ;;  %v15039_v34 = vpop.f32.mrf.mxu0  ;;  %v11157_v38 = vld [vmem:[%s15703_s3 + $0x770] ss:$8 sps:$4 sm:$0xff]  }
 0x373   :  { %7859 = vmatpush1.bf16.msra.mxu0 %v11154_v10  ;;  %v11166_v10 = vld [vmem:[%s15703_s3 + $0x764] ss:$8 sps:$4 sm:$0xff]  }
 0x374   :  { %7860 = vmatprep.subr.bf16.mxu0 %v11163_v54  ;;  %v15053_v23 = vpop.f32.mrf.mxu0  ;;  %v11167_v54 = vld [vmem:[%s15703_s3 + $0x620] ss:$8 sps:$4 sm:$0xff]  }
 0x375   :  { %7320 = vmatpush2.bf16.msra.mxu1 %v11151_v42 }
 0x376   :  { %7925 = vmatprep.subr.bf16.mxu1 %v11159_v55  ;;  %7415 = vmatmul.mubr.bf16.gmra.mxu0 %v11160_v19  ;;  %v11176_v55 = vld [vmem:[%s15703_s3 + $0x614] ss:$8 sps:$4 sm:$0xff]   ;;  %v15070_v8 = vpop.f32.mrf.mxu0 }
 0x377   :  { %7861 = vmatpush1.bf16.msra.mxu0 %v11161_v29  ;;  %7424 = vmatprep.mubr.bf16.mxu0 %v16080_v14  ;;  %v11164_v29 = vld [vmem:[%s15703_s3 + $0x760] ss:$8 sps:$4 sm:$0xff]  }
 0x378   :  { %v5107_v42 = vpop.f32.mrf.mxu1  ;;  %7322 = vmatmul.mubr.bf16.vlgmr.msra.gmra.mxu1 %v14634_v40  ;;  %7862 = vmatprep.subr.bf16.mxu0 %v11169_v47  ;;  %v11172_v40 = vld [vmem:[%s15703_s3 + $0x754] ss:$8 sps:$4 sm:$0xff]  }
 0x379   :  { %v5181_v19 = vadd.f32 %v5180_v18, %v5107_v42  ;;  %7331 = vmatprep.mubr.bf16.mxu1 %v14644_v63  ;;  %7926 = vmatpush1.bf16.msra.mxu1 %v11157_v38  ;;  %v11174_v63 = vld [vmem:[%s15703_s3 + $0x610] ss:$8 sps:$4 sm:$0xff]   ;;  %v11173_v38 = vld [vmem:[#allocation2 + $0x80] ss:$12 sps:$4 sm:$0xff]  }
 0x37a   :  { %v5109_v4 = vpop.f32.mrf.mxu1  ;;  %7927 = vmatprep.subr.bf16.mxu1 %v11166_v10  ;;  %v11182_v10 = vld [vmem:[%s15703_s3 + $0x604] ss:$8 sps:$4 sm:$0xff]  }
 0x37b   :  { %v15076_v47 = vadd.f32 %v5181_v19, %v14842_v48  ;;  %v5183_v16 = vadd.f32 %v5182_v35, %v5109_v4  ;;  %7863 = vmatpush1.bf16.msra.mxu0 %v11167_v54  ;;  %v11170_v4 = vld [vmem:[%s15703_s3 + $0x750] ss:$8 sps:$4 sm:$0xff]   ;;  %v5202_v48 = vpop.f32.mrf.mxu0  ;;  %v11179_v54 = vld [vmem:[%s15703_s3 + $0x744] ss:$8 sps:$4 sm:$0xff]   ;;  %v11191_v19 = vld [vmem:[%s15703_s3 + $0x6f4] ss:$8 sps:$4 sm:$0xff]  }
 0x37c   :  { %v5111_v18 = vpop.f32.mrf.mxu1  ;;  %7864 = vmatprep.subr.bf16.mxu0 %v11176_v55 }
 0x37d   :  { %v15085_v42 = vadd.f32 %v5183_v16, %v14852_v53  ;;  %v5185_v0 = vadd.f32 %v5184_v49, %v5111_v18  ;;  %7928 = vmatpush1.bf16.msra.mxu1 %v11164_v29  ;;  %v11180_v53 = vld [vmem:[%s15703_s3 + $0x600] ss:$8 sps:$4 sm:$0xff]  }
 0x37e   :  { %v5113_v35 = vpop.f32.mrf.mxu1  ;;  %7929 = vmatprep.subr.bf16.mxu1 %v11172_v40  ;;  %7425 = vmatmul.mubr.bf16.gmra.mxu0 %v11173_v38 }
 0x37f   :  { %v15094_v55 = vadd.f32 %v5185_v0, %v14865_v37  ;;  %v15097_v16 = vadd.f32 %v15014_v17, %v5113_v35  ;;  %7865 = vmatpush1.bf16.msra.mxu0 %v11174_v63  ;;  %7884 = vmatprep.mubr.bf16.mxu0 %v14824_v36  ;;  %v11177_v36 = vld [vmem:[%s15703_s3 + $0x740] ss:$8 sps:$4 sm:$0xff]   ;;  %v5204_v37 = vpop.f32.mrf.mxu0  ;;  %v11197_v63 = vld [vmem:[%s15703_s3 + $0x6e4] ss:$8 sps:$4 sm:$0xff]   ;;  %v3515_v35 = vadd.f32 %v14459_v12, %v14487_v61  ;;  %v11203_v12 = vld [vmem:[%s15703_s3 + $0x6d4] ss:$8 sps:$4 sm:$0xff]  }
 0x380   :  { %v5117_v49 = vpop.f32.mrf.mxu1  ;;  %7332 = vmatmul.mubr.bf16.gmra.mxu1 %v14679_v22  ;;  %7866 = vmatprep.subr.bf16.mxu0 %v11182_v10  ;;  %v11185_v22 = vld [vmem:[%s15703_s3 + $0x734] ss:$8 sps:$4 sm:$0xff]   ;;  %v2983_v61 = vadd.f32 %v14233_v57, %v14223_v44  ;;  %v4643_v44 = vadd.f32 %v14901_v58, %v14947_v3 }
 0x381   :  { %v5191_v0 = vadd.f32 %v15022_v59, %v5117_v49  ;;  %7341 = vmatprep.mubr.bf16.mxu1 %v14689_v2  ;;  %7930 = vmatpush1.bf16.msra.mxu1 %v11170_v4  ;;  %v11189_v2 = vld [vmem:[%s15703_s3 + $0x6f0] ss:$8 sps:$4 sm:$0xff]   ;;  %v11194_v4 = vld [vmem:[%s15703_s3 + $0x724] ss:$8 sps:$4 sm:$0xff]  }
 0x382   :  { %v5119_v17 = vpop.f32.mrf.mxu1  ;;  %7931 = vmatprep.subr.bf16.mxu1 %v11179_v54  ;;  %v11188_v54 = vld [vmem:[#allocation2 + $0x7c] ss:$12 sps:$4 sm:$0xff]  }
 0x383   :  { %v15116_v29 = vadd.f32 %v5191_v0, %v14884_v30  ;;  %v5193_v40 = vadd.f32 %v15031_v25, %v5119_v17  ;;  %7867 = vmatpush1.bf16.msra.mxu0 %v11180_v53  ;;  %v11183_v30 = vld [vmem:[%s15703_s3 + $0x730] ss:$8 sps:$4 sm:$0xff]   ;;  %v5206_v25 = vpop.f32.mrf.mxu0  ;;  %v11195_v53 = vld [vmem:[%s15703_s3 + $0x6e0] ss:$8 sps:$4 sm:$0xff]   ;;  %v3554_v17 = vadd.f32 %v3515_v35, %v2983_v61  ;;  %v11216_v61 = vld [vmem:[%s15703_s3 + $0x6a4] ss:$8 sps:$4 sm:$0xff]  }
 0x384   :  { %v5121_v59 = vpop.f32.mrf.mxu1  ;;  %7868 = vmatprep.subr.bf16.mxu0 %v11191_v19  ;;  %v11192_v19 = vld [vmem:[%s15703_s3 + $0x720] ss:$8 sps:$4 sm:$0xff]  }
 0x385   :  { %v15126_v18 = vadd.f32 %v5193_v40, %v14895_v7  ;;  %v5195_v38 = vadd.f32 %v15039_v34, %v5121_v59  ;;  %7932 = vmatpush1.bf16.msra.mxu1 %v11177_v36  ;;  %v11200_v36 = vld [vmem:[%s15703_s3 + $0x714] ss:$8 sps:$4 sm:$0xff]  }
 0x386   :  { %v5123_v10 = vpop.f32.mrf.mxu1  ;;  %7933 = vmatprep.subr.bf16.mxu1 %v11185_v22  ;;  %v11209_v22 = vld [vmem:[%s15703_s3 + $0x6c4] ss:$8 sps:$4 sm:$0xff]  }
 0x387   :  { %16244 = vst [vmem:[#allocation5_spill] sm:$0xff] %v15126_v18  ;;  %v15138_v7 = vadd.f32 %v5195_v38, %v14911_v31  ;;  %v15141_v34 = vadd.f32 %v15053_v23, %v5123_v10  ;;  %7869 = vmatpush2.bf16.msra.mxu0 %v11189_v2  ;;  %v4079_v23 = vadd.f32 %v14694_v56, %v14724_v46  ;;  %v11201_v56 = vld [vmem:[%s15703_s3 + $0x6d0] ss:$8 sps:$4 sm:$0xff]   ;;  %v11207_v10 = vld [vmem:[%s15703_s3 + $0x6c0] ss:$8 sps:$4 sm:$0xff]  }
 0x388   :  { %v5127_v49 = vpop.f32.mrf.mxu1  ;;  %7342 = vmatmul.mubr.bf16.gmra.mxu1 %v14722_v13  ;;  %7870 = vmatprep.subr.bf16.mxu0 %v11197_v63  ;;  %v5210_v13 = vpop.f32.mrf.mxu0  ;;  %v11206_v63 = vld [vmem:[%s15703_s3 + $0x704] ss:$8 sps:$4 sm:$0xff]   ;;  %v3525_v38 = vadd.f32 %v14595_v41, %v14524_v27  ;;  %v11213_v27 = vld [vmem:[%s15703_s3 + $0x6b4] ss:$8 sps:$4 sm:$0xff]   ;;  %v4089_v41 = vadd.f32 %v14814_v45, %v14761_v9  ;;  %v11211_v9 = vld [vmem:[%s15703_s3 + $0x6b0] ss:$8 sps:$4 sm:$0xff]  }
 0x389   :  { %16245 = vst [vmem:[#allocation85_spill] sm:$0xff] %v15138_v7  ;;  %v5201_v31 = vadd.f32 %v15070_v8, %v5127_v49  ;;  %7351 = vmatprep.mubr.bf16.mxu1 %v11188_v54  ;;  %7934 = vmatpush1.bf16.msra.mxu1 %v11183_v30  ;;  %v4118_v40 = vadd.f32 %v4079_v23, %v3554_v17  ;;  %v11204_v54 = vld [vmem:[%s15703_s3 + $0x700] ss:$8 sps:$4 sm:$0xff]  }
 0x38a   :  { %v5129_v0 = vpop.f32.mrf.mxu1  ;;  %7935 = vmatprep.subr.bf16.mxu1 %v11194_v4  ;;  %v5212_v3 = vpop.f32.mrf.mxu0  ;;  %v2993_v4 = vadd.f32 %v14317_v15, %v14367_v11 }
 0x38b   :  { %v15164_v57 = vadd.f32 %v5201_v31, %v14931_v5  ;;  %v5203_v8 = vadd.f32 %v5202_v48, %v5129_v0  ;;  %7871 = vmatpush2.bf16.msra.mxu0 %v11195_v53  ;;  %v11198_v5 = vld [vmem:[%s15703_s3 + $0x710] ss:$8 sps:$4 sm:$0xff]   ;;  %v4682_v30 = vadd.f32 %v4643_v44, %v4118_v40  ;;  %v11210_v0 = vld [vmem:[#allocation2 + $0xc8] ss:$12 sps:$4 sm:$0xff]   ;;  %v11223_v40 = vld [vmem:[%s15703_s3 + $0x684] ss:$8 sps:$4 sm:$0xff]  }
 0x38c   :  { %v5131_v46 = vpop.f32.mrf.mxu1  ;;  %7872 = vmatprep.subr.bf16.mxu0 %v11203_v12  ;;  %v11186_v48 = vld [vmem:[#allocation2 + $0x78] ss:$12 sps:$4 sm:$0xff]   ;;  %v5214_v15 = vpop.f32.mrf.mxu0  ;;  %v3558_v53 = vadd.f32 %v3525_v38, %v2993_v4 }
 0x38d   :  { %16246 = vst [vmem:[#allocation74_spill] sm:$0xff] %v15164_v57  ;;  %v15173_v2 = vadd.f32 %v5203_v8, %v14940_v43  ;;  %v5205_v58 = vadd.f32 %v5204_v37, %v5131_v46  ;;  %7936 = vmatpush1.bf16.msra.mxu1 %v11192_v19  ;;  %v11214_v8 = vld [vmem:[%s15703_s3 + $0x6a0] ss:$8 sps:$4 sm:$0xff]  }
 0x38e   :  { %v5133_v59 = vpop.f32.mrf.mxu1  ;;  %7937 = vmatprep.subr.bf16.mxu1 %v11200_v36  ;;  %v4122_v23 = vadd.f32 %v4089_v41, %v3558_v53  ;;  %v11225_v53 = vld [vmem:[#allocation2 + $0x110] ss:$12 sps:$4 sm:$0xff]  }
 0x38f   :  { %16247 = vst [vmem:[#allocation86_spill] sm:$0xff] %v15173_v2  ;;  %v15184_v43 = vadd.f32 %v5205_v58, %v14953_v32  ;;  %v5207_v37 = vadd.f32 %v5206_v25, %v5133_v59  ;;  %7873 = vmatpush2.bf16.msra.mxu0 %v11201_v56 }
 0x390   :  { %v5137_v35 = vpop.f32.mrf.mxu1  ;;  %7352 = vmatmul.mubr.bf16.gmra.mxu1 %v11186_v48  ;;  %7874 = vmatprep.subr.bf16.mxu0 %v11209_v22  ;;  %v4686_v36 = vadd.f32 %v14990_v21, %v4122_v23 }
 0x391   :  { %16248 = vst [vmem:[#allocation7_spill] sm:$0xff] %v15184_v43  ;;  %v15196_v32 = vadd.f32 %v5207_v37, %v4682_v30  ;;  %v5211_v25 = vadd.f32 %v5210_v13, %v5137_v35  ;;  %7938 = vmatpush1.bf16.msra.mxu1 %v11198_v5  ;;  %7957 = vmatprep.mubr.bf16.mxu1 %v16080_v14  ;;  %v11217_v5 = vld [vmem:[#allocation2 + $0xe0] ss:$12 sps:$4 sm:$0xff]   ;;  %v11224_v30 = vld [vmem:[#allocation2 + $0xf8] ss:$12 sps:$4 sm:$0xff]  }
 0x392   :  { %v5139_v11 = vpop.f32.mrf.mxu1  ;;  %7939 = vmatprep.subr.bf16.mxu1 %v11206_v63 }
 0x393   :  { %16249 = vst [vmem:[#allocation6_spill] sm:$0xff] %v15196_v32  ;;  %v15203_v49 = vadd.f32 %v5211_v25, %v14970_v50  ;;  %v5213_v12 = vadd.f32 %v5212_v3, %v5139_v11  ;;  %7875 = vmatpush2.bf16.msra.mxu0 %v11207_v10  ;;  %v5216_v50 = vpop.f32.mrf.mxu0  ;;  %v11221_v3 = vld [vmem:[%s15703_s3 + $0x680] ss:$8 sps:$4 sm:$0xff]  }
 0x394   :  { %v5141_v45 = vpop.f32.mrf.mxu1  ;;  %7876 = vmatprep.subr.bf16.mxu0 %v11213_v27 }
 0x395   :  { %16250 = vst [vmem:[#allocation87_spill] sm:$0xff] %v15203_v49  ;;  %v15212_v31 = vadd.f32 %v5213_v12, %v14979_v20  ;;  %v5215_v19 = vadd.f32 %v5214_v15, %v5141_v45  ;;  %7940 = vmatpush1.bf16.msra.mxu1 %v11204_v54  ;;  %v11220_v20 = vld [vmem:[%s15703_s3 + $0x694] ss:$8 sps:$4 sm:$0xff]  }
 0x396   :  { %v5143_v13 = vpop.f32.mrf.mxu1 }
 0x397   :  { %16251 = vst [vmem:[#allocation88_spill] sm:$0xff] %v15212_v31  ;;  %v15216_v17 = vadd.f32 %v5215_v19, %v14988_v33  ;;  %v5217_v44 = vadd.f32 %v5216_v50, %v5143_v13  ;;  %7877 = vmatpush2.bf16.msra.mxu0 %v11211_v9  ;;  %v11218_v33 = vld [vmem:[%s15703_s3 + $0x690] ss:$8 sps:$4 sm:$0xff]  }
 0x398   :  { %v5742_v56 = vpop.f32.mrf.mxu1  ;;  %7958 = vmatmul.mubr.bf16.vlgmr.msra.gmra.mxu1 %v11210_v0  ;;  %7878 = vmatprep.subr.bf16.mxu0 %v11216_v61  ;;  %v11228_v13 = vld [vmem:[#allocation2 + $0x10c] ss:$12 sps:$4 sm:$0xff]  }
 0x399   :  { %16252 = vst [vmem:[#allocation8_spill] sm:$0xff] %v15216_v17  ;;  %v15224_v46 = vadd.f32 %v5217_v44, %v4686_v36  ;;  %7967 = vmatprep.mubr.bf16.mxu1 %v16080_v14 }
 0x39a   :  { %v5744_v21 = vpop.f32.mrf.mxu1 }
 0x39b   :  { %16253 = vst [vmem:[#allocation21_spill] sm:$0xff] %v15224_v46  ;;  %7879 = vmatpush2.bf16.msra.mxu0 %v11214_v8 }
 0x39c   :  { %v5746_v22 = vpop.f32.mrf.mxu1  ;;  %7880 = vmatprep.subr.bf16.mxu0 %v11220_v20 }
 0x39e   :  { %v5748_v58 = vpop.f32.mrf.mxu1 }
 0x39f   :  { %7881 = vmatpush2.bf16.msra.mxu0 %v11218_v33 }
 0x3a0   :  { %v5752_v48 = vpop.f32.mrf.mxu1  ;;  %7968 = vmatmul.mubr.bf16.gmra.mxu1 %v11217_v5  ;;  %7882 = vmatprep.subr.bf16.mxu0 %v11223_v40 }
 0x3a1   :  { %7977 = vmatprep.mubr.bf16.mxu1 %v16080_v14 }
 0x3a2   :  { %v5754_v59 = vpop.f32.mrf.mxu1 }
 0x3a3   :  { %7883 = vmatpush2.bf16.msra.mxu0 %v11221_v3 }
 0x3a4   :  { %v5756_v63 = vpop.f32.mrf.mxu1 }
 0x3a6   :  { %v5758_v38 = vpop.f32.mrf.mxu1  ;;  %v5669_v37 = vpop.f32.mrf.mxu0  ;;  %7885 = vmatmul.mubr.bf16.vlgmr.msra.gmra.mxu0 %v14857_v1 }
 0x3a7   :  { %v15238_v10 = vadd.f32 %v5742_v56, %v5669_v37  ;;  %7894 = vmatprep.mubr.bf16.mxu0 %v14870_v39 }
 0x3a8   :  { %v5762_v4 = vpop.f32.mrf.mxu1  ;;  %7978 = vmatmul.mubr.bf16.gmra.mxu1 %v11224_v30  ;;  %v5671_v35 = vpop.f32.mrf.mxu0 }
 0x3a9   :  { %v5745_v27 = vadd.f32 %v5744_v21, %v5671_v35  ;;  %7987 = vmatprep.mubr.bf16.mxu1 %v16080_v14  ;;  %v11226_v21 = vld [vmem:[#allocation2 + $0x108] ss:$12 sps:$4 sm:$0xff]  }
 0x3aa   :  { %v5673_v41 = vpop.f32.mrf.mxu0  ;;  %v5764_v54 = vpop.f32.mrf.mxu1 }
 0x3ab   :  { %v15242_v25 = vadd.f32 %v5746_v22, %v5673_v41 }
 0x3ac   :  { %v5675_v15 = vpop.f32.mrf.mxu0  ;;  %v5766_v39 = vpop.f32.mrf.mxu1 }
 0x3ad   :  { %v15244_v11 = vadd.f32 %v5748_v58, %v5675_v15 }
 0x3ae   :  { %v5679_v12 = vpop.f32.mrf.mxu0  ;;  %7895 = vmatmul.mubr.bf16.gmra.mxu0 %v14903_v51  ;;  %v5768_v23 = vpop.f32.mrf.mxu1 }
 0x3af   :  { %v15247_v1 = vadd.f32 %v5752_v48, %v5679_v12  ;;  %7904 = vmatprep.mubr.bf16.mxu0 %v14916_v24 }
 0x3b0   :  { %7988 = vmatmul.mubr.bf16.gmra.mxu1 %v11225_v53  ;;  %v5681_v9 = vpop.f32.mrf.mxu0  ;;  %v5772_v24 = vpop.f32.mrf.mxu1 }
 0x3b1   :  { %v15250_v45 = vadd.f32 %v5754_v59, %v5681_v9 }
 0x3b2   :  { %v5683_v14 = vpop.f32.mrf.mxu0  ;;  %v5774_v20 = vpop.f32.mrf.mxu1 }
 0x3b3   :  { %v15252_v61 = vadd.f32 %v5756_v63, %v5683_v14 }
 0x3b4   :  { %v5685_v19 = vpop.f32.mrf.mxu0 }
 0x3b5   :  { %v15254_v50 = vadd.f32 %v5758_v38, %v5685_v19 }
 0x3b6   :  { %v5689_v0 = vpop.f32.mrf.mxu0  ;;  %7905 = vmatmul.mubr.bf16.gmra.mxu0 %v14945_v6  ;;  %v5776_v6 = vpop.f32.mrf.mxu1 }
 0x3b7   :  { %v15257_v51 = vadd.f32 %v5762_v4, %v5689_v0  ;;  %7914 = vmatprep.mubr.bf16.mxu0 %v11228_v13 }
 0x3b8   :  { %v5691_v36 = vpop.f32.mrf.mxu0  ;;  %v5778_v63 = vpop.f32.mrf.mxu1 }
 0x3b9   :  { %v15259_v44 = vadd.f32 %v5764_v54, %v5691_v36 }
 0x3ba   :  { %v5693_v8 = vpop.f32.mrf.mxu0 }
 0x3bb   :  { %v15261_v56 = vadd.f32 %v5766_v39, %v5693_v8  ;;  %v15796_v8 = vmov 0.0  }
 0x3bc   :  { %v5695_v33 = vpop.f32.mrf.mxu0  ;;  %10110 = vmatprep.subr.bf16.mxu0 %v15796_v8  ;;  %10090 = vmatprep.subr.bf16.mxu1 %v15796_v8 }
 0x3bd   :  { %v15263_v22 = vadd.f32 %v5768_v23, %v5695_v33  ;;  %10106 = vmatprep.mubr.msk.bf16.mxu1 %vm11295_vm0, %v15796_v8 }
 0x3be   :  { %v5699_v40 = vpop.f32.mrf.mxu0  ;;  %7915 = vmatmul.mubr.bf16.gmra.mxu0 %v11226_v21 }
 0x3bf   :  { %v15265_v58 = vadd.f32 %v5772_v24, %v5699_v40  ;;  %10126 = vmatprep.mubr.msk.bf16.mxu0 %vm11295_vm0, %v15796_v8 }
 0x3c0   :  { %v5701_v5 = vpop.f32.mrf.mxu0 }
 0x3c1   :  { %v15267_v3 = vadd.f32 %v5774_v20, %v5701_v5 }
 0x3c2   :  { %v5703_v48 = vpop.f32.mrf.mxu0 }
 0x3c3   :  { %v15269_v59 = vadd.f32 %v5776_v6, %v5703_v48 }
 0x3c4   :  { %v5705_v38 = vpop.f32.mrf.mxu0 }
 0x3c5   :  { %v15271_v30 = vadd.f32 %v5778_v63, %v5705_v38 }
 0x3c6   :  { %v6272_v37 = vpop.f32.mrf.mxu0 }
 0x3c8   :  { %v6274_v4 = vpop.f32.mrf.mxu0 }
 0x3ca   :  { %v6276_v35 = vpop.f32.mrf.mxu0 }
 0x3cc   :  { %v6278_v41 = vpop.f32.mrf.mxu0 }
 0x3ce   :  { %v6282_v54 = vpop.f32.mrf.mxu0 }
 0x3d0   :  { %v6284_v15 = vpop.f32.mrf.mxu0 }
 0x3d2   :  { %v6286_v53 = vpop.f32.mrf.mxu0 }
 0x3d4   :  { %v6288_v12 = vpop.f32.mrf.mxu0 }
 0x3d6   :  { %v6292_v14 = vpop.f32.mrf.mxu0 }
 0x3d8   :  { %v6199_v39 = vpop.f32.mrf.mxu1  ;;  %v6294_v20 = vpop.f32.mrf.mxu0 }
 0x3d9   :  { %v6273_v9 = vadd.f32 %v6272_v37, %v6199_v39  ;;  %v11231_v39 = vld [vmem:[%s15705_s5 + $0x78] sm:$0xff]  }
 0x3da   :  { %v6201_v23 = vpop.f32.mrf.mxu1  ;;  %v6296_v48 = vpop.f32.mrf.mxu0  ;;  %10091 = vmatpush3.bf16.msra.mxu1 %v11231_v39 }
 0x3db   :  { %v15274_v19 = vadd.f32 %v6273_v9, %v15238_v10  ;;  %v6275_v13 = vadd.f32 %v6274_v4, %v6201_v23  ;;  %v11229_v10 = vld [vmem:[%s15705_s5 + $0x38] sm:$0xff]   ;;  %10092 = vmatprep.subr.bf16.mxu1 %v15796_v8 }
 0x3dc   :  { %v6203_v0 = vpop.f32.mrf.mxu1  ;;  %10111 = vmatpush3.bf16.msra.mxu0 %v11229_v10 }
 0x3dd   :  { %v15276_v24 = vadd.f32 %v6275_v13, %v5745_v27  ;;  %v6277_v36 = vadd.f32 %v6276_v35, %v6203_v0  ;;  %10112 = vmatprep.subr.bf16.mxu0 %v15796_v8 }
 0x3de   :  { %v6205_v21 = vpop.f32.mrf.mxu1 }
 0x3df   :  { %v15281_v33 = vadd.f32 %v6277_v36, %v15242_v25  ;;  %v6279_v40 = vadd.f32 %v6278_v41, %v6205_v21  ;;  %v11230_v25 = vld [vmem:[%s15705_s5 + $0x30] sm:$0xff]   ;;  %v6298_v41 = vpop.f32.mrf.mxu0 }
 0x3e0   :  { %v6209_v6 = vpop.f32.mrf.mxu1  ;;  %10113 = vmatpush3.bf16.msra.mxu0 %v11230_v25 }
 0x3e1   :  { %v15287_v27 = vadd.f32 %v6279_v40, %v15244_v11  ;;  %v6283_v5 = vadd.f32 %v6282_v54, %v6209_v6  ;;  %10114 = vmatprep.subr.bf16.mxu0 %v15796_v8  ;;  %v6302_v13 = vpop.f32.mrf.mxu0 }
 0x3e2   :  { %v6211_v63 = vpop.f32.mrf.mxu1 }
 0x3e3   :  { %v15294_v38 = vadd.f32 %v6283_v5, %v15247_v1  ;;  %v6285_v37 = vadd.f32 %v6284_v15, %v6211_v63  ;;  %v11232_v1 = vld [vmem:[%s15705_s5 + $0x28] sm:$0xff]   ;;  %v6304_v10 = vpop.f32.mrf.mxu0 }
 0x3e4   :  { %v6213_v4 = vpop.f32.mrf.mxu1  ;;  %10115 = vmatpush3.bf16.msra.mxu0 %v11232_v1 }
 0x3e5   :  { %v15297_v35 = vadd.f32 %v6285_v37, %v15250_v45  ;;  %v6287_v11 = vadd.f32 %v6286_v53, %v6213_v4  ;;  %10116 = vmatprep.subr.bf16.mxu0 %v15796_v8 }
 0x3e6   :  { %v6215_v54 = vpop.f32.mrf.mxu1 }
 0x3e7   :  { %v15307_v15 = vadd.f32 %v6287_v11, %v15252_v61  ;;  %v6289_v9 = vadd.f32 %v6288_v12, %v6215_v54  ;;  %v11233_v61 = vld [vmem:[%s15705_s5 + $0x70] sm:$0xff]   ;;  %v11235_v11 = vld [vmem:[%s15705_s5 + $0x68] sm:$0xff]  }
 0x3e8   :  { %v6219_v45 = vpop.f32.mrf.mxu1  ;;  %10093 = vmatpush3.bf16.msra.mxu1 %v11233_v61 }
 0x3e9   :  { %v15310_v53 = vadd.f32 %v6289_v9, %v15254_v50  ;;  %v6293_v23 = vadd.f32 %v6292_v14, %v6219_v45  ;;  %v11234_v50 = vld [vmem:[%s15705_s5 + $0x20] sm:$0xff]   ;;  %10094 = vmatprep.subr.bf16.mxu1 %v15796_v8 }
 0x3ea   :  { %v6221_v0 = vpop.f32.mrf.mxu1  ;;  %10117 = vmatpush3.bf16.msra.mxu0 %v11234_v50 }
 0x3eb   :  { %v15315_v36 = vadd.f32 %v6293_v23, %v15257_v51  ;;  %v6295_v21 = vadd.f32 %v6294_v20, %v6221_v0  ;;  %10118 = vmatprep.subr.bf16.mxu0 %v15796_v8 }
 0x3ec   :  { %v6223_v12 = vpop.f32.mrf.mxu1  ;;  %10095 = vmatpush3.bf16.msra.mxu1 %v11235_v11 }
 0x3ed   :  { %v15324_v14 = vadd.f32 %v6295_v21, %v15259_v44  ;;  %v6297_v40 = vadd.f32 %v6296_v48, %v6223_v12  ;;  %v6306_v44 = vpop.f32.mrf.mxu0  ;;  %10096 = vmatprep.subr.bf16.mxu1 %v15796_v8  ;;  %v11241_v12 = vld [vmem:[%s15705_s5 + $0x50] sm:$0xff]  }
 0x3ee   :  { %v6225_v6 = vpop.f32.mrf.mxu1 }
 0x3ef   :  { %v15329_v51 = vadd.f32 %v6297_v40, %v15261_v56  ;;  %v6299_v20 = vadd.f32 %v6298_v41, %v6225_v6  ;;  %v11236_v56 = vld [vmem:[%s15705_s5 + $0x18] sm:$0xff]   ;;  %v6308_v39 = vpop.f32.mrf.mxu0  ;;  %v11242_v40 = vld [vmem:[%s15705_s5] sm:$0xff]  }
 0x3f0   :  { %v6229_v5 = vpop.f32.mrf.mxu1  ;;  %10119 = vmatpush3.bf16.msra.mxu0 %v11236_v56 }
 0x3f1   :  { %v15332_v63 = vadd.f32 %v6299_v20, %v15263_v22  ;;  %v6303_v25 = vadd.f32 %v6302_v13, %v6229_v5  ;;  %10120 = vmatprep.subr.bf16.mxu0 %v15796_v8  ;;  %v11238_v13 = vld [vmem:[%s15705_s5 + $0x10] sm:$0xff]   ;;  %v11243_v20 = vld [vmem:[%s15705_s5 + $0x48] sm:$0xff]  }
 0x3f2   :  { %v6231_v37 = vpop.f32.mrf.mxu1 }
 0x3f3   :  { %v15335_v48 = vadd.f32 %v6303_v25, %v15265_v58  ;;  %v6305_v4 = vadd.f32 %v6304_v10, %v6231_v37 }
 0x3f4   :  { %v6233_v41 = vpop.f32.mrf.mxu1  ;;  %10121 = vmatpush3.bf16.msra.mxu0 %v11238_v13 }
 0x3f5   :  { %v15344_v54 = vadd.f32 %v6305_v4, %v15267_v3  ;;  %v6307_v22 = vadd.f32 %v6306_v44, %v6233_v41  ;;  %v11237_v3 = vld [vmem:[%s15705_s5 + $0x60] sm:$0xff]   ;;  %10122 = vmatprep.subr.bf16.mxu0 %v15796_v8 }
 0x3f6   :  { %v6235_v1 = vpop.f32.mrf.mxu1  ;;  %10097 = vmatpush3.bf16.msra.mxu1 %v11237_v3  ;;  %v11245_v41 = vld [vmem:[%s15705_s5 + $0x40] sm:$0xff]  }
 0x3f7   :  { %v15349_v58 = vadd.f32 %v6307_v22, %v15269_v59  ;;  %v6309_v9 = vadd.f32 %v6308_v39, %v6235_v1  ;;  %v11239_v59 = vld [vmem:[%s15705_s5 + $0x58] sm:$0xff]   ;;  %10098 = vmatprep.subr.bf16.mxu1 %v15796_v8 }
 0x3f8   :  { %v6834_v45 = vpop.f32.mrf.mxu1 }
 0x3f9   :  { %v15352_v23 = vadd.f32 %v6309_v9, %v15271_v30  ;;  %v11240_v30 = vld [vmem:[%s15705_s5 + $0x8] sm:$0xff]  }
 0x3fa   :  { %v6836_v0 = vpop.f32.mrf.mxu1  ;;  %10099 = vmatpush3.bf16.msra.mxu1 %v11239_v59  ;;  %10123 = vmatpush3.bf16.msra.mxu0 %v11240_v30 }
 0x3fb   :  { %10100 = vmatprep.subr.bf16.mxu1 %v15796_v8  ;;  %10124 = vmatprep.subr.bf16.mxu0 %v15796_v8 }
 0x3fc   :  { %v15366_v21 = vpop.f32.mrf.mxu1 }
 0x3fe   :  { %v15370_v61 = vpop.f32.mrf.mxu1  ;;  %10101 = vmatpush3.bf16.msra.mxu1 %v11241_v12  ;;  %10125 = vmatpush3.bf16.msra.mxu0 %v11242_v40 }
 0x3ff   :  { %10102 = vmatprep.subr.bf16.mxu1 %v15796_v8  ;;  %10150 = vmatprep.subr.bf16.mxu0 %v15796_v8 }
 0x400   :  { %v6844_v50 = vpop.f32.mrf.mxu1 }
 0x402   :  { %v6846_v10 = vpop.f32.mrf.mxu1  ;;  %10103 = vmatpush3.bf16.msra.mxu1 %v11243_v20 }
 0x403   :  { %10104 = vmatprep.subr.bf16.mxu1 %v15796_v8 }
 0x404   :  { %v15380_v6 = vpop.f32.mrf.mxu1 }
 0x406   :  { %v15391_v5 = vpop.f32.mrf.mxu1  ;;  %v6761_v25 = vpop.f32.mrf.mxu0  ;;  %10105 = vmatpush3.bf16.msra.mxu1 %v11245_v41 }
 0x407   :  { %v6835_v44 = vadd.f32 %v6834_v45, %v6761_v25  ;;  %10130 = vmatprep.subr.bf16.mxu1 %v15796_v8 }
 0x408   :  { %v6854_v37 = vpop.f32.mrf.mxu1  ;;  %v6763_v4 = vpop.f32.mrf.mxu0 }
 0x409   :  { %v15395_v11 = vadd.f32 %v6835_v44, %v15274_v19  ;;  %v6837_v56 = vadd.f32 %v6836_v0, %v6763_v4 }
 0x40a   :  { %v15400_v22 = vpop.f32.mrf.mxu0  ;;  %v6856_v1 = vpop.f32.mrf.mxu1 }
 0x40b   :  { %v15403_v39 = vadd.f32 %v6837_v56, %v15276_v24 }
 0x40c   :  { %v15405_v9 = vpop.f32.mrf.mxu0  ;;  %v6858_v19 = vpop.f32.mrf.mxu1 }
 0x40e   :  { %v6771_v45 = vpop.f32.mrf.mxu0  ;;  %v6860_v24 = vpop.f32.mrf.mxu1 }
 0x40f   :  { %v6845_v3 = vadd.f32 %v6844_v50, %v6771_v45 }
 0x410   :  { %v6773_v13 = vpop.f32.mrf.mxu0  ;;  %v6864_v44 = vpop.f32.mrf.mxu1 }
 0x411   :  { %v15409_v0 = vadd.f32 %v6845_v3, %v15294_v38  ;;  %v6847_v59 = vadd.f32 %v6846_v10, %v6773_v13 }
 0x412   :  { %v15411_v30 = vpop.f32.mrf.mxu0  ;;  %v6866_v45 = vpop.f32.mrf.mxu1 }
 0x413   :  { %v15414_v12 = vadd.f32 %v6847_v59, %v15297_v35 }
 0x414   :  { %v15416_v40 = vpop.f32.mrf.mxu0  ;;  %v6868_v8 = vpop.f32.mrf.mxu1 }
 0x416   :  { %v6781_v20 = vpop.f32.mrf.mxu0 }
 0x417   :  { %v6855_v25 = vadd.f32 %v6854_v37, %v6781_v20 }
 0x418   :  { %v6783_v4 = vpop.f32.mrf.mxu0 }
 0x419   :  { %v15419_v50 = vadd.f32 %v6855_v25, %v15315_v36  ;;  %v6857_v56 = vadd.f32 %v6856_v1, %v6783_v4 }
 0x41a   :  { %v6785_v41 = vpop.f32.mrf.mxu0 }
 0x41b   :  { %16254 = vst [vmem:[#allocation89_spill] sm:$0xff] %v15419_v50  ;;  %v15422_v38 = vadd.f32 %v6857_v56, %v15324_v14  ;;  %v6859_v10 = vadd.f32 %v6858_v19, %v6785_v41  ;;  %v6870_v56 = vpop.f32.mrf.mxu1  ;;  %v16284_v50 = vld [vmem:[#allocation84_spill] sm:$0xff] }
 0x41c   :  { %v6787_v3 = vpop.f32.mrf.mxu0 }
 0x41d   :  { %16255 = vst [vmem:[#allocation9_spill] sm:$0xff] %v15422_v38  ;;  %v15425_v35 = vadd.f32 %v6859_v10, %v15329_v51  ;;  %v6861_v13 = vadd.f32 %v6860_v24, %v6787_v3 }
 0x41e   :  { %v6791_v59 = vpop.f32.mrf.mxu0 }
 0x41f   :  { %16256 = vst [vmem:[#allocation90_spill] sm:$0xff] %v15425_v35  ;;  %v15428_v37 = vadd.f32 %v6861_v13, %v15332_v63  ;;  %v6865_v20 = vadd.f32 %v6864_v44, %v6791_v59 }
 0x420   :  { %v6793_v36 = vpop.f32.mrf.mxu0 }
 0x421   :  { %16257 = vst [vmem:[#allocation22_spill] sm:$0xff] %v15428_v37  ;;  %v15431_v1 = vadd.f32 %v6865_v20, %v15335_v48  ;;  %v6867_v25 = vadd.f32 %v6866_v45, %v6793_v36 }
 0x422   :  { %v6795_v14 = vpop.f32.mrf.mxu0 }
 0x423   :  { %16258 = vst [vmem:[#allocation91_spill] sm:$0xff] %v15431_v1  ;;  %v15434_v19 = vadd.f32 %v6867_v25, %v15344_v54  ;;  %v6869_v4 = vadd.f32 %v6868_v8, %v6795_v14 }
 0x424   :  { %v6797_v51 = vpop.f32.mrf.mxu0 }
 0x425   :  { %16259 = vst [vmem:[#allocation10_spill] sm:$0xff] %v15434_v19  ;;  %v15437_v24 = vadd.f32 %v6869_v4, %v15349_v58  ;;  %v6871_v41 = vadd.f32 %v6870_v56, %v6797_v51 }
 0x426   :  { %v7396_v44 = vpop.f32.mrf.mxu0 }
 0x427   :  { %16260 = vst [vmem:[#allocation92_spill] sm:$0xff] %v15437_v24  ;;  %v15440_v63 = vadd.f32 %v6871_v41, %v15352_v23 }
 0x428   :  { %v7398_v10 = vpop.f32.mrf.mxu0 }
 0x429   :  { %16261 = vst [vmem:[#allocation11_spill] sm:$0xff] %v15440_v63 }
 0x42a   :  { %v7400_v3 = vpop.f32.mrf.mxu0 }
 0x42c   :  { %v7402_v48 = vpop.f32.mrf.mxu0 }
 0x42e   :  { %v7406_v13 = vpop.f32.mrf.mxu0 }
 0x430   :  { %v15442_v20 = vpop.f32.mrf.mxu0 }
 0x432   :  { %v15444_v36 = vpop.f32.mrf.mxu0 }
 0x434   :  { %v15446_v14 = vpop.f32.mrf.mxu0 }
 0x436   :  { %v15452_v56 = vpop.f32.mrf.mxu0 }
 0x438   :  { %v7323_v45 = vpop.f32.mrf.mxu1  ;;  %v15458_v46 = vpop.f32.mrf.mxu0 }
 0x439   :  { %16263 = vst [vmem:[#allocation12_spill] sm:$0xff] %v15458_v46  ;;  %v16278_v46 = vld [vmem:[#allocation143_spill] sm:$0xff] }
 0x43a   :  { %v7325_v59 = vpop.f32.mrf.mxu1  ;;  %v15464_v63 = vpop.f32.mrf.mxu0 }
 0x43b   :  { %16266 = vst [vmem:[#allocation95_spill] sm:$0xff] %v15464_v63  ;;  %v7399_v63 = vadd.f32 %v7398_v10, %v7325_v59  ;;  %v16281_v10 = vld [vmem:[#allocation82_spill] sm:$0xff]  ;;  %v16282_v59 = vld [vmem:[#allocation4_spill] sm:$0xff] }
 0x43c   :  { %v7327_v54 = vpop.f32.mrf.mxu1  ;;  %v15470_v32 = vpop.f32.mrf.mxu0  ;;  %v2973_v18 = vadd.f32 %v16282_v59, %v16281_v10 }
 0x43d   :  { %16269 = vst [vmem:[#allocation24_spill] sm:$0xff] %v15470_v32  ;;  %v3495_v32 = vadd.f32 %v14344_v28, %v14409_v62  ;;  %v6841_v28 = vadd.f32 %v15370_v61, %v15405_v9  ;;  %v7452_v61 = vadd.f32 %v7399_v63, %v15403_v39  ;;  %v16288_v39 = vld [vmem:[#allocation70_spill] sm:$0xff] }
 0x43e   :  { %v7329_v8 = vpop.f32.mrf.mxu1  ;;  %v15476_v2 = vpop.f32.mrf.mxu0 }
 0x43f   :  { %16272 = vst [vmem:[#allocation98_spill] sm:$0xff] %v15476_v2  ;;  %v7403_v9 = vadd.f32 %v7402_v48, %v7329_v8 }
 0x440   :  { %v7333_v25 = vpop.f32.mrf.mxu1  ;;  %v15478_v57 = vpop.f32.mrf.mxu0 }
 0x441   :  { %16273 = vst [vmem:[#allocation15_spill] sm:$0xff] %v15478_v57  ;;  %v2963_v57 = vadd.f32 %v14161_v26, %v14151_v52  ;;  %v16283_v26 = vld [vmem:[#allocation20_spill] sm:$0xff] }
 0x442   :  { %v7335_v58 = vpop.f32.mrf.mxu1 }
 0x443   :  { %v3546_v52 = vadd.f32 %v3495_v32, %v2963_v57 }
 0x444   :  { %v15448_v4 = vpop.f32.mrf.mxu1 }
 0x446   :  { %v15450_v23 = vpop.f32.mrf.mxu1 }
 0x448   :  { %v15454_v51 = vpop.f32.mrf.mxu1 }
 0x44a   :  { %v15456_v41 = vpop.f32.mrf.mxu1 }
 0x44b   :  { %16262 = vst [vmem:[#allocation93_spill] sm:$0xff] %v15456_v41  ;;  %v16279_v41 = vld [vmem:[#allocation83_spill] sm:$0xff] }
 0x44c   :  { %v15460_v17 = vpop.f32.mrf.mxu1 }
 0x44d   :  { %16264 = vst [vmem:[#allocation94_spill] sm:$0xff] %v15460_v17 }
 0x44e   :  { %v15462_v31 = vpop.f32.mrf.mxu1 }
 0x44f   :  { %16265 = vst [vmem:[#allocation23_spill] sm:$0xff] %v15462_v31  ;;  %v15480_v31 = vpop.f32.mrf.mxu0 }
 0x450   :  { %v15466_v49 = vpop.f32.mrf.mxu1  ;;  %16274 = vst [vmem:[#allocation99_spill] sm:$0xff] %v15480_v31  ;;  %v16277_v31 = vld [vmem:[#allocation19_spill] sm:$0xff] }
 0x451   :  { %16267 = vst [vmem:[#allocation13_spill] sm:$0xff] %v15466_v49  ;;  %v3505_v17 = vadd.f32 %v16277_v31, %v14448_v60  ;;  %v4623_v60 = vadd.f32 %v16284_v50, %v16283_v26  ;;  %v16287_v26 = vld [vmem:[#allocation72_spill] sm:$0xff] }
 0x452   :  { %v15468_v24 = vpop.f32.mrf.mxu1  ;;  %v4633_v63 = vadd.f32 %v16288_v39, %v16287_v26 }
 0x453   :  { %16268 = vst [vmem:[#allocation96_spill] sm:$0xff] %v15468_v24  ;;  %v7397_v24 = vadd.f32 %v7396_v44, %v7323_v45  ;;  %v4059_v44 = vadd.f32 %v16279_v41, %v16278_v46  ;;  %v7401_v45 = vadd.f32 %v7400_v3, %v7327_v54  ;;  %v7407_v3 = vadd.f32 %v7406_v13, %v7333_v25 }
 0x454   :  { %v15472_v19 = vpop.f32.mrf.mxu1 }
 0x455   :  { %16270 = vst [vmem:[#allocation97_spill] sm:$0xff] %v15472_v19  ;;  %v15488_v19 = vpop.f32.mrf.mxu0  ;;  %v7455_v8 = vadd.f32 %v7407_v3, %v15409_v0 }
 0x456   :  { %v15474_v43 = vpop.f32.mrf.mxu1  ;;  %16275 = vst [vmem:[#allocation25_spill] sm:$0xff] %v15488_v19 }
 0x457   :  { %16271 = vst [vmem:[#allocation14_spill] sm:$0xff] %v15474_v43  ;;  %v6839_v43 = vadd.f32 %v15366_v21, %v15400_v22  ;;  %v7451_v22 = vadd.f32 %v7397_v24, %v15395_v11  ;;  %v3550_v11 = vadd.f32 %v3505_v17, %v2973_v18  ;;  %v4110_v24 = vadd.f32 %v4059_v44, %v3546_v52 }
 0x458   :  { %v7959_v1 = vpop.f32.mrf.mxu1 }
 0x459   :  { %v6891_v31 = vadd.f32 %v6839_v43, %v15281_v33  ;;  %v16285_v43 = vld [vmem:[#allocation64_spill] sm:$0xff]  ;;  %v16286_v33 = vld [vmem:[#allocation62_spill] sm:$0xff]  ;;  %v4674_v59 = vadd.f32 %v4623_v60, %v4110_v24 }
 0x45a   :  { %v7961_v37 = vpop.f32.mrf.mxu1  ;;  %v4069_v10 = vadd.f32 %v16286_v33, %v16285_v43 }
 0x45b   :  { %v7453_v57 = vadd.f32 %v7401_v45, %v6891_v31 }
 0x45c   :  { %v7963_v35 = vpop.f32.mrf.mxu1 }
 0x45e   :  { %v7965_v38 = vpop.f32.mrf.mxu1 }
 0x460   :  { %v7969_v7 = vpop.f32.mrf.mxu1 }
 0x462   :  { %v15482_v49 = vpop.f32.mrf.mxu1 }
 0x464   :  { %v15490_v2 = vpop.f32.mrf.mxu1 }
 0x465   :  { %16276 = vst [vmem:[#allocation100_spill] sm:$0xff] %v15490_v2 }
 0x466   :  { %v15500_v62 = vpop.f32.mrf.mxu1  ;;  %v7886_v21 = vpop.f32.mrf.mxu0 }
 0x467   :  { %16280 = vst [vmem:[#allocation17_spill] sm:$0xff] %v15500_v62  ;;  %v7960_v19 = vadd.f32 %v7959_v1, %v7886_v21  ;;  %v6892_v1 = vadd.f32 %v6841_v28, %v15287_v27 }
 0x468   :  { %v15508_v46 = vpop.f32.mrf.mxu1  ;;  %v7888_v41 = vpop.f32.mrf.mxu0 }
 0x469   :  { %v8014_v62 = vadd.f32 %v7960_v19, %v7451_v22  ;;  %v7962_v2 = vadd.f32 %v7961_v37, %v7888_v41  ;;  %v7409_v37 = vadd.f32 %v15442_v20, %v7335_v58  ;;  %v7454_v27 = vadd.f32 %v7403_v9, %v6892_v1  ;;  %v15530_v58 = vld [vmem:[%s15706_s4] ss:$0 sm:$0xff]  ;;  %v16290_v9 = vld [vmem:[#allocation89_spill] sm:$0xff] }
 0x46a   :  { %v7890_v54 = vpop.f32.mrf.mxu0  ;;  %v15518_v18 = vpop.f32.mrf.mxu1 }
 0x46b   :  { %v8078_v32 = vmax.f32 %v15076_v47, %v8014_v62  ;;  %v8015_v50 = vadd.f32 %v7962_v2, %v7452_v61  ;;  %v7964_v21 = vadd.f32 %v7963_v35, %v7890_v54  ;;  %v5238_v47 = vadd.f32 %v15097_v16, %v4674_v59  ;;  %v16293_v54 = vld [vmem:[#allocation93_spill] sm:$0xff] }
 0x46c   :  { %v7892_v17 = vpop.f32.mrf.mxu0  ;;  %v6849_v2 = vadd.f32 %v15380_v6, %v15411_v30  ;;  %v6851_v35 = vadd.f32 %v15391_v5, %v15416_v40  ;;  %v4114_v16 = vadd.f32 %v4069_v10, %v3550_v11  ;;  %v7456_v28 = vadd.f32 %v7409_v37, %v15414_v12  ;;  %v7983_v0 = vpop.f32.mrf.mxu1  ;;  %v16289_v41 = vld [vmem:[#allocation100_spill] sm:$0xff]  ;;  %v16297_v37 = vld [vmem:[#allocation85_spill] sm:$0xff] }
 0x46d   :  { %v8079_v19 = vmax.f32 %v15085_v42, %v8015_v50  ;;  %v8016_v48 = vadd.f32 %v7964_v21, %v7453_v57  ;;  %v7966_v13 = vadd.f32 %v7965_v38, %v7892_v17  ;;  %v7411_v6 = vadd.f32 %v15444_v36, %v15448_v4  ;;  %v16294_v57 = vld [vmem:[#allocation12_spill] sm:$0xff]  ;;  %v16296_v50 = vld [vmem:[#allocation95_spill] sm:$0xff] }
 0x46e   :  { %v7896_v25 = vpop.f32.mrf.mxu0  ;;  %v7413_v5 = vadd.f32 %v15446_v14, %v15450_v23  ;;  %v7417_v40 = vadd.f32 %v15452_v56, %v15454_v51  ;;  %v4678_v45 = vadd.f32 %v4633_v63, %v4114_v16  ;;  %v6896_v12 = vadd.f32 %v6851_v35, %v15310_v53  ;;  %v7985_v51 = vpop.f32.mrf.mxu1  ;;  %v16291_v53 = vld [vmem:[#allocation5_spill] sm:$0xff] }
 0x46f   :  { %v8094_v20 = vmax.f32 %v8078_v32, %v8079_v19  ;;  %v8080_v42 = vmax.f32 %v15094_v55, %v8016_v48  ;;  %v8017_v38 = vadd.f32 %v7966_v13, %v7454_v27  ;;  %v7970_v44 = vadd.f32 %v7969_v7, %v7896_v25  ;;  %v16292_v1 = vld [vmem:[#allocation17_spill] sm:$0xff]  ;;  %v16295_v32 = vld [vmem:[#allocation94_spill] sm:$0xff]  ;;  %v11244_v19 = vld [vmem:[%s15705_s5 + $0xf8] sm:$0xff]  }
 0x470   :  { %v7898_v30 = vpop.f32.mrf.mxu0  ;;  %v6895_v7 = vadd.f32 %v6849_v2, %v15307_v15  ;;  %v5242_v60 = vadd.f32 %v15141_v34, %v4678_v45  ;;  %v7458_v56 = vadd.f32 %v7413_v5, %v6896_v12  ;;  %v7459_v11 = vadd.f32 %v7417_v40, %v16290_v9  ;;  %v7989_v63 = vpop.f32.mrf.mxu1  ;;  %v16298_v48 = vld [vmem:[#allocation23_spill] sm:$0xff]  ;;  %v16299_v13 = vld [vmem:[#allocation24_spill] sm:$0xff]  ;;  %v16300_v25 = vld [vmem:[#allocation9_spill] sm:$0xff] }
 0x471   :  { %v8081_v62 = vmax.f32 %v5238_v47, %v8017_v38  ;;  %v8018_v22 = vadd.f32 %v7970_v44, %v7455_v8  ;;  %v7972_v55 = vadd.f32 %v15482_v49, %v7898_v30  ;;  %v8109_v52 = vadd.f32 %v15530_v58, %v8094_v20  ;;  %v16302_v38 = vld [vmem:[#allocation98_spill] sm:$0xff]  ;;  %v16306_v45 = vld [vmem:[#allocation15_spill] sm:$0xff] }
 0x472   :  { %v7900_v36 = vpop.f32.mrf.mxu0  ;;  %v7457_v31 = vadd.f32 %v7411_v6, %v6895_v7  ;;  %v7421_v34 = vadd.f32 %v16296_v50, %v16295_v32  ;;  %v7423_v47 = vadd.f32 %v16299_v13, %v16298_v48  ;;  %v16303_v6 = vld [vmem:[#allocation90_spill] sm:$0xff]  ;;  %v7991_v12 = vpop.f32.mrf.mxu1 }
 0x473   :  { %v8095_v4 = vmax.f32 %v8080_v42, %v8081_v62  ;;  %v8082_v14 = vmax.f32 %v15116_v29, %v8018_v22  ;;  %v8019_v23 = vadd.f32 %v7972_v55, %v7456_v28  ;;  %v7974_v61 = vadd.f32 %v16289_v41, %v7900_v36  ;;  %v16301_v42 = vld [vmem:[#allocation13_spill] sm:$0xff]  ;;  %v16304_v40 = vld [vmem:[#allocation74_spill] sm:$0xff]  ;;  %v16305_v55 = vld [vmem:[#allocation96_spill] sm:$0xff] }
 0x474   :  { %v7902_v49 = vpop.f32.mrf.mxu0  ;;  %v7419_v29 = vadd.f32 %v16294_v57, %v16293_v54  ;;  %v8117_v21 = vmax.f32 %v8109_v52, 0.0  ;;  %v7427_v44 = vadd.f32 %v16302_v38, %v16301_v42  ;;  %v7461_v5 = vadd.f32 %v7421_v34, %v16303_v6  ;;  %v16314_v32 = vld [vmem:[#allocation10_spill] sm:$0xff]  ;;  %v16320_v42 = vld [vmem:[#allocation11_spill] sm:$0xff] }
 0x475   :  { %v8110_v15 = vadd.f32 %v15530_v58, %v8095_v4  ;;  %v8083_v24 = vmax.f32 %v16291_v53, %v8019_v23  ;;  %v7976_v3 = vadd.f32 %v16292_v1, %v7902_v49  ;;  %v8020_v43 = vadd.f32 %v7974_v61, %v7457_v31  ;;  %v11246_v4 = vld [vmem:[%s15705_s5 + $0xf0] sm:$0xff]   ;;  %v16310_v61 = vld [vmem:[#allocation97_spill] sm:$0xff]  ;;  %v16311_v49 = vld [vmem:[#allocation99_spill] sm:$0xff] }
 0x476   :  { %v7906_v33 = vpop.f32.mrf.mxu0  ;;  %v7460_v20 = vadd.f32 %v7419_v29, %v16300_v25  ;;  %v7429_v7 = vadd.f32 %v16306_v45, %v16305_v55  ;;  %v7431_v9 = vadd.f32 %v16311_v49, %v16310_v61  ;;  %v16315_v34 = vld [vmem:[#allocation14_spill] sm:$0xff] }
 0x477   :  { %v8118_v10 = vmax.f32 %v8110_v15, 0.0  ;;  %v8096_v59 = vmax.f32 %v8082_v14, %v8083_v24  ;;  %v8021_v26 = vadd.f32 %v7976_v3, %v7458_v56  ;;  %v7980_v39 = vadd.f32 %v15508_v46, %v7906_v33  ;;  %v16308_v14 = vld [vmem:[#allocation22_spill] sm:$0xff]  ;;  %v16309_v56 = vld [vmem:[#allocation91_spill] sm:$0xff] }
 0x478   :  { %v8084_v17 = vmax.f32 %v16297_v37, %v8020_v43  ;;  %v7908_v27 = vpop.f32.mrf.mxu0  ;;  %v7462_v23 = vadd.f32 %v7423_v47, %v16308_v14  ;;  %v7463_v41 = vadd.f32 %v7427_v44, %v16309_v56  ;;  %v16312_v15 = vld [vmem:[#allocation86_spill] sm:$0xff]  ;;  %v16313_v3 = vld [vmem:[#allocation7_spill] sm:$0xff]  ;;  %v7464_v50 = vadd.f32 %v7429_v7, %v16314_v32  ;;  %v7993_v43 = vpop.f32.mrf.mxu1  ;;  %v16322_v7 = vld [vmem:[#allocation8_spill] sm:$0xff] }
 0x479   :  { %v8125_v2 = vpack.c.bf16 %v8118_v10, %v8117_v21  ;;  %v8085_v35 = vmax.f32 %v5242_v60, %v8021_v26  ;;  %v8022_v8 = vadd.f32 %v7980_v39, %v7459_v11  ;;  %v8111_v46 = vadd.f32 %v15530_v58, %v8096_v59  ;;  %v11247_v59 = vld [vmem:[%s15705_s5 + $0xb8] sm:$0xff]   ;;  %v11248_v26 = vld [vmem:[%s15705_s5 + $0xe8] sm:$0xff]   ;;  %v16317_v37 = vld [vmem:[#allocation6_spill] sm:$0xff] }
 0x47a   :  { %v7982_v16 = vadd.f32 %v15518_v18, %v7908_v27  ;;  %v7910_v28 = vpop.f32.mrf.mxu0  ;;  %v16307_v18 = vmov 0.0   ;;  %v7995_v44 = vpop.f32.mrf.mxu1  ;;  %v11253_v56 = vld [vmem:[%s15705_s5 + $0xa0] sm:$0xff]  }
 0x47b   :  { %v8097_v30 = vmax.f32 %v8084_v17, %v8085_v35  ;;  %v8086_v62 = vmax.f32 %v16304_v40, %v8022_v8  ;;  %v7984_v22 = vadd.f32 %v7983_v0, %v7910_v28  ;;  %10127 = vmatmul.mubr.bf16.vlgmr.msra.gmra.mxu0 %v8125_v2  ;;  %v8119_v11 = vmax.f32 %v8111_v46, 0.0  ;;  %v16319_v35 = vld [vmem:[#allocation87_spill] sm:$0xff]  ;;  %v11250_v28 = vld [vmem:[%s15705_s5 + $0xe0] sm:$0xff]  }
 0x47c   :  { %v8023_v52 = vadd.f32 %v7982_v16, %v7460_v20  ;;  %10151 = vmatpush3.bf16.msra.mxu0 %v11244_v19  ;;  %v7912_v36 = vpop.f32.mrf.mxu0  ;;  %10166 = vmatprep.mubr.msk.bf16.mxu0 %vm11295_vm0, %v16307_v18  ;;  %v16318_v19 = vld [vmem:[#allocation92_spill] sm:$0xff]  ;;  %v11249_v16 = vld [vmem:[%s15705_s5 + $0xb0] sm:$0xff]  }
 0x47d   :  { %v8112_v60 = vadd.f32 %v15530_v58, %v8097_v30  ;;  %v8024_v0 = vadd.f32 %v7984_v22, %v7461_v5  ;;  %v7986_v31 = vadd.f32 %v7985_v51, %v7912_v36  ;;  %10152 = vmatprep.subr.bf16.mxu0 %v16307_v18  ;;  %v16316_v51 = vld [vmem:[#allocation25_spill] sm:$0xff]  ;;  %v7465_v48 = vadd.f32 %v7431_v9, %v16318_v19  ;;  %v16321_v5 = vld [vmem:[#allocation88_spill] sm:$0xff] }
 0x47e   :  { %v8087_v53 = vmax.f32 %v16312_v15, %v8023_v52  ;;  %v7916_v24 = vpop.f32.mrf.mxu0  ;;  %v7433_v21 = vadd.f32 %v16316_v51, %v16315_v34  ;;  %v11251_v36 = vld [vmem:[%s15705_s5 + $0xa8] sm:$0xff]   ;;  %v11264_v32 = vld [vmem:[%s15707_s7 + $0x20] sm:$0xff]   ;;  %v11266_v34 = vld [vmem:[%s15707_s7 + $0x10] sm:$0xff]  }
 0x47f   :  { %v8120_v1 = vmax.f32 %v8112_v60, 0.0  ;;  %v8088_v54 = vmax.f32 %v16313_v3, %v8024_v0  ;;  %v8025_v57 = vadd.f32 %v7986_v31, %v7462_v23  ;;  %v7990_v29 = vadd.f32 %v7989_v63, %v7916_v24  ;;  %v16323_v23 = vld [vmem:[#allocation21_spill] sm:$0xff]  ;;  %v11258_v24 = vld [vmem:[%s15705_s5 + $0xc0] sm:$0xff]  }
 0x480   :  { %v8098_v33 = vmax.f32 %v8086_v62, %v8087_v53  ;;  %10153 = vmatpush3.bf16.msra.mxu0 %v11246_v4  ;;  %v7918_v10 = vpop.f32.mrf.mxu0  ;;  %v7466_v38 = vadd.f32 %v7433_v21, %v16320_v42  ;;  %v11252_v4 = vld [vmem:[%s15705_s5 + $0xd8] sm:$0xff]   ;;  %v11256_v15 = vld [vmem:[%s15705_s5 + $0xc8] sm:$0xff]   ;;  %v11260_v3 = vld [vmem:[%s15705_s5 + $0x80] sm:$0xff]  }
 0x481   :  { %v8126_v39 = vpack.c.bf16 %v8120_v1, %v8119_v11  ;;  %v8089_v63 = vmax.f32 %v16317_v37, %v8025_v57  ;;  %v8026_v17 = vadd.f32 %v7990_v29, %v7463_v41  ;;  %v7992_v27 = vadd.f32 %v7991_v12, %v7918_v10  ;;  %10154 = vmatprep.subr.bf16.mxu0 %v16307_v18  ;;  %v11254_v41 = vld [vmem:[%s15705_s5 + $0xd0] sm:$0xff]   ;;  %v11255_v11 = vld [vmem:[%s15705_s5 + $0x98] sm:$0xff]   ;;  %v11259_v1 = vld [vmem:[%s15705_s5 + $0x88] sm:$0xff]  }
 0x482   :  { %v8113_v13 = vadd.f32 %v15530_v58, %v8098_v33  ;;  %v7920_v47 = vpop.f32.mrf.mxu0  ;;  %v11262_v57 = vld [vmem:[%s15707_s7 + $0x30] sm:$0xff]   ;;  %v11263_v29 = vld [vmem:[%s15707_s7 + $0x28] sm:$0xff]   ;;  %v11268_v21 = vld [vmem:[%s15707_s7] sm:$0xff]  }
 0x483   :  { %v8099_v2 = vmax.f32 %v8088_v54, %v8089_v63  ;;  %v8090_v8 = vmax.f32 %v16319_v35, %v8026_v17  ;;  %v8027_v25 = vadd.f32 %v7992_v27, %v7464_v50  ;;  %v7994_v20 = vadd.f32 %v7993_v43, %v7920_v47  ;;  %10107 = vmatmul.mubr.bf16.vlgmr.msra.gmra.mxu1 %v8126_v39  ;;  %v11261_v54 = vld [vmem:[%s15707_s7 + $0x38] sm:$0xff]   ;;  %v11267_v51 = vld [vmem:[%s15707_s7 + $0x8] sm:$0xff]  }
 0x484   :  { %10131 = vmatpush3.bf16.msra.mxu1 %v11247_v59  ;;  %10155 = vmatpush3.bf16.msra.mxu0 %v11248_v26  ;;  %v7922_v46 = vpop.f32.mrf.mxu0  ;;  %v8121_v22 = vmax.f32 %v8113_v13, 0.0  ;;  %v11265_v50 = vld [vmem:[%s15707_s7 + $0x18] sm:$0xff]  }
 0x485   :  { %v8114_v6 = vadd.f32 %v15530_v58, %v8099_v2  ;;  %v8091_v30 = vmax.f32 %v16321_v5, %v8027_v25  ;;  %v8028_v40 = vadd.f32 %v7994_v20, %v7465_v48  ;;  %v7996_v62 = vadd.f32 %v7995_v44, %v7922_v46  ;;  %10132 = vmatprep.subr.bf16.mxu1 %v16307_v18 }
 0x486   :  { %10156 = vmatprep.subr.bf16.mxu0 %v16307_v18  ;;  %10146 = vmatprep.mubr.msk.bf16.mxu1 %vm11295_vm0, %v16307_v18 }
 0x487   :  { %v8122_v55 = vmax.f32 %v8114_v6, 0.0  ;;  %v8100_v45 = vmax.f32 %v8090_v8, %v8091_v30  ;;  %v8092_v12 = vmax.f32 %v16322_v7, %v8028_v40  ;;  %v8029_v52 = vadd.f32 %v7996_v62, %v7466_v38  ;;  %v9988_v30 = vld [vmem:[%s15709_s8] ss:$0 sm:$0xff] }
 0x488   :  { %10133 = vmatpush3.bf16.msra.mxu1 %v11249_v16  ;;  %10157 = vmatpush3.bf16.msra.mxu0 %v11250_v28 }
 0x489   :  { %v8127_v14 = vpack.c.bf16 %v8122_v55, %v8121_v22  ;;  %v8093_v60 = vmax.f32 %v16323_v23, %v8029_v52  ;;  %10134 = vmatprep.subr.bf16.mxu1 %v16307_v18  ;;  %10158 = vmatprep.subr.bf16.mxu0 %v16307_v18  ;;  %v8115_v0 = vadd.f32 %v15530_v58, %v8100_v45 }
 0x48b   :  { %v8101_v31 = vmax.f32 %v8092_v12, %v8093_v60  ;;  %v8123_v49 = vmax.f32 %v8115_v0, 0.0 }
 0x48c   :  { %10135 = vmatpush3.bf16.msra.mxu1 %v11251_v36  ;;  %10159 = vmatpush3.bf16.msra.mxu0 %v11252_v4 }
 0x48d   :  { %v8116_v61 = vadd.f32 %v15530_v58, %v8101_v31  ;;  %10136 = vmatprep.subr.bf16.mxu1 %v16307_v18  ;;  %10160 = vmatprep.subr.bf16.mxu0 %v16307_v18  ;;  %v11257_v58 = vld [vmem:[%s15705_s5 + $0x90] sm:$0xff]  }
 0x48f   :  { %v8124_v9 = vmax.f32 %v8116_v61, 0.0 }
 0x490   :  { %10137 = vmatpush3.bf16.msra.mxu1 %v11253_v56  ;;  %10161 = vmatpush3.bf16.msra.mxu0 %v11254_v41 }
 0x491   :  { %v8128_v53 = vpack.c.bf16 %v8124_v9, %v8123_v49  ;;  %10138 = vmatprep.subr.bf16.mxu1 %v16307_v18  ;;  %10162 = vmatprep.subr.bf16.mxu0 %v16307_v18 }
 0x494   :  { %10139 = vmatpush3.bf16.msra.mxu1 %v11255_v11  ;;  %10163 = vmatpush3.bf16.msra.mxu0 %v11256_v15 }
 0x495   :  { %10140 = vmatprep.subr.bf16.mxu1 %v16307_v18  ;;  %10164 = vmatprep.subr.bf16.mxu0 %v16307_v18 }
 0x498   :  { %10141 = vmatpush3.bf16.msra.mxu1 %v11257_v58  ;;  %10165 = vmatpush3.bf16.msra.mxu0 %v11258_v24 }
 0x499   :  { %10142 = vmatprep.subr.bf16.mxu1 %v16307_v18 }
 0x49b   :  { %10167 = vmatmul.mubr.bf16.vlgmr.msra.gmra.mxu0 %v8128_v53 }
 0x49c   :  { %10143 = vmatpush3.bf16.msra.mxu1 %v11259_v1 }
 0x49d   :  { %10144 = vmatprep.subr.bf16.mxu1 %v16307_v18 }
 0x4a0   :  { %10145 = vmatpush3.bf16.msra.mxu1 %v11260_v3 }
 0x4a1   :  { %10170 = vmatprep.subr.bf16.mxu1 %v16307_v18 }
 0x4a3   :  { %10147 = vmatmul.mubr.bf16.vlgmr.msra.gmra.mxu1 %v8127_v14 }
 0x4a4   :  { %10186 = vmatprep.mubr.msk.bf16.mxu1 %vm11295_vm0, %v16307_v18  ;;  %10171 = vmatpush3.bf16.msra.mxu1 %v11261_v54 }
 0x4a5   :  { %10172 = vmatprep.subr.bf16.mxu1 %v16307_v18 }
 0x4a8   :  { %10173 = vmatpush3.bf16.msra.mxu1 %v11262_v57 }
 0x4a9   :  { %10174 = vmatprep.subr.bf16.mxu1 %v16307_v18 }
 0x4ac   :  { %10175 = vmatpush3.bf16.msra.mxu1 %v11263_v29 }
 0x4ad   :  { %10176 = vmatprep.subr.bf16.mxu1 %v16307_v18 }
 0x4b0   :  { %10177 = vmatpush3.bf16.msra.mxu1 %v11264_v32 }
 0x4b1   :  { %10178 = vmatprep.subr.bf16.mxu1 %v16307_v18 }
 0x4b4   :  { %10179 = vmatpush3.bf16.msra.mxu1 %v11265_v50 }
 0x4b5   :  { %10180 = vmatprep.subr.bf16.mxu1 %v16307_v18 }
 0x4b8   :  { %10181 = vmatpush3.bf16.msra.mxu1 %v11266_v34 }
 0x4b9   :  { %10182 = vmatprep.subr.bf16.mxu1 %v16307_v18 }
 0x4bc   :  { %10183 = vmatpush3.bf16.msra.mxu1 %v11267_v51 }
 0x4bd   :  { %10184 = vmatprep.subr.bf16.mxu1 %v16307_v18  ;;  %v9987_v18 = vld [vmem:[%s15708_s6] ss:$0 sm:$0xff] }
 0x4c0   :  { %10185 = vmatpush3.bf16.msra.mxu1 %v11268_v21 }
 0x53b   :  { %v8333_v43 = vpop.f32.mrf.mxu0 }
 0x53d   :  { %v10128_v33 = vpop.f32.mrf.mxu0 }
 0x53f   :  { %v8336_v10 = vpop.f32.mrf.mxu0 }
 0x541   :  { %v10129_v59 = vpop.f32.mrf.mxu0 }
 0x543   :  { %v8244_v26 = vpop.f32.mrf.mxu1 }
 0x544   :  { %v8334_v13 = vadd.f32 %v8333_v43, %v8244_v26 }
 0x545   :  { %v10108_v39 = vpop.f32.mrf.mxu1 }
 0x547   :  { %v8247_v37 = vpop.f32.mrf.mxu1 }
 0x548   :  { %v8337_v8 = vadd.f32 %v8336_v10, %v8247_v37 }
 0x549   :  { %v10109_v63 = vpop.f32.mrf.mxu1 }
 0x55b   :  { %v8547_v17 = vpop.f32.mrf.mxu0 }
 0x55d   :  { %v10168_v27 = vpop.f32.mrf.mxu0 }
 0x55f   :  { %v8550_v19 = vpop.f32.mrf.mxu0 }
 0x561   :  { %v10169_v48 = vpop.f32.mrf.mxu0 }
 0x563   :  { %v8439_v47 = vpop.f32.mrf.mxu1 }
 0x564   :  { %v8446_v2 = vadd.f32 %v8439_v47, %v8334_v13 }
 0x565   :  { %v10148_v35 = vpop.f32.mrf.mxu1 }
 0x566   :  { %v8554_v25 = vadd.f32 %v8547_v17, %v8446_v2 }
 0x567   :  { %v8442_v20 = vpop.f32.mrf.mxu1 }
 0x568   :  { %v8447_v42 = vadd.f32 %v8442_v20, %v8337_v8  ;;  %v8563_v44 = vadd.f32 %v9987_v18, %v8554_v25 }
 0x569   :  { %v10149_v38 = vpop.f32.mrf.mxu1 }
 0x56a   :  { %v8555_v46 = vadd.f32 %v8550_v19, %v8447_v42  ;;  %v8565_v28 = vmax.f32 %v8563_v44, 0.0 }
 0x56c   :  { %v8564_v16 = vadd.f32 %v9987_v18, %v8555_v46 }
 0x56e   :  { %v8566_v6 = vmax.f32 %v8564_v16, 0.0 }
 0x570   :  { %v8567_v5 = vpack.c.bf16 %v8566_v6, %v8565_v28 }
 0x572   :  { %10187 = vmatmul.mubr.bf16.vlgmr.msra.gmra.mxu1 %v8567_v5 }
 0x632   :  { %v8673_v40 = vpop.f32.mrf.mxu1 }
 0x633   :  { %v8674_v62 = vadd.f32 %v9988_v30, %v8673_v40 }
 0x634   :  { %v10188_v22 = vpop.f32.mrf.mxu1 }
 0x635   :  { %8680 = vmax.xlane.f32.xlu0 %v8674_v62 }
 0x636   :  { %v8676_v55 = vpop.f32.mrf.mxu1 }
 0x637   :  { %v8677_v45 = vadd.f32 %v9988_v30, %v8676_v55 }
 0x638   :  { %v10189_v7 = vpop.f32.mrf.mxu1 }
 0x639   :  { %8682 = vmax.xlane.f32.xlu0 %v8677_v45 }
 0x6be   :  { %v8681_v12 = vpop.xlane.xlu0 %8680 }
 0x6bf   :  { %v8684_v52 = vsub.f32 %v8674_v62, %v8681_v12 }
 0x6c1   :  { %v8686_v36 = vmul.f32 1.442695, %v8684_v52 }
 0x6c2   :  { %v8683_v4 = vpop.xlane.xlu0 %8682 }
 0x6c3   :  { %v8685_v14 = vsub.f32 %v8677_v45, %v8683_v4  ;;  %11269 = vpow2.f32 %v8686_v36 }
 0x6c5   :  { %v8688_v23 = vmul.f32 1.442695, %v8685_v14 }
 0x6c7   :  { %11271 = vpow2.f32 %v8688_v23 }
 0x6d0   :  { %v11270_v60 = vpop.eup %11269 }
 0x6d1   :  { %8690 = vadd.xlane.f32.xlu1 %v11270_v60 }
 0x6d4   :  { %v11272_v0 = vpop.eup %11271 }
 0x6d5   :  { %8692 = vadd.xlane.f32.xlu1 %v11272_v0 }
 0x75a   :  { %v8691_v31 = vpop.xlane.xlu1 %8690 }
 0x75b   :  { %11273 = vlog2.f32 %v8691_v31 }
 0x75e   :  { %v8693_v56 = vpop.xlane.xlu1 %8692 }
 0x75f   :  { %11275 = vlog2.f32 %v8693_v56 }
 0x768   :  { %v11274_v41 = vpop.eup %11273 }
 0x769   :  { %v8695_v61 = vmul.f32 0.6931472, %v11274_v41 }
 0x76b   :  { %v8698_v49 = vsub.f32 %v8684_v52, %v8695_v61 }
 0x76c   :  { %v11276_v9 = vpop.eup %11275 }
 0x76d   :  { %8700 = vst [vmem:[%s15710_s9] sm:$0xff] %v8698_v49  ;;  %v8697_v11 = vmul.f32 0.6931472, %v11276_v9 }
 0x76f   :  { %v8699_v15 = vsub.f32 %v8685_v14, %v8697_v11 }
 0x771   :  { %8701 = vst [vmem:[%s15710_s9 + $0x8] sm:$0xff] %v8699_v15 }

</bundles_post_ra>
